<compile_context>
chip_gen: v7x
topology: tpu7x:2x2x1
jax: 0.10.0
libtpu: 0.0.40
codegen_flags: <defaults>
</compile_context>

<pallas_src>
import functools

import jax
import jax.numpy as jnp
import numpy as np
from jax.experimental import pallas as pl
from jax.experimental.pallas import tpu as pltpu


# ----------------------------------------------------------------------------
# Fused multi-layer GRU recurrence kernel
# ----------------------------------------------------------------------------
def _make_fused_gru_kernel(L, B, H, chunk):
    """Gate column order: layer 0 gates [r|z|n] (3H);
    upper layers [r|z|n_x|n_h] (4H)."""

    def kernel(*refs):
        if L > 1:
            (emb_ref, wih0_ref, bx0_ref, whh0_ref, bhn0_ref,
             w4_ref, b4_ref, y_ref, hN_ref, h_scr) = refs
        else:
            (emb_ref, wih0_ref, bx0_ref, whh0_ref, bhn0_ref,
             y_ref, hN_ref, h_scr) = refs
            w4_ref = b4_ref = None

        step = pl.program_id(0)
        cdt = whh0_ref.dtype               # matmul compute dtype (f32 or bf16)

        @pl.when(step == 0)
        def _():
            h_scr[...] = jnp.zeros_like(h_scr)

        # ---- Layer-0 input projection for the whole chunk: ONE big GEMM.
        # emb block is (chunk*B, E); rows fill the MXU far better than B=8.
        gx0_all = jnp.dot(emb_ref[...], wih0_ref[...],
                          preferred_element_type=jnp.float32)      # (chunk*B, 3H)
        gx0_all = gx0_all + bx0_ref[...]   # b_ir+b_hr | b_iz+b_hz | b_in, once/chunk

        # ---- Hoisted bias broadcasts (outside the unrolled tt loop).
        bhn0 = jnp.broadcast_to(bhn0_ref[...], (B, H))
        if L > 1:
            b4_bc = [jnp.broadcast_to(b4_ref[l], (B, 4 * H)) for l in range(L - 1)]

        # Per-layer hidden states carried in locals across the chunk
        # (VMEM scratch touched only at chunk boundaries).
        hs = [h_scr[l] for l in range(L)]

        for tt in range(chunk):            # unrolled timestep loop
            # -- layer 0: precomputed input gates + one fused hidden matmul.
            gx = gx0_all[tt * B:(tt + 1) * B, :]        # (B, 3H) static slice
            h = hs[0]
            gh = jnp.dot(h.astype(cdt), whh0_ref[...],
                         preferred_element_type=jnp.float32)        # (B, 3H)
            r = jax.nn.sigmoid(gx[:, 0:H] + gh[:, 0:H])
            z = jax.nn.sigmoid(gx[:, H:2 * H] + gh[:, H:2 * H])
            n = jnp.tanh(gx[:, 2 * H:] + r * (gh[:, 2 * H:] + bhn0))
            h = (1.0 - z) * n + z * h                   # f32 carry
            hs[0] = h
            x_below = h

            # -- upper layers: ONE fused [x, h] @ (2H, 4H) matmul per layer.
            for l in range(1, L):
                h = hs[l]
                xh = jnp.concatenate([x_below, h], axis=1).astype(cdt)  # (B, 2H)
                g = jnp.dot(xh, w4_ref[l - 1],
                            preferred_element_type=jnp.float32)         # (B, 4H)
                g = g + b4_bc[l - 1]
                r = jax.nn.sigmoid(g[:, 0:H])
                z = jax.nn.sigmoid(g[:, H:2 * H])
                n = jnp.tanh(g[:, 2 * H:3 * H] + r * g[:, 3 * H:4 * H])
                h = (1.0 - z) * n + z * h
                hs[l] = h
                x_below = h

            # Lane-dense (B, H) slab write at a static sublane-aligned offset.
            y_ref[tt * B:(tt + 1) * B, :] = x_below.astype(y_ref.dtype)

        for l in range(L):
            h_scr[l] = hs[l]

        @pl.when(step == pl.num_programs(0) - 1)
        def _():
            for l in range(L):
                hN_ref[l] = hs[l].astype(hN_ref.dtype)

    return kernel


def _vmem_limit_bytes(E, H, L, B, chunk, w_itemsize):
    """Resident weights + double-buffered streamed blocks + scratch, ~25% slack."""
    f32 = 4
    resident = w_itemsize * (E * 3 * H + H * 3 * H) + f32 * (3 * H + H)
    if L > 1:
        resident += (L - 1) * (w_itemsize * 2 * H * 4 * H + f32 * 4 * H)
    streamed = chunk * B * (E * w_itemsize + H * f32)      # emb block + y block
    hn_out = L * B * H * f32
    scratch = L * B * H * f32
    est = 2 * (resident + streamed + hn_out) + scratch     # default double-buffering
    est = int(est * 1.25) + (4 << 20)
    return max(32 << 20, min(est, 64 << 20))


def _fused_gru_pallas(emb_flat, wih0, bx0, whh0, bhn0, w4, b4,
                      *, T, B, E, H, L, chunk, cdt):
    kernel = _make_fused_gru_kernel(L, B, H, chunk)

    in_specs = [
        pl.BlockSpec((chunk * B, E), lambda s: (s, 0)),      # streamed emb block
        pl.BlockSpec((E, 3 * H), lambda s: (0, 0)),          # resident W_ih_0
        pl.BlockSpec((1, 3 * H), lambda s: (0, 0)),          # resident bx0
        pl.BlockSpec((H, 3 * H), lambda s: (0, 0)),          # resident W_hh_0
        pl.BlockSpec((1, H), lambda s: (0, 0)),              # resident b_hn_0
    ]
    inputs = [emb_flat, wih0, bx0, whh0, bhn0]
    if L > 1:
        in_specs += [
            pl.BlockSpec((L - 1, 2 * H, 4 * H), lambda s: (0, 0, 0)),  # resident
            pl.BlockSpec((L - 1, 1, 4 * H), lambda s: (0, 0, 0)),      # resident
        ]
        inputs += [w4, b4]

    y, hN = pl.pallas_call(
        kernel,
        out_shape=(
            jax.ShapeDtypeStruct((T * B, H), jnp.float32),
            jax.ShapeDtypeStruct((L, B, H), jnp.float32),
        ),
        grid_spec=pltpu.PrefetchScalarGridSpec(
            num_scalar_prefetch=0,
            grid=(T // chunk,),
            in_specs=in_specs,
            out_specs=[
                pl.BlockSpec((chunk * B, H), lambda s: (s, 0)),  # per-chunk y
                pl.BlockSpec((L, B, H), lambda s: (0, 0, 0)),    # final hidden
            ],
            scratch_shapes=[pltpu.VMEM((L, B, H), jnp.float32)],  # carried h
        ),
        compiler_params=pltpu.CompilerParams(
            dimension_semantics=("arbitrary",),        # serial recurrence over T
            vmem_limit_bytes=_vmem_limit_bytes(
                E, H, L, B, chunk, jnp.dtype(cdt).itemsize),
        ),
    )(*inputs)
    return y, hN


# ----------------------------------------------------------------------------
# Host-side weight/bias fusion helpers
# ----------------------------------------------------------------------------
def _combine_input_bias(b_ih, b_hh, H):
    # b_hr / b_hz add inside the sigmoid -> fold into the input-side bias.
    # b_hn must stay with the hidden matmul (multiplied by r).
    return jnp.concatenate([
        b_ih[0:H] + b_hh[0:H],
        b_ih[H:2 * H] + b_hh[H:2 * H],
        b_ih[2 * H:3 * H],
    ])


def _stack_upper_weight(w_ih, w_hh, H):
    # (2H, 4H) = [[W_ir W_iz W_in  0 ],
    #             [W_hr W_hz  0  W_hn]]  -> exact PyTorch n-gate with one dot.
    zeros = jnp.zeros((H, H), w_ih.dtype)
    top = jnp.concatenate([w_ih, zeros], axis=1)                               # (H, 4H)
    bot = jnp.concatenate([w_hh[:, 0:2 * H], zeros, w_hh[:, 2 * H:3 * H]], axis=1)
    return jnp.concatenate([top, bot], axis=0)                                 # (2H, 4H)


def _stack_upper_bias(b_ih, b_hh, H):
    # (4H,) = [b_ir+b_hr | b_iz+b_hz | b_in | b_hn]
    return jnp.concatenate([
        b_ih[0:H] + b_hh[0:H],
        b_ih[H:2 * H] + b_hh[H:2 * H],
        b_ih[2 * H:3 * H],
        b_hh[2 * H:3 * H],
    ])


def _pick_chunk(T, max_chunk=16):
    c = min(max_chunk, T)
    while T % c:
        c -= 1
    return c


# ----------------------------------------------------------------------------
# Seq2SeqEncoder forward
# ----------------------------------------------------------------------------
def seq2seq_encoder_forward(tokens, params, num_layers,
                            compute_dtype=jnp.float32, max_chunk=16):
    """tokens: (B, T) int32 -> (output (T, B, H), state (num_layers, B, H))."""
    cdt = compute_dtype
    B, T = tokens.shape
    E = params["embedding"].shape[1]
    H = params["w_hh_0"].shape[0]
    L = num_layers
    assert B % 8 == 0, "batch must be a multiple of 8 (f32 sublane tile)"
    # H % 128 == 0 keeps the r/z/n gate slices lane-aligned (perf, not required).

    # Embedding gather + time-major flatten (XLA glue): (T*B, E) lane-dense stream.
    emb_t = params["embedding"][jnp.swapaxes(tokens, 0, 1)]        # (T, B, E)
    emb_flat = emb_t.reshape(T * B, E).astype(cdt)

    # Layer-0 weights / fused biases.
    wih0 = params["w_ih_0"].astype(cdt)                            # (E, 3H)
    bx0 = _combine_input_bias(params["b_ih_0"], params["b_hh_0"], H)[None, :]
    whh0 = params["w_hh_0"].astype(cdt)                            # (H, 3H)
    bhn0 = params["b_hh_0"][2 * H:3 * H][None, :]                  # (1, H)

    w4 = b4 = None
    if L > 1:
        w4 = jnp.stack([
            _stack_upper_weight(params[f"w_ih_{l}"], params[f"w_hh_{l}"], H)
            for l in range(1, L)]).astype(cdt)                     # (L-1, 2H, 4H)
        b4 = jnp.stack([
            _stack_upper_bias(params[f"b_ih_{l}"], params[f"b_hh_{l}"], H)[None, :]
            for l in range(1, L)])                                 # (L-1, 1, 4H)

    chunk = _pick_chunk(T, max_chunk)
    y_flat, state = _fused_gru_pallas(emb_flat, wih0, bx0, whh0, bhn0, w4, b4,
                                      T=T, B=B, E=E, H=H, L=L, chunk=chunk,
                                      cdt=cdt)
    return y_flat.reshape(T, B, H), state


# ----------------------------------------------------------------------------
# Pure-JAX reference (lax.scan), PyTorch nn.GRU semantics
# ----------------------------------------------------------------------------
def seq2seq_encoder_ref(tokens, params, num_layers, compute_dtype=jnp.float32):
    cdt = compute_dtype
    emb = params["embedding"][tokens]            # (B, T, E)
    x = jnp.transpose(emb, (1, 0, 2))            # (T, B, E)
    H = params["w_hh_0"].shape[0]
    B = x.shape[1]
    states = []
    for l in range(num_layers):
        w_ih = params[f"w_ih_{l}"].astype(cdt)
        w_hh = params[f"w_hh_{l}"].astype(cdt)
        b_ih = params[f"b_ih_{l}"]
        b_hh = params[f"b_hh_{l}"]

        def step(h, xt, w_ih=w_ih, w_hh=w_hh, b_ih=b_ih, b_hh=b_hh):
            gx = jnp.dot(xt.astype(cdt), w_ih,
                         preferred_element_type=jnp.float32) + b_ih
            gh = jnp.dot(h.astype(cdt), w_hh,
                         preferred_element_type=jnp.float32) + b_hh
            r = jax.nn.sigmoid(gx[:, 0:H] + gh[:, 0:H])
            z = jax.nn.sigmoid(gx[:, H:2 * H] + gh[:, H:2 * H])
            n = jnp.tanh(gx[:, 2 * H:] + r * gh[:, 2 * H:])
            h_new = (1.0 - z) * n + z * h
            return h_new, h_new

        h0 = jnp.zeros((B, H), jnp.float32)
        hN, x = jax.lax.scan(step, h0, x)
        states.append(hN)
    return x, jnp.stack(states, axis=0)


# ----------------------------------------------------------------------------
# Deterministic parameter init (nn.Embedding / nn.GRU shapes, stored
# pre-transposed & gate-fused: W: (d_in, 3H), b: (3H,); gate order r, z, n)
# ----------------------------------------------------------------------------
def init_params(key, vocab_size, embed_size, num_hiddens, num_layers):
    params = {}
    key, ek = jax.random.split(key)
    params["embedding"] = jax.random.normal(ek, (vocab_size, embed_size),
                                            jnp.float32)
    bound = 1.0 / np.sqrt(num_hiddens)
    for l in range(num_layers):
        d_in = embed_size if l == 0 else num_hiddens
        key, k1, k2, k3, k4 = jax.random.split(key, 5)
        params[f"w_ih_{l}"] = jax.random.uniform(
            k1, (d_in, 3 * num_hiddens), jnp.float32, -bound, bound)
        params[f"w_hh_{l}"] = jax.random.uniform(
            k2, (num_hiddens, 3 * num_hiddens), jnp.float32, -bound, bound)
        params[f"b_ih_{l}"] = jax.random.uniform(
            k3, (3 * num_hiddens,), jnp.float32, -bound, bound)
        params[f"b_hh_{l}"] = jax.random.uniform(
            k4, (3 * num_hiddens,), jnp.float32, -bound, bound)
    return params


# ----------------------------------------------------------------------------
if __name__ == "__main__":
    # Small, sublane/lane-aligned demo: B=8 (f32 sublanes), H=128 (lanes).
    # (Real workloads should push B toward 128/256 rows to fill the MXU.)
    vocab_size, embed_size, num_hiddens, num_layers = 50, 32, 128, 2
    batch, seq_len = 8, 32
    # dropout=0 (PyTorch applies dropout only between layers; 0 == identity)

    key = jax.random.PRNGKey(0)
    key, pk, tk = jax.random.split(key, 3)
    params = init_params(pk, vocab_size, embed_size, num_hiddens, num_layers)
    tokens = jax.random.randint(tk, (batch, seq_len), 0, vocab_size, jnp.int32)

    # float32 path: exact PyTorch semantics.  (compute_dtype=jnp.bfloat16 is
    # available for v6e/v7x MXU peak but is intentionally not exercised here —
    # some backends lack BF16xBF16=F32 dot support.)
    fwd = jax.jit(functools.partial(
        seq2seq_encoder_forward, num_layers=num_layers,
        compute_dtype=jnp.float32))
    out, state = fwd(tokens, params)
    jax.block_until_ready((out, state))

    ref_o, ref_s = seq2seq_encoder_ref(tokens, params, num_layers, jnp.float32)
    assert out.shape == (seq_len, batch, num_hiddens)
    assert state.shape == (num_layers, batch, num_hiddens)
    np.testing.assert_allclose(np.asarray(out), np.asarray(ref_o),
                               rtol=1e-4, atol=1e-4)
    np.testing.assert_allclose(np.asarray(state), np.asarray(ref_s),
                               rtol=1e-4, atol=1e-4)

    print("KERNEL_OK")
</pallas_src>

<mosaic_0001>
module attributes {stable_mosaic.version = 11 : i64} {
  func.func @kernel(%arg0: i32, %arg1: memref<128x32xf32, #tpu.memory_space<vmem>>, %arg2: memref<32x384xf32, #tpu.memory_space<vmem>>, %arg3: memref<1x384xf32, #tpu.memory_space<vmem>>, %arg4: memref<128x384xf32, #tpu.memory_space<vmem>>, %arg5: memref<1x128xf32, #tpu.memory_space<vmem>>, %arg6: memref<1x256x512xf32, #tpu.memory_space<vmem>>, %arg7: memref<1x1x512xf32, #tpu.memory_space<vmem>>, %arg8: memref<128x128xf32, #tpu.memory_space<vmem>>, %arg9: memref<2x8x128xf32, #tpu.memory_space<vmem>>, %arg10: memref<2x8x128xf32, #tpu.memory_space<vmem>>) attributes {dimension_semantics = [#tpu.dimension_semantics<arbitrary>], iteration_bounds = array<i64: 2>, scalar_prefetch = 0 : i64, scratch_operands = 1 : i64, tpu.core_type = #tpu.core_type<tc>, window_params = [{transform_indices = @transform_0, window_bounds = array<i64: 128, 32>}, {pipeline_mode = #tpu.pipeline_mode<synchronous>, transform_indices = @transform_1, window_bounds = array<i64: 32, 384>}, {pipeline_mode = #tpu.pipeline_mode<synchronous>, transform_indices = @transform_2, window_bounds = array<i64: 1, 384>}, {pipeline_mode = #tpu.pipeline_mode<synchronous>, transform_indices = @transform_3, window_bounds = array<i64: 128, 384>}, {pipeline_mode = #tpu.pipeline_mode<synchronous>, transform_indices = @transform_4, window_bounds = array<i64: 1, 128>}, {pipeline_mode = #tpu.pipeline_mode<synchronous>, transform_indices = @transform_5, window_bounds = array<i64: 1, 256, 512>}, {pipeline_mode = #tpu.pipeline_mode<synchronous>, transform_indices = @transform_6, window_bounds = array<i64: 1, 1, 512>}, {transform_indices = @transform_7, window_bounds = array<i64: 128, 128>}, {pipeline_mode = #tpu.pipeline_mode<synchronous>, transform_indices = @transform_8, window_bounds = array<i64: 2, 8, 128>}]} {
    %c0_i32 = arith.constant 0 : i32
    %0 = arith.cmpi eq, %arg0, %c0_i32 : i32
    %1 = arith.extui %0 : i1 to i32
    %c0_i32_0 = arith.constant 0 : i32
    %2 = arith.cmpi ne, %1, %c0_i32_0 : i32
    scf.if %2 {
      %cst_248 = arith.constant 0.000000e+00 : f32
      %957 = vector.broadcast %cst_248 : f32 to vector<2x8x128xf32>
      %c0_249 = arith.constant 0 : index
      %c0_250 = arith.constant 0 : index
      %c0_251 = arith.constant 0 : index
      %958 = vector.load %arg10[%c0_249, %c0_250, %c0_251] : memref<2x8x128xf32, #tpu.memory_space<vmem>>, vector<2x8x128xf32>
      tpu.vector_store %arg10[%c0_249, %c0_250, %c0_251], %957 {strides = array<i32>} : memref<2x8x128xf32, #tpu.memory_space<vmem>>, vector<2x8x128xf32>,
    } else {
    }
    %c0 = arith.constant 0 : index
    %c0_1 = arith.constant 0 : index
    %3 = vector.load %arg1[%c0, %c0_1] : memref<128x32xf32, #tpu.memory_space<vmem>>, vector<128x32xf32>
    %c0_2 = arith.constant 0 : index
    %c0_3 = arith.constant 0 : index
    %4 = vector.load %arg2[%c0_2, %c0_3] : memref<32x384xf32, #tpu.memory_space<vmem>>, vector<32x384xf32>
    %cst = arith.constant dense<0.000000e+00> : vector<128x384xf32>
    %5 = tpu.matmul %3, %4, %cst {dimension_numbers = #tpu.dot_dimension_numbers<[1], [0], [0], [1], [0, 0, 1, 1], [], []>} : vector<128x32xf32>, vector<32x384xf32>, vector<128x384xf32> -> vector<128x384xf32>
    %c0_4 = arith.constant 0 : index
    %c0_5 = arith.constant 0 : index
    %6 = vector.load %arg3[%c0_4, %c0_5] : memref<1x384xf32, #tpu.memory_space<vmem>>, vector<1x384xf32>
    %7 = vector.broadcast %6 : vector<1x384xf32> to vector<128x384xf32>
    %8 = arith.addf %5, %7 : vector<128x384xf32>
    %c0_6 = arith.constant 0 : index
    %c0_7 = arith.constant 0 : index
    %9 = vector.load %arg5[%c0_6, %c0_7] : memref<1x128xf32, #tpu.memory_space<vmem>>, vector<1x128xf32>
    %10 = vector.shape_cast %9 : vector<1x128xf32> to vector<1x128xf32>
    %11 = vector.broadcast %10 : vector<1x128xf32> to vector<8x128xf32>
    %c0_8 = arith.constant 0 : index
    %c0_9 = arith.constant 0 : index
    %c0_10 = arith.constant 0 : index
    %12 = vector.load %arg7[%c0_8, %c0_9, %c0_10] : memref<1x1x512xf32, #tpu.memory_space<vmem>>, vector<1x1x512xf32>
    %13 = vector.shape_cast %12 : vector<1x1x512xf32> to vector<1x512xf32>
    %14 = vector.shape_cast %13 : vector<1x512xf32> to vector<1x512xf32>
    %15 = vector.broadcast %14 : vector<1x512xf32> to vector<8x512xf32>
    %c0_11 = arith.constant 0 : index
    %c0_12 = arith.constant 0 : index
    %c0_13 = arith.constant 0 : index
    %16 = vector.load %arg10[%c0_11, %c0_12, %c0_13] : memref<2x8x128xf32, #tpu.memory_space<vmem>>, vector<1x8x128xf32>
    %17 = vector.shape_cast %16 : vector<1x8x128xf32> to vector<8x128xf32>
    %c1 = arith.constant 1 : index
    %c0_14 = arith.constant 0 : index
    %c0_15 = arith.constant 0 : index
    %18 = vector.load %arg10[%c1, %c0_14, %c0_15] : memref<2x8x128xf32, #tpu.memory_space<vmem>>, vector<1x8x128xf32>
    %19 = vector.shape_cast %18 : vector<1x8x128xf32> to vector<8x128xf32>
    %20 = vector.extract_strided_slice %8 {offsets = [0, 0], sizes = [8, 384], strides = [1, 1]} : vector<128x384xf32> to vector<8x384xf32>
    %c0_16 = arith.constant 0 : index
    %c0_17 = arith.constant 0 : index
    %21 = vector.load %arg4[%c0_16, %c0_17] : memref<128x384xf32, #tpu.memory_space<vmem>>, vector<128x384xf32>
    %cst_18 = arith.constant dense<0.000000e+00> : vector<8x384xf32>
    %22 = tpu.matmul %17, %21, %cst_18 {dimension_numbers = #tpu.dot_dimension_numbers<[1], [0], [0], [1], [0, 0, 1, 1], [], []>} : vector<8x128xf32>, vector<128x384xf32>, vector<8x384xf32> -> vector<8x384xf32>
    %23 = vector.extract_strided_slice %20 {offsets = [0, 0], sizes = [8, 128], strides = [1, 1]} : vector<8x384xf32> to vector<8x128xf32>
    %24 = vector.extract_strided_slice %22 {offsets = [0, 0], sizes = [8, 128], strides = [1, 1]} : vector<8x384xf32> to vector<8x128xf32>
    %25 = arith.addf %23, %24 : vector<8x128xf32>
    %26 = arith.negf %25 : vector<8x128xf32>
    %27 = math.exp %26 : vector<8x128xf32>
    %cst_19 = arith.constant 1.000000e+00 : f32
    %28 = vector.broadcast %cst_19 : f32 to vector<8x128xf32>
    %29 = arith.addf %28, %27 : vector<8x128xf32>
    %30 = arith.divf %28, %29 : vector<8x128xf32>
    %31 = vector.extract_strided_slice %20 {offsets = [0, 128], sizes = [8, 128], strides = [1, 1]} : vector<8x384xf32> to vector<8x128xf32>
    %32 = vector.extract_strided_slice %22 {offsets = [0, 128], sizes = [8, 128], strides = [1, 1]} : vector<8x384xf32> to vector<8x128xf32>
    %33 = arith.addf %31, %32 : vector<8x128xf32>
    %34 = arith.negf %33 : vector<8x128xf32>
    %35 = math.exp %34 : vector<8x128xf32>
    %cst_20 = arith.constant 1.000000e+00 : f32
    %36 = vector.broadcast %cst_20 : f32 to vector<8x128xf32>
    %37 = arith.addf %36, %35 : vector<8x128xf32>
    %38 = arith.divf %36, %37 : vector<8x128xf32>
    %39 = vector.extract_strided_slice %20 {offsets = [0, 256], sizes = [8, 128], strides = [1, 1]} : vector<8x384xf32> to vector<8x128xf32>
    %40 = vector.extract_strided_slice %22 {offsets = [0, 256], sizes = [8, 128], strides = [1, 1]} : vector<8x384xf32> to vector<8x128xf32>
    %41 = arith.addf %40, %11 : vector<8x128xf32>
    %42 = arith.mulf %30, %41 : vector<8x128xf32>
    %43 = arith.addf %39, %42 : vector<8x128xf32>
    %44 = math.tanh %43 : vector<8x128xf32>
    %cst_21 = arith.constant 1.000000e+00 : f32
    %45 = vector.broadcast %cst_21 : f32 to vector<8x128xf32>
    %46 = arith.subf %45, %38 : vector<8x128xf32>
    %47 = arith.mulf %46, %44 : vector<8x128xf32>
    %48 = arith.mulf %38, %17 : vector<8x128xf32>
    %49 = arith.addf %47, %48 : vector<8x128xf32>
    %50 = tpu.concatenate %49, %19 in 1 : vector<8x128xf32>, vector<8x128xf32> -> vector<8x256xf32>
    %c0_22 = arith.constant 0 : index
    %c0_23 = arith.constant 0 : index
    %c0_24 = arith.constant 0 : index
    %51 = vector.load %arg6[%c0_22, %c0_23, %c0_24] : memref<1x256x512xf32, #tpu.memory_space<vmem>>, vector<1x256x512xf32>
    %52 = vector.shape_cast %51 : vector<1x256x512xf32> to vector<256x512xf32>
    %cst_25 = arith.constant dense<0.000000e+00> : vector<8x512xf32>
    %53 = tpu.matmul %50, %52, %cst_25 {dimension_numbers = #tpu.dot_dimension_numbers<[1], [0], [0], [1], [0, 0, 1, 1], [], []>} : vector<8x256xf32>, vector<256x512xf32>, vector<8x512xf32> -> vector<8x512xf32>
    %54 = arith.addf %53, %15 : vector<8x512xf32>
    %55 = vector.extract_strided_slice %54 {offsets = [0, 0], sizes = [8, 128], strides = [1, 1]} : vector<8x512xf32> to vector<8x128xf32>
    %56 = arith.negf %55 : vector<8x128xf32>
    %57 = math.exp %56 : vector<8x128xf32>
    %cst_26 = arith.constant 1.000000e+00 : f32
    %58 = vector.broadcast %cst_26 : f32 to vector<8x128xf32>
    %59 = arith.addf %58, %57 : vector<8x128xf32>
    %60 = arith.divf %58, %59 : vector<8x128xf32>
    %61 = vector.extract_strided_slice %54 {offsets = [0, 128], sizes = [8, 128], strides = [1, 1]} : vector<8x512xf32> to vector<8x128xf32>
    %62 = arith.negf %61 : vector<8x128xf32>
    %63 = math.exp %62 : vector<8x128xf32>
    %cst_27 = arith.constant 1.000000e+00 : f32
    %64 = vector.broadcast %cst_27 : f32 to vector<8x128xf32>
    %65 = arith.addf %64, %63 : vector<8x128xf32>
    %66 = arith.divf %64, %65 : vector<8x128xf32>
    %67 = vector.extract_strided_slice %54 {offsets = [0, 256], sizes = [8, 128], strides = [1, 1]} : vector<8x512xf32> to vector<8x128xf32>
    %68 = vector.extract_strided_slice %54 {offsets = [0, 384], sizes = [8, 128], strides = [1, 1]} : vector<8x512xf32> to vector<8x128xf32>
    %69 = arith.mulf %60, %68 : vector<8x128xf32>
    %70 = arith.addf %67, %69 : vector<8x128xf32>
    %71 = math.tanh %70 : vector<8x128xf32>
    %cst_28 = arith.constant 1.000000e+00 : f32
    %72 = vector.broadcast %cst_28 : f32 to vector<8x128xf32>
    %73 = arith.subf %72, %66 : vector<8x128xf32>
    %74 = arith.mulf %73, %71 : vector<8x128xf32>
    %75 = arith.mulf %66, %19 : vector<8x128xf32>
    %76 = arith.addf %74, %75 : vector<8x128xf32>
    %c0_29 = arith.constant 0 : index
    %c0_30 = arith.constant 0 : index
    %77 = vector.load %arg8[%c0_29, %c0_30] : memref<128x128xf32, #tpu.memory_space<vmem>>, vector<8x128xf32>
    tpu.vector_store %arg8[%c0_29, %c0_30], %76 {strides = array<i32>} : memref<128x128xf32, #tpu.memory_space<vmem>>, vector<8x128xf32>,
    %78 = vector.extract_strided_slice %8 {offsets = [8, 0], sizes = [8, 384], strides = [1, 1]} : vector<128x384xf32> to vector<8x384xf32>
    %c0_31 = arith.constant 0 : index
    %c0_32 = arith.constant 0 : index
    %79 = vector.load %arg4[%c0_31, %c0_32] : memref<128x384xf32, #tpu.memory_space<vmem>>, vector<128x384xf32>
    %cst_33 = arith.constant dense<0.000000e+00> : vector<8x384xf32>
    %80 = tpu.matmul %49, %79, %cst_33 {dimension_numbers = #tpu.dot_dimension_numbers<[1], [0], [0], [1], [0, 0, 1, 1], [], []>} : vector<8x128xf32>, vector<128x384xf32>, vector<8x384xf32> -> vector<8x384xf32>
    %81 = vector.extract_strided_slice %78 {offsets = [0, 0], sizes = [8, 128], strides = [1, 1]} : vector<8x384xf32> to vector<8x128xf32>
    %82 = vector.extract_strided_slice %80 {offsets = [0, 0], sizes = [8, 128], strides = [1, 1]} : vector<8x384xf32> to vector<8x128xf32>
    %83 = arith.addf %81, %82 : vector<8x128xf32>
    %84 = arith.negf %83 : vector<8x128xf32>
    %85 = math.exp %84 : vector<8x128xf32>
    %cst_34 = arith.constant 1.000000e+00 : f32
    %86 = vector.broadcast %cst_34 : f32 to vector<8x128xf32>
    %87 = arith.addf %86, %85 : vector<8x128xf32>
    %88 = arith.divf %86, %87 : vector<8x128xf32>
    %89 = vector.extract_strided_slice %78 {offsets = [0, 128], sizes = [8, 128], strides = [1, 1]} : vector<8x384xf32> to vector<8x128xf32>
    %90 = vector.extract_strided_slice %80 {offsets = [0, 128], sizes = [8, 128], strides = [1, 1]} : vector<8x384xf32> to vector<8x128xf32>
    %91 = arith.addf %89, %90 : vector<8x128xf32>
    %92 = arith.negf %91 : vector<8x128xf32>
    %93 = math.exp %92 : vector<8x128xf32>
    %cst_35 = arith.constant 1.000000e+00 : f32
    %94 = vector.broadcast %cst_35 : f32 to vector<8x128xf32>
    %95 = arith.addf %94, %93 : vector<8x128xf32>
    %96 = arith.divf %94, %95 : vector<8x128xf32>
    %97 = vector.extract_strided_slice %78 {offsets = [0, 256], sizes = [8, 128], strides = [1, 1]} : vector<8x384xf32> to vector<8x128xf32>
    %98 = vector.extract_strided_slice %80 {offsets = [0, 256], sizes = [8, 128], strides = [1, 1]} : vector<8x384xf32> to vector<8x128xf32>
    %99 = arith.addf %98, %11 : vector<8x128xf32>
    %100 = arith.mulf %88, %99 : vector<8x128xf32>
    %101 = arith.addf %97, %100 : vector<8x128xf32>
    %102 = math.tanh %101 : vector<8x128xf32>
    %cst_36 = arith.constant 1.000000e+00 : f32
    %103 = vector.broadcast %cst_36 : f32 to vector<8x128xf32>
    %104 = arith.subf %103, %96 : vector<8x128xf32>
    %105 = arith.mulf %104, %102 : vector<8x128xf32>
    %106 = arith.mulf %96, %49 : vector<8x128xf32>
    %107 = arith.addf %105, %106 : vector<8x128xf32>
    %108 = tpu.concatenate %107, %76 in 1 : vector<8x128xf32>, vector<8x128xf32> -> vector<8x256xf32>
    %c0_37 = arith.constant 0 : index
    %c0_38 = arith.constant 0 : index
    %c0_39 = arith.constant 0 : index
    %109 = vector.load %arg6[%c0_37, %c0_38, %c0_39] : memref<1x256x512xf32, #tpu.memory_space<vmem>>, vector<1x256x512xf32>
    %110 = vector.shape_cast %109 : vector<1x256x512xf32> to vector<256x512xf32>
    %cst_40 = arith.constant dense<0.000000e+00> : vector<8x512xf32>
    %111 = tpu.matmul %108, %110, %cst_40 {dimension_numbers = #tpu.dot_dimension_numbers<[1], [0], [0], [1], [0, 0, 1, 1], [], []>} : vector<8x256xf32>, vector<256x512xf32>, vector<8x512xf32> -> vector<8x512xf32>
    %112 = arith.addf %111, %15 : vector<8x512xf32>
    %113 = vector.extract_strided_slice %112 {offsets = [0, 0], sizes = [8, 128], strides = [1, 1]} : vector<8x512xf32> to vector<8x128xf32>
    %114 = arith.negf %113 : vector<8x128xf32>
    %115 = math.exp %114 : vector<8x128xf32>
    %cst_41 = arith.constant 1.000000e+00 : f32
    %116 = vector.broadcast %cst_41 : f32 to vector<8x128xf32>
    %117 = arith.addf %116, %115 : vector<8x128xf32>
    %118 = arith.divf %116, %117 : vector<8x128xf32>
    %119 = vector.extract_strided_slice %112 {offsets = [0, 128], sizes = [8, 128], strides = [1, 1]} : vector<8x512xf32> to vector<8x128xf32>
    %120 = arith.negf %119 : vector<8x128xf32>
    %121 = math.exp %120 : vector<8x128xf32>
    %cst_42 = arith.constant 1.000000e+00 : f32
    %122 = vector.broadcast %cst_42 : f32 to vector<8x128xf32>
    %123 = arith.addf %122, %121 : vector<8x128xf32>
    %124 = arith.divf %122, %123 : vector<8x128xf32>
    %125 = vector.extract_strided_slice %112 {offsets = [0, 256], sizes = [8, 128], strides = [1, 1]} : vector<8x512xf32> to vector<8x128xf32>
    %126 = vector.extract_strided_slice %112 {offsets = [0, 384], sizes = [8, 128], strides = [1, 1]} : vector<8x512xf32> to vector<8x128xf32>
    %127 = arith.mulf %118, %126 : vector<8x128xf32>
    %128 = arith.addf %125, %127 : vector<8x128xf32>
    %129 = math.tanh %128 : vector<8x128xf32>
    %cst_43 = arith.constant 1.000000e+00 : f32
    %130 = vector.broadcast %cst_43 : f32 to vector<8x128xf32>
    %131 = arith.subf %130, %124 : vector<8x128xf32>
    %132 = arith.mulf %131, %129 : vector<8x128xf32>
    %133 = arith.mulf %124, %76 : vector<8x128xf32>
    %134 = arith.addf %132, %133 : vector<8x128xf32>
    %c8 = arith.constant 8 : index
    %c0_44 = arith.constant 0 : index
    %135 = vector.load %arg8[%c8, %c0_44] : memref<128x128xf32, #tpu.memory_space<vmem>>, vector<8x128xf32>
    tpu.vector_store %arg8[%c8, %c0_44], %134 {strides = array<i32>} : memref<128x128xf32, #tpu.memory_space<vmem>>, vector<8x128xf32>,
    %136 = vector.extract_strided_slice %8 {offsets = [16, 0], sizes = [8, 384], strides = [1, 1]} : vector<128x384xf32> to vector<8x384xf32>
    %c0_45 = arith.constant 0 : index
    %c0_46 = arith.constant 0 : index
    %137 = vector.load %arg4[%c0_45, %c0_46] : memref<128x384xf32, #tpu.memory_space<vmem>>, vector<128x384xf32>
    %cst_47 = arith.constant dense<0.000000e+00> : vector<8x384xf32>
    %138 = tpu.matmul %107, %137, %cst_47 {dimension_numbers = #tpu.dot_dimension_numbers<[1], [0], [0], [1], [0, 0, 1, 1], [], []>} : vector<8x128xf32>, vector<128x384xf32>, vector<8x384xf32> -> vector<8x384xf32>
    %139 = vector.extract_strided_slice %136 {offsets = [0, 0], sizes = [8, 128], strides = [1, 1]} : vector<8x384xf32> to vector<8x128xf32>
    %140 = vector.extract_strided_slice %138 {offsets = [0, 0], sizes = [8, 128], strides = [1, 1]} : vector<8x384xf32> to vector<8x128xf32>
    %141 = arith.addf %139, %140 : vector<8x128xf32>
    %142 = arith.negf %141 : vector<8x128xf32>
    %143 = math.exp %142 : vector<8x128xf32>
    %cst_48 = arith.constant 1.000000e+00 : f32
    %144 = vector.broadcast %cst_48 : f32 to vector<8x128xf32>
    %145 = arith.addf %144, %143 : vector<8x128xf32>
    %146 = arith.divf %144, %145 : vector<8x128xf32>
    %147 = vector.extract_strided_slice %136 {offsets = [0, 128], sizes = [8, 128], strides = [1, 1]} : vector<8x384xf32> to vector<8x128xf32>
    %148 = vector.extract_strided_slice %138 {offsets = [0, 128], sizes = [8, 128], strides = [1, 1]} : vector<8x384xf32> to vector<8x128xf32>
    %149 = arith.addf %147, %148 : vector<8x128xf32>
    %150 = arith.negf %149 : vector<8x128xf32>
    %151 = math.exp %150 : vector<8x128xf32>
    %cst_49 = arith.constant 1.000000e+00 : f32
    %152 = vector.broadcast %cst_49 : f32 to vector<8x128xf32>
    %153 = arith.addf %152, %151 : vector<8x128xf32>
    %154 = arith.divf %152, %153 : vector<8x128xf32>
    %155 = vector.extract_strided_slice %136 {offsets = [0, 256], sizes = [8, 128], strides = [1, 1]} : vector<8x384xf32> to vector<8x128xf32>
    %156 = vector.extract_strided_slice %138 {offsets = [0, 256], sizes = [8, 128], strides = [1, 1]} : vector<8x384xf32> to vector<8x128xf32>
    %157 = arith.addf %156, %11 : vector<8x128xf32>
    %158 = arith.mulf %146, %157 : vector<8x128xf32>
    %159 = arith.addf %155, %158 : vector<8x128xf32>
    %160 = math.tanh %159 : vector<8x128xf32>
    %cst_50 = arith.constant 1.000000e+00 : f32
    %161 = vector.broadcast %cst_50 : f32 to vector<8x128xf32>
    %162 = arith.subf %161, %154 : vector<8x128xf32>
    %163 = arith.mulf %162, %160 : vector<8x128xf32>
    %164 = arith.mulf %154, %107 : vector<8x128xf32>
    %165 = arith.addf %163, %164 : vector<8x128xf32>
    %166 = tpu.concatenate %165, %134 in 1 : vector<8x128xf32>, vector<8x128xf32> -> vector<8x256xf32>
    %c0_51 = arith.constant 0 : index
    %c0_52 = arith.constant 0 : index
    %c0_53 = arith.constant 0 : index
    %167 = vector.load %arg6[%c0_51, %c0_52, %c0_53] : memref<1x256x512xf32, #tpu.memory_space<vmem>>, vector<1x256x512xf32>
    %168 = vector.shape_cast %167 : vector<1x256x512xf32> to vector<256x512xf32>
    %cst_54 = arith.constant dense<0.000000e+00> : vector<8x512xf32>
    %169 = tpu.matmul %166, %168, %cst_54 {dimension_numbers = #tpu.dot_dimension_numbers<[1], [0], [0], [1], [0, 0, 1, 1], [], []>} : vector<8x256xf32>, vector<256x512xf32>, vector<8x512xf32> -> vector<8x512xf32>
    %170 = arith.addf %169, %15 : vector<8x512xf32>
    %171 = vector.extract_strided_slice %170 {offsets = [0, 0], sizes = [8, 128], strides = [1, 1]} : vector<8x512xf32> to vector<8x128xf32>
    %172 = arith.negf %171 : vector<8x128xf32>
    %173 = math.exp %172 : vector<8x128xf32>
    %cst_55 = arith.constant 1.000000e+00 : f32
    %174 = vector.broadcast %cst_55 : f32 to vector<8x128xf32>
    %175 = arith.addf %174, %173 : vector<8x128xf32>
    %176 = arith.divf %174, %175 : vector<8x128xf32>
    %177 = vector.extract_strided_slice %170 {offsets = [0, 128], sizes = [8, 128], strides = [1, 1]} : vector<8x512xf32> to vector<8x128xf32>
    %178 = arith.negf %177 : vector<8x128xf32>
    %179 = math.exp %178 : vector<8x128xf32>
    %cst_56 = arith.constant 1.000000e+00 : f32
    %180 = vector.broadcast %cst_56 : f32 to vector<8x128xf32>
    %181 = arith.addf %180, %179 : vector<8x128xf32>
    %182 = arith.divf %180, %181 : vector<8x128xf32>
    %183 = vector.extract_strided_slice %170 {offsets = [0, 256], sizes = [8, 128], strides = [1, 1]} : vector<8x512xf32> to vector<8x128xf32>
    %184 = vector.extract_strided_slice %170 {offsets = [0, 384], sizes = [8, 128], strides = [1, 1]} : vector<8x512xf32> to vector<8x128xf32>
    %185 = arith.mulf %176, %184 : vector<8x128xf32>
    %186 = arith.addf %183, %185 : vector<8x128xf32>
    %187 = math.tanh %186 : vector<8x128xf32>
    %cst_57 = arith.constant 1.000000e+00 : f32
    %188 = vector.broadcast %cst_57 : f32 to vector<8x128xf32>
    %189 = arith.subf %188, %182 : vector<8x128xf32>
    %190 = arith.mulf %189, %187 : vector<8x128xf32>
    %191 = arith.mulf %182, %134 : vector<8x128xf32>
    %192 = arith.addf %190, %191 : vector<8x128xf32>
    %c16 = arith.constant 16 : index
    %c0_58 = arith.constant 0 : index
    %193 = vector.load %arg8[%c16, %c0_58] : memref<128x128xf32, #tpu.memory_space<vmem>>, vector<8x128xf32>
    tpu.vector_store %arg8[%c16, %c0_58], %192 {strides = array<i32>} : memref<128x128xf32, #tpu.memory_space<vmem>>, vector<8x128xf32>,
    %194 = vector.extract_strided_slice %8 {offsets = [24, 0], sizes = [8, 384], strides = [1, 1]} : vector<128x384xf32> to vector<8x384xf32>
    %c0_59 = arith.constant 0 : index
    %c0_60 = arith.constant 0 : index
    %195 = vector.load %arg4[%c0_59, %c0_60] : memref<128x384xf32, #tpu.memory_space<vmem>>, vector<128x384xf32>
    %cst_61 = arith.constant dense<0.000000e+00> : vector<8x384xf32>
    %196 = tpu.matmul %165, %195, %cst_61 {dimension_numbers = #tpu.dot_dimension_numbers<[1], [0], [0], [1], [0, 0, 1, 1], [], []>} : vector<8x128xf32>, vector<128x384xf32>, vector<8x384xf32> -> vector<8x384xf32>
    %197 = vector.extract_strided_slice %194 {offsets = [0, 0], sizes = [8, 128], strides = [1, 1]} : vector<8x384xf32> to vector<8x128xf32>
    %198 = vector.extract_strided_slice %196 {offsets = [0, 0], sizes = [8, 128], strides = [1, 1]} : vector<8x384xf32> to vector<8x128xf32>
    %199 = arith.addf %197, %198 : vector<8x128xf32>
    %200 = arith.negf %199 : vector<8x128xf32>
    %201 = math.exp %200 : vector<8x128xf32>
    %cst_62 = arith.constant 1.000000e+00 : f32
    %202 = vector.broadcast %cst_62 : f32 to vector<8x128xf32>
    %203 = arith.addf %202, %201 : vector<8x128xf32>
    %204 = arith.divf %202, %203 : vector<8x128xf32>
    %205 = vector.extract_strided_slice %194 {offsets = [0, 128], sizes = [8, 128], strides = [1, 1]} : vector<8x384xf32> to vector<8x128xf32>
    %206 = vector.extract_strided_slice %196 {offsets = [0, 128], sizes = [8, 128], strides = [1, 1]} : vector<8x384xf32> to vector<8x128xf32>
    %207 = arith.addf %205, %206 : vector<8x128xf32>
    %208 = arith.negf %207 : vector<8x128xf32>
    %209 = math.exp %208 : vector<8x128xf32>
    %cst_63 = arith.constant 1.000000e+00 : f32
    %210 = vector.broadcast %cst_63 : f32 to vector<8x128xf32>
    %211 = arith.addf %210, %209 : vector<8x128xf32>
    %212 = arith.divf %210, %211 : vector<8x128xf32>
    %213 = vector.extract_strided_slice %194 {offsets = [0, 256], sizes = [8, 128], strides = [1, 1]} : vector<8x384xf32> to vector<8x128xf32>
    %214 = vector.extract_strided_slice %196 {offsets = [0, 256], sizes = [8, 128], strides = [1, 1]} : vector<8x384xf32> to vector<8x128xf32>
    %215 = arith.addf %214, %11 : vector<8x128xf32>
    %216 = arith.mulf %204, %215 : vector<8x128xf32>
    %217 = arith.addf %213, %216 : vector<8x128xf32>
    %218 = math.tanh %217 : vector<8x128xf32>
    %cst_64 = arith.constant 1.000000e+00 : f32
    %219 = vector.broadcast %cst_64 : f32 to vector<8x128xf32>
    %220 = arith.subf %219, %212 : vector<8x128xf32>
    %221 = arith.mulf %220, %218 : vector<8x128xf32>
    %222 = arith.mulf %212, %165 : vector<8x128xf32>
    %223 = arith.addf %221, %222 : vector<8x128xf32>
    %224 = tpu.concatenate %223, %192 in 1 : vector<8x128xf32>, vector<8x128xf32> -> vector<8x256xf32>
    %c0_65 = arith.constant 0 : index
    %c0_66 = arith.constant 0 : index
    %c0_67 = arith.constant 0 : index
    %225 = vector.load %arg6[%c0_65, %c0_66, %c0_67] : memref<1x256x512xf32, #tpu.memory_space<vmem>>, vector<1x256x512xf32>
    %226 = vector.shape_cast %225 : vector<1x256x512xf32> to vector<256x512xf32>
    %cst_68 = arith.constant dense<0.000000e+00> : vector<8x512xf32>
    %227 = tpu.matmul %224, %226, %cst_68 {dimension_numbers = #tpu.dot_dimension_numbers<[1], [0], [0], [1], [0, 0, 1, 1], [], []>} : vector<8x256xf32>, vector<256x512xf32>, vector<8x512xf32> -> vector<8x512xf32>
    %228 = arith.addf %227, %15 : vector<8x512xf32>
    %229 = vector.extract_strided_slice %228 {offsets = [0, 0], sizes = [8, 128], strides = [1, 1]} : vector<8x512xf32> to vector<8x128xf32>
    %230 = arith.negf %229 : vector<8x128xf32>
    %231 = math.exp %230 : vector<8x128xf32>
    %cst_69 = arith.constant 1.000000e+00 : f32
    %232 = vector.broadcast %cst_69 : f32 to vector<8x128xf32>
    %233 = arith.addf %232, %231 : vector<8x128xf32>
    %234 = arith.divf %232, %233 : vector<8x128xf32>
    %235 = vector.extract_strided_slice %228 {offsets = [0, 128], sizes = [8, 128], strides = [1, 1]} : vector<8x512xf32> to vector<8x128xf32>
    %236 = arith.negf %235 : vector<8x128xf32>
    %237 = math.exp %236 : vector<8x128xf32>
    %cst_70 = arith.constant 1.000000e+00 : f32
    %238 = vector.broadcast %cst_70 : f32 to vector<8x128xf32>
    %239 = arith.addf %238, %237 : vector<8x128xf32>
    %240 = arith.divf %238, %239 : vector<8x128xf32>
    %241 = vector.extract_strided_slice %228 {offsets = [0, 256], sizes = [8, 128], strides = [1, 1]} : vector<8x512xf32> to vector<8x128xf32>
    %242 = vector.extract_strided_slice %228 {offsets = [0, 384], sizes = [8, 128], strides = [1, 1]} : vector<8x512xf32> to vector<8x128xf32>
    %243 = arith.mulf %234, %242 : vector<8x128xf32>
    %244 = arith.addf %241, %243 : vector<8x128xf32>
    %245 = math.tanh %244 : vector<8x128xf32>
    %cst_71 = arith.constant 1.000000e+00 : f32
    %246 = vector.broadcast %cst_71 : f32 to vector<8x128xf32>
    %247 = arith.subf %246, %240 : vector<8x128xf32>
    %248 = arith.mulf %247, %245 : vector<8x128xf32>
    %249 = arith.mulf %240, %192 : vector<8x128xf32>
    %250 = arith.addf %248, %249 : vector<8x128xf32>
    %c24 = arith.constant 24 : index
    %c0_72 = arith.constant 0 : index
    %251 = vector.load %arg8[%c24, %c0_72] : memref<128x128xf32, #tpu.memory_space<vmem>>, vector<8x128xf32>
    tpu.vector_store %arg8[%c24, %c0_72], %250 {strides = array<i32>} : memref<128x128xf32, #tpu.memory_space<vmem>>, vector<8x128xf32>,
    %252 = vector.extract_strided_slice %8 {offsets = [32, 0], sizes = [8, 384], strides = [1, 1]} : vector<128x384xf32> to vector<8x384xf32>
    %c0_73 = arith.constant 0 : index
    %c0_74 = arith.constant 0 : index
    %253 = vector.load %arg4[%c0_73, %c0_74] : memref<128x384xf32, #tpu.memory_space<vmem>>, vector<128x384xf32>
    %cst_75 = arith.constant dense<0.000000e+00> : vector<8x384xf32>
    %254 = tpu.matmul %223, %253, %cst_75 {dimension_numbers = #tpu.dot_dimension_numbers<[1], [0], [0], [1], [0, 0, 1, 1], [], []>} : vector<8x128xf32>, vector<128x384xf32>, vector<8x384xf32> -> vector<8x384xf32>
    %255 = vector.extract_strided_slice %252 {offsets = [0, 0], sizes = [8, 128], strides = [1, 1]} : vector<8x384xf32> to vector<8x128xf32>
    %256 = vector.extract_strided_slice %254 {offsets = [0, 0], sizes = [8, 128], strides = [1, 1]} : vector<8x384xf32> to vector<8x128xf32>
    %257 = arith.addf %255, %256 : vector<8x128xf32>
    %258 = arith.negf %257 : vector<8x128xf32>
    %259 = math.exp %258 : vector<8x128xf32>
    %cst_76 = arith.constant 1.000000e+00 : f32
    %260 = vector.broadcast %cst_76 : f32 to vector<8x128xf32>
    %261 = arith.addf %260, %259 : vector<8x128xf32>
    %262 = arith.divf %260, %261 : vector<8x128xf32>
    %263 = vector.extract_strided_slice %252 {offsets = [0, 128], sizes = [8, 128], strides = [1, 1]} : vector<8x384xf32> to vector<8x128xf32>
    %264 = vector.extract_strided_slice %254 {offsets = [0, 128], sizes = [8, 128], strides = [1, 1]} : vector<8x384xf32> to vector<8x128xf32>
    %265 = arith.addf %263, %264 : vector<8x128xf32>
    %266 = arith.negf %265 : vector<8x128xf32>
    %267 = math.exp %266 : vector<8x128xf32>
    %cst_77 = arith.constant 1.000000e+00 : f32
    %268 = vector.broadcast %cst_77 : f32 to vector<8x128xf32>
    %269 = arith.addf %268, %267 : vector<8x128xf32>
    %270 = arith.divf %268, %269 : vector<8x128xf32>
    %271 = vector.extract_strided_slice %252 {offsets = [0, 256], sizes = [8, 128], strides = [1, 1]} : vector<8x384xf32> to vector<8x128xf32>
    %272 = vector.extract_strided_slice %254 {offsets = [0, 256], sizes = [8, 128], strides = [1, 1]} : vector<8x384xf32> to vector<8x128xf32>
    %273 = arith.addf %272, %11 : vector<8x128xf32>
    %274 = arith.mulf %262, %273 : vector<8x128xf32>
    %275 = arith.addf %271, %274 : vector<8x128xf32>
    %276 = math.tanh %275 : vector<8x128xf32>
    %cst_78 = arith.constant 1.000000e+00 : f32
    %277 = vector.broadcast %cst_78 : f32 to vector<8x128xf32>
    %278 = arith.subf %277, %270 : vector<8x128xf32>
    %279 = arith.mulf %278, %276 : vector<8x128xf32>
    %280 = arith.mulf %270, %223 : vector<8x128xf32>
    %281 = arith.addf %279, %280 : vector<8x128xf32>
    %282 = tpu.concatenate %281, %250 in 1 : vector<8x128xf32>, vector<8x128xf32> -> vector<8x256xf32>
    %c0_79 = arith.constant 0 : index
    %c0_80 = arith.constant 0 : index
    %c0_81 = arith.constant 0 : index
    %283 = vector.load %arg6[%c0_79, %c0_80, %c0_81] : memref<1x256x512xf32, #tpu.memory_space<vmem>>, vector<1x256x512xf32>
    %284 = vector.shape_cast %283 : vector<1x256x512xf32> to vector<256x512xf32>
    %cst_82 = arith.constant dense<0.000000e+00> : vector<8x512xf32>
    %285 = tpu.matmul %282, %284, %cst_82 {dimension_numbers = #tpu.dot_dimension_numbers<[1], [0], [0], [1], [0, 0, 1, 1], [], []>} : vector<8x256xf32>, vector<256x512xf32>, vector<8x512xf32> -> vector<8x512xf32>
    %286 = arith.addf %285, %15 : vector<8x512xf32>
    %287 = vector.extract_strided_slice %286 {offsets = [0, 0], sizes = [8, 128], strides = [1, 1]} : vector<8x512xf32> to vector<8x128xf32>
    %288 = arith.negf %287 : vector<8x128xf32>
    %289 = math.exp %288 : vector<8x128xf32>
    %cst_83 = arith.constant 1.000000e+00 : f32
    %290 = vector.broadcast %cst_83 : f32 to vector<8x128xf32>
    %291 = arith.addf %290, %289 : vector<8x128xf32>
    %292 = arith.divf %290, %291 : vector<8x128xf32>
    %293 = vector.extract_strided_slice %286 {offsets = [0, 128], sizes = [8, 128], strides = [1, 1]} : vector<8x512xf32> to vector<8x128xf32>
    %294 = arith.negf %293 : vector<8x128xf32>
    %295 = math.exp %294 : vector<8x128xf32>
    %cst_84 = arith.constant 1.000000e+00 : f32
    %296 = vector.broadcast %cst_84 : f32 to vector<8x128xf32>
    %297 = arith.addf %296, %295 : vector<8x128xf32>
    %298 = arith.divf %296, %297 : vector<8x128xf32>
    %299 = vector.extract_strided_slice %286 {offsets = [0, 256], sizes = [8, 128], strides = [1, 1]} : vector<8x512xf32> to vector<8x128xf32>
    %300 = vector.extract_strided_slice %286 {offsets = [0, 384], sizes = [8, 128], strides = [1, 1]} : vector<8x512xf32> to vector<8x128xf32>
    %301 = arith.mulf %292, %300 : vector<8x128xf32>
    %302 = arith.addf %299, %301 : vector<8x128xf32>
    %303 = math.tanh %302 : vector<8x128xf32>
    %cst_85 = arith.constant 1.000000e+00 : f32
    %304 = vector.broadcast %cst_85 : f32 to vector<8x128xf32>
    %305 = arith.subf %304, %298 : vector<8x128xf32>
    %306 = arith.mulf %305, %303 : vector<8x128xf32>
    %307 = arith.mulf %298, %250 : vector<8x128xf32>
    %308 = arith.addf %306, %307 : vector<8x128xf32>
    %c32 = arith.constant 32 : index
    %c0_86 = arith.constant 0 : index
    %309 = vector.load %arg8[%c32, %c0_86] : memref<128x128xf32, #tpu.memory_space<vmem>>, vector<8x128xf32>
    tpu.vector_store %arg8[%c32, %c0_86], %308 {strides = array<i32>} : memref<128x128xf32, #tpu.memory_space<vmem>>, vector<8x128xf32>,
    %310 = vector.extract_strided_slice %8 {offsets = [40, 0], sizes = [8, 384], strides = [1, 1]} : vector<128x384xf32> to vector<8x384xf32>
    %c0_87 = arith.constant 0 : index
    %c0_88 = arith.constant 0 : index
    %311 = vector.load %arg4[%c0_87, %c0_88] : memref<128x384xf32, #tpu.memory_space<vmem>>, vector<128x384xf32>
    %cst_89 = arith.constant dense<0.000000e+00> : vector<8x384xf32>
    %312 = tpu.matmul %281, %311, %cst_89 {dimension_numbers = #tpu.dot_dimension_numbers<[1], [0], [0], [1], [0, 0, 1, 1], [], []>} : vector<8x128xf32>, vector<128x384xf32>, vector<8x384xf32> -> vector<8x384xf32>
    %313 = vector.extract_strided_slice %310 {offsets = [0, 0], sizes = [8, 128], strides = [1, 1]} : vector<8x384xf32> to vector<8x128xf32>
    %314 = vector.extract_strided_slice %312 {offsets = [0, 0], sizes = [8, 128], strides = [1, 1]} : vector<8x384xf32> to vector<8x128xf32>
    %315 = arith.addf %313, %314 : vector<8x128xf32>
    %316 = arith.negf %315 : vector<8x128xf32>
    %317 = math.exp %316 : vector<8x128xf32>
    %cst_90 = arith.constant 1.000000e+00 : f32
    %318 = vector.broadcast %cst_90 : f32 to vector<8x128xf32>
    %319 = arith.addf %318, %317 : vector<8x128xf32>
    %320 = arith.divf %318, %319 : vector<8x128xf32>
    %321 = vector.extract_strided_slice %310 {offsets = [0, 128], sizes = [8, 128], strides = [1, 1]} : vector<8x384xf32> to vector<8x128xf32>
    %322 = vector.extract_strided_slice %312 {offsets = [0, 128], sizes = [8, 128], strides = [1, 1]} : vector<8x384xf32> to vector<8x128xf32>
    %323 = arith.addf %321, %322 : vector<8x128xf32>
    %324 = arith.negf %323 : vector<8x128xf32>
    %325 = math.exp %324 : vector<8x128xf32>
    %cst_91 = arith.constant 1.000000e+00 : f32
    %326 = vector.broadcast %cst_91 : f32 to vector<8x128xf32>
    %327 = arith.addf %326, %325 : vector<8x128xf32>
    %328 = arith.divf %326, %327 : vector<8x128xf32>
    %329 = vector.extract_strided_slice %310 {offsets = [0, 256], sizes = [8, 128], strides = [1, 1]} : vector<8x384xf32> to vector<8x128xf32>
    %330 = vector.extract_strided_slice %312 {offsets = [0, 256], sizes = [8, 128], strides = [1, 1]} : vector<8x384xf32> to vector<8x128xf32>
    %331 = arith.addf %330, %11 : vector<8x128xf32>
    %332 = arith.mulf %320, %331 : vector<8x128xf32>
    %333 = arith.addf %329, %332 : vector<8x128xf32>
    %334 = math.tanh %333 : vector<8x128xf32>
    %cst_92 = arith.constant 1.000000e+00 : f32
    %335 = vector.broadcast %cst_92 : f32 to vector<8x128xf32>
    %336 = arith.subf %335, %328 : vector<8x128xf32>
    %337 = arith.mulf %336, %334 : vector<8x128xf32>
    %338 = arith.mulf %328, %281 : vector<8x128xf32>
    %339 = arith.addf %337, %338 : vector<8x128xf32>
    %340 = tpu.concatenate %339, %308 in 1 : vector<8x128xf32>, vector<8x128xf32> -> vector<8x256xf32>
    %c0_93 = arith.constant 0 : index
    %c0_94 = arith.constant 0 : index
    %c0_95 = arith.constant 0 : index
    %341 = vector.load %arg6[%c0_93, %c0_94, %c0_95] : memref<1x256x512xf32, #tpu.memory_space<vmem>>, vector<1x256x512xf32>
    %342 = vector.shape_cast %341 : vector<1x256x512xf32> to vector<256x512xf32>
    %cst_96 = arith.constant dense<0.000000e+00> : vector<8x512xf32>
    %343 = tpu.matmul %340, %342, %cst_96 {dimension_numbers = #tpu.dot_dimension_numbers<[1], [0], [0], [1], [0, 0, 1, 1], [], []>} : vector<8x256xf32>, vector<256x512xf32>, vector<8x512xf32> -> vector<8x512xf32>
    %344 = arith.addf %343, %15 : vector<8x512xf32>
    %345 = vector.extract_strided_slice %344 {offsets = [0, 0], sizes = [8, 128], strides = [1, 1]} : vector<8x512xf32> to vector<8x128xf32>
    %346 = arith.negf %345 : vector<8x128xf32>
    %347 = math.exp %346 : vector<8x128xf32>
    %cst_97 = arith.constant 1.000000e+00 : f32
    %348 = vector.broadcast %cst_97 : f32 to vector<8x128xf32>
    %349 = arith.addf %348, %347 : vector<8x128xf32>
    %350 = arith.divf %348, %349 : vector<8x128xf32>
    %351 = vector.extract_strided_slice %344 {offsets = [0, 128], sizes = [8, 128], strides = [1, 1]} : vector<8x512xf32> to vector<8x128xf32>
    %352 = arith.negf %351 : vector<8x128xf32>
    %353 = math.exp %352 : vector<8x128xf32>
    %cst_98 = arith.constant 1.000000e+00 : f32
    %354 = vector.broadcast %cst_98 : f32 to vector<8x128xf32>
    %355 = arith.addf %354, %353 : vector<8x128xf32>
    %356 = arith.divf %354, %355 : vector<8x128xf32>
    %357 = vector.extract_strided_slice %344 {offsets = [0, 256], sizes = [8, 128], strides = [1, 1]} : vector<8x512xf32> to vector<8x128xf32>
    %358 = vector.extract_strided_slice %344 {offsets = [0, 384], sizes = [8, 128], strides = [1, 1]} : vector<8x512xf32> to vector<8x128xf32>
    %359 = arith.mulf %350, %358 : vector<8x128xf32>
    %360 = arith.addf %357, %359 : vector<8x128xf32>
    %361 = math.tanh %360 : vector<8x128xf32>
    %cst_99 = arith.constant 1.000000e+00 : f32
    %362 = vector.broadcast %cst_99 : f32 to vector<8x128xf32>
    %363 = arith.subf %362, %356 : vector<8x128xf32>
    %364 = arith.mulf %363, %361 : vector<8x128xf32>
    %365 = arith.mulf %356, %308 : vector<8x128xf32>
    %366 = arith.addf %364, %365 : vector<8x128xf32>
    %c40 = arith.constant 40 : index
    %c0_100 = arith.constant 0 : index
    %367 = vector.load %arg8[%c40, %c0_100] : memref<128x128xf32, #tpu.memory_space<vmem>>, vector<8x128xf32>
    tpu.vector_store %arg8[%c40, %c0_100], %366 {strides = array<i32>} : memref<128x128xf32, #tpu.memory_space<vmem>>, vector<8x128xf32>,
    %368 = vector.extract_strided_slice %8 {offsets = [48, 0], sizes = [8, 384], strides = [1, 1]} : vector<128x384xf32> to vector<8x384xf32>
    %c0_101 = arith.constant 0 : index
    %c0_102 = arith.constant 0 : index
    %369 = vector.load %arg4[%c0_101, %c0_102] : memref<128x384xf32, #tpu.memory_space<vmem>>, vector<128x384xf32>
    %cst_103 = arith.constant dense<0.000000e+00> : vector<8x384xf32>
    %370 = tpu.matmul %339, %369, %cst_103 {dimension_numbers = #tpu.dot_dimension_numbers<[1], [0], [0], [1], [0, 0, 1, 1], [], []>} : vector<8x128xf32>, vector<128x384xf32>, vector<8x384xf32> -> vector<8x384xf32>
    %371 = vector.extract_strided_slice %368 {offsets = [0, 0], sizes = [8, 128], strides = [1, 1]} : vector<8x384xf32> to vector<8x128xf32>
    %372 = vector.extract_strided_slice %370 {offsets = [0, 0], sizes = [8, 128], strides = [1, 1]} : vector<8x384xf32> to vector<8x128xf32>
    %373 = arith.addf %371, %372 : vector<8x128xf32>
    %374 = arith.negf %373 : vector<8x128xf32>
    %375 = math.exp %374 : vector<8x128xf32>
    %cst_104 = arith.constant 1.000000e+00 : f32
    %376 = vector.broadcast %cst_104 : f32 to vector<8x128xf32>
    %377 = arith.addf %376, %375 : vector<8x128xf32>
    %378 = arith.divf %376, %377 : vector<8x128xf32>
    %379 = vector.extract_strided_slice %368 {offsets = [0, 128], sizes = [8, 128], strides = [1, 1]} : vector<8x384xf32> to vector<8x128xf32>
    %380 = vector.extract_strided_slice %370 {offsets = [0, 128], sizes = [8, 128], strides = [1, 1]} : vector<8x384xf32> to vector<8x128xf32>
    %381 = arith.addf %379, %380 : vector<8x128xf32>
    %382 = arith.negf %381 : vector<8x128xf32>
    %383 = math.exp %382 : vector<8x128xf32>
    %cst_105 = arith.constant 1.000000e+00 : f32
    %384 = vector.broadcast %cst_105 : f32 to vector<8x128xf32>
    %385 = arith.addf %384, %383 : vector<8x128xf32>
    %386 = arith.divf %384, %385 : vector<8x128xf32>
    %387 = vector.extract_strided_slice %368 {offsets = [0, 256], sizes = [8, 128], strides = [1, 1]} : vector<8x384xf32> to vector<8x128xf32>
    %388 = vector.extract_strided_slice %370 {offsets = [0, 256], sizes = [8, 128], strides = [1, 1]} : vector<8x384xf32> to vector<8x128xf32>
    %389 = arith.addf %388, %11 : vector<8x128xf32>
    %390 = arith.mulf %378, %389 : vector<8x128xf32>
    %391 = arith.addf %387, %390 : vector<8x128xf32>
    %392 = math.tanh %391 : vector<8x128xf32>
    %cst_106 = arith.constant 1.000000e+00 : f32
    %393 = vector.broadcast %cst_106 : f32 to vector<8x128xf32>
    %394 = arith.subf %393, %386 : vector<8x128xf32>
    %395 = arith.mulf %394, %392 : vector<8x128xf32>
    %396 = arith.mulf %386, %339 : vector<8x128xf32>
    %397 = arith.addf %395, %396 : vector<8x128xf32>
    %398 = tpu.concatenate %397, %366 in 1 : vector<8x128xf32>, vector<8x128xf32> -> vector<8x256xf32>
    %c0_107 = arith.constant 0 : index
    %c0_108 = arith.constant 0 : index
    %c0_109 = arith.constant 0 : index
    %399 = vector.load %arg6[%c0_107, %c0_108, %c0_109] : memref<1x256x512xf32, #tpu.memory_space<vmem>>, vector<1x256x512xf32>
    %400 = vector.shape_cast %399 : vector<1x256x512xf32> to vector<256x512xf32>
    %cst_110 = arith.constant dense<0.000000e+00> : vector<8x512xf32>
    %401 = tpu.matmul %398, %400, %cst_110 {dimension_numbers = #tpu.dot_dimension_numbers<[1], [0], [0], [1], [0, 0, 1, 1], [], []>} : vector<8x256xf32>, vector<256x512xf32>, vector<8x512xf32> -> vector<8x512xf32>
    %402 = arith.addf %401, %15 : vector<8x512xf32>
    %403 = vector.extract_strided_slice %402 {offsets = [0, 0], sizes = [8, 128], strides = [1, 1]} : vector<8x512xf32> to vector<8x128xf32>
    %404 = arith.negf %403 : vector<8x128xf32>
    %405 = math.exp %404 : vector<8x128xf32>
    %cst_111 = arith.constant 1.000000e+00 : f32
    %406 = vector.broadcast %cst_111 : f32 to vector<8x128xf32>
    %407 = arith.addf %406, %405 : vector<8x128xf32>
    %408 = arith.divf %406, %407 : vector<8x128xf32>
    %409 = vector.extract_strided_slice %402 {offsets = [0, 128], sizes = [8, 128], strides = [1, 1]} : vector<8x512xf32> to vector<8x128xf32>
    %410 = arith.negf %409 : vector<8x128xf32>
    %411 = math.exp %410 : vector<8x128xf32>
    %cst_112 = arith.constant 1.000000e+00 : f32
    %412 = vector.broadcast %cst_112 : f32 to vector<8x128xf32>
    %413 = arith.addf %412, %411 : vector<8x128xf32>
    %414 = arith.divf %412, %413 : vector<8x128xf32>
    %415 = vector.extract_strided_slice %402 {offsets = [0, 256], sizes = [8, 128], strides = [1, 1]} : vector<8x512xf32> to vector<8x128xf32>
    %416 = vector.extract_strided_slice %402 {offsets = [0, 384], sizes = [8, 128], strides = [1, 1]} : vector<8x512xf32> to vector<8x128xf32>
    %417 = arith.mulf %408, %416 : vector<8x128xf32>
    %418 = arith.addf %415, %417 : vector<8x128xf32>
    %419 = math.tanh %418 : vector<8x128xf32>
    %cst_113 = arith.constant 1.000000e+00 : f32
    %420 = vector.broadcast %cst_113 : f32 to vector<8x128xf32>
    %421 = arith.subf %420, %414 : vector<8x128xf32>
    %422 = arith.mulf %421, %419 : vector<8x128xf32>
    %423 = arith.mulf %414, %366 : vector<8x128xf32>
    %424 = arith.addf %422, %423 : vector<8x128xf32>
    %c48 = arith.constant 48 : index
    %c0_114 = arith.constant 0 : index
    %425 = vector.load %arg8[%c48, %c0_114] : memref<128x128xf32, #tpu.memory_space<vmem>>, vector<8x128xf32>
    tpu.vector_store %arg8[%c48, %c0_114], %424 {strides = array<i32>} : memref<128x128xf32, #tpu.memory_space<vmem>>, vector<8x128xf32>,
    %426 = vector.extract_strided_slice %8 {offsets = [56, 0], sizes = [8, 384], strides = [1, 1]} : vector<128x384xf32> to vector<8x384xf32>
    %c0_115 = arith.constant 0 : index
    %c0_116 = arith.constant 0 : index
    %427 = vector.load %arg4[%c0_115, %c0_116] : memref<128x384xf32, #tpu.memory_space<vmem>>, vector<128x384xf32>
    %cst_117 = arith.constant dense<0.000000e+00> : vector<8x384xf32>
    %428 = tpu.matmul %397, %427, %cst_117 {dimension_numbers = #tpu.dot_dimension_numbers<[1], [0], [0], [1], [0, 0, 1, 1], [], []>} : vector<8x128xf32>, vector<128x384xf32>, vector<8x384xf32> -> vector<8x384xf32>
    %429 = vector.extract_strided_slice %426 {offsets = [0, 0], sizes = [8, 128], strides = [1, 1]} : vector<8x384xf32> to vector<8x128xf32>
    %430 = vector.extract_strided_slice %428 {offsets = [0, 0], sizes = [8, 128], strides = [1, 1]} : vector<8x384xf32> to vector<8x128xf32>
    %431 = arith.addf %429, %430 : vector<8x128xf32>
    %432 = arith.negf %431 : vector<8x128xf32>
    %433 = math.exp %432 : vector<8x128xf32>
    %cst_118 = arith.constant 1.000000e+00 : f32
    %434 = vector.broadcast %cst_118 : f32 to vector<8x128xf32>
    %435 = arith.addf %434, %433 : vector<8x128xf32>
    %436 = arith.divf %434, %435 : vector<8x128xf32>
    %437 = vector.extract_strided_slice %426 {offsets = [0, 128], sizes = [8, 128], strides = [1, 1]} : vector<8x384xf32> to vector<8x128xf32>
    %438 = vector.extract_strided_slice %428 {offsets = [0, 128], sizes = [8, 128], strides = [1, 1]} : vector<8x384xf32> to vector<8x128xf32>
    %439 = arith.addf %437, %438 : vector<8x128xf32>
    %440 = arith.negf %439 : vector<8x128xf32>
    %441 = math.exp %440 : vector<8x128xf32>
    %cst_119 = arith.constant 1.000000e+00 : f32
    %442 = vector.broadcast %cst_119 : f32 to vector<8x128xf32>
    %443 = arith.addf %442, %441 : vector<8x128xf32>
    %444 = arith.divf %442, %443 : vector<8x128xf32>
    %445 = vector.extract_strided_slice %426 {offsets = [0, 256], sizes = [8, 128], strides = [1, 1]} : vector<8x384xf32> to vector<8x128xf32>
    %446 = vector.extract_strided_slice %428 {offsets = [0, 256], sizes = [8, 128], strides = [1, 1]} : vector<8x384xf32> to vector<8x128xf32>
    %447 = arith.addf %446, %11 : vector<8x128xf32>
    %448 = arith.mulf %436, %447 : vector<8x128xf32>
    %449 = arith.addf %445, %448 : vector<8x128xf32>
    %450 = math.tanh %449 : vector<8x128xf32>
    %cst_120 = arith.constant 1.000000e+00 : f32
    %451 = vector.broadcast %cst_120 : f32 to vector<8x128xf32>
    %452 = arith.subf %451, %444 : vector<8x128xf32>
    %453 = arith.mulf %452, %450 : vector<8x128xf32>
    %454 = arith.mulf %444, %397 : vector<8x128xf32>
    %455 = arith.addf %453, %454 : vector<8x128xf32>
    %456 = tpu.concatenate %455, %424 in 1 : vector<8x128xf32>, vector<8x128xf32> -> vector<8x256xf32>
    %c0_121 = arith.constant 0 : index
    %c0_122 = arith.constant 0 : index
    %c0_123 = arith.constant 0 : index
    %457 = vector.load %arg6[%c0_121, %c0_122, %c0_123] : memref<1x256x512xf32, #tpu.memory_space<vmem>>, vector<1x256x512xf32>
    %458 = vector.shape_cast %457 : vector<1x256x512xf32> to vector<256x512xf32>
    %cst_124 = arith.constant dense<0.000000e+00> : vector<8x512xf32>
    %459 = tpu.matmul %456, %458, %cst_124 {dimension_numbers = #tpu.dot_dimension_numbers<[1], [0], [0], [1], [0, 0, 1, 1], [], []>} : vector<8x256xf32>, vector<256x512xf32>, vector<8x512xf32> -> vector<8x512xf32>
    %460 = arith.addf %459, %15 : vector<8x512xf32>
    %461 = vector.extract_strided_slice %460 {offsets = [0, 0], sizes = [8, 128], strides = [1, 1]} : vector<8x512xf32> to vector<8x128xf32>
    %462 = arith.negf %461 : vector<8x128xf32>
    %463 = math.exp %462 : vector<8x128xf32>
    %cst_125 = arith.constant 1.000000e+00 : f32
    %464 = vector.broadcast %cst_125 : f32 to vector<8x128xf32>
    %465 = arith.addf %464, %463 : vector<8x128xf32>
    %466 = arith.divf %464, %465 : vector<8x128xf32>
    %467 = vector.extract_strided_slice %460 {offsets = [0, 128], sizes = [8, 128], strides = [1, 1]} : vector<8x512xf32> to vector<8x128xf32>
    %468 = arith.negf %467 : vector<8x128xf32>
    %469 = math.exp %468 : vector<8x128xf32>
    %cst_126 = arith.constant 1.000000e+00 : f32
    %470 = vector.broadcast %cst_126 : f32 to vector<8x128xf32>
    %471 = arith.addf %470, %469 : vector<8x128xf32>
    %472 = arith.divf %470, %471 : vector<8x128xf32>
    %473 = vector.extract_strided_slice %460 {offsets = [0, 256], sizes = [8, 128], strides = [1, 1]} : vector<8x512xf32> to vector<8x128xf32>
    %474 = vector.extract_strided_slice %460 {offsets = [0, 384], sizes = [8, 128], strides = [1, 1]} : vector<8x512xf32> to vector<8x128xf32>
    %475 = arith.mulf %466, %474 : vector<8x128xf32>
    %476 = arith.addf %473, %475 : vector<8x128xf32>
    %477 = math.tanh %476 : vector<8x128xf32>
    %cst_127 = arith.constant 1.000000e+00 : f32
    %478 = vector.broadcast %cst_127 : f32 to vector<8x128xf32>
    %479 = arith.subf %478, %472 : vector<8x128xf32>
    %480 = arith.mulf %479, %477 : vector<8x128xf32>
    %481 = arith.mulf %472, %424 : vector<8x128xf32>
    %482 = arith.addf %480, %481 : vector<8x128xf32>
    %c56 = arith.constant 56 : index
    %c0_128 = arith.constant 0 : index
    %483 = vector.load %arg8[%c56, %c0_128] : memref<128x128xf32, #tpu.memory_space<vmem>>, vector<8x128xf32>
    tpu.vector_store %arg8[%c56, %c0_128], %482 {strides = array<i32>} : memref<128x128xf32, #tpu.memory_space<vmem>>, vector<8x128xf32>,
    %484 = vector.extract_strided_slice %8 {offsets = [64, 0], sizes = [8, 384], strides = [1, 1]} : vector<128x384xf32> to vector<8x384xf32>
    %c0_129 = arith.constant 0 : index
    %c0_130 = arith.constant 0 : index
    %485 = vector.load %arg4[%c0_129, %c0_130] : memref<128x384xf32, #tpu.memory_space<vmem>>, vector<128x384xf32>
    %cst_131 = arith.constant dense<0.000000e+00> : vector<8x384xf32>
    %486 = tpu.matmul %455, %485, %cst_131 {dimension_numbers = #tpu.dot_dimension_numbers<[1], [0], [0], [1], [0, 0, 1, 1], [], []>} : vector<8x128xf32>, vector<128x384xf32>, vector<8x384xf32> -> vector<8x384xf32>
    %487 = vector.extract_strided_slice %484 {offsets = [0, 0], sizes = [8, 128], strides = [1, 1]} : vector<8x384xf32> to vector<8x128xf32>
    %488 = vector.extract_strided_slice %486 {offsets = [0, 0], sizes = [8, 128], strides = [1, 1]} : vector<8x384xf32> to vector<8x128xf32>
    %489 = arith.addf %487, %488 : vector<8x128xf32>
    %490 = arith.negf %489 : vector<8x128xf32>
    %491 = math.exp %490 : vector<8x128xf32>
    %cst_132 = arith.constant 1.000000e+00 : f32
    %492 = vector.broadcast %cst_132 : f32 to vector<8x128xf32>
    %493 = arith.addf %492, %491 : vector<8x128xf32>
    %494 = arith.divf %492, %493 : vector<8x128xf32>
    %495 = vector.extract_strided_slice %484 {offsets = [0, 128], sizes = [8, 128], strides = [1, 1]} : vector<8x384xf32> to vector<8x128xf32>
    %496 = vector.extract_strided_slice %486 {offsets = [0, 128], sizes = [8, 128], strides = [1, 1]} : vector<8x384xf32> to vector<8x128xf32>
    %497 = arith.addf %495, %496 : vector<8x128xf32>
    %498 = arith.negf %497 : vector<8x128xf32>
    %499 = math.exp %498 : vector<8x128xf32>
    %cst_133 = arith.constant 1.000000e+00 : f32
    %500 = vector.broadcast %cst_133 : f32 to vector<8x128xf32>
    %501 = arith.addf %500, %499 : vector<8x128xf32>
    %502 = arith.divf %500, %501 : vector<8x128xf32>
    %503 = vector.extract_strided_slice %484 {offsets = [0, 256], sizes = [8, 128], strides = [1, 1]} : vector<8x384xf32> to vector<8x128xf32>
    %504 = vector.extract_strided_slice %486 {offsets = [0, 256], sizes = [8, 128], strides = [1, 1]} : vector<8x384xf32> to vector<8x128xf32>
    %505 = arith.addf %504, %11 : vector<8x128xf32>
    %506 = arith.mulf %494, %505 : vector<8x128xf32>
    %507 = arith.addf %503, %506 : vector<8x128xf32>
    %508 = math.tanh %507 : vector<8x128xf32>
    %cst_134 = arith.constant 1.000000e+00 : f32
    %509 = vector.broadcast %cst_134 : f32 to vector<8x128xf32>
    %510 = arith.subf %509, %502 : vector<8x128xf32>
    %511 = arith.mulf %510, %508 : vector<8x128xf32>
    %512 = arith.mulf %502, %455 : vector<8x128xf32>
    %513 = arith.addf %511, %512 : vector<8x128xf32>
    %514 = tpu.concatenate %513, %482 in 1 : vector<8x128xf32>, vector<8x128xf32> -> vector<8x256xf32>
    %c0_135 = arith.constant 0 : index
    %c0_136 = arith.constant 0 : index
    %c0_137 = arith.constant 0 : index
    %515 = vector.load %arg6[%c0_135, %c0_136, %c0_137] : memref<1x256x512xf32, #tpu.memory_space<vmem>>, vector<1x256x512xf32>
    %516 = vector.shape_cast %515 : vector<1x256x512xf32> to vector<256x512xf32>
    %cst_138 = arith.constant dense<0.000000e+00> : vector<8x512xf32>
    %517 = tpu.matmul %514, %516, %cst_138 {dimension_numbers = #tpu.dot_dimension_numbers<[1], [0], [0], [1], [0, 0, 1, 1], [], []>} : vector<8x256xf32>, vector<256x512xf32>, vector<8x512xf32> -> vector<8x512xf32>
    %518 = arith.addf %517, %15 : vector<8x512xf32>
    %519 = vector.extract_strided_slice %518 {offsets = [0, 0], sizes = [8, 128], strides = [1, 1]} : vector<8x512xf32> to vector<8x128xf32>
    %520 = arith.negf %519 : vector<8x128xf32>
    %521 = math.exp %520 : vector<8x128xf32>
    %cst_139 = arith.constant 1.000000e+00 : f32
    %522 = vector.broadcast %cst_139 : f32 to vector<8x128xf32>
    %523 = arith.addf %522, %521 : vector<8x128xf32>
    %524 = arith.divf %522, %523 : vector<8x128xf32>
    %525 = vector.extract_strided_slice %518 {offsets = [0, 128], sizes = [8, 128], strides = [1, 1]} : vector<8x512xf32> to vector<8x128xf32>
    %526 = arith.negf %525 : vector<8x128xf32>
    %527 = math.exp %526 : vector<8x128xf32>
    %cst_140 = arith.constant 1.000000e+00 : f32
    %528 = vector.broadcast %cst_140 : f32 to vector<8x128xf32>
    %529 = arith.addf %528, %527 : vector<8x128xf32>
    %530 = arith.divf %528, %529 : vector<8x128xf32>
    %531 = vector.extract_strided_slice %518 {offsets = [0, 256], sizes = [8, 128], strides = [1, 1]} : vector<8x512xf32> to vector<8x128xf32>
    %532 = vector.extract_strided_slice %518 {offsets = [0, 384], sizes = [8, 128], strides = [1, 1]} : vector<8x512xf32> to vector<8x128xf32>
    %533 = arith.mulf %524, %532 : vector<8x128xf32>
    %534 = arith.addf %531, %533 : vector<8x128xf32>
    %535 = math.tanh %534 : vector<8x128xf32>
    %cst_141 = arith.constant 1.000000e+00 : f32
    %536 = vector.broadcast %cst_141 : f32 to vector<8x128xf32>
    %537 = arith.subf %536, %530 : vector<8x128xf32>
    %538 = arith.mulf %537, %535 : vector<8x128xf32>
    %539 = arith.mulf %530, %482 : vector<8x128xf32>
    %540 = arith.addf %538, %539 : vector<8x128xf32>
    %c64 = arith.constant 64 : index
    %c0_142 = arith.constant 0 : index
    %541 = vector.load %arg8[%c64, %c0_142] : memref<128x128xf32, #tpu.memory_space<vmem>>, vector<8x128xf32>
    tpu.vector_store %arg8[%c64, %c0_142], %540 {strides = array<i32>} : memref<128x128xf32, #tpu.memory_space<vmem>>, vector<8x128xf32>,
    %542 = vector.extract_strided_slice %8 {offsets = [72, 0], sizes = [8, 384], strides = [1, 1]} : vector<128x384xf32> to vector<8x384xf32>
    %c0_143 = arith.constant 0 : index
    %c0_144 = arith.constant 0 : index
    %543 = vector.load %arg4[%c0_143, %c0_144] : memref<128x384xf32, #tpu.memory_space<vmem>>, vector<128x384xf32>
    %cst_145 = arith.constant dense<0.000000e+00> : vector<8x384xf32>
    %544 = tpu.matmul %513, %543, %cst_145 {dimension_numbers = #tpu.dot_dimension_numbers<[1], [0], [0], [1], [0, 0, 1, 1], [], []>} : vector<8x128xf32>, vector<128x384xf32>, vector<8x384xf32> -> vector<8x384xf32>
    %545 = vector.extract_strided_slice %542 {offsets = [0, 0], sizes = [8, 128], strides = [1, 1]} : vector<8x384xf32> to vector<8x128xf32>
    %546 = vector.extract_strided_slice %544 {offsets = [0, 0], sizes = [8, 128], strides = [1, 1]} : vector<8x384xf32> to vector<8x128xf32>
    %547 = arith.addf %545, %546 : vector<8x128xf32>
    %548 = arith.negf %547 : vector<8x128xf32>
    %549 = math.exp %548 : vector<8x128xf32>
    %cst_146 = arith.constant 1.000000e+00 : f32
    %550 = vector.broadcast %cst_146 : f32 to vector<8x128xf32>
    %551 = arith.addf %550, %549 : vector<8x128xf32>
    %552 = arith.divf %550, %551 : vector<8x128xf32>
    %553 = vector.extract_strided_slice %542 {offsets = [0, 128], sizes = [8, 128], strides = [1, 1]} : vector<8x384xf32> to vector<8x128xf32>
    %554 = vector.extract_strided_slice %544 {offsets = [0, 128], sizes = [8, 128], strides = [1, 1]} : vector<8x384xf32> to vector<8x128xf32>
    %555 = arith.addf %553, %554 : vector<8x128xf32>
    %556 = arith.negf %555 : vector<8x128xf32>
    %557 = math.exp %556 : vector<8x128xf32>
    %cst_147 = arith.constant 1.000000e+00 : f32
    %558 = vector.broadcast %cst_147 : f32 to vector<8x128xf32>
    %559 = arith.addf %558, %557 : vector<8x128xf32>
    %560 = arith.divf %558, %559 : vector<8x128xf32>
    %561 = vector.extract_strided_slice %542 {offsets = [0, 256], sizes = [8, 128], strides = [1, 1]} : vector<8x384xf32> to vector<8x128xf32>
    %562 = vector.extract_strided_slice %544 {offsets = [0, 256], sizes = [8, 128], strides = [1, 1]} : vector<8x384xf32> to vector<8x128xf32>
    %563 = arith.addf %562, %11 : vector<8x128xf32>
    %564 = arith.mulf %552, %563 : vector<8x128xf32>
    %565 = arith.addf %561, %564 : vector<8x128xf32>
    %566 = math.tanh %565 : vector<8x128xf32>
    %cst_148 = arith.constant 1.000000e+00 : f32
    %567 = vector.broadcast %cst_148 : f32 to vector<8x128xf32>
    %568 = arith.subf %567, %560 : vector<8x128xf32>
    %569 = arith.mulf %568, %566 : vector<8x128xf32>
    %570 = arith.mulf %560, %513 : vector<8x128xf32>
    %571 = arith.addf %569, %570 : vector<8x128xf32>
    %572 = tpu.concatenate %571, %540 in 1 : vector<8x128xf32>, vector<8x128xf32> -> vector<8x256xf32>
    %c0_149 = arith.constant 0 : index
    %c0_150 = arith.constant 0 : index
    %c0_151 = arith.constant 0 : index
    %573 = vector.load %arg6[%c0_149, %c0_150, %c0_151] : memref<1x256x512xf32, #tpu.memory_space<vmem>>, vector<1x256x512xf32>
    %574 = vector.shape_cast %573 : vector<1x256x512xf32> to vector<256x512xf32>
    %cst_152 = arith.constant dense<0.000000e+00> : vector<8x512xf32>
    %575 = tpu.matmul %572, %574, %cst_152 {dimension_numbers = #tpu.dot_dimension_numbers<[1], [0], [0], [1], [0, 0, 1, 1], [], []>} : vector<8x256xf32>, vector<256x512xf32>, vector<8x512xf32> -> vector<8x512xf32>
    %576 = arith.addf %575, %15 : vector<8x512xf32>
    %577 = vector.extract_strided_slice %576 {offsets = [0, 0], sizes = [8, 128], strides = [1, 1]} : vector<8x512xf32> to vector<8x128xf32>
    %578 = arith.negf %577 : vector<8x128xf32>
    %579 = math.exp %578 : vector<8x128xf32>
    %cst_153 = arith.constant 1.000000e+00 : f32
    %580 = vector.broadcast %cst_153 : f32 to vector<8x128xf32>
    %581 = arith.addf %580, %579 : vector<8x128xf32>
    %582 = arith.divf %580, %581 : vector<8x128xf32>
    %583 = vector.extract_strided_slice %576 {offsets = [0, 128], sizes = [8, 128], strides = [1, 1]} : vector<8x512xf32> to vector<8x128xf32>
    %584 = arith.negf %583 : vector<8x128xf32>
    %585 = math.exp %584 : vector<8x128xf32>
    %cst_154 = arith.constant 1.000000e+00 : f32
    %586 = vector.broadcast %cst_154 : f32 to vector<8x128xf32>
    %587 = arith.addf %586, %585 : vector<8x128xf32>
    %588 = arith.divf %586, %587 : vector<8x128xf32>
    %589 = vector.extract_strided_slice %576 {offsets = [0, 256], sizes = [8, 128], strides = [1, 1]} : vector<8x512xf32> to vector<8x128xf32>
    %590 = vector.extract_strided_slice %576 {offsets = [0, 384], sizes = [8, 128], strides = [1, 1]} : vector<8x512xf32> to vector<8x128xf32>
    %591 = arith.mulf %582, %590 : vector<8x128xf32>
    %592 = arith.addf %589, %591 : vector<8x128xf32>
    %593 = math.tanh %592 : vector<8x128xf32>
    %cst_155 = arith.constant 1.000000e+00 : f32
    %594 = vector.broadcast %cst_155 : f32 to vector<8x128xf32>
    %595 = arith.subf %594, %588 : vector<8x128xf32>
    %596 = arith.mulf %595, %593 : vector<8x128xf32>
    %597 = arith.mulf %588, %540 : vector<8x128xf32>
    %598 = arith.addf %596, %597 : vector<8x128xf32>
    %c72 = arith.constant 72 : index
    %c0_156 = arith.constant 0 : index
    %599 = vector.load %arg8[%c72, %c0_156] : memref<128x128xf32, #tpu.memory_space<vmem>>, vector<8x128xf32>
    tpu.vector_store %arg8[%c72, %c0_156], %598 {strides = array<i32>} : memref<128x128xf32, #tpu.memory_space<vmem>>, vector<8x128xf32>,
    %600 = vector.extract_strided_slice %8 {offsets = [80, 0], sizes = [8, 384], strides = [1, 1]} : vector<128x384xf32> to vector<8x384xf32>
    %c0_157 = arith.constant 0 : index
    %c0_158 = arith.constant 0 : index
    %601 = vector.load %arg4[%c0_157, %c0_158] : memref<128x384xf32, #tpu.memory_space<vmem>>, vector<128x384xf32>
    %cst_159 = arith.constant dense<0.000000e+00> : vector<8x384xf32>
    %602 = tpu.matmul %571, %601, %cst_159 {dimension_numbers = #tpu.dot_dimension_numbers<[1], [0], [0], [1], [0, 0, 1, 1], [], []>} : vector<8x128xf32>, vector<128x384xf32>, vector<8x384xf32> -> vector<8x384xf32>
    %603 = vector.extract_strided_slice %600 {offsets = [0, 0], sizes = [8, 128], strides = [1, 1]} : vector<8x384xf32> to vector<8x128xf32>
    %604 = vector.extract_strided_slice %602 {offsets = [0, 0], sizes = [8, 128], strides = [1, 1]} : vector<8x384xf32> to vector<8x128xf32>
    %605 = arith.addf %603, %604 : vector<8x128xf32>
    %606 = arith.negf %605 : vector<8x128xf32>
    %607 = math.exp %606 : vector<8x128xf32>
    %cst_160 = arith.constant 1.000000e+00 : f32
    %608 = vector.broadcast %cst_160 : f32 to vector<8x128xf32>
    %609 = arith.addf %608, %607 : vector<8x128xf32>
    %610 = arith.divf %608, %609 : vector<8x128xf32>
    %611 = vector.extract_strided_slice %600 {offsets = [0, 128], sizes = [8, 128], strides = [1, 1]} : vector<8x384xf32> to vector<8x128xf32>
    %612 = vector.extract_strided_slice %602 {offsets = [0, 128], sizes = [8, 128], strides = [1, 1]} : vector<8x384xf32> to vector<8x128xf32>
    %613 = arith.addf %611, %612 : vector<8x128xf32>
    %614 = arith.negf %613 : vector<8x128xf32>
    %615 = math.exp %614 : vector<8x128xf32>
    %cst_161 = arith.constant 1.000000e+00 : f32
    %616 = vector.broadcast %cst_161 : f32 to vector<8x128xf32>
    %617 = arith.addf %616, %615 : vector<8x128xf32>
    %618 = arith.divf %616, %617 : vector<8x128xf32>
    %619 = vector.extract_strided_slice %600 {offsets = [0, 256], sizes = [8, 128], strides = [1, 1]} : vector<8x384xf32> to vector<8x128xf32>
    %620 = vector.extract_strided_slice %602 {offsets = [0, 256], sizes = [8, 128], strides = [1, 1]} : vector<8x384xf32> to vector<8x128xf32>
    %621 = arith.addf %620, %11 : vector<8x128xf32>
    %622 = arith.mulf %610, %621 : vector<8x128xf32>
    %623 = arith.addf %619, %622 : vector<8x128xf32>
    %624 = math.tanh %623 : vector<8x128xf32>
    %cst_162 = arith.constant 1.000000e+00 : f32
    %625 = vector.broadcast %cst_162 : f32 to vector<8x128xf32>
    %626 = arith.subf %625, %618 : vector<8x128xf32>
    %627 = arith.mulf %626, %624 : vector<8x128xf32>
    %628 = arith.mulf %618, %571 : vector<8x128xf32>
    %629 = arith.addf %627, %628 : vector<8x128xf32>
    %630 = tpu.concatenate %629, %598 in 1 : vector<8x128xf32>, vector<8x128xf32> -> vector<8x256xf32>
    %c0_163 = arith.constant 0 : index
    %c0_164 = arith.constant 0 : index
    %c0_165 = arith.constant 0 : index
    %631 = vector.load %arg6[%c0_163, %c0_164, %c0_165] : memref<1x256x512xf32, #tpu.memory_space<vmem>>, vector<1x256x512xf32>
    %632 = vector.shape_cast %631 : vector<1x256x512xf32> to vector<256x512xf32>
    %cst_166 = arith.constant dense<0.000000e+00> : vector<8x512xf32>
    %633 = tpu.matmul %630, %632, %cst_166 {dimension_numbers = #tpu.dot_dimension_numbers<[1], [0], [0], [1], [0, 0, 1, 1], [], []>} : vector<8x256xf32>, vector<256x512xf32>, vector<8x512xf32> -> vector<8x512xf32>
    %634 = arith.addf %633, %15 : vector<8x512xf32>
    %635 = vector.extract_strided_slice %634 {offsets = [0, 0], sizes = [8, 128], strides = [1, 1]} : vector<8x512xf32> to vector<8x128xf32>
    %636 = arith.negf %635 : vector<8x128xf32>
    %637 = math.exp %636 : vector<8x128xf32>
    %cst_167 = arith.constant 1.000000e+00 : f32
    %638 = vector.broadcast %cst_167 : f32 to vector<8x128xf32>
    %639 = arith.addf %638, %637 : vector<8x128xf32>
    %640 = arith.divf %638, %639 : vector<8x128xf32>
    %641 = vector.extract_strided_slice %634 {offsets = [0, 128], sizes = [8, 128], strides = [1, 1]} : vector<8x512xf32> to vector<8x128xf32>
    %642 = arith.negf %641 : vector<8x128xf32>
    %643 = math.exp %642 : vector<8x128xf32>
    %cst_168 = arith.constant 1.000000e+00 : f32
    %644 = vector.broadcast %cst_168 : f32 to vector<8x128xf32>
    %645 = arith.addf %644, %643 : vector<8x128xf32>
    %646 = arith.divf %644, %645 : vector<8x128xf32>
    %647 = vector.extract_strided_slice %634 {offsets = [0, 256], sizes = [8, 128], strides = [1, 1]} : vector<8x512xf32> to vector<8x128xf32>
    %648 = vector.extract_strided_slice %634 {offsets = [0, 384], sizes = [8, 128], strides = [1, 1]} : vector<8x512xf32> to vector<8x128xf32>
    %649 = arith.mulf %640, %648 : vector<8x128xf32>
    %650 = arith.addf %647, %649 : vector<8x128xf32>
    %651 = math.tanh %650 : vector<8x128xf32>
    %cst_169 = arith.constant 1.000000e+00 : f32
    %652 = vector.broadcast %cst_169 : f32 to vector<8x128xf32>
    %653 = arith.subf %652, %646 : vector<8x128xf32>
    %654 = arith.mulf %653, %651 : vector<8x128xf32>
    %655 = arith.mulf %646, %598 : vector<8x128xf32>
    %656 = arith.addf %654, %655 : vector<8x128xf32>
    %c80 = arith.constant 80 : index
    %c0_170 = arith.constant 0 : index
    %657 = vector.load %arg8[%c80, %c0_170] : memref<128x128xf32, #tpu.memory_space<vmem>>, vector<8x128xf32>
    tpu.vector_store %arg8[%c80, %c0_170], %656 {strides = array<i32>} : memref<128x128xf32, #tpu.memory_space<vmem>>, vector<8x128xf32>,
    %658 = vector.extract_strided_slice %8 {offsets = [88, 0], sizes = [8, 384], strides = [1, 1]} : vector<128x384xf32> to vector<8x384xf32>
    %c0_171 = arith.constant 0 : index
    %c0_172 = arith.constant 0 : index
    %659 = vector.load %arg4[%c0_171, %c0_172] : memref<128x384xf32, #tpu.memory_space<vmem>>, vector<128x384xf32>
    %cst_173 = arith.constant dense<0.000000e+00> : vector<8x384xf32>
    %660 = tpu.matmul %629, %659, %cst_173 {dimension_numbers = #tpu.dot_dimension_numbers<[1], [0], [0], [1], [0, 0, 1, 1], [], []>} : vector<8x128xf32>, vector<128x384xf32>, vector<8x384xf32> -> vector<8x384xf32>
    %661 = vector.extract_strided_slice %658 {offsets = [0, 0], sizes = [8, 128], strides = [1, 1]} : vector<8x384xf32> to vector<8x128xf32>
    %662 = vector.extract_strided_slice %660 {offsets = [0, 0], sizes = [8, 128], strides = [1, 1]} : vector<8x384xf32> to vector<8x128xf32>
    %663 = arith.addf %661, %662 : vector<8x128xf32>
    %664 = arith.negf %663 : vector<8x128xf32>
    %665 = math.exp %664 : vector<8x128xf32>
    %cst_174 = arith.constant 1.000000e+00 : f32
    %666 = vector.broadcast %cst_174 : f32 to vector<8x128xf32>
    %667 = arith.addf %666, %665 : vector<8x128xf32>
    %668 = arith.divf %666, %667 : vector<8x128xf32>
    %669 = vector.extract_strided_slice %658 {offsets = [0, 128], sizes = [8, 128], strides = [1, 1]} : vector<8x384xf32> to vector<8x128xf32>
    %670 = vector.extract_strided_slice %660 {offsets = [0, 128], sizes = [8, 128], strides = [1, 1]} : vector<8x384xf32> to vector<8x128xf32>
    %671 = arith.addf %669, %670 : vector<8x128xf32>
    %672 = arith.negf %671 : vector<8x128xf32>
    %673 = math.exp %672 : vector<8x128xf32>
    %cst_175 = arith.constant 1.000000e+00 : f32
    %674 = vector.broadcast %cst_175 : f32 to vector<8x128xf32>
    %675 = arith.addf %674, %673 : vector<8x128xf32>
    %676 = arith.divf %674, %675 : vector<8x128xf32>
    %677 = vector.extract_strided_slice %658 {offsets = [0, 256], sizes = [8, 128], strides = [1, 1]} : vector<8x384xf32> to vector<8x128xf32>
    %678 = vector.extract_strided_slice %660 {offsets = [0, 256], sizes = [8, 128], strides = [1, 1]} : vector<8x384xf32> to vector<8x128xf32>
    %679 = arith.addf %678, %11 : vector<8x128xf32>
    %680 = arith.mulf %668, %679 : vector<8x128xf32>
    %681 = arith.addf %677, %680 : vector<8x128xf32>
    %682 = math.tanh %681 : vector<8x128xf32>
    %cst_176 = arith.constant 1.000000e+00 : f32
    %683 = vector.broadcast %cst_176 : f32 to vector<8x128xf32>
    %684 = arith.subf %683, %676 : vector<8x128xf32>
    %685 = arith.mulf %684, %682 : vector<8x128xf32>
    %686 = arith.mulf %676, %629 : vector<8x128xf32>
    %687 = arith.addf %685, %686 : vector<8x128xf32>
    %688 = tpu.concatenate %687, %656 in 1 : vector<8x128xf32>, vector<8x128xf32> -> vector<8x256xf32>
    %c0_177 = arith.constant 0 : index
    %c0_178 = arith.constant 0 : index
    %c0_179 = arith.constant 0 : index
    %689 = vector.load %arg6[%c0_177, %c0_178, %c0_179] : memref<1x256x512xf32, #tpu.memory_space<vmem>>, vector<1x256x512xf32>
    %690 = vector.shape_cast %689 : vector<1x256x512xf32> to vector<256x512xf32>
    %cst_180 = arith.constant dense<0.000000e+00> : vector<8x512xf32>
    %691 = tpu.matmul %688, %690, %cst_180 {dimension_numbers = #tpu.dot_dimension_numbers<[1], [0], [0], [1], [0, 0, 1, 1], [], []>} : vector<8x256xf32>, vector<256x512xf32>, vector<8x512xf32> -> vector<8x512xf32>
    %692 = arith.addf %691, %15 : vector<8x512xf32>
    %693 = vector.extract_strided_slice %692 {offsets = [0, 0], sizes = [8, 128], strides = [1, 1]} : vector<8x512xf32> to vector<8x128xf32>
    %694 = arith.negf %693 : vector<8x128xf32>
    %695 = math.exp %694 : vector<8x128xf32>
    %cst_181 = arith.constant 1.000000e+00 : f32
    %696 = vector.broadcast %cst_181 : f32 to vector<8x128xf32>
    %697 = arith.addf %696, %695 : vector<8x128xf32>
    %698 = arith.divf %696, %697 : vector<8x128xf32>
    %699 = vector.extract_strided_slice %692 {offsets = [0, 128], sizes = [8, 128], strides = [1, 1]} : vector<8x512xf32> to vector<8x128xf32>
    %700 = arith.negf %699 : vector<8x128xf32>
    %701 = math.exp %700 : vector<8x128xf32>
    %cst_182 = arith.constant 1.000000e+00 : f32
    %702 = vector.broadcast %cst_182 : f32 to vector<8x128xf32>
    %703 = arith.addf %702, %701 : vector<8x128xf32>
    %704 = arith.divf %702, %703 : vector<8x128xf32>
    %705 = vector.extract_strided_slice %692 {offsets = [0, 256], sizes = [8, 128], strides = [1, 1]} : vector<8x512xf32> to vector<8x128xf32>
    %706 = vector.extract_strided_slice %692 {offsets = [0, 384], sizes = [8, 128], strides = [1, 1]} : vector<8x512xf32> to vector<8x128xf32>
    %707 = arith.mulf %698, %706 : vector<8x128xf32>
    %708 = arith.addf %705, %707 : vector<8x128xf32>
    %709 = math.tanh %708 : vector<8x128xf32>
    %cst_183 = arith.constant 1.000000e+00 : f32
    %710 = vector.broadcast %cst_183 : f32 to vector<8x128xf32>
    %711 = arith.subf %710, %704 : vector<8x128xf32>
    %712 = arith.mulf %711, %709 : vector<8x128xf32>
    %713 = arith.mulf %704, %656 : vector<8x128xf32>
    %714 = arith.addf %712, %713 : vector<8x128xf32>
    %c88 = arith.constant 88 : index
    %c0_184 = arith.constant 0 : index
    %715 = vector.load %arg8[%c88, %c0_184] : memref<128x128xf32, #tpu.memory_space<vmem>>, vector<8x128xf32>
    tpu.vector_store %arg8[%c88, %c0_184], %714 {strides = array<i32>} : memref<128x128xf32, #tpu.memory_space<vmem>>, vector<8x128xf32>,
    %716 = vector.extract_strided_slice %8 {offsets = [96, 0], sizes = [8, 384], strides = [1, 1]} : vector<128x384xf32> to vector<8x384xf32>
    %c0_185 = arith.constant 0 : index
    %c0_186 = arith.constant 0 : index
    %717 = vector.load %arg4[%c0_185, %c0_186] : memref<128x384xf32, #tpu.memory_space<vmem>>, vector<128x384xf32>
    %cst_187 = arith.constant dense<0.000000e+00> : vector<8x384xf32>
    %718 = tpu.matmul %687, %717, %cst_187 {dimension_numbers = #tpu.dot_dimension_numbers<[1], [0], [0], [1], [0, 0, 1, 1], [], []>} : vector<8x128xf32>, vector<128x384xf32>, vector<8x384xf32> -> vector<8x384xf32>
    %719 = vector.extract_strided_slice %716 {offsets = [0, 0], sizes = [8, 128], strides = [1, 1]} : vector<8x384xf32> to vector<8x128xf32>
    %720 = vector.extract_strided_slice %718 {offsets = [0, 0], sizes = [8, 128], strides = [1, 1]} : vector<8x384xf32> to vector<8x128xf32>
    %721 = arith.addf %719, %720 : vector<8x128xf32>
    %722 = arith.negf %721 : vector<8x128xf32>
    %723 = math.exp %722 : vector<8x128xf32>
    %cst_188 = arith.constant 1.000000e+00 : f32
    %724 = vector.broadcast %cst_188 : f32 to vector<8x128xf32>
    %725 = arith.addf %724, %723 : vector<8x128xf32>
    %726 = arith.divf %724, %725 : vector<8x128xf32>
    %727 = vector.extract_strided_slice %716 {offsets = [0, 128], sizes = [8, 128], strides = [1, 1]} : vector<8x384xf32> to vector<8x128xf32>
    %728 = vector.extract_strided_slice %718 {offsets = [0, 128], sizes = [8, 128], strides = [1, 1]} : vector<8x384xf32> to vector<8x128xf32>
    %729 = arith.addf %727, %728 : vector<8x128xf32>
    %730 = arith.negf %729 : vector<8x128xf32>
    %731 = math.exp %730 : vector<8x128xf32>
    %cst_189 = arith.constant 1.000000e+00 : f32
    %732 = vector.broadcast %cst_189 : f32 to vector<8x128xf32>
    %733 = arith.addf %732, %731 : vector<8x128xf32>
    %734 = arith.divf %732, %733 : vector<8x128xf32>
    %735 = vector.extract_strided_slice %716 {offsets = [0, 256], sizes = [8, 128], strides = [1, 1]} : vector<8x384xf32> to vector<8x128xf32>
    %736 = vector.extract_strided_slice %718 {offsets = [0, 256], sizes = [8, 128], strides = [1, 1]} : vector<8x384xf32> to vector<8x128xf32>
    %737 = arith.addf %736, %11 : vector<8x128xf32>
    %738 = arith.mulf %726, %737 : vector<8x128xf32>
    %739 = arith.addf %735, %738 : vector<8x128xf32>
    %740 = math.tanh %739 : vector<8x128xf32>
    %cst_190 = arith.constant 1.000000e+00 : f32
    %741 = vector.broadcast %cst_190 : f32 to vector<8x128xf32>
    %742 = arith.subf %741, %734 : vector<8x128xf32>
    %743 = arith.mulf %742, %740 : vector<8x128xf32>
    %744 = arith.mulf %734, %687 : vector<8x128xf32>
    %745 = arith.addf %743, %744 : vector<8x128xf32>
    %746 = tpu.concatenate %745, %714 in 1 : vector<8x128xf32>, vector<8x128xf32> -> vector<8x256xf32>
    %c0_191 = arith.constant 0 : index
    %c0_192 = arith.constant 0 : index
    %c0_193 = arith.constant 0 : index
    %747 = vector.load %arg6[%c0_191, %c0_192, %c0_193] : memref<1x256x512xf32, #tpu.memory_space<vmem>>, vector<1x256x512xf32>
    %748 = vector.shape_cast %747 : vector<1x256x512xf32> to vector<256x512xf32>
    %cst_194 = arith.constant dense<0.000000e+00> : vector<8x512xf32>
    %749 = tpu.matmul %746, %748, %cst_194 {dimension_numbers = #tpu.dot_dimension_numbers<[1], [0], [0], [1], [0, 0, 1, 1], [], []>} : vector<8x256xf32>, vector<256x512xf32>, vector<8x512xf32> -> vector<8x512xf32>
    %750 = arith.addf %749, %15 : vector<8x512xf32>
    %751 = vector.extract_strided_slice %750 {offsets = [0, 0], sizes = [8, 128], strides = [1, 1]} : vector<8x512xf32> to vector<8x128xf32>
    %752 = arith.negf %751 : vector<8x128xf32>
    %753 = math.exp %752 : vector<8x128xf32>
    %cst_195 = arith.constant 1.000000e+00 : f32
    %754 = vector.broadcast %cst_195 : f32 to vector<8x128xf32>
    %755 = arith.addf %754, %753 : vector<8x128xf32>
    %756 = arith.divf %754, %755 : vector<8x128xf32>
    %757 = vector.extract_strided_slice %750 {offsets = [0, 128], sizes = [8, 128], strides = [1, 1]} : vector<8x512xf32> to vector<8x128xf32>
    %758 = arith.negf %757 : vector<8x128xf32>
    %759 = math.exp %758 : vector<8x128xf32>
    %cst_196 = arith.constant 1.000000e+00 : f32
    %760 = vector.broadcast %cst_196 : f32 to vector<8x128xf32>
    %761 = arith.addf %760, %759 : vector<8x128xf32>
    %762 = arith.divf %760, %761 : vector<8x128xf32>
    %763 = vector.extract_strided_slice %750 {offsets = [0, 256], sizes = [8, 128], strides = [1, 1]} : vector<8x512xf32> to vector<8x128xf32>
    %764 = vector.extract_strided_slice %750 {offsets = [0, 384], sizes = [8, 128], strides = [1, 1]} : vector<8x512xf32> to vector<8x128xf32>
    %765 = arith.mulf %756, %764 : vector<8x128xf32>
    %766 = arith.addf %763, %765 : vector<8x128xf32>
    %767 = math.tanh %766 : vector<8x128xf32>
    %cst_197 = arith.constant 1.000000e+00 : f32
    %768 = vector.broadcast %cst_197 : f32 to vector<8x128xf32>
    %769 = arith.subf %768, %762 : vector<8x128xf32>
    %770 = arith.mulf %769, %767 : vector<8x128xf32>
    %771 = arith.mulf %762, %714 : vector<8x128xf32>
    %772 = arith.addf %770, %771 : vector<8x128xf32>
    %c96 = arith.constant 96 : index
    %c0_198 = arith.constant 0 : index
    %773 = vector.load %arg8[%c96, %c0_198] : memref<128x128xf32, #tpu.memory_space<vmem>>, vector<8x128xf32>
    tpu.vector_store %arg8[%c96, %c0_198], %772 {strides = array<i32>} : memref<128x128xf32, #tpu.memory_space<vmem>>, vector<8x128xf32>,
    %774 = vector.extract_strided_slice %8 {offsets = [104, 0], sizes = [8, 384], strides = [1, 1]} : vector<128x384xf32> to vector<8x384xf32>
    %c0_199 = arith.constant 0 : index
    %c0_200 = arith.constant 0 : index
    %775 = vector.load %arg4[%c0_199, %c0_200] : memref<128x384xf32, #tpu.memory_space<vmem>>, vector<128x384xf32>
    %cst_201 = arith.constant dense<0.000000e+00> : vector<8x384xf32>
    %776 = tpu.matmul %745, %775, %cst_201 {dimension_numbers = #tpu.dot_dimension_numbers<[1], [0], [0], [1], [0, 0, 1, 1], [], []>} : vector<8x128xf32>, vector<128x384xf32>, vector<8x384xf32> -> vector<8x384xf32>
    %777 = vector.extract_strided_slice %774 {offsets = [0, 0], sizes = [8, 128], strides = [1, 1]} : vector<8x384xf32> to vector<8x128xf32>
    %778 = vector.extract_strided_slice %776 {offsets = [0, 0], sizes = [8, 128], strides = [1, 1]} : vector<8x384xf32> to vector<8x128xf32>
    %779 = arith.addf %777, %778 : vector<8x128xf32>
    %780 = arith.negf %779 : vector<8x128xf32>
    %781 = math.exp %780 : vector<8x128xf32>
    %cst_202 = arith.constant 1.000000e+00 : f32
    %782 = vector.broadcast %cst_202 : f32 to vector<8x128xf32>
    %783 = arith.addf %782, %781 : vector<8x128xf32>
    %784 = arith.divf %782, %783 : vector<8x128xf32>
    %785 = vector.extract_strided_slice %774 {offsets = [0, 128], sizes = [8, 128], strides = [1, 1]} : vector<8x384xf32> to vector<8x128xf32>
    %786 = vector.extract_strided_slice %776 {offsets = [0, 128], sizes = [8, 128], strides = [1, 1]} : vector<8x384xf32> to vector<8x128xf32>
    %787 = arith.addf %785, %786 : vector<8x128xf32>
    %788 = arith.negf %787 : vector<8x128xf32>
    %789 = math.exp %788 : vector<8x128xf32>
    %cst_203 = arith.constant 1.000000e+00 : f32
    %790 = vector.broadcast %cst_203 : f32 to vector<8x128xf32>
    %791 = arith.addf %790, %789 : vector<8x128xf32>
    %792 = arith.divf %790, %791 : vector<8x128xf32>
    %793 = vector.extract_strided_slice %774 {offsets = [0, 256], sizes = [8, 128], strides = [1, 1]} : vector<8x384xf32> to vector<8x128xf32>
    %794 = vector.extract_strided_slice %776 {offsets = [0, 256], sizes = [8, 128], strides = [1, 1]} : vector<8x384xf32> to vector<8x128xf32>
    %795 = arith.addf %794, %11 : vector<8x128xf32>
    %796 = arith.mulf %784, %795 : vector<8x128xf32>
    %797 = arith.addf %793, %796 : vector<8x128xf32>
    %798 = math.tanh %797 : vector<8x128xf32>
    %cst_204 = arith.constant 1.000000e+00 : f32
    %799 = vector.broadcast %cst_204 : f32 to vector<8x128xf32>
    %800 = arith.subf %799, %792 : vector<8x128xf32>
    %801 = arith.mulf %800, %798 : vector<8x128xf32>
    %802 = arith.mulf %792, %745 : vector<8x128xf32>
    %803 = arith.addf %801, %802 : vector<8x128xf32>
    %804 = tpu.concatenate %803, %772 in 1 : vector<8x128xf32>, vector<8x128xf32> -> vector<8x256xf32>
    %c0_205 = arith.constant 0 : index
    %c0_206 = arith.constant 0 : index
    %c0_207 = arith.constant 0 : index
    %805 = vector.load %arg6[%c0_205, %c0_206, %c0_207] : memref<1x256x512xf32, #tpu.memory_space<vmem>>, vector<1x256x512xf32>
    %806 = vector.shape_cast %805 : vector<1x256x512xf32> to vector<256x512xf32>
    %cst_208 = arith.constant dense<0.000000e+00> : vector<8x512xf32>
    %807 = tpu.matmul %804, %806, %cst_208 {dimension_numbers = #tpu.dot_dimension_numbers<[1], [0], [0], [1], [0, 0, 1, 1], [], []>} : vector<8x256xf32>, vector<256x512xf32>, vector<8x512xf32> -> vector<8x512xf32>
    %808 = arith.addf %807, %15 : vector<8x512xf32>
    %809 = vector.extract_strided_slice %808 {offsets = [0, 0], sizes = [8, 128], strides = [1, 1]} : vector<8x512xf32> to vector<8x128xf32>
    %810 = arith.negf %809 : vector<8x128xf32>
    %811 = math.exp %810 : vector<8x128xf32>
    %cst_209 = arith.constant 1.000000e+00 : f32
    %812 = vector.broadcast %cst_209 : f32 to vector<8x128xf32>
    %813 = arith.addf %812, %811 : vector<8x128xf32>
    %814 = arith.divf %812, %813 : vector<8x128xf32>
    %815 = vector.extract_strided_slice %808 {offsets = [0, 128], sizes = [8, 128], strides = [1, 1]} : vector<8x512xf32> to vector<8x128xf32>
    %816 = arith.negf %815 : vector<8x128xf32>
    %817 = math.exp %816 : vector<8x128xf32>
    %cst_210 = arith.constant 1.000000e+00 : f32
    %818 = vector.broadcast %cst_210 : f32 to vector<8x128xf32>
    %819 = arith.addf %818, %817 : vector<8x128xf32>
    %820 = arith.divf %818, %819 : vector<8x128xf32>
    %821 = vector.extract_strided_slice %808 {offsets = [0, 256], sizes = [8, 128], strides = [1, 1]} : vector<8x512xf32> to vector<8x128xf32>
    %822 = vector.extract_strided_slice %808 {offsets = [0, 384], sizes = [8, 128], strides = [1, 1]} : vector<8x512xf32> to vector<8x128xf32>
    %823 = arith.mulf %814, %822 : vector<8x128xf32>
    %824 = arith.addf %821, %823 : vector<8x128xf32>
    %825 = math.tanh %824 : vector<8x128xf32>
    %cst_211 = arith.constant 1.000000e+00 : f32
    %826 = vector.broadcast %cst_211 : f32 to vector<8x128xf32>
    %827 = arith.subf %826, %820 : vector<8x128xf32>
    %828 = arith.mulf %827, %825 : vector<8x128xf32>
    %829 = arith.mulf %820, %772 : vector<8x128xf32>
    %830 = arith.addf %828, %829 : vector<8x128xf32>
    %c104 = arith.constant 104 : index
    %c0_212 = arith.constant 0 : index
    %831 = vector.load %arg8[%c104, %c0_212] : memref<128x128xf32, #tpu.memory_space<vmem>>, vector<8x128xf32>
    tpu.vector_store %arg8[%c104, %c0_212], %830 {strides = array<i32>} : memref<128x128xf32, #tpu.memory_space<vmem>>, vector<8x128xf32>,
    %832 = vector.extract_strided_slice %8 {offsets = [112, 0], sizes = [8, 384], strides = [1, 1]} : vector<128x384xf32> to vector<8x384xf32>
    %c0_213 = arith.constant 0 : index
    %c0_214 = arith.constant 0 : index
    %833 = vector.load %arg4[%c0_213, %c0_214] : memref<128x384xf32, #tpu.memory_space<vmem>>, vector<128x384xf32>
    %cst_215 = arith.constant dense<0.000000e+00> : vector<8x384xf32>
    %834 = tpu.matmul %803, %833, %cst_215 {dimension_numbers = #tpu.dot_dimension_numbers<[1], [0], [0], [1], [0, 0, 1, 1], [], []>} : vector<8x128xf32>, vector<128x384xf32>, vector<8x384xf32> -> vector<8x384xf32>
    %835 = vector.extract_strided_slice %832 {offsets = [0, 0], sizes = [8, 128], strides = [1, 1]} : vector<8x384xf32> to vector<8x128xf32>
    %836 = vector.extract_strided_slice %834 {offsets = [0, 0], sizes = [8, 128], strides = [1, 1]} : vector<8x384xf32> to vector<8x128xf32>
    %837 = arith.addf %835, %836 : vector<8x128xf32>
    %838 = arith.negf %837 : vector<8x128xf32>
    %839 = math.exp %838 : vector<8x128xf32>
    %cst_216 = arith.constant 1.000000e+00 : f32
    %840 = vector.broadcast %cst_216 : f32 to vector<8x128xf32>
    %841 = arith.addf %840, %839 : vector<8x128xf32>
    %842 = arith.divf %840, %841 : vector<8x128xf32>
    %843 = vector.extract_strided_slice %832 {offsets = [0, 128], sizes = [8, 128], strides = [1, 1]} : vector<8x384xf32> to vector<8x128xf32>
    %844 = vector.extract_strided_slice %834 {offsets = [0, 128], sizes = [8, 128], strides = [1, 1]} : vector<8x384xf32> to vector<8x128xf32>
    %845 = arith.addf %843, %844 : vector<8x128xf32>
    %846 = arith.negf %845 : vector<8x128xf32>
    %847 = math.exp %846 : vector<8x128xf32>
    %cst_217 = arith.constant 1.000000e+00 : f32
    %848 = vector.broadcast %cst_217 : f32 to vector<8x128xf32>
    %849 = arith.addf %848, %847 : vector<8x128xf32>
    %850 = arith.divf %848, %849 : vector<8x128xf32>
    %851 = vector.extract_strided_slice %832 {offsets = [0, 256], sizes = [8, 128], strides = [1, 1]} : vector<8x384xf32> to vector<8x128xf32>
    %852 = vector.extract_strided_slice %834 {offsets = [0, 256], sizes = [8, 128], strides = [1, 1]} : vector<8x384xf32> to vector<8x128xf32>
    %853 = arith.addf %852, %11 : vector<8x128xf32>
    %854 = arith.mulf %842, %853 : vector<8x128xf32>
    %855 = arith.addf %851, %854 : vector<8x128xf32>
    %856 = math.tanh %855 : vector<8x128xf32>
    %cst_218 = arith.constant 1.000000e+00 : f32
    %857 = vector.broadcast %cst_218 : f32 to vector<8x128xf32>
    %858 = arith.subf %857, %850 : vector<8x128xf32>
    %859 = arith.mulf %858, %856 : vector<8x128xf32>
    %860 = arith.mulf %850, %803 : vector<8x128xf32>
    %861 = arith.addf %859, %860 : vector<8x128xf32>
    %862 = tpu.concatenate %861, %830 in 1 : vector<8x128xf32>, vector<8x128xf32> -> vector<8x256xf32>
    %c0_219 = arith.constant 0 : index
    %c0_220 = arith.constant 0 : index
    %c0_221 = arith.constant 0 : index
    %863 = vector.load %arg6[%c0_219, %c0_220, %c0_221] : memref<1x256x512xf32, #tpu.memory_space<vmem>>, vector<1x256x512xf32>
    %864 = vector.shape_cast %863 : vector<1x256x512xf32> to vector<256x512xf32>
    %cst_222 = arith.constant dense<0.000000e+00> : vector<8x512xf32>
    %865 = tpu.matmul %862, %864, %cst_222 {dimension_numbers = #tpu.dot_dimension_numbers<[1], [0], [0], [1], [0, 0, 1, 1], [], []>} : vector<8x256xf32>, vector<256x512xf32>, vector<8x512xf32> -> vector<8x512xf32>
    %866 = arith.addf %865, %15 : vector<8x512xf32>
    %867 = vector.extract_strided_slice %866 {offsets = [0, 0], sizes = [8, 128], strides = [1, 1]} : vector<8x512xf32> to vector<8x128xf32>
    %868 = arith.negf %867 : vector<8x128xf32>
    %869 = math.exp %868 : vector<8x128xf32>
    %cst_223 = arith.constant 1.000000e+00 : f32
    %870 = vector.broadcast %cst_223 : f32 to vector<8x128xf32>
    %871 = arith.addf %870, %869 : vector<8x128xf32>
    %872 = arith.divf %870, %871 : vector<8x128xf32>
    %873 = vector.extract_strided_slice %866 {offsets = [0, 128], sizes = [8, 128], strides = [1, 1]} : vector<8x512xf32> to vector<8x128xf32>
    %874 = arith.negf %873 : vector<8x128xf32>
    %875 = math.exp %874 : vector<8x128xf32>
    %cst_224 = arith.constant 1.000000e+00 : f32
    %876 = vector.broadcast %cst_224 : f32 to vector<8x128xf32>
    %877 = arith.addf %876, %875 : vector<8x128xf32>
    %878 = arith.divf %876, %877 : vector<8x128xf32>
    %879 = vector.extract_strided_slice %866 {offsets = [0, 256], sizes = [8, 128], strides = [1, 1]} : vector<8x512xf32> to vector<8x128xf32>
    %880 = vector.extract_strided_slice %866 {offsets = [0, 384], sizes = [8, 128], strides = [1, 1]} : vector<8x512xf32> to vector<8x128xf32>
    %881 = arith.mulf %872, %880 : vector<8x128xf32>
    %882 = arith.addf %879, %881 : vector<8x128xf32>
    %883 = math.tanh %882 : vector<8x128xf32>
    %cst_225 = arith.constant 1.000000e+00 : f32
    %884 = vector.broadcast %cst_225 : f32 to vector<8x128xf32>
    %885 = arith.subf %884, %878 : vector<8x128xf32>
    %886 = arith.mulf %885, %883 : vector<8x128xf32>
    %887 = arith.mulf %878, %830 : vector<8x128xf32>
    %888 = arith.addf %886, %887 : vector<8x128xf32>
    %c112 = arith.constant 112 : index
    %c0_226 = arith.constant 0 : index
    %889 = vector.load %arg8[%c112, %c0_226] : memref<128x128xf32, #tpu.memory_space<vmem>>, vector<8x128xf32>
    tpu.vector_store %arg8[%c112, %c0_226], %888 {strides = array<i32>} : memref<128x128xf32, #tpu.memory_space<vmem>>, vector<8x128xf32>,
    %890 = vector.extract_strided_slice %8 {offsets = [120, 0], sizes = [8, 384], strides = [1, 1]} : vector<128x384xf32> to vector<8x384xf32>
    %c0_227 = arith.constant 0 : index
    %c0_228 = arith.constant 0 : index
    %891 = vector.load %arg4[%c0_227, %c0_228] : memref<128x384xf32, #tpu.memory_space<vmem>>, vector<128x384xf32>
    %cst_229 = arith.constant dense<0.000000e+00> : vector<8x384xf32>
    %892 = tpu.matmul %861, %891, %cst_229 {dimension_numbers = #tpu.dot_dimension_numbers<[1], [0], [0], [1], [0, 0, 1, 1], [], []>} : vector<8x128xf32>, vector<128x384xf32>, vector<8x384xf32> -> vector<8x384xf32>
    %893 = vector.extract_strided_slice %890 {offsets = [0, 0], sizes = [8, 128], strides = [1, 1]} : vector<8x384xf32> to vector<8x128xf32>
    %894 = vector.extract_strided_slice %892 {offsets = [0, 0], sizes = [8, 128], strides = [1, 1]} : vector<8x384xf32> to vector<8x128xf32>
    %895 = arith.addf %893, %894 : vector<8x128xf32>
    %896 = arith.negf %895 : vector<8x128xf32>
    %897 = math.exp %896 : vector<8x128xf32>
    %cst_230 = arith.constant 1.000000e+00 : f32
    %898 = vector.broadcast %cst_230 : f32 to vector<8x128xf32>
    %899 = arith.addf %898, %897 : vector<8x128xf32>
    %900 = arith.divf %898, %899 : vector<8x128xf32>
    %901 = vector.extract_strided_slice %890 {offsets = [0, 128], sizes = [8, 128], strides = [1, 1]} : vector<8x384xf32> to vector<8x128xf32>
    %902 = vector.extract_strided_slice %892 {offsets = [0, 128], sizes = [8, 128], strides = [1, 1]} : vector<8x384xf32> to vector<8x128xf32>
    %903 = arith.addf %901, %902 : vector<8x128xf32>
    %904 = arith.negf %903 : vector<8x128xf32>
    %905 = math.exp %904 : vector<8x128xf32>
    %cst_231 = arith.constant 1.000000e+00 : f32
    %906 = vector.broadcast %cst_231 : f32 to vector<8x128xf32>
    %907 = arith.addf %906, %905 : vector<8x128xf32>
    %908 = arith.divf %906, %907 : vector<8x128xf32>
    %909 = vector.extract_strided_slice %890 {offsets = [0, 256], sizes = [8, 128], strides = [1, 1]} : vector<8x384xf32> to vector<8x128xf32>
    %910 = vector.extract_strided_slice %892 {offsets = [0, 256], sizes = [8, 128], strides = [1, 1]} : vector<8x384xf32> to vector<8x128xf32>
    %911 = arith.addf %910, %11 : vector<8x128xf32>
    %912 = arith.mulf %900, %911 : vector<8x128xf32>
    %913 = arith.addf %909, %912 : vector<8x128xf32>
    %914 = math.tanh %913 : vector<8x128xf32>
    %cst_232 = arith.constant 1.000000e+00 : f32
    %915 = vector.broadcast %cst_232 : f32 to vector<8x128xf32>
    %916 = arith.subf %915, %908 : vector<8x128xf32>
    %917 = arith.mulf %916, %914 : vector<8x128xf32>
    %918 = arith.mulf %908, %861 : vector<8x128xf32>
    %919 = arith.addf %917, %918 : vector<8x128xf32>
    %920 = tpu.concatenate %919, %888 in 1 : vector<8x128xf32>, vector<8x128xf32> -> vector<8x256xf32>
    %c0_233 = arith.constant 0 : index
    %c0_234 = arith.constant 0 : index
    %c0_235 = arith.constant 0 : index
    %921 = vector.load %arg6[%c0_233, %c0_234, %c0_235] : memref<1x256x512xf32, #tpu.memory_space<vmem>>, vector<1x256x512xf32>
    %922 = vector.shape_cast %921 : vector<1x256x512xf32> to vector<256x512xf32>
    %cst_236 = arith.constant dense<0.000000e+00> : vector<8x512xf32>
    %923 = tpu.matmul %920, %922, %cst_236 {dimension_numbers = #tpu.dot_dimension_numbers<[1], [0], [0], [1], [0, 0, 1, 1], [], []>} : vector<8x256xf32>, vector<256x512xf32>, vector<8x512xf32> -> vector<8x512xf32>
    %924 = arith.addf %923, %15 : vector<8x512xf32>
    %925 = vector.extract_strided_slice %924 {offsets = [0, 0], sizes = [8, 128], strides = [1, 1]} : vector<8x512xf32> to vector<8x128xf32>
    %926 = arith.negf %925 : vector<8x128xf32>
    %927 = math.exp %926 : vector<8x128xf32>
    %cst_237 = arith.constant 1.000000e+00 : f32
    %928 = vector.broadcast %cst_237 : f32 to vector<8x128xf32>
    %929 = arith.addf %928, %927 : vector<8x128xf32>
    %930 = arith.divf %928, %929 : vector<8x128xf32>
    %931 = vector.extract_strided_slice %924 {offsets = [0, 128], sizes = [8, 128], strides = [1, 1]} : vector<8x512xf32> to vector<8x128xf32>
    %932 = arith.negf %931 : vector<8x128xf32>
    %933 = math.exp %932 : vector<8x128xf32>
    %cst_238 = arith.constant 1.000000e+00 : f32
    %934 = vector.broadcast %cst_238 : f32 to vector<8x128xf32>
    %935 = arith.addf %934, %933 : vector<8x128xf32>
    %936 = arith.divf %934, %935 : vector<8x128xf32>
    %937 = vector.extract_strided_slice %924 {offsets = [0, 256], sizes = [8, 128], strides = [1, 1]} : vector<8x512xf32> to vector<8x128xf32>
    %938 = vector.extract_strided_slice %924 {offsets = [0, 384], sizes = [8, 128], strides = [1, 1]} : vector<8x512xf32> to vector<8x128xf32>
    %939 = arith.mulf %930, %938 : vector<8x128xf32>
    %940 = arith.addf %937, %939 : vector<8x128xf32>
    %941 = math.tanh %940 : vector<8x128xf32>
    %cst_239 = arith.constant 1.000000e+00 : f32
    %942 = vector.broadcast %cst_239 : f32 to vector<8x128xf32>
    %943 = arith.subf %942, %936 : vector<8x128xf32>
    %944 = arith.mulf %943, %941 : vector<8x128xf32>
    %945 = arith.mulf %936, %888 : vector<8x128xf32>
    %946 = arith.addf %944, %945 : vector<8x128xf32>
    %c120 = arith.constant 120 : index
    %c0_240 = arith.constant 0 : index
    %947 = vector.load %arg8[%c120, %c0_240] : memref<128x128xf32, #tpu.memory_space<vmem>>, vector<8x128xf32>
    tpu.vector_store %arg8[%c120, %c0_240], %946 {strides = array<i32>} : memref<128x128xf32, #tpu.memory_space<vmem>>, vector<8x128xf32>,
    %c0_241 = arith.constant 0 : index
    %c0_242 = arith.constant 0 : index
    %c0_243 = arith.constant 0 : index
    %948 = vector.load %arg10[%c0_241, %c0_242, %c0_243] : memref<2x8x128xf32, #tpu.memory_space<vmem>>, vector<1x8x128xf32>
    %949 = vector.shape_cast %948 : vector<1x8x128xf32> to vector<8x128xf32>
    %950 = vector.shape_cast %919 : vector<8x128xf32> to vector<1x8x128xf32>
    tpu.vector_store %arg10[%c0_241, %c0_242, %c0_243], %950 {strides = array<i32>} : memref<2x8x128xf32, #tpu.memory_space<vmem>>, vector<1x8x128xf32>,
    %c1_244 = arith.constant 1 : index
    %c0_245 = arith.constant 0 : index
    %c0_246 = arith.constant 0 : index
    %951 = vector.load %arg10[%c1_244, %c0_245, %c0_246] : memref<2x8x128xf32, #tpu.memory_space<vmem>>, vector<1x8x128xf32>
    %952 = vector.shape_cast %951 : vector<1x8x128xf32> to vector<8x128xf32>
    %953 = vector.shape_cast %946 : vector<8x128xf32> to vector<1x8x128xf32>
    tpu.vector_store %arg10[%c1_244, %c0_245, %c0_246], %953 {strides = array<i32>} : memref<2x8x128xf32, #tpu.memory_space<vmem>>, vector<1x8x128xf32>,
    %c1_i32 = arith.constant 1 : i32
    %954 = arith.cmpi eq, %arg0, %c1_i32 : i32
    %955 = arith.extui %954 : i1 to i32
    %c0_i32_247 = arith.constant 0 : i32
    %956 = arith.cmpi ne, %955, %c0_i32_247 : i32
    scf.if %956 {
      %c0_248 = arith.constant 0 : index
      %c0_249 = arith.constant 0 : index
      %c0_250 = arith.constant 0 : index
      %957 = vector.load %arg9[%c0_248, %c0_249, %c0_250] : memref<2x8x128xf32, #tpu.memory_space<vmem>>, vector<1x8x128xf32>
      %958 = vector.shape_cast %957 : vector<1x8x128xf32> to vector<8x128xf32>
      %959 = vector.shape_cast %919 : vector<8x128xf32> to vector<1x8x128xf32>
      tpu.vector_store %arg9[%c0_248, %c0_249, %c0_250], %959 {strides = array<i32>} : memref<2x8x128xf32, #tpu.memory_space<vmem>>, vector<1x8x128xf32>,
      %c1_251 = arith.constant 1 : index
      %c0_252 = arith.constant 0 : index
      %c0_253 = arith.constant 0 : index
      %960 = vector.load %arg9[%c1_251, %c0_252, %c0_253] : memref<2x8x128xf32, #tpu.memory_space<vmem>>, vector<1x8x128xf32>
      %961 = vector.shape_cast %960 : vector<1x8x128xf32> to vector<8x128xf32>
      %962 = vector.shape_cast %946 : vector<8x128xf32> to vector<1x8x128xf32>
      tpu.vector_store %arg9[%c1_251, %c0_252, %c0_253], %962 {strides = array<i32>} : memref<2x8x128xf32, #tpu.memory_space<vmem>>, vector<1x8x128xf32>,
    } else {
    }
    return
  }
  func.func @transform_0(%arg0: i32) -> (i32, i32) {
    %c0_i32 = arith.constant 0 : i32
    %c0_i32_0 = arith.constant 0 : i32
    return %arg0, %c0_i32 : i32, i32
  }
  func.func @transform_1(%arg0: i32) -> (i32, i32) {
    %c0_i32 = arith.constant 0 : i32
    %c0_i32_0 = arith.constant 0 : i32
    %c0_i32_1 = arith.constant 0 : i32
    return %c0_i32, %c0_i32_0 : i32, i32
  }
  func.func @transform_2(%arg0: i32) -> (i32, i32) {
    %c0_i32 = arith.constant 0 : i32
    %c0_i32_0 = arith.constant 0 : i32
    %c0_i32_1 = arith.constant 0 : i32
    return %c0_i32, %c0_i32_0 : i32, i32
  }
  func.func @transform_3(%arg0: i32) -> (i32, i32) {
    %c0_i32 = arith.constant 0 : i32
    %c0_i32_0 = arith.constant 0 : i32
    %c0_i32_1 = arith.constant 0 : i32
    return %c0_i32, %c0_i32_0 : i32, i32
  }
  func.func @transform_4(%arg0: i32) -> (i32, i32) {
    %c0_i32 = arith.constant 0 : i32
    %c0_i32_0 = arith.constant 0 : i32
    %c0_i32_1 = arith.constant 0 : i32
    return %c0_i32, %c0_i32_0 : i32, i32
  }
  func.func @transform_5(%arg0: i32) -> (i32, i32, i32) {
    %c0_i32 = arith.constant 0 : i32
    %c0_i32_0 = arith.constant 0 : i32
    %c0_i32_1 = arith.constant 0 : i32
    %c0_i32_2 = arith.constant 0 : i32
    return %c0_i32, %c0_i32_0, %c0_i32_1 : i32, i32, i32
  }
  func.func @transform_6(%arg0: i32) -> (i32, i32, i32) {
    %c0_i32 = arith.constant 0 : i32
    %c0_i32_0 = arith.constant 0 : i32
    %c0_i32_1 = arith.constant 0 : i32
    %c0_i32_2 = arith.constant 0 : i32
    return %c0_i32, %c0_i32_0, %c0_i32_1 : i32, i32, i32
  }
  func.func @transform_7(%arg0: i32) -> (i32, i32) {
    %c0_i32 = arith.constant 0 : i32
    %c0_i32_0 = arith.constant 0 : i32
    return %arg0, %c0_i32 : i32, i32
  }
  func.func @transform_8(%arg0: i32) -> (i32, i32, i32) {
    %c0_i32 = arith.constant 0 : i32
    %c0_i32_0 = arith.constant 0 : i32
    %c0_i32_1 = arith.constant 0 : i32
    %c0_i32_2 = arith.constant 0 : i32
    return %c0_i32, %c0_i32_0, %c0_i32_1 : i32, i32, i32
  }
}

</mosaic_0001>

<bundles_post_ra>
// kernel: seq2seq_encoder_forward.1
= control target key start
LH: loop header
LB: loop body
LE: loop exit
PB: predicated region body
PF: predicated region fallthrough
CT: control target
= control target key end

     0   :  { %14 = vsyncpa [#allocation4], 0  ;;  %s21398_s0 = inlined_call_operand.vmem [shape: f32[256,32], index: 0, kind: input, shape index: {}]   ;;  %s21399_s1 = inlined_call_operand.vmem [shape: f32[32,384], index: 1, kind: input, shape index: {}]   ;;  %s21400_s2 = inlined_call_operand.vmem [shape: f32[1,384], index: 2, kind: input, shape index: {}]   ;;  %s21401_s3 = inlined_call_operand.vmem [shape: f32[128,384], index: 3, kind: input, shape index: {}]   ;;  %s21402_s4 = inlined_call_operand.vmem [shape: f32[1,128], index: 4, kind: input, shape index: {}]   ;;  %s21403_s5 = inlined_call_operand.vmem [shape: f32[1,256,512], index: 5, kind: input, shape index: {}]   ;;  %s21404_s6 = inlined_call_operand.vmem [shape: f32[1,1,512], index: 6, kind: input, shape index: {}]   ;;  %s21405_s7 = inlined_call_operand.hbm [shape: f32[256,128], index: 7, kind: output, shape index: {0}]   ;;  %s21406_s8 = inlined_call_operand.hbm [shape: f32[2,8,128], index: 8, kind: output, shape index: {1}]  }
   0x1   :  { %16 = vsyncpa [#allocation4 + $0x1], 0 }
   0x2   :  { %17 = vsyncpa [#allocation6], 0  ;;  %s13421_s27 = smov 0   ;;  %s13423_s28 = smov 0  }
   0x3   :  { %s13425_s29 = smov 0   ;;  %s13427_s30 = smov 0  }
   0x4 LB: > { %s13442_s9 = sadd.s32 4294967295, %s13366_s30   ;;  %s8869_s10 = sadd.s32 4294967294, %s13366_s30   ;;  %s13366_s30 = sphi %s13427_s30, %s22434_s30   ;;  %s13362_s29 = sphi %s13425_s29, %s22433_s29   ;;  %s13358_s28 = sphi %s13423_s28, %s22432_s28   ;;  %s13354_s27 = sphi %s13421_s27, %s22431_s27  }
   0x5   : > { %s13446_s11 = sadd.s32 1, %s13366_s30   ;;  %s182_s12 = sadd.s32 1, %s13362_s29 }
   0x6   : > { %s179_s13 = ssub.s32 %s13366_s30, %s13446_s11  ;;  %p192_p0 = scmp.ne.s32.totalorder %s13362_s29, %s13358_s28 }
   0x7   : > { %p180_p1 = scmp.eq.s32.totalorder %s179_s13, 0  ;;  %p193_p2 = scmp.eq.s32.totalorder %s13442_s9, 1 }
   0x8   : > { %p198_p3 = scmp.ne.s32.totalorder %s13358_s28, %s13354_s27  ;;  %p199_p4 = scmp.eq.s32.totalorder %s8869_s10, 1 }
   0x9   : > { %s13457_s14 = scalar_select %p180_p1, %s13362_s29, %s182_s12  }
   0xa   : > { %p13461_p5 = por %p193_p2, %p192_p0  ;;  %p13465_p6 = por %p199_p4, %p198_p3 }
   0xb   : > { %p8872_p7 = scmp.ge.s32.totalorder %s13366_s30, 1  ;;  %p265_p8 = scmp.lt.s32.totalorder %s13366_s30, 3 }
   0xd   : > { %p266_p9 = pnand %p8872_p7, %p265_p8 }
   0xf   : > { %269 = sbr.rel (%p266_p9) target bundleno = 5028 (0x13a4), region = 48 }
  0x16   : > { %s21407_s17 = sand.u32 1, %s13358_s28   ;;  %s8874_s18 = sshll.u32 %s13442_s9, 4 }
  0x17   : > { %s8873_s19 = sshll.u32 %s21407_s17, 7  ;;  %p300_p10 = scmp.lt.s32.totalorder %s8874_s18, 31 }
  0x18   : > { %s13480_s24 = scalar_lea.vmem [#allocation3], %s8873_s19  ;;  %p8876_p11 = scmp.ne.s32.totalorder %s13442_s9, 0 }
  0x19   : > { %s22436_s18 = smov (!%p300_p10, %s8874_s18), 31  ;;  %v13368_v0 = vmov (!%p8876_p11), 0.0  }
  0x1a   : > { %s8875_s20 = sshll.u32 %s22436_s18, 3  ;;  %309 = sbr.rel (%p8876_p11) target bundleno = 33 (0x21), region = 52  ;;  %310 = vst [vmem:[#allocation2] sm:$0xff] (!%p8876_p11), %v13368_v0  ;;  %311 = vst [vmem:[#allocation2 + $0x8] sm:$0xff] (!%p8876_p11), %v13368_v0 }
  0x1b   : > { %s13478_s23 = scalar_lea.vmem %s21398_s0, %s8875_s20 }
  0x21 PF: > { %v329_v1 = vld [vmem:[%s21399_s1 + $0x8] sm:$0xff]  ;;  %v332_v2 = vld [vmem:[%s21399_s1 + $0x20] sm:$0xff]  ;;  %v331_v5 = vld [vmem:[%s21399_s1 + $0x18] sm:$0xff]  ;;  %v21408_v8 = vmov 0.0   ;;  %vm357_vm0 = vcmask 261120   ;;  %v21410_v58 = vmov 0.0|0.0  }
  0x22   : > { %v328_v3 = vld [vmem:[%s21399_s1] sm:$0xff]  ;;  %v9867_v4 = vpack.c.bf16 %v332_v2, %v329_v1  ;;  %v335_v6 = vld [vmem:[%s21399_s1 + $0x38] sm:$0xff]  ;;  %v338_v7 = vld [vmem:[%s21399_s1 + $0x50] sm:$0xff]  ;;  %470 = vmatprep.mubr.f32.mxu0 %v21408_v8  ;;  %542 = vmatprep.mubr.f32.mxu1 %v21408_v8  ;;  %vm13371_vm1 = vmmov 0   ;;  %p8974_p12 = scmp.ne.s32.totalorder %s13442_s9, 1 }
  0x23   : > { %v9869_v9 = vpack.c.bf16 %v331_v5, %v328_v3  ;;  %v9871_v10 = vpack.c.bf16 %v338_v7, %v335_v6  ;;  %v334_v11 = vld [vmem:[%s21399_s1 + $0x30] sm:$0xff]  ;;  %v337_v12 = vld [vmem:[%s21399_s1 + $0x48] sm:$0xff]  ;;  %v748_v14 = vld [vmem:[%s21401_s3 + $0x20] sm:$0xff] }
  0x24   : > { %9868 = vmatprep.subr.bf16.mxu0 %v9867_v4  ;;  %v745_v13 = vld [vmem:[%s21401_s3 + $0x8] sm:$0xff]  ;;  %12827 = vmatprep.subr.bf16.mxu1 %v9867_v4  ;;  %v9873_v15 = vpack.c.bf16 %v337_v12, %v334_v11  ;;  %v744_v17 = vld [vmem:[%s21401_s3] sm:$0xff]  ;;  %v747_v18 = vld [vmem:[%s21401_s3 + $0x18] sm:$0xff] }
  0x25   : > { %9870 = vmatpush1.bf16.msra.mxu0 %v9869_v9  ;;  %12829 = vmatpush1.bf16.msra.mxu1 %v9869_v9  ;;  %v9883_v16 = vpack.c.bf16 %v748_v14, %v745_v13  ;;  %v751_v19 = vld [vmem:[%s21401_s3 + $0x38] sm:$0xff]  ;;  %v754_v20 = vld [vmem:[%s21401_s3 + $0x50] sm:$0xff]  ;;  %v13528_v21 = vld [vmem:[%s13478_s23] sm:$0xff]  ;;  %v9885_v22 = vpack.c.bf16 %v747_v18, %v744_v17 }
  0x26   : > { %9872 = vmatprep.subr.bf16.mxu0 %v9871_v10  ;;  %12828 = vmatprep.subr.bf16.mxu1 %v9871_v10  ;;  %v9887_v23 = vpack.c.bf16 %v754_v20, %v751_v19  ;;  %v750_v24 = vld [vmem:[%s21401_s3 + $0x30] sm:$0xff]  ;;  %v753_v25 = vld [vmem:[%s21401_s3 + $0x48] sm:$0xff]  ;;  %v760_v27 = vld [vmem:[%s21401_s3 + $0x80] sm:$0xff] }
  0x27   : > { %v757_v26 = vld [vmem:[%s21401_s3 + $0x68] sm:$0xff]  ;;  %v13545_v28 = vld [vmem:[%s13478_s23 + $0x60] sm:$0xff]  ;;  %v9889_v30 = vpack.c.bf16 %v753_v25, %v750_v24  ;;  %v330_v31 = vld [vmem:[%s21399_s1 + $0x10] sm:$0xff] }
  0x28   : > { %v13549_v29 = vld [vmem:[%s13478_s23 + $0x8] sm:$0xff]  ;;  %v9891_v33 = vpack.c.bf16 %v760_v27, %v757_v26  ;;  %v756_v34 = vld [vmem:[%s21401_s3 + $0x60] sm:$0xff]  ;;  %v759_v35 = vld [vmem:[%s21401_s3 + $0x78] sm:$0xff] }
  0x29   : > { %9874 = vmatpush1.bf16.msra.mxu0 %v9873_v15  ;;  %12830 = vmatpush1.bf16.msra.mxu1 %v9873_v15  ;;  %v333_v32 = vld [vmem:[%s21399_s1 + $0x28] sm:$0xff]  ;;  %v763_v37 = vld [vmem:[%s21401_s3 + $0x98] sm:$0xff]  ;;  %v766_v38 = vld [vmem:[%s21401_s3 + $0xb0] sm:$0xff]  ;;  %v9893_v43 = vpack.c.bf16 %v759_v35, %v756_v34 }
  0x2a   : > { %9884 = vmatprep.subr.bf16.mxu0 %v9883_v16  ;;  %v9875_v36 = vpack.c.bf16 %v333_v32, %v330_v31  ;;  %v13575_v39 = vld [vmem:[%s13478_s23 + $0x68] sm:$0xff]  ;;  %v336_v40 = vld [vmem:[%s21399_s1 + $0x40] sm:$0xff]  ;;  %v339_v41 = vld [vmem:[%s21399_s1 + $0x58] sm:$0xff]  ;;  %v9895_v45 = vpack.c.bf16 %v766_v38, %v763_v37 }
  0x2b   : > { %v13585_v42 = vld [vmem:[%s13478_s23 + $0x10] sm:$0xff]  ;;  %v9879_v44 = vpack.c.bf16 %v339_v41, %v336_v40  ;;  %v765_v47 = vld [vmem:[%s21401_s3 + $0xa8] sm:$0xff]  ;;  %v772_v49 = vld [vmem:[%s21401_s3 + $0xe0] sm:$0xff] }
  0x2c   : > { %8877 = vmatmul.mubr.msk.f32.vlgmr.msra.gmra.mrb[0].mxu0 %vm357_vm0, %v13528_v21  ;;  %8889 = vmatmul.mubr.msk.f32.vlgmr.msra.gmra.mrb[0].mxu1 %vm357_vm0, %v13545_v28  ;;  %v762_v46 = vld [vmem:[%s21401_s3 + $0x90] sm:$0xff]  ;;  %v769_v48 = vld [vmem:[%s21401_s3 + $0xc8] sm:$0xff]  ;;  %v315_v51 = vld [vmem:[%s13478_s23 + $0x18] sm:$0xff] }
  0x2d   : > { %9886 = vmatpush1.bf16.msra.mxu0 %v9885_v22  ;;  %476 = vmatprep.mubr.f32.mxu0 %v21408_v8  ;;  %v13605_v50 = vld [vmem:[%s13478_s23 + $0x70] sm:$0xff]  ;;  %v9897_v52 = vpack.c.bf16 %v765_v47, %v762_v46  ;;  %v9899_v53 = vpack.c.bf16 %v772_v49, %v769_v48  ;;  %v768_v54 = vld [vmem:[%s21401_s3 + $0xc0] sm:$0xff]  ;;  %v771_v55 = vld [vmem:[%s21401_s3 + $0xd8] sm:$0xff] }
  0x2e   : > { %9888 = vmatprep.subr.bf16.mxu0 %v9887_v23  ;;  %548 = vmatprep.mubr.f32.mxu1 %v21408_v8  ;;  %v775_v56 = vld [vmem:[%s21401_s3 + $0xf8] sm:$0xff]  ;;  %v778_v57 = vld [vmem:[%s21401_s3 + $0x110] sm:$0xff]  ;;  %v316_v60 = vld [vmem:[%s13478_s23 + $0x20] sm:$0xff]  ;;  %v9901_v61 = vpack.c.bf16 %v771_v55, %v768_v54 }
  0x2f   : > { %9876 = vmatprep.subr.bf16.mxu1 %v9875_v36  ;;  %v13627_v59 = vld [vmem:[%s13478_s23 + $0x78] sm:$0xff]  ;;  %v746_v62 = vld [vmem:[%s21401_s3 + $0x10] sm:$0xff]  ;;  %v749_v63 = vld [vmem:[%s21401_s3 + $0x28] sm:$0xff]  ;;  %v9903_v0 = vpack.c.bf16 %v778_v57, %v775_v56 }
  0x30   : > { %8878 = vmatmul.mubr.msk.f32.gmra.mrb[2].mxu0 %vm357_vm0, %v13549_v29  ;;  %9878 = vmatpush3.bf16.msra.mxu1 %v9875_v36  ;;  %v774_v1 = vld [vmem:[%s21401_s3 + $0xf0] sm:$0xff]  ;;  %v777_v2 = vld [vmem:[%s21401_s3 + $0x108] sm:$0xff]  ;;  %v784_v4 = vld [vmem:[%s21401_s3 + $0x140] sm:$0xff]  ;;  %v13654_v5 = vpack.c.bf16 %v749_v63, %v746_v62 }
  0x31   : > { %482 = vmatprep.mubr.f32.mxu0 %v21408_v8  ;;  %9890 = vmatpush1.bf16.msra.mxu0 %v9889_v30  ;;  %v781_v3 = vld [vmem:[%s21401_s3 + $0x128] sm:$0xff]  ;;  %v9905_v7 = vpack.c.bf16 %v777_v2, %v774_v1  ;;  %v752_v9 = vld [vmem:[%s21401_s3 + $0x40] sm:$0xff]  ;;  %v755_v10 = vld [vmem:[%s21401_s3 + $0x58] sm:$0xff] }
  0x32   : > { %9892 = vmatprep.subr.bf16.mxu0 %v9891_v33  ;;  %8890 = vmatmul.mubr.msk.f32.gmra.mrb[2].mxu1 %vm357_vm0, %v13575_v39  ;;  %v317_v6 = vld [vmem:[%s13478_s23 + $0x28] sm:$0xff]  ;;  %v13664_v11 = vpack.c.bf16 %v784_v4, %v781_v3  ;;  %v780_v12 = vld [vmem:[%s21401_s3 + $0x120] sm:$0xff]  ;;  %v783_v13 = vld [vmem:[%s21401_s3 + $0x138] sm:$0xff]  ;;  %v13682_v16 = vpack.c.bf16 %v755_v10, %v752_v9 }
  0x33   : > { %9880 = vmatprep.subr.bf16.mxu1 %v9879_v44  ;;  %554 = vmatprep.mubr.f32.mxu1 %v21408_v8  ;;  %v787_v14 = vld [vmem:[%s21401_s3 + $0x158] sm:$0xff]  ;;  %v790_v15 = vld [vmem:[%s21401_s3 + $0x170] sm:$0xff]  ;;  %v13686_v18 = vpack.c.bf16 %v783_v13, %v780_v12  ;;  %v761_v20 = vld [vmem:[%s21401_s3 + $0x88] sm:$0xff] }
  0x34   : > { %8879 = vmatmul.mubr.msk.f32.gmra.mrb[4].mxu0 %vm357_vm0, %v13585_v42  ;;  %9882 = vmatpush3.bf16.msra.mxu1 %v9879_v44  ;;  %v318_v17 = vld [vmem:[%s13478_s23 + $0x30] sm:$0xff]  ;;  %v789_v23 = vld [vmem:[%s21401_s3 + $0x168] sm:$0xff]  ;;  %v319_v25 = vld [vmem:[%s13478_s23 + $0x38] sm:$0xff] }
  0x35   : > { %488 = vmatprep.mubr.f32.mxu0 %v21408_v8  ;;  %9894 = vmatpush1.bf16.msra.mxu0 %v9893_v43  ;;  %v758_v19 = vld [vmem:[%s21401_s3 + $0x70] sm:$0xff]  ;;  %v764_v27 = vld [vmem:[%s21401_s3 + $0xa0] sm:$0xff]  ;;  %v773_v33 = vld [vmem:[%s21401_s3 + $0xe8] sm:$0xff] }
  0x36   : > { %9896 = vmatprep.subr.bf16.mxu0 %v9895_v45  ;;  %8891 = vmatmul.mubr.msk.f32.gmra.mrb[4].mxu1 %vm357_vm0, %v13605_v50  ;;  %v786_v22 = vld [vmem:[%s21401_s3 + $0x150] sm:$0xff]  ;;  %v13709_v24 = vpack.c.bf16 %v761_v20, %v758_v19  ;;  %v320_v31 = vld [vmem:[%s13478_s23 + $0x40] sm:$0xff]  ;;  %v321_v35 = vld [vmem:[%s13478_s23 + $0x48] sm:$0xff] }
  0x37   : > { %9915 = vmatprep.subr.bf16.mxu1 %v21410_v58  ;;  %560 = vmatprep.mubr.f32.mxu1 %v21408_v8  ;;  %v13714_v26 = vpack.c.bf16 %v789_v23, %v786_v22  ;;  %v770_v32 = vld [vmem:[%s21401_s3 + $0xd0] sm:$0xff]  ;;  %v776_v36 = vld [vmem:[%s21401_s3 + $0x100] sm:$0xff]  ;;  %v779_v37 = vld [vmem:[%s21401_s3 + $0x118] sm:$0xff] }
  0x38   : > { %8880 = vmatmul.mubr.msk.f32.gmra.mrb[6].mxu0 %vm357_vm0, %v315_v51  ;;  %v13744_v34 = vpack.c.bf16 %v773_v33, %v770_v32  ;;  %v322_v38 = vld [vmem:[%s13478_s23 + $0x50] sm:$0xff]  ;;  %v13760_v40 = vpack.c.bf16 %v779_v37, %v776_v36  ;;  %v323_v43 = vld [vmem:[%s13478_s23 + $0x58] sm:$0xff]  ;;  %v788_v45 = vld [vmem:[%s21401_s3 + $0x160] sm:$0xff] }
  0x39   : > { %494 = vmatprep.mubr.f32.mxu0 %v21408_v8  ;;  %9898 = vmatpush1.bf16.msra.mxu0 %v9897_v52  ;;  %v782_v41 = vld [vmem:[%s21401_s3 + $0x130] sm:$0xff]  ;;  %v791_v46 = vld [vmem:[%s21401_s3 + $0x178] sm:$0xff]  ;;  %v960_v48 = vld [vmem:[%s21403_s5 + $0x28] sm:$0xff] }
  0x3a   : > { %9900 = vmatprep.subr.bf16.mxu0 %v9899_v53  ;;  %8892 = vmatmul.mubr.msk.f32.gmra.mrb[6].mxu1 %vm357_vm0, %v13627_v59  ;;  %v13791_v47 = vpack.c.bf16 %v791_v46, %v788_v45  ;;  %v958_v49 = vld [vmem:[%s21403_s5 + $0x18] sm:$0xff]  ;;  %v955_v52 = vld [vmem:[%s21403_s5] sm:$0xff]  ;;  %v957_v56 = vld [vmem:[%s21403_s5 + $0x10] sm:$0xff] }
  0x3b   : > { %9283 = vmatprep.mubr.msk.f32.mxu1 %vm357_vm0, %v13528_v21  ;;  %v13695_v21 = vpack.c.bf16 %v790_v15, %v787_v14  ;;  %v959_v53 = vld [vmem:[%s21403_s5 + $0x20] sm:$0xff]  ;;  %v961_v57 = vld [vmem:[%s21403_s5 + $0x30] sm:$0xff]  ;;  %v966_v62 = vld [vmem:[%s21403_s5 + $0x58] sm:$0xff] }
  0x3c   : > { %8881 = vmatmul.mubr.msk.f32.gmra.mrb[8].mxu0 %vm357_vm0, %v316_v60  ;;  %v13828_v55 = vpack.c.bf16 %v959_v53, %v955_v52  ;;  %v963_v1 = vld [vmem:[%s21403_s5 + $0x40] sm:$0xff]  ;;  %v972_v10 = vld [vmem:[%s21403_s5 + $0x88] sm:$0xff]  ;;  %v974_v13 = vld [vmem:[%s21403_s5 + $0x98] sm:$0xff] }
  0x3d   : > { %500 = vmatprep.mubr.f32.mxu0 %v21408_v8  ;;  %9902 = vmatpush1.bf16.msra.mxu0 %v9901_v61  ;;  %v968_v61 = vld [vmem:[%s21403_s5 + $0x68] sm:$0xff]  ;;  %v967_v2 = vld [vmem:[%s21403_s5 + $0x60] sm:$0xff]  ;;  %v978_v15 = vld [vmem:[%s21403_s5 + $0xb8] sm:$0xff] }
  0x3e   : > { %9904 = vmatprep.subr.bf16.mxu0 %v9903_v0  ;;  %9284 = vmatmul.mubr.msk.f32.vlgmr.msra.gmra.mrb[8].mxu1 %vm357_vm0, %v13549_v29  ;;  %v767_v29 = vld [vmem:[%s21401_s3 + $0xb8] sm:$0xff]  ;;  %v13864_v4 = vpack.c.bf16 %v967_v2, %v963_v1  ;;  %v976_v12 = vld [vmem:[%s21403_s5 + $0xa8] sm:$0xff]  ;;  %v975_v19 = vld [vmem:[%s21403_s5 + $0xa0] sm:$0xff]  ;;  %v13898_v20 = vpack.c.bf16 %v978_v15, %v974_v13 }
  0x3f   : > { %9917 = vmatpush3.bf16.msra.mxu1 %v13654_v5  ;;  %9286 = vmatprep.mubr.msk.f32.mxu1 %vm357_vm0, %v13585_v42  ;;  %v13728_v30 = vpack.c.bf16 %v767_v29, %v764_v27  ;;  %v785_v42 = vld [vmem:[%s21401_s3 + $0x148] sm:$0xff]  ;;  %v970_v0 = vld [vmem:[%s21403_s5 + $0x78] sm:$0xff]  ;;  %v13887_v14 = vpack.c.bf16 %v976_v12, %v972_v10  ;;  %v973_v23 = vld [vmem:[%s21403_s5 + $0x90] sm:$0xff] }
  0x40   : > { %8882 = vmatmul.mubr.msk.f32.gmra.mrb[10].mxu0 %vm357_vm0, %v317_v6  ;;  %9918 = vmatprep.subr.bf16.mxu1 %v21410_v58  ;;  %v13775_v44 = vpack.c.bf16 %v785_v42, %v782_v41  ;;  %v13862_v3 = vpack.c.bf16 %v970_v0, %v966_v62  ;;  %v980_v29 = vld [vmem:[%s21403_s5 + $0xc8] sm:$0xff]  ;;  %v982_v32 = vld [vmem:[%s21403_s5 + $0xd8] sm:$0xff]  ;;  %v979_v36 = vld [vmem:[%s21403_s5 + $0xc0] sm:$0xff] }
  0x41   : > { %506 = vmatprep.mubr.f32.mxu0 %v21408_v8  ;;  %9906 = vmatpush1.bf16.msra.mxu0 %v9905_v7  ;;  %v969_v7 = vld [vmem:[%s21403_s5 + $0x70] sm:$0xff]  ;;  %v983_v37 = vld [vmem:[%s21403_s5 + $0xe0] sm:$0xff]  ;;  %v988_v46 = vld [vmem:[%s21403_s5 + $0x108] sm:$0xff] }
  0x42   : > { %9908 = vmatprep.subr.bf16.mxu0 %v13664_v11  ;;  %9287 = vmatmul.mubr.msk.f32.gmra.mrb[10].mxu1 %vm357_vm0, %v315_v51  ;;  %v962_v51 = vld [vmem:[%s21403_s5 + $0x38] sm:$0xff]  ;;  %v13936_v41 = vpack.c.bf16 %v983_v37, %v979_v36  ;;  %v981_v42 = vld [vmem:[%s21403_s5 + $0xd0] sm:$0xff]  ;;  %v987_v53 = vld [vmem:[%s21403_s5 + $0x100] sm:$0xff] }
  0x43   : > { %9920 = vmatpush3.bf16.msra.mxu1 %v13682_v16  ;;  %9289 = vmatprep.mubr.msk.f32.mxu1 %vm357_vm0, %v316_v60  ;;  %v13826_v54 = vpack.c.bf16 %v962_v51, %v958_v49  ;;  %v964_v60 = vld [vmem:[%s21403_s5 + $0x48] sm:$0xff]  ;;  %v994_v51 = vld [vmem:[%s21403_s5 + $0x138] sm:$0xff]  ;;  %v995_v10 = vld [vmem:[%s21403_s5 + $0x140] sm:$0xff] }
  0x44   : > { %8883 = vmatmul.mubr.msk.f32.gmra.mrb[12].mxu0 %vm357_vm0, %v318_v17  ;;  %9921 = vmatprep.subr.bf16.mxu1 %v21410_v58  ;;  %v13851_v63 = vpack.c.bf16 %v968_v61, %v964_v60  ;;  %v993_v61 = vld [vmem:[%s21403_s5 + $0x130] sm:$0xff]  ;;  %v996_v0 = vld [vmem:[%s21403_s5 + $0x148] sm:$0xff]  ;;  %v998_v2 = vld [vmem:[%s21403_s5 + $0x158] sm:$0xff] }
  0x45   : > { %512 = vmatprep.mubr.f32.mxu0 %v21408_v8  ;;  %9910 = vmatpush1.bf16.msra.mxu0 %v13686_v18  ;;  %v1000_v1 = vld [vmem:[%s21403_s5 + $0x168] sm:$0xff]  ;;  %v999_v12 = vld [vmem:[%s21403_s5 + $0x160] sm:$0xff] }
  0x46   : > { %9912 = vmatprep.subr.bf16.mxu0 %v13695_v21  ;;  %9290 = vmatmul.mubr.msk.f32.gmra.mrb[12].mxu1 %vm357_vm0, %v317_v6  ;;  %v965_v6 = vld [vmem:[%s21403_s5 + $0x50] sm:$0xff]  ;;  %v14008_v15 = vpack.c.bf16 %v999_v12, %v995_v10  ;;  %v1003_v36 = vld [vmem:[%s21403_s5 + $0x180] sm:$0xff] }
  0x47   : > { %9923 = vmatpush3.bf16.msra.mxu1 %v13709_v24  ;;  %9292 = vmatprep.mubr.msk.f32.mxu1 %vm357_vm0, %v318_v17  ;;  %v13873_v9 = vpack.c.bf16 %v969_v7, %v965_v6  ;;  %v971_v17 = vld [vmem:[%s21403_s5 + $0x80] sm:$0xff]  ;;  %v13995_v6 = vpack.c.bf16 %v1000_v1, %v996_v0  ;;  %v1002_v7 = vld [vmem:[%s21403_s5 + $0x178] sm:$0xff]  ;;  %v1013_v10 = vld [vmem:[%s21403_s5 + $0x1d0] sm:$0xff] }
  0x48   : > { %8884 = vmatmul.mubr.msk.f32.gmra.mrb[14].mxu0 %vm357_vm0, %v319_v25  ;;  %9924 = vmatprep.subr.bf16.mxu1 %v21410_v58  ;;  %v13900_v22 = vpack.c.bf16 %v975_v19, %v971_v17  ;;  %v14006_v13 = vpack.c.bf16 %v1002_v7, %v998_v2  ;;  %v997_v17 = vld [vmem:[%s21403_s5 + $0x150] sm:$0xff]  ;;  %v1007_v37 = vld [vmem:[%s21403_s5 + $0x1a0] sm:$0xff] }
  0x49   : > { %518 = vmatprep.mubr.f32.mxu0 %v21408_v8  ;;  %9914 = vmatpush1.bf16.msra.mxu0 %v13714_v26  ;;  %v1001_v19 = vld [vmem:[%s21403_s5 + $0x170] sm:$0xff]  ;;  %v1011_v0 = vld [vmem:[%s21403_s5 + $0x1c0] sm:$0xff] }
  0x4a   : > { %9293 = vmatmul.mubr.msk.f32.gmra.mrb[14].mxu1 %vm357_vm0, %v319_v25  ;;  %10004 = vmatprep.subr.bf16.mxu0 %v13826_v54  ;;  %v977_v25 = vld [vmem:[%s21403_s5 + $0xb0] sm:$0xff]  ;;  %v1015_v1 = vld [vmem:[%s21403_s5 + $0x1e0] sm:$0xff] }
  0x4b   : > { %9926 = vmatpush3.bf16.msra.mxu1 %v13728_v30  ;;  %9295 = vmatprep.mubr.msk.f32.mxu1 %vm357_vm0, %v320_v31  ;;  %v13909_v27 = vpack.c.bf16 %v977_v25, %v973_v23  ;;  %v14017_v23 = vpack.c.bf16 %v1001_v19, %v997_v17  ;;  %v1004_v25 = vld [vmem:[%s21403_s5 + $0x188] sm:$0xff]  ;;  %v14080_v7 = vpack.c.bf16 %v1015_v1, %v1011_v0  ;;  %v1017_v12 = vld [vmem:[%s21403_s5 + $0x1f0] sm:$0xff]  ;;  %v1030_v1 = vld [vmem:[%s21403_s5 + $0x258] sm:$0xff] }
  0x4c   : > { %8885 = vmatmul.mubr.msk.f32.gmra.mrb[16].mxu0 %vm357_vm0, %v320_v31  ;;  %9927 = vmatprep.subr.bf16.mxu1 %v21410_v58  ;;  %v984_v31 = vld [vmem:[%s21403_s5 + $0xe8] sm:$0xff]  ;;  %v14089_v17 = vpack.c.bf16 %v1017_v12, %v1013_v10  ;;  %v1034_v12 = vld [vmem:[%s21403_s5 + $0x278] sm:$0xff] }
  0x4d   : > { %524 = vmatprep.mubr.f32.mxu0 %v21408_v8  ;;  %v13923_v33 = vpack.c.bf16 %v984_v31, %v980_v29  ;;  %v1008_v29 = vld [vmem:[%s21403_s5 + $0x1a8] sm:$0xff]  ;;  %v1006_v31 = vld [vmem:[%s21403_s5 + $0x198] sm:$0xff]  ;;  %21744 = vst [vmem:[#allocation9_spill] sm:$0xff] %v14080_v7 }
  0x4e   : > { %9296 = vmatmul.mubr.msk.f32.gmra.mrb[16].mxu1 %vm357_vm0, %v321_v35  ;;  %21745 = vst [vmem:[#allocation10_spill] sm:$0xff] %v14089_v17  ;;  %v1020_v19 = vld [vmem:[%s21403_s5 + $0x208] sm:$0xff] }
  0x4f   : > { %9929 = vmatpush3.bf16.msra.mxu1 %v13744_v34  ;;  %9298 = vmatprep.mubr.msk.f32.mxu1 %vm357_vm0, %v322_v38  ;;  %v1032_v0 = vld [vmem:[%s21403_s5 + $0x268] sm:$0xff] }
  0x50   : > { %8886 = vmatmul.mubr.msk.f32.gmra.mrb[18].mxu0 %vm357_vm0, %v321_v35  ;;  %9930 = vmatprep.subr.bf16.mxu1 %v21410_v58  ;;  %v986_v35 = vld [vmem:[%s21403_s5 + $0xf8] sm:$0xff] }
  0x51   : > { %530 = vmatprep.mubr.f32.mxu0 %v21408_v8 }
  0x52   : > { %9299 = vmatmul.mubr.msk.f32.gmra.mrb[18].mxu1 %vm357_vm0, %v323_v43 }
  0x53   : > { %9932 = vmatpush3.bf16.msra.mxu1 %v13760_v40  ;;  %9301 = vmatprep.mubr.msk.f32.mxu1 %vm357_vm0, %v13545_v28  ;;  %v13794_v28 = vld [vmem:[#allocation2] sm:$0xff] }
  0x54   : > { %8887 = vmatmul.mubr.msk.f32.gmra.mrb[20].mxu0 %vm357_vm0, %v322_v38  ;;  %9933 = vmatprep.subr.bf16.mxu1 %v21410_v58  ;;  %v13934_v38 = vpack.c.bf16 %v986_v35, %v982_v32  ;;  %v14031_v32 = vpack.c.bf16 %v1008_v29, %v1004_v25  ;;  %v1010_v35 = vld [vmem:[%s21403_s5 + $0x1b8] sm:$0xff]  ;;  %v1024_v25 = vld [vmem:[%s21403_s5 + $0x228] sm:$0xff] }
  0x55   : > { %536 = vmatprep.mubr.f32.mxu0 %v21408_v8  ;;  %v1022_v29 = vld [vmem:[%s21403_s5 + $0x218] sm:$0xff] }
  0x56   : > { %9302 = vmatmul.mubr.msk.f32.gmra.mrb[20].mxu1 %vm357_vm0, %v13575_v39  ;;  %v956_v39 = vld [vmem:[%s21403_s5 + $0x8] sm:$0xff] }
  0x57   : > { %9935 = vmatpush3.bf16.msra.mxu1 %v13775_v44  ;;  %9304 = vmatprep.mubr.msk.f32.mxu1 %vm357_vm0, %v13605_v50  ;;  %v13815_v50 = vpack.c.bf16 %v960_v48, %v956_v39  ;;  %v992_v39 = vld [vmem:[%s21403_s5 + $0x128] sm:$0xff]  ;;  %v990_v48 = vld [vmem:[%s21403_s5 + $0x118] sm:$0xff] }
  0x58   : > { %8888 = vmatmul.mubr.msk.f32.gmra.mrb[22].mxu0 %vm357_vm0, %v323_v43  ;;  %9936 = vmatprep.subr.bf16.mxu1 %v21410_v58  ;;  %v985_v43 = vld [vmem:[%s21403_s5 + $0xf0] sm:$0xff]  ;;  %v13959_v49 = vpack.c.bf16 %v992_v39, %v988_v46  ;;  %v13964_v52 = vpack.c.bf16 %v994_v51, %v990_v48  ;;  %v1012_v51 = vld [vmem:[%s21403_s5 + $0x1c8] sm:$0xff]  ;;  %v1047_v58 = vld [vmem:[%s21403_s5 + $0x2e0] sm:$0xff] }
  0x59   : > { %856 = vmatprep.mubr.f32.mxu0 %v21408_v8  ;;  %v13945_v45 = vpack.c.bf16 %v985_v43, %v981_v42  ;;  %v14042_v42 = vpack.c.bf16 %v1010_v35, %v1006_v31  ;;  %v14044_v43 = vpack.c.bf16 %v1007_v37, %v1003_v36  ;;  %v1005_v46 = vld [vmem:[%s21403_s5 + $0x190] sm:$0xff]  ;;  %v14103_v31 = vpack.c.bf16 %v1024_v25, %v1020_v19  ;;  %v1026_v35 = vld [vmem:[%s21403_s5 + $0x238] sm:$0xff]  ;;  %v1019_v36 = vld [vmem:[%s21403_s5 + $0x200] sm:$0xff] }
  0x5a   : > { %9305 = vmatmul.mubr.msk.f32.gmra.mrb[22].mxu1 %vm357_vm0, %v13627_v59  ;;  %v13837_v59 = vpack.c.bf16 %v961_v57, %v957_v56  ;;  %v991_v56 = vld [vmem:[%s21403_s5 + $0x120] sm:$0xff]  ;;  %v989_v57 = vld [vmem:[%s21403_s5 + $0x110] sm:$0xff] }
  0x5b   : > { %9938 = vmatpush3.bf16.msra.mxu1 %v13791_v47  ;;  %9339 = vmatprep.mubr.msk.f32.mxu1 %vm13371_vm1, %v21408_v8  ;;  %v13977_v60 = vpack.c.bf16 %v991_v56, %v987_v53  ;;  %v13982_v62 = vpack.c.bf16 %v993_v61, %v989_v57  ;;  %v1009_v39 = vld [vmem:[%s21403_s5 + $0x1b0] sm:$0xff]  ;;  %v1016_v53 = vld [vmem:[%s21403_s5 + $0x1e8] sm:$0xff]  ;;  %v1014_v56 = vld [vmem:[%s21403_s5 + $0x1d8] sm:$0xff]  ;;  %21746 = vst [vmem:[#allocation11_spill] sm:$0xff] %v14103_v31 }
  0x5c   : > { %857 = vmatmul.mubr.f32.vlgmr.msra.gmra.mrb[0].mxu0 %v13794_v28  ;;  %9940 = vmatprep.subr.bf16.mxu1 %v13815_v50  ;;  %v14053_v48 = vpack.c.bf16 %v1009_v39, %v1005_v46  ;;  %v14067_v57 = vpack.c.bf16 %v1016_v53, %v1012_v51  ;;  %v1018_v61 = vld [vmem:[%s21403_s5 + $0x1f8] sm:$0xff]  ;;  %v1023_v37 = vld [vmem:[%s21403_s5 + $0x220] sm:$0xff]  ;;  %v14114_v46 = vpack.c.bf16 %v1026_v35, %v1022_v29  ;;  %v1021_v51 = vld [vmem:[%s21403_s5 + $0x210] sm:$0xff] }
  0x5d   : > { %10006 = vmatpush1.bf16.msra.mxu0 %v13837_v59  ;;  %v14078_v2 = vpack.c.bf16 %v1018_v61, %v1014_v56  ;;  %v14116_v39 = vpack.c.bf16 %v1023_v37, %v1019_v36  ;;  %v1025_v53 = vld [vmem:[%s21403_s5 + $0x230] sm:$0xff]  ;;  %v1028_v61 = vld [vmem:[%s21403_s5 + $0x248] sm:$0xff]  ;;  %v1027_v19 = vld [vmem:[%s21403_s5 + $0x240] sm:$0xff]  ;;  %v14150_v29 = vpack.c.bf16 %v1034_v12, %v1030_v1 }
  0x5e   : > { %9340 = vmatmul.mubr.f32.vlgmr.msra.gmra.mrb[24].mxu1 %v13794_v28  ;;  %10008 = vmatprep.subr.bf16.mxu0 %v13862_v3  ;;  %21747 = vst [vmem:[#allocation12_spill] sm:$0xff] %v14114_v46  ;;  %v14125_v56 = vpack.c.bf16 %v1025_v53, %v1021_v51  ;;  %v14139_v10 = vpack.c.bf16 %v1032_v0, %v1028_v61  ;;  %v1031_v25 = vld [vmem:[%s21403_s5 + $0x260] sm:$0xff]  ;;  %v1029_v36 = vld [vmem:[%s21403_s5 + $0x250] sm:$0xff]  ;;  %v1036_v53 = vld [vmem:[%s21403_s5 + $0x288] sm:$0xff] }
  0x5f   : > { %9942 = vmatpush1.bf16.msra.mxu1 %v13828_v55  ;;  %21748 = vst [vmem:[#allocation13_spill] sm:$0xff] %v14116_v39  ;;  %21751 = vst [vmem:[#allocation16_spill] sm:$0xff] %v14150_v29  ;;  %v14152_v35 = vpack.c.bf16 %v1031_v25, %v1027_v19  ;;  %v1033_v37 = vld [vmem:[%s21403_s5 + $0x270] sm:$0xff]  ;;  %v1040_v61 = vld [vmem:[%s21403_s5 + $0x2a8] sm:$0xff] }
  0x60   : > { %9944 = vmatprep.subr.bf16.mxu1 %v13851_v63  ;;  %21749 = vst [vmem:[#allocation14_spill] sm:$0xff] %v14125_v56  ;;  %21750 = vst [vmem:[#allocation15_spill] sm:$0xff] %v14139_v10  ;;  %v14161_v51 = vpack.c.bf16 %v1033_v37, %v1029_v36  ;;  %v1038_v0 = vld [vmem:[%s21403_s5 + $0x298] sm:$0xff]  ;;  %v14175_v1 = vpack.c.bf16 %v1040_v61, %v1036_v53  ;;  %v1035_v19 = vld [vmem:[%s21403_s5 + $0x280] sm:$0xff] }
  0x61   : > { %10010 = vmatpush1.bf16.msra.mxu0 %v13873_v9  ;;  %21752 = vst [vmem:[#allocation17_spill] sm:$0xff] %v14152_v35  ;;  %v1042_v12 = vld [vmem:[%s21403_s5 + $0x2b8] sm:$0xff]  ;;  %v1039_v25 = vld [vmem:[%s21403_s5 + $0x2a0] sm:$0xff]  ;;  %v1037_v53 = vld [vmem:[%s21403_s5 + $0x290] sm:$0xff] }
  0x62   : > { %10012 = vmatprep.subr.bf16.mxu0 %v13898_v20  ;;  %21753 = vst [vmem:[#allocation18_spill] sm:$0xff] %v14161_v51  ;;  %21754 = vst [vmem:[#allocation19_spill] sm:$0xff] %v14175_v1  ;;  %v14186_v36 = vpack.c.bf16 %v1042_v12, %v1038_v0  ;;  %v14188_v37 = vpack.c.bf16 %v1039_v25, %v1035_v19  ;;  %v1041_v61 = vld [vmem:[%s21403_s5 + $0x2b0] sm:$0xff]  ;;  %v1044_v0 = vld [vmem:[%s21403_s5 + $0x2c8] sm:$0xff] }
  0x63   : > { %9946 = vmatpush1.bf16.msra.mxu1 %v13864_v4  ;;  %v14197_v8 = vpack.c.bf16 %v1041_v61, %v1037_v53  ;;  %v1048_v12 = vld [vmem:[%s21403_s5 + $0x2e8] sm:$0xff]  ;;  %v1046_v19 = vld [vmem:[%s21403_s5 + $0x2d8] sm:$0xff]  ;;  %v1043_v61 = vld [vmem:[%s21403_s5 + $0x2c0] sm:$0xff] }
  0x64   : > { %9948 = vmatprep.subr.bf16.mxu1 %v13887_v14  ;;  %21755 = vst [vmem:[#allocation20_spill] sm:$0xff] %v14186_v36  ;;  %21756 = vst [vmem:[#allocation21_spill] sm:$0xff] %v14188_v37  ;;  %v14211_v25 = vpack.c.bf16 %v1048_v12, %v1044_v0  ;;  %v1050_v53 = vld [vmem:[%s21403_s5 + $0x2f8] sm:$0xff]  ;;  %v1045_v0 = vld [vmem:[%s21403_s5 + $0x2d0] sm:$0xff] }
  0x65   : > { %10014 = vmatpush1.bf16.msra.mxu0 %v13909_v27  ;;  %21757 = vst [vmem:[#allocation22_spill] sm:$0xff] %v14197_v8  ;;  %v1049_v12 = vld [vmem:[%s21403_s5 + $0x2f0] sm:$0xff] }
  0x66   : > { %10016 = vmatprep.subr.bf16.mxu0 %v13934_v38  ;;  %21758 = vst [vmem:[#allocation23_spill] sm:$0xff] %v14211_v25 }
  0x67   : > { %9950 = vmatpush1.bf16.msra.mxu1 %v13900_v22 }
  0x68   : > { %9952 = vmatprep.subr.bf16.mxu1 %v13923_v33 }
  0x69   : > { %10018 = vmatpush1.bf16.msra.mxu0 %v13945_v45 }
  0x6a   : > { %10020 = vmatprep.subr.bf16.mxu0 %v13964_v52 }
  0x6b   : > { %9954 = vmatpush1.bf16.msra.mxu1 %v13936_v41 }
  0x6c   : > { %9956 = vmatprep.subr.bf16.mxu1 %v13959_v49 }
  0x6d   : > { %10022 = vmatpush1.bf16.msra.mxu0 %v13982_v62 }
  0x6e   : > { %10024 = vmatprep.subr.bf16.mxu0 %v14006_v13 }
  0x6f   : > { %9958 = vmatpush1.bf16.msra.mxu1 %v13977_v60 }
  0x70   : > { %9960 = vmatprep.subr.bf16.mxu1 %v13995_v6 }
  0x71   : > { %10026 = vmatpush1.bf16.msra.mxu0 %v14017_v23 }
  0x72   : > { %10028 = vmatprep.subr.bf16.mxu0 %v14042_v42 }
  0x73   : > { %9962 = vmatpush1.bf16.msra.mxu1 %v14008_v15 }
  0x74   : > { %9964 = vmatprep.subr.bf16.mxu1 %v14031_v32 }
  0x75   : > { %10030 = vmatpush1.bf16.msra.mxu0 %v14053_v48 }
  0x76   : > { %10032 = vmatprep.subr.bf16.mxu0 %v14078_v2 }
  0x77   : > { %9966 = vmatpush1.bf16.msra.mxu1 %v14044_v43 }
  0x78   : > { %9968 = vmatprep.subr.bf16.mxu1 %v14067_v57 }
  0x79   : > { %10034 = vmatpush1.bf16.msra.mxu0 %v14089_v17 }
  0x7a   : > { %10036 = vmatprep.subr.bf16.mxu0 %v14114_v46 }
  0x7b   : > { %9970 = vmatpush1.bf16.msra.mxu1 %v14080_v7 }
  0x7c   : > { %9972 = vmatprep.subr.bf16.mxu1 %v14103_v31 }
  0x7d   : > { %10038 = vmatpush1.bf16.msra.mxu0 %v14125_v56 }
  0x7e   : > { %10040 = vmatprep.subr.bf16.mxu0 %v14150_v29 }
  0x7f   : > { %9974 = vmatpush1.bf16.msra.mxu1 %v14116_v39 }
  0x80   : > { %9976 = vmatprep.subr.bf16.mxu1 %v14139_v10 }
  0x81   : > { %10042 = vmatpush1.bf16.msra.mxu0 %v14161_v51  ;;  %v1069_v51 = vld [vmem:[%s21403_s5 + $0x390] sm:$0xff] }
  0x82   : > { %10044 = vmatprep.subr.bf16.mxu0 %v14186_v36  ;;  %v14224_v36 = vpack.c.bf16 %v1047_v58, %v1043_v61  ;;  %v1052_v58 = vld [vmem:[%s21403_s5 + $0x308] sm:$0xff] }
  0x83   : > { %9978 = vmatpush1.bf16.msra.mxu1 %v14152_v35 }
  0x84   : > { %9980 = vmatprep.subr.bf16.mxu1 %v14175_v1  ;;  %21760 = vst [vmem:[#allocation25_spill] sm:$0xff] %v14224_v36 }
  0x85   : > { %10046 = vmatpush1.bf16.msra.mxu0 %v14197_v8  ;;  %v14233_v8 = vpack.c.bf16 %v1049_v12, %v1045_v0  ;;  %v1058_v0 = vld [vmem:[%s21403_s5 + $0x338] sm:$0xff]  ;;  %v1051_v12 = vld [vmem:[%s21403_s5 + $0x300] sm:$0xff] }
  0x87   : > { %9982 = vmatpush1.bf16.msra.mxu1 %v14188_v37  ;;  %v14222_v37 = vpack.c.bf16 %v1050_v53, %v1046_v19  ;;  %21761 = vst [vmem:[#allocation26_spill] sm:$0xff] %v14233_v8  ;;  %v1056_v19 = vld [vmem:[%s21403_s5 + $0x328] sm:$0xff]  ;;  %v1054_v53 = vld [vmem:[%s21403_s5 + $0x318] sm:$0xff] }
  0x88   : > { %9984 = vmatprep.subr.bf16.mxu1 %v14211_v25  ;;  %v14247_v61 = vpack.c.bf16 %v1056_v19, %v1052_v58  ;;  %v1053_v58 = vld [vmem:[%s21403_s5 + $0x310] sm:$0xff] }
  0x89   : > { %21759 = vst [vmem:[#allocation24_spill] sm:$0xff] %v14222_v37  ;;  %10048 = vmatprep.subr.bf16.mxu0 %v14222_v37  ;;  %v14258_v37 = vpack.c.bf16 %v1058_v0, %v1054_v53  ;;  %v1057_v19 = vld [vmem:[%s21403_s5 + $0x330] sm:$0xff]  ;;  %v1064_v53 = vld [vmem:[%s21403_s5 + $0x368] sm:$0xff]  ;;  %v1062_v0 = vld [vmem:[%s21403_s5 + $0x358] sm:$0xff] }
  0x8a   : > { %10050 = vmatpush1.bf16.msra.mxu0 %v14233_v8  ;;  %21762 = vst [vmem:[#allocation27_spill] sm:$0xff] %v14247_v61  ;;  %v14269_v8 = vpack.c.bf16 %v1057_v19, %v1053_v58  ;;  %v1066_v58 = vld [vmem:[%s21403_s5 + $0x378] sm:$0xff]  ;;  %v1059_v19 = vld [vmem:[%s21403_s5 + $0x340] sm:$0xff] }
  0x8b   : > { %9986 = vmatpush1.bf16.msra.mxu1 %v14224_v36  ;;  %v1055_v36 = vld [vmem:[%s21403_s5 + $0x320] sm:$0xff]  ;;  %21763 = vst [vmem:[#allocation28_spill] sm:$0xff] %v14258_v37  ;;  %10052 = vmatprep.subr.bf16.mxu0 %v14258_v37  ;;  %v14294_v37 = vpack.c.bf16 %v1066_v58, %v1062_v0  ;;  %v1070_v0 = vld [vmem:[%s21403_s5 + $0x398] sm:$0xff] }
  0x8c   : > { %v14260_v25 = vpack.c.bf16 %v1055_v36, %v1051_v12  ;;  %9988 = vmatprep.subr.bf16.mxu1 %v14247_v61  ;;  %21765 = vst [vmem:[#allocation30_spill] sm:$0xff] %v14269_v8  ;;  %v1060_v36 = vld [vmem:[%s21403_s5 + $0x348] sm:$0xff]  ;;  %v1074_v58 = vld [vmem:[%s21403_s5 + $0x3b8] sm:$0xff] }
  0x8d   : > { %v14283_v12 = vpack.c.bf16 %v1064_v53, %v1060_v36  ;;  %21767 = vst [vmem:[#allocation32_spill] sm:$0xff] %v14294_v37  ;;  %v1061_v36 = vld [vmem:[%s21403_s5 + $0x350] sm:$0xff] }
  0x8e   : > { %21764 = vst [vmem:[#allocation29_spill] sm:$0xff] %v14260_v25  ;;  %10054 = vmatpush1.bf16.msra.mxu0 %v14269_v8  ;;  %v1065_v53 = vld [vmem:[%s21403_s5 + $0x370] sm:$0xff]  ;;  %v1068_v8 = vld [vmem:[%s21403_s5 + $0x388] sm:$0xff] }
  0x8f   : > { %9990 = vmatpush1.bf16.msra.mxu1 %v14260_v25  ;;  %21766 = vst [vmem:[#allocation31_spill] sm:$0xff] %v14283_v12  ;;  %v1063_v25 = vld [vmem:[%s21403_s5 + $0x360] sm:$0xff]  ;;  %v14308_v1 = vpack.c.bf16 %v1065_v53, %v1061_v36  ;;  %10056 = vmatprep.subr.bf16.mxu0 %v14294_v37  ;;  %v14323_v36 = vpack.c.bf16 %v1074_v58, %v1070_v0  ;;  %v1080_v0 = vld [vmem:[%s21403_s5 + $0x3e8] sm:$0xff] }
  0x90   : > { %v14296_v61 = vpack.c.bf16 %v1063_v25, %v1059_v19  ;;  %9992 = vmatprep.subr.bf16.mxu1 %v14283_v12  ;;  %v1072_v25 = vld [vmem:[%s21403_s5 + $0x3a8] sm:$0xff]  ;;  %v1067_v53 = vld [vmem:[%s21403_s5 + $0x380] sm:$0xff] }
  0x91   : > { %21769 = vst [vmem:[#allocation34_spill] sm:$0xff] %v14308_v1  ;;  %v14321_v19 = vpack.c.bf16 %v1072_v25, %v1068_v8  ;;  %21771 = vst [vmem:[#allocation36_spill] sm:$0xff] %v14323_v36  ;;  %v1071_v12 = vld [vmem:[%s21403_s5 + $0x3a0] sm:$0xff]  ;;  %v1073_v8 = vld [vmem:[%s21403_s5 + $0x3b0] sm:$0xff] }
  0x92   : > { %21768 = vst [vmem:[#allocation33_spill] sm:$0xff] %v14296_v61  ;;  %10058 = vmatpush1.bf16.msra.mxu0 %v14308_v1  ;;  %v14335_v37 = vpack.c.bf16 %v1071_v12, %v1067_v53  ;;  %v1076_v25 = vld [vmem:[%s21403_s5 + $0x3c8] sm:$0xff]  ;;  %v14348_v58 = vpack.c.bf16 %v1073_v8, %v1069_v51  ;;  %v1078_v53 = vld [vmem:[%s21403_s5 + $0x3d8] sm:$0xff]  ;;  %v1079_v51 = vld [vmem:[%s21403_s5 + $0x3e0] sm:$0xff] }
  0x93   : > { %9994 = vmatpush1.bf16.msra.mxu1 %v14296_v61  ;;  %21770 = vst [vmem:[#allocation35_spill] sm:$0xff] %v14321_v19  ;;  %10060 = vmatprep.subr.bf16.mxu0 %v14323_v36  ;;  %v14350_v12 = vpack.c.bf16 %v1080_v0, %v1076_v25  ;;  %v1082_v1 = vld [vmem:[%s21403_s5 + $0x3f8] sm:$0xff]  ;;  %v1075_v61 = vld [vmem:[%s21403_s5 + $0x3c0] sm:$0xff]  ;;  %v1077_v8 = vld [vmem:[%s21403_s5 + $0x3d0] sm:$0xff] }
  0x94   : > { %21772 = vst [vmem:[#allocation37_spill] sm:$0xff] %v14335_v37  ;;  %9996 = vmatprep.subr.bf16.mxu1 %v14321_v19  ;;  %21773 = vst [vmem:[#allocation38_spill] sm:$0xff] %v14348_v58  ;;  %v14361_v35 = vpack.c.bf16 %v1082_v1, %v1078_v53  ;;  %v1081_v25 = vld [vmem:[%s21403_s5 + $0x3f0] sm:$0xff]  ;;  %v14373_v0 = vpack.c.bf16 %v1079_v51, %v1075_v61  ;;  %v14375_v36 = vld [vmem:[#allocation2 + $0x8] sm:$0xff]  ;;  %v21780_v51 = vmov 0.0|0.0  }
  0x95   : > { %21774 = vst [vmem:[#allocation39_spill] sm:$0xff] %v14350_v12  ;;  %21777 = vst [vmem:[#allocation42_spill] sm:$0xff] %v14375_v36  ;;  %v1246_v1 = vld [vmem:[%s21401_s3 + $0x8] sm:$0xff]  ;;  %v1249_v53 = vld [vmem:[%s21401_s3 + $0x20] sm:$0xff]  ;;  %v14385_v19 = vpack.c.bf16 %v1081_v25, %v1077_v8  ;;  %1147 = vmatprep.mubr.f32.mxu1 %v14375_v36  ;;  %1218 = vmatprep.mubr.f32.mxu0 %v14375_v36  ;;  %v342_v25 = vlaneseq }
  0x96   : > { %21775 = vst [vmem:[#allocation40_spill] sm:$0xff] %v14361_v35  ;;  %21776 = vst [vmem:[#allocation41_spill] sm:$0xff] %v14373_v0  ;;  %10062 = vmatpush1.bf16.msra.mxu0 %v14348_v58  ;;  %v14389_v61 = vpack.c.bf16 %v1249_v53, %v1246_v1 }
  0x97   : > { %9998 = vmatpush1.bf16.msra.mxu1 %v14335_v37  ;;  %21778 = vst [vmem:[#allocation43_spill] sm:$0xff] %v14385_v19  ;;  %10064 = vmatprep.subr.bf16.mxu0 %v14361_v35  ;;  %v14404_v1 = vshrl.u32 %v342_v25, 7 }
  0x98   : > { %10000 = vmatprep.subr.bf16.mxu1 %v14350_v12  ;;  %21779 = vst [vmem:[#allocation44_spill] sm:$0xff] %v14389_v61 }
  0x9a   : > { %10066 = vmatpush1.bf16.msra.mxu0 %v14385_v19  ;;  %v21445_v19 = vsub.s32 2, %v14404_v1 }
  0x9b   : > { %10002 = vmatpush1.bf16.msra.mxu1 %v14373_v0  ;;  %10068 = vmatprep.subr.bf16.mxu0 %v14389_v61  ;;  %v340_v61 = vld [vmem:[%s21400_s2] sm:$0x7] }
  0x9c   : > { %10099 = vmatprep.subr.bf16.mxu1 %v21780_v51 }
  0xff   : > { %v14396_v58 = vpop.f32.mrb[0].mxu1 }
 0x100   : > { %21781 = vst [vmem:[#allocation45_spill] sm:$0xff] %v14396_v58  ;;  %v14398_v8 = vpop.f32.mrb[1].mxu1 }
 0x101   : > { %21782 = vst [vmem:[#allocation46_spill] sm:$0xff] %v14398_v8 }
 0x105   : > { %v14400_v35 = vpop.f32.mrb[2].mxu1 }
 0x106   : > { %21783 = vst [vmem:[#allocation47_spill] sm:$0xff] %v14400_v35  ;;  %v14402_v12 = vpop.f32.mrb[3].mxu1  ;;  %v353_v35 = vrot.slane %v340_v61, %v21445_v19 }
 0x107   : > { %21784 = vst [vmem:[#allocation48_spill] sm:$0xff] %v14402_v12 }
 0x109   : > { %v14406_v53 = vpop.f32.mrb[4].mxu1 }
 0x10a   : > { %21785 = vst [vmem:[#allocation49_spill] sm:$0xff] %v14406_v53  ;;  %v14408_v36 = vpop.f32.mrb[5].mxu1 }
 0x10b   : > { %21786 = vst [vmem:[#allocation50_spill] sm:$0xff] %v14408_v36 }
 0x10d   : > { %v14414_v58 = vpop.f32.mrb[6].mxu1 }
 0x10e   : > { %21787 = vst [vmem:[#allocation51_spill] sm:$0xff] %v14414_v58  ;;  %v14416_v8 = vpop.f32.mrb[7].mxu1 }
 0x10f   : > { %21788 = vst [vmem:[#allocation52_spill] sm:$0xff] %v14416_v8 }
 0x111   : > { %v9285_v12 = vpop.f32.mrb[8].mxu1 }
 0x112   : > { %v14420_v25 = vadd.f32 %v9285_v12, %v353_v35  ;;  %v633_v0 = vpop.f32.mrb[9].mxu1 }
 0x114   : > { %21789 = vst [vmem:[#allocation53_spill] sm:$0xff] %v14420_v25 }
 0x115   : > { %v9288_v53 = vpop.f32.mrb[10].mxu1 }
 0x116   : > { %v14422_v37 = vadd.f32 %v9288_v53, %v353_v35  ;;  %v643_v36 = vpop.f32.mrb[11].mxu1 }
 0x117   : > { %v14424_v29 = vadd.f32 %v643_v36, %v353_v35 }
 0x118   : > { %21790 = vst [vmem:[#allocation54_spill] sm:$0xff] %v14422_v37 }
 0x119   : > { %21791 = vst [vmem:[#allocation55_spill] sm:$0xff] %v14424_v29  ;;  %v9291_v10 = vpop.f32.mrb[12].mxu1 }
 0x11a   : > { %v14426_v56 = vadd.f32 %v9291_v10, %v353_v35  ;;  %v653_v39 = vpop.f32.mrb[13].mxu1 }
 0x11b   : > { %v14428_v58 = vadd.f32 %v653_v39, %v353_v35  ;;  %v21447_v39 = vsub.s32 0, %v14404_v1 }
 0x11c   : > { %21792 = vst [vmem:[#allocation56_spill] sm:$0xff] %v14426_v56 }
 0x11d   : > { %21793 = vst [vmem:[#allocation57_spill] sm:$0xff] %v14428_v58  ;;  %v9294_v8 = vpop.f32.mrb[14].mxu1 }
 0x11e   : > { %v14430_v46 = vadd.f32 %v9294_v8, %v353_v35  ;;  %v663_v19 = vpop.f32.mrb[15].mxu1 }
 0x11f   : > { %v14432_v31 = vadd.f32 %v663_v19, %v353_v35 }
 0x120   : > { %21794 = vst [vmem:[#allocation58_spill] sm:$0xff] %v14430_v46 }
 0x121   : > { %21795 = vst [vmem:[#allocation59_spill] sm:$0xff] %v14432_v31  ;;  %v9297_v12 = vpop.f32.mrb[16].mxu1 }
 0x122   : > { %v14434_v25 = vadd.f32 %v9297_v12, %v353_v35  ;;  %v673_v53 = vpop.f32.mrb[17].mxu1  ;;  %v21450_v12 = vsub.s32 1, %v14404_v1 }
 0x123   : > { %v14436_v37 = vadd.f32 %v673_v53, %v353_v35  ;;  %v14450_v53 = vrot.slane %v340_v61, %v21447_v39 }
 0x124   : > { %21796 = vst [vmem:[#allocation60_spill] sm:$0xff] %v14434_v25 }
 0x125   : > { %21797 = vst [vmem:[#allocation61_spill] sm:$0xff] %v14436_v37  ;;  %v9300_v36 = vpop.f32.mrb[18].mxu1 }
 0x126   : > { %v14438_v29 = vadd.f32 %v9300_v36, %v353_v35  ;;  %v683_v10 = vpop.f32.mrb[19].mxu1 }
 0x127   : > { %v14440_v56 = vadd.f32 %v683_v10, %v353_v35 }
 0x128   : > { %21798 = vst [vmem:[#allocation62_spill] sm:$0xff] %v14438_v29 }
 0x129   : > { %21799 = vst [vmem:[#allocation63_spill] sm:$0xff] %v14440_v56  ;;  %v9303_v58 = vpop.f32.mrb[20].mxu1 }
 0x12a   : > { %v14443_v8 = vadd.f32 %v9303_v58, %v353_v35  ;;  %v693_v46 = vpop.f32.mrb[21].mxu1 }
 0x12b   : > { %v14445_v19 = vadd.f32 %v693_v46, %v353_v35  ;;  %v14459_v46 = vrot.slane %v340_v61, %v21450_v12  ;;  %v634_v12 = vadd.f32 %v633_v0, %v353_v35 }
 0x12c   : > { %21800 = vst [vmem:[#allocation64_spill] sm:$0xff] %v14443_v8 }
 0x12d   : > { %21801 = vst [vmem:[#allocation65_spill] sm:$0xff] %v14445_v19  ;;  %v9306_v25 = vpop.f32.mrb[22].mxu1  ;;  %21804 = vst [vmem:[#allocation68_spill] sm:$0xff] %v14459_v46 }
 0x12e   : > { %v14452_v29 = vadd.f32 %v9306_v25, %v353_v35  ;;  %v703_v10 = vpop.f32.mrb[23].mxu1 }
 0x12f   : > { %v858_v36 = vpop.f32.mrb[0].mxu0  ;;  %v14455_v31 = vadd.f32 %v703_v10, %v353_v35  ;;  %v1255_v35 = vld [vmem:[%s21401_s3 + $0x50] sm:$0xff] }
 0x130   : > { %21802 = vst [vmem:[#allocation66_spill] sm:$0xff] %v14452_v29  ;;  %v12831_v56 = vadd.f32 %v858_v36, %v14450_v53  ;;  %v860_v37 = vpop.f32.mrb[1].mxu0  ;;  %v14465_v36 = vld [vmem:[%s21402_s4] ss:$0 sm:$0xff] }
 0x131   : > { %21803 = vst [vmem:[#allocation67_spill] sm:$0xff] %v14455_v31  ;;  %v929_v8 = vpop.f32.mrb[24].mxu1  ;;  %v12832_v19 = vadd.f32 %v860_v37, %v14459_v46 }
 0x132   : > { %v8910_v58 = vmul.f32 -1.442695, %v12831_v56  ;;  %v9341_v39 = vpop.f32.mrb[25].mxu1  ;;  %v947_v61 = vadd.f32 %v14465_v36, %v929_v8 }
 0x133   : > { %v8911_v17 = vmul.f32 -1.442695, %v12832_v19 }
 0x134   : > { %12947 = vpow2.f32 %v8910_v58  ;;  %v1248_v58 = vld [vmem:[%s21401_s3 + $0x18] sm:$0xff] }
 0x135   : > { %12949 = vpow2.f32 %v8911_v17 }
 0x13e   : > { %v12948_v25 = vpop.eup %12947 }
 0x13f   : > { %v937_v29 = vadd.f32 1.0, %v12948_v25  ;;  %v12950_v7 = vpop.eup %12949 }
 0x140   : > { %v944_v10 = vadd.f32 1.0, %v12950_v7  ;;  %v1252_v7 = vld [vmem:[%s21401_s3 + $0x38] sm:$0xff] }
 0x141   : > { %12951 = vrcp.f32 %v937_v29  ;;  %v1245_v29 = vld [vmem:[%s21401_s3] sm:$0xff] }
 0x142   : > { %12953 = vrcp.f32 %v944_v10 }
 0x14b   : > { %v12952_v56 = vpop.eup %12951 }
 0x14c   : > { %v948_v37 = vmul.f32 %v12952_v56, %v947_v61  ;;  %v12954_v19 = vpop.eup %12953  ;;  %v14485_v61 = vpack.c.bf16 %v1255_v35, %v1252_v7  ;;  %v1251_v56 = vld [vmem:[%s21401_s3 + $0x30] sm:$0xff]  ;;  %v21805_v7 = vmov 0.0  }
 0x14d   : > { %v951_v17 = vsub.f32 1.0, %v12954_v19  ;;  %v953_v8 = vmul.f32 %v12954_v19, %v13794_v28  ;;  %v1261_v28 = vld [vmem:[%s21401_s3 + $0x80] sm:$0xff] }
 0x14e   : > { %v949_v39 = vadd.f32 %v948_v37, %v634_v12  ;;  %v14481_v12 = vpack.c.bf16 %v1248_v58, %v1245_v29  ;;  %v1254_v37 = vld [vmem:[%s21401_s3 + $0x48] sm:$0xff]  ;;  %v1257_v29 = vld [vmem:[%s21401_s3 + $0x60] sm:$0xff]  ;;  %v1260_v58 = vld [vmem:[%s21401_s3 + $0x78] sm:$0xff] }
 0x14f   : > { %v14503_v19 = vpack.c.bf16 %v1254_v37, %v1251_v56  ;;  %v14526_v35 = vpack.c.bf16 %v1260_v58, %v1257_v29  ;;  %v1266_v56 = vld [vmem:[%s21401_s3 + $0xa8] sm:$0xff]  ;;  %v1273_v37 = vld [vmem:[%s21401_s3 + $0xe0] sm:$0xff]  ;;  %v1272_v58 = vld [vmem:[%s21401_s3 + $0xd8] sm:$0xff] }
 0x150   : > { %12955 = vtanh.f32 %v949_v39  ;;  %v1258_v39 = vld [vmem:[%s21401_s3 + $0x68] sm:$0xff]  ;;  %v1269_v29 = vld [vmem:[%s21401_s3 + $0xc0] sm:$0xff] }
 0x15a   : > { %v12956_v25 = vpop.eup %12955 }
 0x15b   : > { %v952_v0 = vmul.f32 %v12956_v25, %v951_v17  ;;  %v14507_v17 = vpack.c.bf16 %v1261_v28, %v1258_v39  ;;  %v1267_v25 = vld [vmem:[%s21401_s3 + $0xb0] sm:$0xff] }
 0x15d   : > { %v14483_v10 = vadd.f32 %v953_v8, %v952_v0  ;;  %v1263_v8 = vld [vmem:[%s21401_s3 + $0x90] sm:$0xff] }
 0x15e   : > { %v14546_v39 = vpack.c.bf16 %v1266_v56, %v1263_v8  ;;  %v1275_v56 = vld [vmem:[%s21401_s3 + $0xf0] sm:$0xff] }
 0x15f   : > { %1148 = vmatmul.mubr.f32.vlgmr.msra.gmra.mrb[26].mxu1 %v14483_v10  ;;  %1219 = vmatmul.mubr.f32.vlgmr.msra.gmra.mrb[24].mxu0 %v14483_v10 }
 0x160   : > { %10070 = vmatpush1.bf16.msra.mxu0 %v14481_v12  ;;  %10101 = vmatpush3.bf16.msra.mxu1 %v13654_v5  ;;  %v1264_v5 = vld [vmem:[%s21401_s3 + $0x98] sm:$0xff] }
 0x161   : > { %10072 = vmatprep.subr.bf16.mxu0 %v14485_v61  ;;  %10102 = vmatprep.subr.bf16.mxu1 %v21780_v51  ;;  %v14530_v0 = vpack.c.bf16 %v1267_v25, %v1264_v5  ;;  %v1279_v5 = vld [vmem:[%s21401_s3 + $0x110] sm:$0xff]  ;;  %v14566_v25 = vpack.c.bf16 %v1272_v58, %v1269_v29  ;;  %v21843_v58 = vsub.s32 1, %v14404_v1 }
 0x162   : > { %1357 = vmatprep.mubr.f32.mxu0 %v21805_v7  ;;  %9374 = vmatprep.mubr.msk.f32.mxu1 %vm13371_vm1, %v21805_v7 }
 0x164   : > { %10074 = vmatpush1.bf16.msra.mxu0 %v14503_v19  ;;  %10104 = vmatpush3.bf16.msra.mxu1 %v13682_v16  ;;  %v1270_v16 = vld [vmem:[%s21401_s3 + $0xc8] sm:$0xff] }
 0x165   : > { %10076 = vmatprep.subr.bf16.mxu0 %v14507_v17  ;;  %10105 = vmatprep.subr.bf16.mxu1 %v21780_v51  ;;  %v14550_v28 = vpack.c.bf16 %v1273_v37, %v1270_v16  ;;  %v1278_v16 = vld [vmem:[%s21401_s3 + $0x108] sm:$0xff] }
 0x168   : > { %10078 = vmatpush1.bf16.msra.mxu0 %v14526_v35  ;;  %10107 = vmatpush3.bf16.msra.mxu1 %v13709_v24  ;;  %v1276_v24 = vld [vmem:[%s21401_s3 + $0xf8] sm:$0xff] }
 0x169   : > { %10080 = vmatprep.subr.bf16.mxu0 %v14530_v0  ;;  %10108 = vmatprep.subr.bf16.mxu1 %v21780_v51  ;;  %v14570_v8 = vpack.c.bf16 %v1279_v5, %v1276_v24 }
 0x16c   : > { %10082 = vmatpush1.bf16.msra.mxu0 %v14546_v39  ;;  %10110 = vmatpush3.bf16.msra.mxu1 %v13728_v30  ;;  %v14580_v30 = vpack.c.bf16 %v1278_v16, %v1275_v56 }
 0x16d   : > { %10084 = vmatprep.subr.bf16.mxu0 %v14550_v28  ;;  %10111 = vmatprep.subr.bf16.mxu1 %v21780_v51 }
 0x170   : > { %10086 = vmatpush1.bf16.msra.mxu0 %v14566_v25  ;;  %10113 = vmatpush3.bf16.msra.mxu1 %v13744_v34  ;;  %v21810_v34 = vld [vmem:[#allocation13_spill] sm:$0xff] }
 0x171   : > { %10088 = vmatprep.subr.bf16.mxu0 %v14570_v8  ;;  %10114 = vmatprep.subr.bf16.mxu1 %v21780_v51 }
 0x174   : > { %10090 = vmatpush1.bf16.msra.mxu0 %v14580_v30  ;;  %10116 = vmatpush3.bf16.msra.mxu1 %v13760_v40  ;;  %v21811_v40 = vld [vmem:[#allocation14_spill] sm:$0xff] }
 0x175   : > { %10092 = vmatprep.subr.bf16.mxu0 %v13664_v11  ;;  %10117 = vmatprep.subr.bf16.mxu1 %v21780_v51  ;;  %v21806_v11 = vld [vmem:[#allocation9_spill] sm:$0xff] }
 0x178   : > { %10094 = vmatpush1.bf16.msra.mxu0 %v13686_v18  ;;  %10119 = vmatpush3.bf16.msra.mxu1 %v13775_v44  ;;  %v21807_v18 = vld [vmem:[#allocation10_spill] sm:$0xff]  ;;  %v21812_v44 = vld [vmem:[#allocation15_spill] sm:$0xff] }
 0x179   : > { %10096 = vmatprep.subr.bf16.mxu0 %v13695_v21  ;;  %10120 = vmatprep.subr.bf16.mxu1 %v21780_v51  ;;  %v21808_v21 = vld [vmem:[#allocation11_spill] sm:$0xff] }
 0x17c   : > { %10098 = vmatpush1.bf16.msra.mxu0 %v13714_v26  ;;  %10122 = vmatpush3.bf16.msra.mxu1 %v13791_v47  ;;  %v21809_v26 = vld [vmem:[#allocation12_spill] sm:$0xff] }
 0x17d   : > { %10124 = vmatprep.subr.bf16.mxu1 %v13815_v50  ;;  %10188 = vmatprep.subr.bf16.mxu0 %v13826_v54  ;;  %v21813_v47 = vld [vmem:[#allocation16_spill] sm:$0xff]  ;;  %v21814_v50 = vld [vmem:[#allocation17_spill] sm:$0xff]  ;;  %v21815_v54 = vld [vmem:[#allocation18_spill] sm:$0xff] }
 0x17f   : > { %1358 = vmatmul.mubr.f32.vlgmr.msra.gmra.mrb[2].mxu0 %v14483_v10  ;;  %9375 = vmatmul.mubr.f32.vlgmr.msra.gmra.mrb[28].mxu1 %v14483_v10 }
 0x180   : > { %10126 = vmatpush1.bf16.msra.mxu1 %v13828_v55  ;;  %10190 = vmatpush1.bf16.msra.mxu0 %v13837_v59  ;;  %v21816_v55 = vld [vmem:[#allocation19_spill] sm:$0xff]  ;;  %v21817_v59 = vld [vmem:[#allocation20_spill] sm:$0xff] }
 0x181   : > { %10128 = vmatprep.subr.bf16.mxu1 %v13851_v63  ;;  %10192 = vmatprep.subr.bf16.mxu0 %v13862_v3  ;;  %v21818_v63 = vld [vmem:[#allocation21_spill] sm:$0xff]  ;;  %v21819_v3 = vld [vmem:[#allocation22_spill] sm:$0xff] }
 0x184   : > { %10130 = vmatpush1.bf16.msra.mxu1 %v13864_v4  ;;  %10194 = vmatpush1.bf16.msra.mxu0 %v13873_v9  ;;  %v21820_v4 = vld [vmem:[#allocation23_spill] sm:$0xff]  ;;  %v21821_v9 = vld [vmem:[#allocation24_spill] sm:$0xff] }
 0x185   : > { %10132 = vmatprep.subr.bf16.mxu1 %v13887_v14  ;;  %10196 = vmatprep.subr.bf16.mxu0 %v13898_v20  ;;  %v21822_v14 = vld [vmem:[#allocation25_spill] sm:$0xff]  ;;  %v21823_v20 = vld [vmem:[#allocation26_spill] sm:$0xff] }
 0x188   : > { %10134 = vmatpush1.bf16.msra.mxu1 %v13900_v22  ;;  %10198 = vmatpush1.bf16.msra.mxu0 %v13909_v27  ;;  %v21824_v22 = vld [vmem:[#allocation27_spill] sm:$0xff]  ;;  %v21825_v27 = vld [vmem:[#allocation28_spill] sm:$0xff] }
 0x189   : > { %10136 = vmatprep.subr.bf16.mxu1 %v13923_v33  ;;  %10200 = vmatprep.subr.bf16.mxu0 %v13934_v38  ;;  %v21826_v33 = vld [vmem:[#allocation29_spill] sm:$0xff]  ;;  %v21827_v38 = vld [vmem:[#allocation30_spill] sm:$0xff] }
 0x18c   : > { %10138 = vmatpush1.bf16.msra.mxu1 %v13936_v41  ;;  %10202 = vmatpush1.bf16.msra.mxu0 %v13945_v45  ;;  %v21828_v41 = vld [vmem:[#allocation31_spill] sm:$0xff]  ;;  %v21829_v45 = vld [vmem:[#allocation32_spill] sm:$0xff] }
 0x18d   : > { %10140 = vmatprep.subr.bf16.mxu1 %v13959_v49  ;;  %10204 = vmatprep.subr.bf16.mxu0 %v13964_v52  ;;  %v21830_v49 = vld [vmem:[#allocation33_spill] sm:$0xff]  ;;  %v21831_v52 = vld [vmem:[#allocation34_spill] sm:$0xff] }
 0x190   : > { %10142 = vmatpush1.bf16.msra.mxu1 %v13977_v60  ;;  %10206 = vmatpush1.bf16.msra.mxu0 %v13982_v62  ;;  %v21832_v60 = vld [vmem:[#allocation35_spill] sm:$0xff]  ;;  %v21833_v62 = vld [vmem:[#allocation36_spill] sm:$0xff] }
 0x191   : > { %10144 = vmatprep.subr.bf16.mxu1 %v13995_v6  ;;  %10208 = vmatprep.subr.bf16.mxu0 %v14006_v13  ;;  %v21834_v6 = vld [vmem:[#allocation37_spill] sm:$0xff]  ;;  %v21835_v13 = vld [vmem:[#allocation38_spill] sm:$0xff] }
 0x194   : > { %10146 = vmatpush1.bf16.msra.mxu1 %v14008_v15  ;;  %10210 = vmatpush1.bf16.msra.mxu0 %v14017_v23  ;;  %v21836_v15 = vld [vmem:[#allocation39_spill] sm:$0xff]  ;;  %v21837_v23 = vld [vmem:[#allocation40_spill] sm:$0xff] }
 0x195   : > { %10148 = vmatprep.subr.bf16.mxu1 %v14031_v32  ;;  %10212 = vmatprep.subr.bf16.mxu0 %v14042_v42  ;;  %v21838_v32 = vld [vmem:[#allocation41_spill] sm:$0xff]  ;;  %v21839_v42 = vld [vmem:[#allocation43_spill] sm:$0xff] }
 0x198   : > { %10150 = vmatpush1.bf16.msra.mxu1 %v14044_v43  ;;  %10214 = vmatpush1.bf16.msra.mxu0 %v14053_v48  ;;  %v21840_v43 = vld [vmem:[#allocation44_spill] sm:$0xff]  ;;  %v719_v48 = vld [vmem:[%s21404_s6] sm:$0xf] }
 0x199   : > { %10152 = vmatprep.subr.bf16.mxu1 %v14067_v57  ;;  %10216 = vmatprep.subr.bf16.mxu0 %v14078_v2  ;;  %v21841_v57 = vsub.s32 0, %v14404_v1  ;;  %v14671_v24 = vrot.slane %v719_v48, %v21843_v58 }
 0x19b   : > { %v14667_v2 = vrot.slane %v719_v48, %v21841_v57 }
 0x19c   : > { %10154 = vmatpush1.bf16.msra.mxu1 %v21806_v11  ;;  %10218 = vmatpush1.bf16.msra.mxu0 %v21807_v18 }
 0x19d   : > { %10156 = vmatprep.subr.bf16.mxu1 %v21808_v21  ;;  %10220 = vmatprep.subr.bf16.mxu0 %v21809_v26  ;;  %21842 = vst [vmem:[#allocation9_spill] sm:$0xff] %v14667_v2 }
 0x1a0   : > { %10158 = vmatpush1.bf16.msra.mxu1 %v21810_v34  ;;  %10222 = vmatpush1.bf16.msra.mxu0 %v21811_v40  ;;  %v735_v40 = vsub.s32 3, %v14404_v1 }
 0x1a1   : > { %10160 = vmatprep.subr.bf16.mxu1 %v21812_v44  ;;  %10224 = vmatprep.subr.bf16.mxu0 %v21813_v47 }
 0x1a2   : > { %v14676_v47 = vrot.slane %v719_v48, %v735_v40  ;;  %v1757_v40 = vld [vmem:[%s21401_s3 + $0x58] sm:$0xff] }
 0x1a4   : > { %10162 = vmatpush1.bf16.msra.mxu1 %v21814_v50  ;;  %10226 = vmatpush1.bf16.msra.mxu0 %v21815_v54  ;;  %21844 = vst [vmem:[#allocation10_spill] sm:$0xff] %v14676_v47  ;;  %v21845_v50 = vsub.s32 2, %v14404_v1 }
 0x1a5   : > { %10164 = vmatprep.subr.bf16.mxu1 %v21816_v55  ;;  %10228 = vmatprep.subr.bf16.mxu0 %v21817_v59 }
 0x1a6   : > { %v14680_v54 = vrot.slane %v719_v48, %v21845_v50  ;;  %v1763_v50 = vld [vmem:[%s21401_s3 + $0x88] sm:$0xff] }
 0x1a8   : > { %10166 = vmatpush1.bf16.msra.mxu1 %v21818_v63  ;;  %10230 = vmatpush1.bf16.msra.mxu0 %v21819_v3 }
 0x1a9   : > { %10168 = vmatprep.subr.bf16.mxu1 %v21820_v4  ;;  %10232 = vmatprep.subr.bf16.mxu0 %v21821_v9 }
 0x1ac   : > { %10170 = vmatpush1.bf16.msra.mxu1 %v21822_v14  ;;  %10234 = vmatpush1.bf16.msra.mxu0 %v21823_v20 }
 0x1ad   : > { %10172 = vmatprep.subr.bf16.mxu1 %v21824_v22  ;;  %10236 = vmatprep.subr.bf16.mxu0 %v21825_v27 }
 0x1b0   : > { %10174 = vmatpush1.bf16.msra.mxu1 %v21826_v33  ;;  %10238 = vmatpush1.bf16.msra.mxu0 %v21827_v38 }
 0x1b1   : > { %10176 = vmatprep.subr.bf16.mxu1 %v21828_v41  ;;  %10240 = vmatprep.subr.bf16.mxu0 %v21829_v45 }
 0x1b4   : > { %10178 = vmatpush1.bf16.msra.mxu1 %v21830_v49  ;;  %10242 = vmatpush1.bf16.msra.mxu0 %v21831_v52 }
 0x1b5   : > { %10180 = vmatprep.subr.bf16.mxu1 %v21832_v60  ;;  %10244 = vmatprep.subr.bf16.mxu0 %v21833_v62  ;;  %v21846_v62 = vld [vmem:[#allocation42_spill] sm:$0xff] }
 0x1b8   : > { %10182 = vmatpush1.bf16.msra.mxu1 %v21834_v6  ;;  %10246 = vmatpush1.bf16.msra.mxu0 %v21835_v13 }
 0x1b9   : > { %10184 = vmatprep.subr.bf16.mxu1 %v21836_v15  ;;  %10248 = vmatprep.subr.bf16.mxu0 %v21837_v23 }
 0x1bc   : > { %10186 = vmatpush1.bf16.msra.mxu1 %v21838_v32  ;;  %10250 = vmatpush1.bf16.msra.mxu0 %v21839_v42 }
 0x1bd   : > { %10252 = vmatprep.subr.bf16.mxu0 %v21840_v43  ;;  %10283 = vmatprep.subr.bf16.mxu1 %v21780_v51 }
 0x232   : > { %v1149_v37 = vpop.f32.mrb[26].mxu1  ;;  %v1220_v29 = vpop.f32.mrb[24].mxu0 }
 0x233   : > { %v1150_v5 = vadd.f32 %v1149_v37, %v14667_v2  ;;  %v1151_v56 = vpop.f32.mrb[27].mxu1  ;;  %v1222_v16 = vpop.f32.mrb[25].mxu0  ;;  %v1221_v3 = vadd.f32 %v1220_v29, %v14680_v54  ;;  %v21847_v37 = vld [vmem:[#allocation53_spill] sm:$0xff] }
 0x234   : > { %v1152_v18 = vadd.f32 %v1151_v56, %v14671_v24  ;;  %v1223_v59 = vadd.f32 %v1222_v16, %v14676_v47  ;;  %v1748_v56 = vld [vmem:[%s21401_s3 + $0x10] sm:$0xff]  ;;  %v1751_v16 = vld [vmem:[%s21401_s3 + $0x28] sm:$0xff] }
 0x235   : > { %v8912_v11 = vmul.f32 -1.442695, %v1150_v5 }
 0x236   : > { %v8913_v21 = vmul.f32 -1.442695, %v1152_v18 }
 0x237   : > { %12957 = vpow2.f32 %v8912_v11 }
 0x238   : > { %12959 = vpow2.f32 %v8913_v21  ;;  %v14702_v21 = vpack.c.bf16 %v1751_v16, %v1748_v56  ;;  %v1968_v56 = vld [vmem:[%s21403_s5 + $0x58] sm:$0xff] }
 0x241   : > { %v12958_v26 = vpop.eup %12957 }
 0x242   : > { %v1228_v34 = vadd.f32 1.0, %v12958_v26  ;;  %v12960_v44 = vpop.eup %12959 }
 0x243   : > { %v1234_v55 = vadd.f32 1.0, %v12960_v44  ;;  %v1760_v44 = vld [vmem:[%s21401_s3 + $0x70] sm:$0xff] }
 0x244   : > { %12961 = vrcp.f32 %v1228_v34  ;;  %v1754_v34 = vld [vmem:[%s21401_s3 + $0x40] sm:$0xff] }
 0x245   : > { %12963 = vrcp.f32 %v1234_v55  ;;  %v1769_v55 = vld [vmem:[%s21401_s3 + $0xb8] sm:$0xff] }
 0x24e   : > { %v12962_v63 = vpop.eup %12961 }
 0x24f   : > { %v1237_v4 = vmul.f32 %v12962_v63, %v1223_v59  ;;  %v12964_v41 = vpop.eup %12963  ;;  %v1775_v59 = vld [vmem:[%s21401_s3 + $0xe8] sm:$0xff]  ;;  %v1781_v63 = vld [vmem:[%s21401_s3 + $0x118] sm:$0xff] }
 0x250   : > { %v1240_v49 = vsub.f32 1.0, %v12964_v41  ;;  %v1242_v6 = vmul.f32 %v12964_v41, %v21846_v62  ;;  %v1790_v41 = vld [vmem:[%s21401_s3 + $0x160] sm:$0xff]  ;;  %v1962_v62 = vld [vmem:[%s21403_s5 + $0x28] sm:$0xff] }
 0x251   : > { %v1238_v9 = vadd.f32 %v1237_v4, %v1221_v3  ;;  %v1786_v3 = vld [vmem:[%s21401_s3 + $0x140] sm:$0xff] }
 0x252   : > { %v1359_v14 = vpop.f32.mrb[2].mxu0  ;;  %v1430_v20 = vpop.f32.mrb[28].mxu1  ;;  %v1782_v4 = vld [vmem:[%s21401_s3 + $0x120] sm:$0xff] }
 0x253   : > { %12965 = vtanh.f32 %v1238_v9  ;;  %v12833_v22 = vadd.f32 %v1359_v14, %v14450_v53  ;;  %v1361_v27 = vpop.f32.mrb[3].mxu0  ;;  %v9376_v33 = vpop.f32.mrb[29].mxu1  ;;  %v1448_v43 = vadd.f32 %v14465_v36, %v1430_v20  ;;  %v1785_v14 = vld [vmem:[%s21401_s3 + $0x138] sm:$0xff]  ;;  %v1787_v20 = vld [vmem:[%s21401_s3 + $0x148] sm:$0xff] }
 0x254   : > { %v12834_v38 = vadd.f32 %v1361_v27, %v14459_v46  ;;  %v14799_v27 = vpack.c.bf16 %v1785_v14, %v1782_v4 }
 0x255   : > { %v8914_v1 = vmul.f32 -1.442695, %v12833_v22  ;;  %v1792_v22 = vld [vmem:[%s21401_s3 + $0x170] sm:$0xff] }
 0x256   : > { %v8915_v45 = vmul.f32 -1.442695, %v12834_v38 }
 0x257   : > { %12967 = vpow2.f32 %v8914_v1  ;;  %v1788_v1 = vld [vmem:[%s21401_s3 + $0x150] sm:$0xff] }
 0x258   : > { %12969 = vpow2.f32 %v8915_v45  ;;  %v1793_v45 = vld [vmem:[%s21401_s3 + $0x178] sm:$0xff] }
 0x25d   : > { %v12966_v52 = vpop.eup %12965 }
 0x25e   : > { %v1241_v60 = vmul.f32 %v12966_v52, %v1240_v49  ;;  %v14823_v52 = vpack.c.bf16 %v1793_v45, %v1790_v41  ;;  %v1988_v45 = vld [vmem:[%s21403_s5 + $0xf8] sm:$0xff] }
 0x260   : > { %v14687_v13 = vadd.f32 %v1242_v6, %v1241_v60  ;;  %v1958_v60 = vld [vmem:[%s21403_s5 + $0x8] sm:$0xff]  ;;  %v1960_v6 = vld [vmem:[%s21403_s5 + $0x18] sm:$0xff] }
 0x261   : > { %v12968_v15 = vpop.eup %12967 }
 0x262   : > { %v1438_v23 = vadd.f32 1.0, %v12968_v15  ;;  %1244 = vst [vmem:[%s13480_s24] sm:$0xff] %v14687_v13  ;;  %1648 = vmatprep.mubr.f32.mxu1 %v14687_v13  ;;  %1719 = vmatprep.mubr.f32.mxu0 %v14687_v13  ;;  %v12970_v32 = vpop.eup %12969  ;;  %v14840_v15 = vpack.c.bf16 %v1962_v62, %v1958_v60  ;;  %v1981_v60 = vld [vmem:[%s21403_s5 + $0xc0] sm:$0xff] }
 0x263   : > { %v1445_v42 = vadd.f32 1.0, %v12970_v32  ;;  %v1957_v32 = vld [vmem:[%s21403_s5] sm:$0xff] }
 0x264   : > { %12971 = vrcp.f32 %v1438_v23  ;;  %v1964_v23 = vld [vmem:[%s21403_s5 + $0x38] sm:$0xff]  ;;  %v1985_v62 = vld [vmem:[%s21403_s5 + $0xe0] sm:$0xff] }
 0x265   : > { %12973 = vrcp.f32 %v1445_v42  ;;  %v1961_v42 = vld [vmem:[%s21403_s5 + $0x20] sm:$0xff] }
 0x26e   : > { %v12972_v48 = vpop.eup %12971 }
 0x26f   : > { %v1449_v57 = vmul.f32 %v12972_v48, %v1448_v43  ;;  %v12974_v58 = vpop.eup %12973  ;;  %v14851_v43 = vpack.c.bf16 %v1964_v23, %v1960_v6  ;;  %v14853_v48 = vpack.c.bf16 %v1961_v42, %v1957_v32  ;;  %v14961_v23 = vpack.c.bf16 %v1985_v62, %v1981_v60  ;;  %v1983_v32 = vld [vmem:[%s21403_s5 + $0xd0] sm:$0xff] }
 0x270   : > { %v1452_v5 = vsub.f32 1.0, %v12974_v58  ;;  %v1454_v36 = vmul.f32 %v12974_v58, %v14483_v10  ;;  %v14716_v10 = vpack.c.bf16 %v1757_v40, %v1754_v34  ;;  %v1966_v58 = vld [vmem:[%s21403_s5 + $0x48] sm:$0xff]  ;;  %v1987_v42 = vld [vmem:[%s21403_s5 + $0xf0] sm:$0xff] }
 0x271   : > { %v1450_v29 = vadd.f32 %v1449_v57, %v21847_v37  ;;  %v1959_v57 = vld [vmem:[%s21403_s5 + $0x10] sm:$0xff] }
 0x272   : > { %v1963_v37 = vld [vmem:[%s21403_s5 + $0x30] sm:$0xff] }
 0x273   : > { %12975 = vtanh.f32 %v1450_v29  ;;  %v14862_v29 = vpack.c.bf16 %v1963_v37, %v1959_v57  ;;  %v14970_v57 = vpack.c.bf16 %v1987_v42, %v1983_v32  ;;  %v1990_v37 = vld [vmem:[%s21403_s5 + $0x108] sm:$0xff]  ;;  %v1999_v60 = vld [vmem:[%s21403_s5 + $0x150] sm:$0xff] }
 0x274   : > { %v2003_v62 = vld [vmem:[%s21403_s5 + $0x170] sm:$0xff]  ;;  %v2006_v42 = vld [vmem:[%s21403_s5 + $0x188] sm:$0xff] }
 0x275   : > { %v15042_v32 = vpack.c.bf16 %v2003_v62, %v1999_v60  ;;  %v2020_v62 = vld [vmem:[%s21403_s5 + $0x1f8] sm:$0xff] }
 0x27d   : > { %v12976_v11 = vpop.eup %12975 }
 0x27e   : > { %v1453_v18 = vmul.f32 %v12976_v11, %v1452_v5  ;;  %v1970_v5 = vld [vmem:[%s21403_s5 + $0x68] sm:$0xff]  ;;  %v1972_v11 = vld [vmem:[%s21403_s5 + $0x78] sm:$0xff] }
 0x27f   : > { %v14876_v16 = vpack.c.bf16 %v1970_v5, %v1966_v58  ;;  %v14887_v34 = vpack.c.bf16 %v1972_v11, %v1968_v56  ;;  %v1994_v58 = vld [vmem:[%s21403_s5 + $0x128] sm:$0xff]  ;;  %v1992_v5 = vld [vmem:[%s21403_s5 + $0x118] sm:$0xff] }
 0x280   : > { %v14704_v26 = vadd.f32 %v1454_v36, %v1453_v18  ;;  %v1965_v18 = vld [vmem:[%s21403_s5 + $0x40] sm:$0xff]  ;;  %v14984_v56 = vpack.c.bf16 %v1994_v58, %v1990_v37  ;;  %v1996_v11 = vld [vmem:[%s21403_s5 + $0x138] sm:$0xff]  ;;  %v2010_v37 = vld [vmem:[%s21403_s5 + $0x1a8] sm:$0xff] }
 0x281   : > { %v1969_v36 = vld [vmem:[%s21403_s5 + $0x60] sm:$0xff]  ;;  %v2008_v58 = vld [vmem:[%s21403_s5 + $0x198] sm:$0xff] }
 0x282   : > { %1649 = vmatmul.mubr.f32.vlgmr.msra.gmra.mrb[30].mxu1 %v14704_v26  ;;  %1720 = vmatmul.mubr.f32.vlgmr.msra.gmra.mrb[26].mxu0 %v14704_v26  ;;  %v14889_v40 = vpack.c.bf16 %v1969_v36, %v1965_v18  ;;  %v1989_v18 = vld [vmem:[%s21403_s5 + $0x100] sm:$0xff] }
 0x283   : > { %10254 = vmatpush1.bf16.msra.mxu0 %v14481_v12  ;;  %10285 = vmatpush3.bf16.msra.mxu1 %v14702_v21  ;;  %v14731_v12 = vpack.c.bf16 %v1763_v50, %v1760_v44  ;;  %v1967_v44 = vld [vmem:[%s21403_s5 + $0x50] sm:$0xff]  ;;  %v1993_v36 = vld [vmem:[%s21403_s5 + $0x120] sm:$0xff] }
 0x284   : > { %10256 = vmatprep.subr.bf16.mxu0 %v14485_v61  ;;  %10286 = vmatprep.subr.bf16.mxu1 %v21780_v51  ;;  %v1766_v61 = vld [vmem:[%s21401_s3 + $0xa0] sm:$0xff]  ;;  %v1971_v50 = vld [vmem:[%s21403_s5 + $0x70] sm:$0xff] }
 0x285   : > { %1858 = vmatprep.mubr.f32.mxu0 %v21805_v7  ;;  %9409 = vmatprep.mubr.msk.f32.mxu1 %vm13371_vm1, %v21805_v7 }
 0x287   : > { %10258 = vmatpush1.bf16.msra.mxu0 %v14503_v19  ;;  %10288 = vmatpush3.bf16.msra.mxu1 %v14716_v10  ;;  %v14743_v19 = vpack.c.bf16 %v1769_v55, %v1766_v61  ;;  %v14898_v61 = vpack.c.bf16 %v1971_v50, %v1967_v44  ;;  %v1974_v55 = vld [vmem:[%s21403_s5 + $0x88] sm:$0xff]  ;;  %v14995_v44 = vpack.c.bf16 %v1996_v11, %v1992_v5  ;;  %v2012_v11 = vld [vmem:[%s21403_s5 + $0x1b8] sm:$0xff] }
 0x288   : > { %10260 = vmatprep.subr.bf16.mxu0 %v14507_v17  ;;  %10289 = vmatprep.subr.bf16.mxu1 %v21780_v51  ;;  %v1772_v17 = vld [vmem:[%s21401_s3 + $0xd0] sm:$0xff]  ;;  %v14997_v50 = vpack.c.bf16 %v1993_v36, %v1989_v18  ;;  %v15056_v5 = vpack.c.bf16 %v2010_v37, %v2006_v42  ;;  %v2005_v18 = vld [vmem:[%s21403_s5 + $0x180] sm:$0xff] }
 0x289   : > { %v2009_v36 = vld [vmem:[%s21403_s5 + $0x1a0] sm:$0xff] }
 0x28a   : > { %v2013_v42 = vld [vmem:[%s21403_s5 + $0x1c0] sm:$0xff] }
 0x28b   : > { %10262 = vmatpush1.bf16.msra.mxu0 %v14526_v35  ;;  %10291 = vmatpush3.bf16.msra.mxu1 %v14731_v12  ;;  %v14755_v35 = vpack.c.bf16 %v1775_v59, %v1772_v17  ;;  %v1978_v17 = vld [vmem:[%s21403_s5 + $0xa8] sm:$0xff]  ;;  %v1976_v59 = vld [vmem:[%s21403_s5 + $0x98] sm:$0xff]  ;;  %v2017_v37 = vld [vmem:[%s21403_s5 + $0x1e0] sm:$0xff] }
 0x28c   : > { %10264 = vmatprep.subr.bf16.mxu0 %v14530_v0  ;;  %10292 = vmatprep.subr.bf16.mxu1 %v21780_v51  ;;  %v1778_v0 = vld [vmem:[%s21401_s3 + $0x100] sm:$0xff] }
 0x28f   : > { %10266 = vmatpush1.bf16.msra.mxu0 %v14546_v39  ;;  %10294 = vmatpush3.bf16.msra.mxu1 %v14743_v19  ;;  %v1783_v39 = vld [vmem:[%s21401_s3 + $0x128] sm:$0xff] }
 0x290   : > { %10268 = vmatprep.subr.bf16.mxu0 %v14550_v28  ;;  %10295 = vmatprep.subr.bf16.mxu1 %v21780_v51  ;;  %v14773_v28 = vpack.c.bf16 %v1781_v63, %v1778_v0  ;;  %v14780_v9 = vpack.c.bf16 %v1786_v3, %v1783_v39  ;;  %v14912_v0 = vpack.c.bf16 %v1978_v17, %v1974_v55  ;;  %v1980_v63 = vld [vmem:[%s21403_s5 + $0xb8] sm:$0xff]  ;;  %v1973_v39 = vld [vmem:[%s21403_s5 + $0x80] sm:$0xff]  ;;  %v1991_v55 = vld [vmem:[%s21403_s5 + $0x110] sm:$0xff] }
 0x291   : > { %v1977_v3 = vld [vmem:[%s21403_s5 + $0xa0] sm:$0xff]  ;;  %v14923_v4 = vpack.c.bf16 %v1980_v63, %v1976_v59  ;;  %v1995_v17 = vld [vmem:[%s21403_s5 + $0x130] sm:$0xff]  ;;  %v1998_v63 = vld [vmem:[%s21403_s5 + $0x148] sm:$0xff] }
 0x292   : > { %v14925_v14 = vpack.c.bf16 %v1977_v3, %v1973_v39  ;;  %v15006_v59 = vpack.c.bf16 %v1995_v17, %v1991_v55  ;;  %v2002_v39 = vld [vmem:[%s21403_s5 + $0x168] sm:$0xff]  ;;  %v2000_v3 = vld [vmem:[%s21403_s5 + $0x158] sm:$0xff]  ;;  %v15067_v55 = vpack.c.bf16 %v2012_v11, %v2008_v58  ;;  %v15069_v17 = vpack.c.bf16 %v2009_v36, %v2005_v18  ;;  %v2015_v18 = vld [vmem:[%s21403_s5 + $0x1d0] sm:$0xff] }
 0x293   : > { %10270 = vmatpush1.bf16.msra.mxu0 %v14566_v25  ;;  %10297 = vmatpush3.bf16.msra.mxu1 %v14755_v35  ;;  %v1784_v25 = vld [vmem:[%s21401_s3 + $0x130] sm:$0xff]  ;;  %v15105_v11 = vpack.c.bf16 %v2017_v37, %v2013_v42  ;;  %v2021_v42 = vld [vmem:[%s21403_s5 + $0x200] sm:$0xff] }
 0x294   : > { %10272 = vmatprep.subr.bf16.mxu0 %v14570_v8  ;;  %10298 = vmatprep.subr.bf16.mxu1 %v21780_v51  ;;  %v1789_v8 = vld [vmem:[%s21401_s3 + $0x158] sm:$0xff]  ;;  %v14801_v33 = vpack.c.bf16 %v1787_v20, %v1784_v25  ;;  %v1975_v25 = vld [vmem:[%s21403_s5 + $0x90] sm:$0xff]  ;;  %21848 = vst [vmem:[#allocation11_spill] sm:$0xff] %v15069_v17  ;;  %v2025_v37 = vld [vmem:[%s21403_s5 + $0x220] sm:$0xff] }
 0x295   : > { %v14808_v38 = vpack.c.bf16 %v1792_v22, %v1789_v8  ;;  %v1979_v20 = vld [vmem:[%s21403_s5 + $0xb0] sm:$0xff]  ;;  %v1982_v22 = vld [vmem:[%s21403_s5 + $0xc8] sm:$0xff]  ;;  %21852 = vst [vmem:[#allocation15_spill] sm:$0xff] %v15105_v11 }
 0x296   : > { %v14934_v8 = vpack.c.bf16 %v1979_v20, %v1975_v25  ;;  %v15020_v25 = vpack.c.bf16 %v2002_v39, %v1998_v63  ;;  %v2004_v20 = vld [vmem:[%s21403_s5 + $0x178] sm:$0xff]  ;;  %v2007_v63 = vld [vmem:[%s21403_s5 + $0x190] sm:$0xff] }
 0x297   : > { %10274 = vmatpush1.bf16.msra.mxu0 %v14580_v30  ;;  %10300 = vmatpush3.bf16.msra.mxu1 %v14773_v28  ;;  %v1791_v30 = vld [vmem:[%s21401_s3 + $0x168] sm:$0xff]  ;;  %v2011_v39 = vld [vmem:[%s21403_s5 + $0x1b0] sm:$0xff] }
 0x298   : > { %10276 = vmatprep.subr.bf16.mxu0 %v14780_v9  ;;  %10301 = vmatprep.subr.bf16.mxu1 %v21780_v51  ;;  %v14821_v49 = vpack.c.bf16 %v1791_v30, %v1788_v1  ;;  %v1986_v1 = vld [vmem:[%s21403_s5 + $0xe8] sm:$0xff]  ;;  %v1984_v30 = vld [vmem:[%s21403_s5 + $0xd8] sm:$0xff]  ;;  %v2019_v36 = vld [vmem:[%s21403_s5 + $0x1f0] sm:$0xff] }
 0x299   : > { %v14948_v41 = vpack.c.bf16 %v1986_v1, %v1982_v22  ;;  %v14959_v6 = vpack.c.bf16 %v1988_v45, %v1984_v30  ;;  %v1997_v22 = vld [vmem:[%s21403_s5 + $0x140] sm:$0xff]  ;;  %v15031_v30 = vpack.c.bf16 %v2004_v20, %v2000_v3  ;;  %v15078_v3 = vpack.c.bf16 %v2011_v39, %v2007_v63  ;;  %v2014_v20 = vld [vmem:[%s21403_s5 + $0x1c8] sm:$0xff] }
 0x29a   : > { %v2001_v1 = vld [vmem:[%s21403_s5 + $0x160] sm:$0xff]  ;;  %v15114_v63 = vpack.c.bf16 %v2019_v36, %v2015_v18  ;;  %v2022_v39 = vld [vmem:[%s21403_s5 + $0x208] sm:$0xff]  ;;  %v15141_v36 = vpack.c.bf16 %v2025_v37, %v2021_v42  ;;  %v2032_v42 = vld [vmem:[%s21403_s5 + $0x258] sm:$0xff] }
 0x29b   : > { %10278 = vmatpush1.bf16.msra.mxu0 %v14799_v27  ;;  %10303 = vmatpush3.bf16.msra.mxu1 %v14801_v33  ;;  %v15033_v45 = vpack.c.bf16 %v2001_v1, %v1997_v22  ;;  %21849 = vst [vmem:[#allocation12_spill] sm:$0xff] %v15078_v3  ;;  %v2018_v22 = vld [vmem:[%s21403_s5 + $0x1e8] sm:$0xff]  ;;  %v2016_v1 = vld [vmem:[%s21403_s5 + $0x1d8] sm:$0xff] }
 0x29c   : > { %10280 = vmatprep.subr.bf16.mxu0 %v14808_v38  ;;  %10304 = vmatprep.subr.bf16.mxu1 %v21780_v51  ;;  %v15092_v60 = vpack.c.bf16 %v2018_v22, %v2014_v20  ;;  %v15103_v58 = vpack.c.bf16 %v2020_v62, %v2016_v1  ;;  %21853 = vst [vmem:[#allocation16_spill] sm:$0xff] %v15114_v63  ;;  %v2026_v20 = vld [vmem:[%s21403_s5 + $0x228] sm:$0xff]  ;;  %v2024_v22 = vld [vmem:[%s21403_s5 + $0x218] sm:$0xff]  ;;  %21856 = vst [vmem:[#allocation19_spill] sm:$0xff] %v15141_v36 }
 0x29d   : > { %v15128_v1 = vpack.c.bf16 %v2026_v20, %v2022_v39  ;;  %v2028_v62 = vld [vmem:[%s21403_s5 + $0x238] sm:$0xff]  ;;  %v2023_v39 = vld [vmem:[%s21403_s5 + $0x210] sm:$0xff] }
 0x29e   : > { %21850 = vst [vmem:[#allocation13_spill] sm:$0xff] %v15092_v60  ;;  %21851 = vst [vmem:[#allocation14_spill] sm:$0xff] %v15103_v58  ;;  %v15139_v18 = vpack.c.bf16 %v2028_v62, %v2024_v22  ;;  %v2027_v20 = vld [vmem:[%s21403_s5 + $0x230] sm:$0xff]  ;;  %v2030_v22 = vld [vmem:[%s21403_s5 + $0x248] sm:$0xff] }
 0x29f   : > { %10282 = vmatpush1.bf16.msra.mxu0 %v14821_v49  ;;  %10306 = vmatpush3.bf16.msra.mxu1 %v14823_v52  ;;  %21854 = vst [vmem:[#allocation17_spill] sm:$0xff] %v15128_v1  ;;  %v15150_v31 = vpack.c.bf16 %v2027_v20, %v2023_v39  ;;  %v2034_v62 = vld [vmem:[%s21403_s5 + $0x268] sm:$0xff]  ;;  %v2036_v39 = vld [vmem:[%s21403_s5 + $0x278] sm:$0xff]  ;;  %v2029_v20 = vld [vmem:[%s21403_s5 + $0x240] sm:$0xff] }
 0x2a0   : > { %10308 = vmatprep.subr.bf16.mxu1 %v14840_v15  ;;  %10372 = vmatprep.subr.bf16.mxu0 %v14851_v43  ;;  %21855 = vst [vmem:[#allocation18_spill] sm:$0xff] %v15139_v18  ;;  %v15164_v37 = vpack.c.bf16 %v2034_v62, %v2030_v22  ;;  %v2031_v22 = vld [vmem:[%s21403_s5 + $0x250] sm:$0xff] }
 0x2a1   : > { %21857 = vst [vmem:[#allocation20_spill] sm:$0xff] %v15150_v31  ;;  %v2035_v62 = vld [vmem:[%s21403_s5 + $0x270] sm:$0xff] }
 0x2a2   : > { %1859 = vmatmul.mubr.f32.vlgmr.msra.gmra.mrb[4].mxu0 %v14704_v26  ;;  %9410 = vmatmul.mubr.f32.vlgmr.msra.gmra.mrb[32].mxu1 %v14704_v26  ;;  %21858 = vst [vmem:[#allocation21_spill] sm:$0xff] %v15164_v37 }
 0x2a3   : > { %10310 = vmatpush1.bf16.msra.mxu1 %v14853_v48  ;;  %10374 = vmatpush1.bf16.msra.mxu0 %v14862_v29 }
 0x2a4   : > { %10312 = vmatprep.subr.bf16.mxu1 %v14876_v16  ;;  %10376 = vmatprep.subr.bf16.mxu0 %v14887_v34 }
 0x2a7   : > { %10314 = vmatpush1.bf16.msra.mxu1 %v14889_v40  ;;  %10378 = vmatpush1.bf16.msra.mxu0 %v14898_v61 }
 0x2a8   : > { %10316 = vmatprep.subr.bf16.mxu1 %v14912_v0  ;;  %10380 = vmatprep.subr.bf16.mxu0 %v14923_v4 }
 0x2ab   : > { %10318 = vmatpush1.bf16.msra.mxu1 %v14925_v14  ;;  %10382 = vmatpush1.bf16.msra.mxu0 %v14934_v8 }
 0x2ac   : > { %10320 = vmatprep.subr.bf16.mxu1 %v14948_v41  ;;  %10384 = vmatprep.subr.bf16.mxu0 %v14959_v6 }
 0x2af   : > { %10322 = vmatpush1.bf16.msra.mxu1 %v14961_v23  ;;  %10386 = vmatpush1.bf16.msra.mxu0 %v14970_v57 }
 0x2b0   : > { %10324 = vmatprep.subr.bf16.mxu1 %v14984_v56  ;;  %10388 = vmatprep.subr.bf16.mxu0 %v14995_v44 }
 0x2b3   : > { %10326 = vmatpush1.bf16.msra.mxu1 %v14997_v50  ;;  %10390 = vmatpush1.bf16.msra.mxu0 %v15006_v59 }
 0x2b4   : > { %10328 = vmatprep.subr.bf16.mxu1 %v15020_v25  ;;  %10392 = vmatprep.subr.bf16.mxu0 %v15031_v30 }
 0x2b7   : > { %10330 = vmatpush1.bf16.msra.mxu1 %v15033_v45  ;;  %10394 = vmatpush1.bf16.msra.mxu0 %v15042_v32 }
 0x2b8   : > { %10332 = vmatprep.subr.bf16.mxu1 %v15056_v5  ;;  %10396 = vmatprep.subr.bf16.mxu0 %v15067_v55 }
 0x2bb   : > { %10334 = vmatpush1.bf16.msra.mxu1 %v15069_v17  ;;  %10398 = vmatpush1.bf16.msra.mxu0 %v15078_v3 }
 0x2bc   : > { %10336 = vmatprep.subr.bf16.mxu1 %v15092_v60  ;;  %10400 = vmatprep.subr.bf16.mxu0 %v15103_v58 }
 0x2bf   : > { %10338 = vmatpush1.bf16.msra.mxu1 %v15105_v11  ;;  %10402 = vmatpush1.bf16.msra.mxu0 %v15114_v63  ;;  %v2071_v11 = vld [vmem:[%s21403_s5 + $0x390] sm:$0xff] }
 0x2c0   : > { %10340 = vmatprep.subr.bf16.mxu1 %v15128_v1  ;;  %10404 = vmatprep.subr.bf16.mxu0 %v15139_v18  ;;  %v15175_v18 = vpack.c.bf16 %v2036_v39, %v2032_v42  ;;  %v2042_v42 = vld [vmem:[%s21403_s5 + $0x2a8] sm:$0xff]  ;;  %v2040_v39 = vld [vmem:[%s21403_s5 + $0x298] sm:$0xff] }
 0x2c2   : > { %21859 = vst [vmem:[#allocation22_spill] sm:$0xff] %v15175_v18 }
 0x2c3   : > { %10342 = vmatpush1.bf16.msra.mxu1 %v15141_v36  ;;  %10406 = vmatpush1.bf16.msra.mxu0 %v15150_v31  ;;  %v2033_v36 = vld [vmem:[%s21403_s5 + $0x260] sm:$0xff]  ;;  %v15186_v31 = vpack.c.bf16 %v2035_v62, %v2031_v22  ;;  %v2044_v22 = vld [vmem:[%s21403_s5 + $0x2b8] sm:$0xff] }
 0x2c4   : > { %v15177_v1 = vpack.c.bf16 %v2033_v36, %v2029_v20  ;;  %10344 = vmatprep.subr.bf16.mxu1 %v15164_v37  ;;  %10408 = vmatprep.subr.bf16.mxu0 %v15175_v18  ;;  %v2038_v36 = vld [vmem:[%s21403_s5 + $0x288] sm:$0xff]  ;;  %v2037_v62 = vld [vmem:[%s21403_s5 + $0x280] sm:$0xff]  ;;  %v15211_v18 = vpack.c.bf16 %v2044_v22, %v2040_v39  ;;  %v2048_v22 = vld [vmem:[%s21403_s5 + $0x2d8] sm:$0xff] }
 0x2c5   : > { %21861 = vst [vmem:[#allocation24_spill] sm:$0xff] %v15186_v31  ;;  %v15200_v20 = vpack.c.bf16 %v2042_v42, %v2038_v36  ;;  %v2039_v36 = vld [vmem:[%s21403_s5 + $0x290] sm:$0xff]  ;;  %v2050_v39 = vld [vmem:[%s21403_s5 + $0x2e8] sm:$0xff] }
 0x2c6   : > { %21860 = vst [vmem:[#allocation23_spill] sm:$0xff] %v15177_v1  ;;  %21863 = vst [vmem:[#allocation26_spill] sm:$0xff] %v15211_v18  ;;  %v2043_v42 = vld [vmem:[%s21403_s5 + $0x2b0] sm:$0xff] }
 0x2c7   : > { %10346 = vmatpush1.bf16.msra.mxu1 %v15177_v1  ;;  %10410 = vmatpush1.bf16.msra.mxu0 %v15186_v31  ;;  %21862 = vst [vmem:[#allocation25_spill] sm:$0xff] %v15200_v20  ;;  %v2041_v1 = vld [vmem:[%s21403_s5 + $0x2a0] sm:$0xff]  ;;  %v15222_v31 = vpack.c.bf16 %v2043_v42, %v2039_v36  ;;  %v2052_v36 = vld [vmem:[%s21403_s5 + $0x2f8] sm:$0xff] }
 0x2c8   : > { %v15213_v37 = vpack.c.bf16 %v2041_v1, %v2037_v62  ;;  %10348 = vmatprep.subr.bf16.mxu1 %v15200_v20  ;;  %10412 = vmatprep.subr.bf16.mxu0 %v15211_v18  ;;  %v2046_v1 = vld [vmem:[%s21403_s5 + $0x2c8] sm:$0xff]  ;;  %v2045_v42 = vld [vmem:[%s21403_s5 + $0x2c0] sm:$0xff]  ;;  %v15247_v18 = vpack.c.bf16 %v2052_v36, %v2048_v22  ;;  %v2056_v36 = vld [vmem:[%s21403_s5 + $0x318] sm:$0xff] }
 0x2c9   : > { %21865 = vst [vmem:[#allocation28_spill] sm:$0xff] %v15222_v31  ;;  %v15236_v62 = vpack.c.bf16 %v2050_v39, %v2046_v1  ;;  %v2047_v1 = vld [vmem:[%s21403_s5 + $0x2d0] sm:$0xff]  ;;  %v2058_v22 = vld [vmem:[%s21403_s5 + $0x328] sm:$0xff] }
 0x2ca   : > { %21864 = vst [vmem:[#allocation27_spill] sm:$0xff] %v15213_v37  ;;  %21867 = vst [vmem:[#allocation30_spill] sm:$0xff] %v15247_v18  ;;  %v2051_v39 = vld [vmem:[%s21403_s5 + $0x2f0] sm:$0xff] }
 0x2cb   : > { %10350 = vmatpush1.bf16.msra.mxu1 %v15213_v37  ;;  %10414 = vmatpush1.bf16.msra.mxu0 %v15222_v31  ;;  %21866 = vst [vmem:[#allocation29_spill] sm:$0xff] %v15236_v62  ;;  %v2049_v37 = vld [vmem:[%s21403_s5 + $0x2e0] sm:$0xff]  ;;  %v15258_v31 = vpack.c.bf16 %v2051_v39, %v2047_v1  ;;  %v2060_v1 = vld [vmem:[%s21403_s5 + $0x338] sm:$0xff] }
 0x2cc   : > { %v15249_v20 = vpack.c.bf16 %v2049_v37, %v2045_v42  ;;  %10352 = vmatprep.subr.bf16.mxu1 %v15236_v62  ;;  %10416 = vmatprep.subr.bf16.mxu0 %v15247_v18  ;;  %v2054_v37 = vld [vmem:[%s21403_s5 + $0x308] sm:$0xff]  ;;  %v2053_v39 = vld [vmem:[%s21403_s5 + $0x300] sm:$0xff]  ;;  %v15283_v18 = vpack.c.bf16 %v2060_v1, %v2056_v36  ;;  %v2064_v1 = vld [vmem:[%s21403_s5 + $0x358] sm:$0xff] }
 0x2cd   : > { %21869 = vst [vmem:[#allocation32_spill] sm:$0xff] %v15258_v31  ;;  %v15272_v42 = vpack.c.bf16 %v2058_v22, %v2054_v37  ;;  %v2055_v37 = vld [vmem:[%s21403_s5 + $0x310] sm:$0xff]  ;;  %v2066_v36 = vld [vmem:[%s21403_s5 + $0x368] sm:$0xff] }
 0x2ce   : > { %21868 = vst [vmem:[#allocation31_spill] sm:$0xff] %v15249_v20  ;;  %21871 = vst [vmem:[#allocation34_spill] sm:$0xff] %v15283_v18  ;;  %v2059_v22 = vld [vmem:[%s21403_s5 + $0x330] sm:$0xff] }
 0x2cf   : > { %10354 = vmatpush1.bf16.msra.mxu1 %v15249_v20  ;;  %10418 = vmatpush1.bf16.msra.mxu0 %v15258_v31  ;;  %21870 = vst [vmem:[#allocation33_spill] sm:$0xff] %v15272_v42  ;;  %v2057_v20 = vld [vmem:[%s21403_s5 + $0x320] sm:$0xff]  ;;  %v15294_v31 = vpack.c.bf16 %v2059_v22, %v2055_v37  ;;  %v2068_v37 = vld [vmem:[%s21403_s5 + $0x378] sm:$0xff] }
 0x2d0   : > { %v15285_v62 = vpack.c.bf16 %v2057_v20, %v2053_v39  ;;  %10356 = vmatprep.subr.bf16.mxu1 %v15272_v42  ;;  %10420 = vmatprep.subr.bf16.mxu0 %v15283_v18  ;;  %v2062_v20 = vld [vmem:[%s21403_s5 + $0x348] sm:$0xff]  ;;  %v2061_v22 = vld [vmem:[%s21403_s5 + $0x340] sm:$0xff]  ;;  %v15319_v18 = vpack.c.bf16 %v2068_v37, %v2064_v1  ;;  %v2072_v1 = vld [vmem:[%s21403_s5 + $0x398] sm:$0xff] }
 0x2d1   : > { %21873 = vst [vmem:[#allocation36_spill] sm:$0xff] %v15294_v31  ;;  %v15308_v39 = vpack.c.bf16 %v2066_v36, %v2062_v20  ;;  %v2063_v20 = vld [vmem:[%s21403_s5 + $0x350] sm:$0xff]  ;;  %v2076_v37 = vld [vmem:[%s21403_s5 + $0x3b8] sm:$0xff] }
 0x2d2   : > { %21872 = vst [vmem:[#allocation35_spill] sm:$0xff] %v15285_v62  ;;  %21875 = vst [vmem:[#allocation38_spill] sm:$0xff] %v15319_v18  ;;  %v2067_v36 = vld [vmem:[%s21403_s5 + $0x370] sm:$0xff] }
 0x2d3   : > { %10358 = vmatpush1.bf16.msra.mxu1 %v15285_v62  ;;  %10422 = vmatpush1.bf16.msra.mxu0 %v15294_v31  ;;  %21874 = vst [vmem:[#allocation37_spill] sm:$0xff] %v15308_v39  ;;  %v2065_v62 = vld [vmem:[%s21403_s5 + $0x360] sm:$0xff]  ;;  %v2070_v31 = vld [vmem:[%s21403_s5 + $0x388] sm:$0xff]  ;;  %v15333_v63 = vpack.c.bf16 %v2067_v36, %v2063_v20  ;;  %v15348_v20 = vpack.c.bf16 %v2076_v37, %v2072_v1 }
 0x2d4   : > { %v15321_v42 = vpack.c.bf16 %v2065_v62, %v2061_v22  ;;  %10360 = vmatprep.subr.bf16.mxu1 %v15308_v39  ;;  %v2074_v62 = vld [vmem:[%s21403_s5 + $0x3a8] sm:$0xff]  ;;  %10424 = vmatprep.subr.bf16.mxu0 %v15319_v18  ;;  %v2069_v36 = vld [vmem:[%s21403_s5 + $0x380] sm:$0xff] }
 0x2d5   : > { %21877 = vst [vmem:[#allocation40_spill] sm:$0xff] %v15333_v63  ;;  %v15346_v22 = vpack.c.bf16 %v2074_v62, %v2070_v31  ;;  %21879 = vst [vmem:[#allocation43_spill] sm:$0xff] %v15348_v20  ;;  %v2073_v39 = vld [vmem:[%s21403_s5 + $0x3a0] sm:$0xff]  ;;  %v2075_v31 = vld [vmem:[%s21403_s5 + $0x3b0] sm:$0xff] }
 0x2d6   : > { %21876 = vst [vmem:[#allocation39_spill] sm:$0xff] %v15321_v42  ;;  %v15360_v18 = vpack.c.bf16 %v2073_v39, %v2069_v36  ;;  %v2078_v62 = vld [vmem:[%s21403_s5 + $0x3c8] sm:$0xff]  ;;  %v15373_v37 = vpack.c.bf16 %v2075_v31, %v2071_v11  ;;  %v2080_v36 = vld [vmem:[%s21403_s5 + $0x3d8] sm:$0xff]  ;;  %v2081_v11 = vld [vmem:[%s21403_s5 + $0x3e0] sm:$0xff] }
 0x2d7   : > { %10362 = vmatpush1.bf16.msra.mxu1 %v15321_v42  ;;  %21878 = vst [vmem:[#allocation41_spill] sm:$0xff] %v15346_v22  ;;  %10426 = vmatpush1.bf16.msra.mxu0 %v15333_v63  ;;  %v2082_v1 = vld [vmem:[%s21403_s5 + $0x3e8] sm:$0xff]  ;;  %v2084_v63 = vld [vmem:[%s21403_s5 + $0x3f8] sm:$0xff]  ;;  %v2077_v42 = vld [vmem:[%s21403_s5 + $0x3c0] sm:$0xff] }
 0x2d8   : > { %21880 = vst [vmem:[#allocation44_spill] sm:$0xff] %v15360_v18  ;;  %10364 = vmatprep.subr.bf16.mxu1 %v15346_v22  ;;  %10428 = vmatprep.subr.bf16.mxu0 %v15348_v20  ;;  %21881 = vst [vmem:[#allocation42_spill] sm:$0xff] %v15373_v37  ;;  %v15375_v39 = vpack.c.bf16 %v2082_v1, %v2078_v62  ;;  %v15386_v58 = vpack.c.bf16 %v2084_v63, %v2080_v36  ;;  %v2079_v31 = vld [vmem:[%s21403_s5 + $0x3d0] sm:$0xff]  ;;  %v2248_v63 = vld [vmem:[%s21401_s3 + $0x8] sm:$0xff] }
 0x2d9   : > { %v2083_v62 = vld [vmem:[%s21403_s5 + $0x3f0] sm:$0xff]  ;;  %v15398_v1 = vpack.c.bf16 %v2081_v11, %v2077_v42  ;;  %v2251_v36 = vld [vmem:[%s21401_s3 + $0x20] sm:$0xff] }
 0x2da   : > { %21882 = vst [vmem:[#allocation53_spill] sm:$0xff] %v15375_v39  ;;  %21883 = vst [vmem:[#allocation69_spill] sm:$0xff] %v15386_v58  ;;  %v15408_v20 = vpack.c.bf16 %v2083_v62, %v2079_v31  ;;  %v15411_v22 = vpack.c.bf16 %v2251_v36, %v2248_v63 }
 0x2db   : > { %10366 = vmatpush1.bf16.msra.mxu1 %v15360_v18  ;;  %21884 = vst [vmem:[#allocation70_spill] sm:$0xff] %v15398_v1  ;;  %10430 = vmatpush1.bf16.msra.mxu0 %v15373_v37 }
 0x2dc   : > { %10368 = vmatprep.subr.bf16.mxu1 %v15375_v39  ;;  %21885 = vst [vmem:[#allocation71_spill] sm:$0xff] %v15408_v20  ;;  %10432 = vmatprep.subr.bf16.mxu0 %v15386_v58  ;;  %21886 = vst [vmem:[#allocation72_spill] sm:$0xff] %v15411_v22 }
 0x2df   : > { %10370 = vmatpush1.bf16.msra.mxu1 %v15398_v1  ;;  %10434 = vmatpush1.bf16.msra.mxu0 %v15408_v20 }
 0x2e0   : > { %10467 = vmatprep.subr.bf16.mxu1 %v21780_v51  ;;  %10436 = vmatprep.subr.bf16.mxu0 %v15411_v22 }
 0x355   : > { %v1650_v42 = vpop.f32.mrb[30].mxu1  ;;  %v1721_v11 = vpop.f32.mrb[26].mxu0 }
 0x356   : > { %v1651_v37 = vadd.f32 %v1650_v42, %v14667_v2  ;;  %v1652_v18 = vpop.f32.mrb[31].mxu1  ;;  %v1723_v39 = vpop.f32.mrb[27].mxu0  ;;  %v1722_v3 = vadd.f32 %v1721_v11, %v14680_v54 }
 0x357   : > { %v1653_v62 = vadd.f32 %v1652_v18, %v14671_v24  ;;  %v1724_v60 = vadd.f32 %v1723_v39, %v14676_v47 }
 0x358   : > { %v8916_v31 = vmul.f32 -1.442695, %v1651_v37 }
 0x359   : > { %v8917_v63 = vmul.f32 -1.442695, %v1653_v62 }
 0x35a   : > { %12977 = vpow2.f32 %v8916_v31 }
 0x35b   : > { %12979 = vpow2.f32 %v8917_v63 }
 0x364   : > { %v12978_v36 = vpop.eup %12977 }
 0x365   : > { %v1729_v1 = vadd.f32 1.0, %v12978_v36  ;;  %v12980_v20 = vpop.eup %12979 }
 0x366   : > { %v1735_v58 = vadd.f32 1.0, %v12980_v20 }
 0x367   : > { %12981 = vrcp.f32 %v1729_v1 }
 0x368   : > { %12983 = vrcp.f32 %v1735_v58 }
 0x371   : > { %v12982_v22 = vpop.eup %12981 }
 0x372   : > { %v1738_v42 = vmul.f32 %v12982_v22, %v1724_v60  ;;  %v12984_v20 = vpop.eup %12983 }
 0x373   : > { %v1741_v36 = vsub.f32 1.0, %v12984_v20 }
 0x374   : > { %v1739_v2 = vadd.f32 %v1738_v42, %v1722_v3  ;;  %v1743_v3 = vmul.f32 %v12984_v20, %v14687_v13  ;;  %v15433_v42 = vld [vmem:[%s21402_s4] ss:$0 sm:$0xff] }
 0x375   : > { %v1860_v17 = vpop.f32.mrb[4].mxu0  ;;  %v1931_v37 = vpop.f32.mrb[32].mxu1  ;;  %v2247_v20 = vld [vmem:[%s21401_s3] sm:$0xff] }
 0x376   : > { %12985 = vtanh.f32 %v1739_v2  ;;  %v12835_v18 = vadd.f32 %v1860_v17, %v14450_v53  ;;  %v1862_v31 = vpop.f32.mrb[5].mxu0  ;;  %v9411_v62 = vpop.f32.mrb[33].mxu1 }
 0x377   : > { %v12836_v1 = vadd.f32 %v1862_v31, %v14459_v46  ;;  %v21887_v31 = vld [vmem:[#allocation55_spill] sm:$0xff] }
 0x378   : > { %v8918_v63 = vmul.f32 -1.442695, %v12835_v18 }
 0x379   : > { %v8919_v39 = vmul.f32 -1.442695, %v12836_v1 }
 0x37a   : > { %12987 = vpow2.f32 %v8918_v63 }
 0x37b   : > { %12989 = vpow2.f32 %v8919_v39  ;;  %v2250_v39 = vld [vmem:[%s21401_s3 + $0x18] sm:$0xff] }
 0x380   : > { %v12986_v47 = vpop.eup %12985 }
 0x381   : > { %v1742_v58 = vmul.f32 %v12986_v47, %v1741_v36  ;;  %v1949_v47 = vadd.f32 %v15433_v42, %v1931_v37  ;;  %v2254_v37 = vld [vmem:[%s21401_s3 + $0x38] sm:$0xff] }
 0x383   : > { %v15424_v60 = vadd.f32 %v1743_v3, %v1742_v58  ;;  %v2257_v58 = vld [vmem:[%s21401_s3 + $0x50] sm:$0xff] }
 0x384   : > { %v12988_v2 = vpop.eup %12987 }
 0x385   : > { %v1939_v22 = vadd.f32 1.0, %v12988_v2  ;;  %1745 = vst [vmem:[%s13480_s24 + $0x8] sm:$0xff] %v15424_v60  ;;  %2149 = vmatprep.mubr.f32.mxu1 %v15424_v60  ;;  %2220 = vmatprep.mubr.f32.mxu0 %v15424_v60  ;;  %v12990_v17 = vpop.eup %12989 }
 0x386   : > { %v1946_v11 = vadd.f32 1.0, %v12990_v17 }
 0x387   : > { %12991 = vrcp.f32 %v1939_v22  ;;  %v15450_v22 = vpack.c.bf16 %v2250_v39, %v2247_v20  ;;  %v2269_v20 = vld [vmem:[%s21401_s3 + $0xb0] sm:$0xff] }
 0x388   : > { %12993 = vrcp.f32 %v1946_v11  ;;  %v15454_v11 = vpack.c.bf16 %v2257_v58, %v2254_v37  ;;  %v2265_v37 = vld [vmem:[%s21401_s3 + $0x90] sm:$0xff]  ;;  %v2268_v58 = vld [vmem:[%s21401_s3 + $0xa8] sm:$0xff] }
 0x391   : > { %v12992_v13 = vpop.eup %12991 }
 0x392   : > { %v1950_v18 = vmul.f32 %v12992_v13, %v1949_v47  ;;  %v12994_v63 = vpop.eup %12993  ;;  %v2253_v47 = vld [vmem:[%s21401_s3 + $0x30] sm:$0xff]  ;;  %v2256_v13 = vld [vmem:[%s21401_s3 + $0x48] sm:$0xff] }
 0x393   : > { %v1953_v1 = vsub.f32 1.0, %v12994_v63  ;;  %v1955_v2 = vmul.f32 %v12994_v63, %v14704_v26  ;;  %v2263_v26 = vld [vmem:[%s21401_s3 + $0x80] sm:$0xff] }
 0x394   : > { %v1951_v62 = vadd.f32 %v1950_v18, %v21887_v31  ;;  %v2260_v18 = vld [vmem:[%s21401_s3 + $0x68] sm:$0xff]  ;;  %v15472_v31 = vpack.c.bf16 %v2256_v13, %v2253_v47  ;;  %v2259_v63 = vld [vmem:[%s21401_s3 + $0x60] sm:$0xff] }
 0x395   : > { %v2271_v13 = vld [vmem:[%s21401_s3 + $0xc0] sm:$0xff] }
 0x396   : > { %12995 = vtanh.f32 %v1951_v62  ;;  %v15476_v62 = vpack.c.bf16 %v2263_v26, %v2260_v18  ;;  %v2274_v18 = vld [vmem:[%s21401_s3 + $0xd8] sm:$0xff]  ;;  %v2281_v26 = vld [vmem:[%s21401_s3 + $0x110] sm:$0xff] }
 0x3a0   : > { %v12996_v36 = vpop.eup %12995 }
 0x3a1   : > { %v1954_v3 = vmul.f32 %v12996_v36, %v1953_v1  ;;  %v2262_v1 = vld [vmem:[%s21401_s3 + $0x78] sm:$0xff] }
 0x3a2   : > { %v15495_v39 = vpack.c.bf16 %v2262_v1, %v2259_v63  ;;  %v15535_v63 = vpack.c.bf16 %v2274_v18, %v2271_v13  ;;  %v21926_v13 = vld [vmem:[#allocation72_spill] sm:$0xff] }
 0x3a3   : > { %v15452_v17 = vadd.f32 %v1955_v2, %v1954_v3  ;;  %v2275_v3 = vld [vmem:[%s21401_s3 + $0xe0] sm:$0xff]  ;;  %v15515_v2 = vpack.c.bf16 %v2268_v58, %v2265_v37 }
 0x3a4   : > { %v21922_v37 = vld [vmem:[#allocation53_spill] sm:$0xff] }
 0x3a5   : > { %2150 = vmatmul.mubr.f32.vlgmr.msra.gmra.mrb[34].mxu1 %v15452_v17  ;;  %2221 = vmatmul.mubr.f32.vlgmr.msra.gmra.mrb[28].mxu0 %v15452_v17  ;;  %v21923_v58 = vld [vmem:[#allocation69_spill] sm:$0xff] }
 0x3a6   : > { %10438 = vmatpush1.bf16.msra.mxu0 %v15450_v22  ;;  %10469 = vmatpush3.bf16.msra.mxu1 %v14702_v21  ;;  %v2266_v21 = vld [vmem:[%s21401_s3 + $0x98] sm:$0xff] }
 0x3a7   : > { %10440 = vmatprep.subr.bf16.mxu0 %v15454_v11  ;;  %10470 = vmatprep.subr.bf16.mxu1 %v21780_v51  ;;  %v15499_v36 = vpack.c.bf16 %v2269_v20, %v2266_v21  ;;  %v2277_v21 = vld [vmem:[%s21401_s3 + $0xf0] sm:$0xff]  ;;  %v2280_v20 = vld [vmem:[%s21401_s3 + $0x108] sm:$0xff] }
 0x3a8   : > { %2359 = vmatprep.mubr.f32.mxu0 %v21805_v7  ;;  %9444 = vmatprep.mubr.msk.f32.mxu1 %vm13371_vm1, %v21805_v7 }
 0x3aa   : > { %10442 = vmatpush1.bf16.msra.mxu0 %v15472_v31  ;;  %10472 = vmatpush3.bf16.msra.mxu1 %v14716_v10  ;;  %v2272_v10 = vld [vmem:[%s21401_s3 + $0xc8] sm:$0xff] }
 0x3ab   : > { %10444 = vmatprep.subr.bf16.mxu0 %v15476_v62  ;;  %10473 = vmatprep.subr.bf16.mxu1 %v21780_v51  ;;  %v15519_v47 = vpack.c.bf16 %v2275_v3, %v2272_v10  ;;  %v21924_v10 = vld [vmem:[#allocation70_spill] sm:$0xff]  ;;  %v21925_v3 = vld [vmem:[#allocation71_spill] sm:$0xff] }
 0x3ae   : > { %10446 = vmatpush1.bf16.msra.mxu0 %v15495_v39  ;;  %10475 = vmatpush3.bf16.msra.mxu1 %v14731_v12  ;;  %v2278_v12 = vld [vmem:[%s21401_s3 + $0xf8] sm:$0xff] }
 0x3af   : > { %10448 = vmatprep.subr.bf16.mxu0 %v15499_v36  ;;  %10476 = vmatprep.subr.bf16.mxu1 %v21780_v51  ;;  %v15539_v1 = vpack.c.bf16 %v2281_v26, %v2278_v12  ;;  %v21927_v26 = vld [vmem:[#allocation9_spill] sm:$0xff] }
 0x3b2   : > { %10450 = vmatpush1.bf16.msra.mxu0 %v15515_v2  ;;  %10478 = vmatpush3.bf16.msra.mxu1 %v14743_v19  ;;  %v15549_v19 = vpack.c.bf16 %v2280_v20, %v2277_v21 }
 0x3b3   : > { %10452 = vmatprep.subr.bf16.mxu0 %v15519_v47  ;;  %10479 = vmatprep.subr.bf16.mxu1 %v21780_v51 }
 0x3b6   : > { %10454 = vmatpush1.bf16.msra.mxu0 %v15535_v63  ;;  %10481 = vmatpush3.bf16.msra.mxu1 %v14755_v35  ;;  %v21888_v35 = vld [vmem:[#allocation11_spill] sm:$0xff] }
 0x3b7   : > { %10456 = vmatprep.subr.bf16.mxu0 %v15539_v1  ;;  %10482 = vmatprep.subr.bf16.mxu1 %v21780_v51 }
 0x3ba   : > { %10458 = vmatpush1.bf16.msra.mxu0 %v15549_v19  ;;  %10484 = vmatpush3.bf16.msra.mxu1 %v14773_v28  ;;  %v21889_v28 = vld [vmem:[#allocation12_spill] sm:$0xff] }
 0x3bb   : > { %10460 = vmatprep.subr.bf16.mxu0 %v14780_v9  ;;  %10485 = vmatprep.subr.bf16.mxu1 %v21780_v51  ;;  %v21890_v9 = vld [vmem:[#allocation13_spill] sm:$0xff] }
 0x3be   : > { %10462 = vmatpush1.bf16.msra.mxu0 %v14799_v27  ;;  %10487 = vmatpush3.bf16.msra.mxu1 %v14801_v33  ;;  %v21891_v27 = vld [vmem:[#allocation14_spill] sm:$0xff]  ;;  %v21892_v33 = vld [vmem:[#allocation15_spill] sm:$0xff] }
 0x3bf   : > { %10464 = vmatprep.subr.bf16.mxu0 %v14808_v38  ;;  %10488 = vmatprep.subr.bf16.mxu1 %v21780_v51  ;;  %v21893_v38 = vld [vmem:[#allocation16_spill] sm:$0xff] }
 0x3c2   : > { %10466 = vmatpush1.bf16.msra.mxu0 %v14821_v49  ;;  %10490 = vmatpush3.bf16.msra.mxu1 %v14823_v52  ;;  %v21894_v49 = vld [vmem:[#allocation17_spill] sm:$0xff]  ;;  %v21895_v52 = vld [vmem:[#allocation18_spill] sm:$0xff] }
 0x3c3   : > { %10492 = vmatprep.subr.bf16.mxu1 %v14840_v15  ;;  %10556 = vmatprep.subr.bf16.mxu0 %v14851_v43  ;;  %v21896_v15 = vld [vmem:[#allocation19_spill] sm:$0xff]  ;;  %v21897_v43 = vld [vmem:[#allocation20_spill] sm:$0xff] }
 0x3c5   : > { %2360 = vmatmul.mubr.f32.vlgmr.msra.gmra.mrb[6].mxu0 %v15452_v17  ;;  %9445 = vmatmul.mubr.f32.vlgmr.msra.gmra.mrb[36].mxu1 %v15452_v17 }
 0x3c6   : > { %10494 = vmatpush1.bf16.msra.mxu1 %v14853_v48  ;;  %10558 = vmatpush1.bf16.msra.mxu0 %v14862_v29  ;;  %v21898_v48 = vld [vmem:[#allocation21_spill] sm:$0xff]  ;;  %v21899_v29 = vld [vmem:[#allocation22_spill] sm:$0xff] }
 0x3c7   : > { %10496 = vmatprep.subr.bf16.mxu1 %v14876_v16  ;;  %10560 = vmatprep.subr.bf16.mxu0 %v14887_v34  ;;  %v21900_v16 = vld [vmem:[#allocation23_spill] sm:$0xff]  ;;  %v21901_v34 = vld [vmem:[#allocation24_spill] sm:$0xff] }
 0x3ca   : > { %10498 = vmatpush1.bf16.msra.mxu1 %v14889_v40  ;;  %10562 = vmatpush1.bf16.msra.mxu0 %v14898_v61  ;;  %v21902_v40 = vld [vmem:[#allocation25_spill] sm:$0xff]  ;;  %v21903_v61 = vld [vmem:[#allocation26_spill] sm:$0xff] }
 0x3cb   : > { %10500 = vmatprep.subr.bf16.mxu1 %v14912_v0  ;;  %10564 = vmatprep.subr.bf16.mxu0 %v14923_v4  ;;  %v21904_v0 = vld [vmem:[#allocation27_spill] sm:$0xff]  ;;  %v21905_v4 = vld [vmem:[#allocation28_spill] sm:$0xff] }
 0x3ce   : > { %10502 = vmatpush1.bf16.msra.mxu1 %v14925_v14  ;;  %10566 = vmatpush1.bf16.msra.mxu0 %v14934_v8  ;;  %v21906_v14 = vld [vmem:[#allocation29_spill] sm:$0xff]  ;;  %v21907_v8 = vld [vmem:[#allocation30_spill] sm:$0xff] }
 0x3cf   : > { %10504 = vmatprep.subr.bf16.mxu1 %v14948_v41  ;;  %10568 = vmatprep.subr.bf16.mxu0 %v14959_v6  ;;  %v21908_v41 = vld [vmem:[#allocation31_spill] sm:$0xff]  ;;  %v21909_v6 = vld [vmem:[#allocation32_spill] sm:$0xff] }
 0x3d2   : > { %10506 = vmatpush1.bf16.msra.mxu1 %v14961_v23  ;;  %10570 = vmatpush1.bf16.msra.mxu0 %v14970_v57  ;;  %v21910_v23 = vld [vmem:[#allocation33_spill] sm:$0xff]  ;;  %v21911_v57 = vld [vmem:[#allocation34_spill] sm:$0xff] }
 0x3d3   : > { %10508 = vmatprep.subr.bf16.mxu1 %v14984_v56  ;;  %10572 = vmatprep.subr.bf16.mxu0 %v14995_v44  ;;  %v21912_v56 = vld [vmem:[#allocation35_spill] sm:$0xff]  ;;  %v21913_v44 = vld [vmem:[#allocation36_spill] sm:$0xff] }
 0x3d6   : > { %10510 = vmatpush1.bf16.msra.mxu1 %v14997_v50  ;;  %10574 = vmatpush1.bf16.msra.mxu0 %v15006_v59  ;;  %v21914_v50 = vld [vmem:[#allocation37_spill] sm:$0xff]  ;;  %v21915_v59 = vld [vmem:[#allocation38_spill] sm:$0xff] }
 0x3d7   : > { %10512 = vmatprep.subr.bf16.mxu1 %v15020_v25  ;;  %10576 = vmatprep.subr.bf16.mxu0 %v15031_v30  ;;  %v21916_v25 = vld [vmem:[#allocation39_spill] sm:$0xff]  ;;  %v21917_v30 = vld [vmem:[#allocation40_spill] sm:$0xff] }
 0x3da   : > { %10514 = vmatpush1.bf16.msra.mxu1 %v15033_v45  ;;  %10578 = vmatpush1.bf16.msra.mxu0 %v15042_v32  ;;  %v21918_v45 = vld [vmem:[#allocation41_spill] sm:$0xff]  ;;  %v21919_v32 = vld [vmem:[#allocation43_spill] sm:$0xff] }
 0x3db   : > { %10516 = vmatprep.subr.bf16.mxu1 %v15056_v5  ;;  %10580 = vmatprep.subr.bf16.mxu0 %v15067_v55  ;;  %v21920_v5 = vld [vmem:[#allocation44_spill] sm:$0xff]  ;;  %v21921_v55 = vld [vmem:[#allocation42_spill] sm:$0xff] }
 0x3de   : > { %10518 = vmatpush1.bf16.msra.mxu1 %v21888_v35  ;;  %10582 = vmatpush1.bf16.msra.mxu0 %v21889_v28 }
 0x3df   : > { %10520 = vmatprep.subr.bf16.mxu1 %v21890_v9  ;;  %10584 = vmatprep.subr.bf16.mxu0 %v21891_v27 }
 0x3e2   : > { %10522 = vmatpush1.bf16.msra.mxu1 %v21892_v33  ;;  %10586 = vmatpush1.bf16.msra.mxu0 %v21893_v38 }
 0x3e3   : > { %10524 = vmatprep.subr.bf16.mxu1 %v21894_v49  ;;  %10588 = vmatprep.subr.bf16.mxu0 %v21895_v52 }
 0x3e6   : > { %10526 = vmatpush1.bf16.msra.mxu1 %v21896_v15  ;;  %10590 = vmatpush1.bf16.msra.mxu0 %v21897_v43  ;;  %v21928_v15 = vld [vmem:[#allocation10_spill] sm:$0xff] }
 0x3e7   : > { %10528 = vmatprep.subr.bf16.mxu1 %v21898_v48  ;;  %10592 = vmatprep.subr.bf16.mxu0 %v21899_v29 }
 0x3ea   : > { %10530 = vmatpush1.bf16.msra.mxu1 %v21900_v16  ;;  %10594 = vmatpush1.bf16.msra.mxu0 %v21901_v34 }
 0x3eb   : > { %10532 = vmatprep.subr.bf16.mxu1 %v21902_v40  ;;  %10596 = vmatprep.subr.bf16.mxu0 %v21903_v61 }
 0x3ee   : > { %10534 = vmatpush1.bf16.msra.mxu1 %v21904_v0  ;;  %10598 = vmatpush1.bf16.msra.mxu0 %v21905_v4 }
 0x3ef   : > { %10536 = vmatprep.subr.bf16.mxu1 %v21906_v14  ;;  %10600 = vmatprep.subr.bf16.mxu0 %v21907_v8 }
 0x3f2   : > { %10538 = vmatpush1.bf16.msra.mxu1 %v21908_v41  ;;  %10602 = vmatpush1.bf16.msra.mxu0 %v21909_v6 }
 0x3f3   : > { %10540 = vmatprep.subr.bf16.mxu1 %v21910_v23  ;;  %10604 = vmatprep.subr.bf16.mxu0 %v21911_v57 }
 0x3f6   : > { %10542 = vmatpush1.bf16.msra.mxu1 %v21912_v56  ;;  %10606 = vmatpush1.bf16.msra.mxu0 %v21913_v44 }
 0x3f7   : > { %10544 = vmatprep.subr.bf16.mxu1 %v21914_v50  ;;  %10608 = vmatprep.subr.bf16.mxu0 %v21915_v59 }
 0x3fa   : > { %10546 = vmatpush1.bf16.msra.mxu1 %v21916_v25  ;;  %10610 = vmatpush1.bf16.msra.mxu0 %v21917_v30 }
 0x3fb   : > { %10548 = vmatprep.subr.bf16.mxu1 %v21918_v45  ;;  %10612 = vmatprep.subr.bf16.mxu0 %v21919_v32 }
 0x3fe   : > { %10550 = vmatpush1.bf16.msra.mxu1 %v21920_v5  ;;  %10614 = vmatpush1.bf16.msra.mxu0 %v21921_v55 }
 0x3ff   : > { %10552 = vmatprep.subr.bf16.mxu1 %v21922_v37  ;;  %10616 = vmatprep.subr.bf16.mxu0 %v21923_v58  ;;  %v21929_v58 = vld [vmem:[#allocation54_spill] sm:$0xff] }
 0x402   : > { %10554 = vmatpush1.bf16.msra.mxu1 %v21924_v10  ;;  %10618 = vmatpush1.bf16.msra.mxu0 %v21925_v3 }
 0x403   : > { %10620 = vmatprep.subr.bf16.mxu0 %v21926_v13  ;;  %10651 = vmatprep.subr.bf16.mxu1 %v21780_v51  ;;  %v2750_v13 = vld [vmem:[%s21401_s3 + $0x10] sm:$0xff] }
 0x478   : > { %v2151_v18 = vpop.f32.mrb[34].mxu1  ;;  %v2222_v12 = vpop.f32.mrb[28].mxu0 }
 0x479   : > { %v2152_v21 = vadd.f32 %v2151_v18, %v21927_v26  ;;  %v2153_v20 = vpop.f32.mrb[35].mxu1  ;;  %v2224_v35 = vpop.f32.mrb[29].mxu0  ;;  %v2223_v29 = vadd.f32 %v2222_v12, %v14680_v54  ;;  %v2753_v18 = vld [vmem:[%s21401_s3 + $0x28] sm:$0xff] }
 0x47a   : > { %v2154_v9 = vadd.f32 %v2153_v20, %v14671_v24  ;;  %v2225_v43 = vadd.f32 %v2224_v35, %v21928_v15  ;;  %v15653_v20 = vpack.c.bf16 %v2753_v18, %v2750_v13  ;;  %v2974_v18 = vld [vmem:[%s21403_s5 + $0x78] sm:$0xff] }
 0x47b   : > { %v8920_v28 = vmul.f32 -1.442695, %v2152_v21 }
 0x47c   : > { %v8921_v27 = vmul.f32 -1.442695, %v2154_v9  ;;  %v2759_v9 = vld [vmem:[%s21401_s3 + $0x58] sm:$0xff] }
 0x47d   : > { %12997 = vpow2.f32 %v8920_v28  ;;  %v2756_v28 = vld [vmem:[%s21401_s3 + $0x40] sm:$0xff] }
 0x47e   : > { %12999 = vpow2.f32 %v8921_v27  ;;  %v2762_v27 = vld [vmem:[%s21401_s3 + $0x70] sm:$0xff] }
 0x487   : > { %v12998_v33 = vpop.eup %12997 }
 0x488   : > { %v2230_v38 = vadd.f32 1.0, %v12998_v33  ;;  %v13000_v49 = vpop.eup %12999  ;;  %v2765_v33 = vld [vmem:[%s21401_s3 + $0x88] sm:$0xff] }
 0x489   : > { %v2236_v52 = vadd.f32 1.0, %v13000_v49  ;;  %v2777_v49 = vld [vmem:[%s21401_s3 + $0xe8] sm:$0xff] }
 0x48a   : > { %13001 = vrcp.f32 %v2230_v38  ;;  %v2771_v38 = vld [vmem:[%s21401_s3 + $0xb8] sm:$0xff] }
 0x48b   : > { %13003 = vrcp.f32 %v2236_v52  ;;  %v2783_v52 = vld [vmem:[%s21401_s3 + $0x118] sm:$0xff] }
 0x494   : > { %v13002_v48 = vpop.eup %13001 }
 0x495   : > { %v2239_v16 = vmul.f32 %v13002_v48, %v2225_v43  ;;  %v13004_v6 = vpop.eup %13003  ;;  %v2788_v43 = vld [vmem:[%s21401_s3 + $0x140] sm:$0xff] }
 0x496   : > { %v2242_v57 = vsub.f32 1.0, %v13004_v6  ;;  %v2244_v50 = vmul.f32 %v13004_v6, %v15424_v60  ;;  %v2784_v48 = vld [vmem:[%s21401_s3 + $0x120] sm:$0xff] }
 0x497   : > { %v2240_v34 = vadd.f32 %v2239_v16, %v2223_v29  ;;  %v2787_v16 = vld [vmem:[%s21401_s3 + $0x138] sm:$0xff] }
 0x498   : > { %v2361_v40 = vpop.f32.mrb[6].mxu0  ;;  %v2432_v61 = vpop.f32.mrb[36].mxu1 }
 0x499   : > { %13005 = vtanh.f32 %v2240_v34  ;;  %v12837_v0 = vadd.f32 %v2361_v40, %v14450_v53  ;;  %v2363_v4 = vpop.f32.mrb[7].mxu0  ;;  %v9446_v14 = vpop.f32.mrb[37].mxu1  ;;  %v2450_v5 = vadd.f32 %v15433_v42, %v2432_v61  ;;  %v2789_v34 = vld [vmem:[%s21401_s3 + $0x148] sm:$0xff]  ;;  %v2794_v40 = vld [vmem:[%s21401_s3 + $0x170] sm:$0xff]  ;;  %v15750_v61 = vpack.c.bf16 %v2787_v16, %v2784_v48 }
 0x49a   : > { %v12838_v41 = vadd.f32 %v2363_v4, %v14459_v46  ;;  %v2790_v4 = vld [vmem:[%s21401_s3 + $0x150] sm:$0xff] }
 0x49b   : > { %v8922_v8 = vmul.f32 -1.442695, %v12837_v0  ;;  %v2977_v16 = vld [vmem:[%s21403_s5 + $0x90] sm:$0xff] }
 0x49c   : > { %v8923_v23 = vmul.f32 -1.442695, %v12838_v41  ;;  %v2795_v41 = vld [vmem:[%s21401_s3 + $0x178] sm:$0xff] }
 0x49d   : > { %13007 = vpow2.f32 %v8922_v8  ;;  %v2792_v8 = vld [vmem:[%s21401_s3 + $0x160] sm:$0xff] }
 0x49e   : > { %13009 = vpow2.f32 %v8923_v23  ;;  %v15774_v23 = vpack.c.bf16 %v2795_v41, %v2792_v8  ;;  %v2990_v8 = vld [vmem:[%s21403_s5 + $0xf8] sm:$0xff]  ;;  %v2983_v41 = vld [vmem:[%s21403_s5 + $0xc0] sm:$0xff] }
 0x4a3   : > { %v13006_v56 = vpop.eup %13005 }
 0x4a4   : > { %v2243_v44 = vmul.f32 %v13006_v56, %v2242_v57  ;;  %v2960_v57 = vld [vmem:[%s21403_s5 + $0x8] sm:$0xff] }
 0x4a5   : > { %v2964_v56 = vld [vmem:[%s21403_s5 + $0x28] sm:$0xff] }
 0x4a6   : > { %v15638_v59 = vadd.f32 %v2244_v50, %v2243_v44  ;;  %v2962_v44 = vld [vmem:[%s21403_s5 + $0x18] sm:$0xff]  ;;  %v15791_v50 = vpack.c.bf16 %v2964_v56, %v2960_v57  ;;  %v2987_v57 = vld [vmem:[%s21403_s5 + $0xe0] sm:$0xff] }
 0x4a7   : > { %v13008_v25 = vpop.eup %13007 }
 0x4a8   : > { %v2440_v30 = vadd.f32 1.0, %v13008_v25  ;;  %2246 = vst [vmem:[%s13480_s24 + $0x10] sm:$0xff] %v15638_v59  ;;  %2650 = vmatprep.mubr.f32.mxu1 %v15638_v59  ;;  %2721 = vmatprep.mubr.f32.mxu0 %v15638_v59  ;;  %v13010_v45 = vpop.eup %13009  ;;  %v2966_v25 = vld [vmem:[%s21403_s5 + $0x38] sm:$0xff] }
 0x4a9   : > { %v2447_v32 = vadd.f32 1.0, %v13010_v45  ;;  %v2963_v45 = vld [vmem:[%s21403_s5 + $0x20] sm:$0xff] }
 0x4aa   : > { %13011 = vrcp.f32 %v2440_v30  ;;  %v2959_v30 = vld [vmem:[%s21403_s5] sm:$0xff] }
 0x4ab   : > { %13013 = vrcp.f32 %v2447_v32  ;;  %v15802_v32 = vpack.c.bf16 %v2966_v25, %v2962_v44  ;;  %v15912_v44 = vpack.c.bf16 %v2987_v57, %v2983_v41  ;;  %v2985_v25 = vld [vmem:[%s21403_s5 + $0xd0] sm:$0xff] }
 0x4ac   : > { %v3005_v41 = vld [vmem:[%s21403_s5 + $0x170] sm:$0xff] }
 0x4b4   : > { %v13012_v55 = vpop.eup %13011 }
 0x4b5   : > { %v2451_v37 = vmul.f32 %v13012_v55, %v2450_v5  ;;  %v13014_v10 = vpop.eup %13013  ;;  %v15804_v5 = vpack.c.bf16 %v2963_v45, %v2959_v30  ;;  %v2961_v55 = vld [vmem:[%s21403_s5 + $0x10] sm:$0xff] }
 0x4b6   : > { %v2454_v3 = vsub.f32 1.0, %v13014_v10  ;;  %v2456_v42 = vmul.f32 %v13014_v10, %v15452_v17  ;;  %v15667_v17 = vpack.c.bf16 %v2759_v9, %v2756_v28  ;;  %v2972_v10 = vld [vmem:[%s21403_s5 + $0x68] sm:$0xff]  ;;  %v2969_v9 = vld [vmem:[%s21403_s5 + $0x50] sm:$0xff] }
 0x4b7   : > { %v2452_v60 = vadd.f32 %v2451_v37, %v21929_v58  ;;  %v2965_v37 = vld [vmem:[%s21403_s5 + $0x30] sm:$0xff] }
 0x4b8   : > { %v15813_v58 = vpack.c.bf16 %v2965_v37, %v2961_v55  ;;  %v2989_v30 = vld [vmem:[%s21403_s5 + $0xf0] sm:$0xff]  ;;  %v2992_v55 = vld [vmem:[%s21403_s5 + $0x108] sm:$0xff] }
 0x4b9   : > { %13015 = vtanh.f32 %v2452_v60  ;;  %v2968_v60 = vld [vmem:[%s21403_s5 + $0x48] sm:$0xff]  ;;  %v15921_v45 = vpack.c.bf16 %v2989_v30, %v2985_v25 }
 0x4ba   : > { %v15827_v13 = vpack.c.bf16 %v2972_v10, %v2968_v60  ;;  %v2996_v37 = vld [vmem:[%s21403_s5 + $0x128] sm:$0xff]  ;;  %v2994_v60 = vld [vmem:[%s21403_s5 + $0x118] sm:$0xff] }
 0x4bb   : > { %v15935_v10 = vpack.c.bf16 %v2996_v37, %v2992_v55  ;;  %v3008_v25 = vld [vmem:[%s21403_s5 + $0x188] sm:$0xff]  ;;  %v3010_v55 = vld [vmem:[%s21403_s5 + $0x198] sm:$0xff] }
 0x4bc   : > { %v3012_v30 = vld [vmem:[%s21403_s5 + $0x1a8] sm:$0xff] }
 0x4bd   : > { %v16007_v37 = vpack.c.bf16 %v3012_v30, %v3008_v25  ;;  %v3019_v25 = vld [vmem:[%s21403_s5 + $0x1e0] sm:$0xff] }
 0x4c3   : > { %v13016_v12 = vpop.eup %13015 }
 0x4c4   : > { %v2455_v21 = vmul.f32 %v13016_v12, %v2454_v3  ;;  %v2970_v3 = vld [vmem:[%s21403_s5 + $0x58] sm:$0xff]  ;;  %v2967_v12 = vld [vmem:[%s21403_s5 + $0x40] sm:$0xff] }
 0x4c6   : > { %v15655_v35 = vadd.f32 %v2456_v42, %v2455_v21  ;;  %v2971_v21 = vld [vmem:[%s21403_s5 + $0x60] sm:$0xff]  ;;  %v15838_v42 = vpack.c.bf16 %v2974_v18, %v2970_v3  ;;  %v2998_v3 = vld [vmem:[%s21403_s5 + $0x138] sm:$0xff] }
 0x4c7   : > { %v15840_v28 = vpack.c.bf16 %v2971_v21, %v2967_v12  ;;  %v2991_v18 = vld [vmem:[%s21403_s5 + $0x100] sm:$0xff]  ;;  %v15946_v21 = vpack.c.bf16 %v2998_v3, %v2994_v60  ;;  %v3014_v60 = vld [vmem:[%s21403_s5 + $0x1b8] sm:$0xff] }
 0x4c8   : > { %2651 = vmatmul.mubr.f32.vlgmr.msra.gmra.mrb[38].mxu1 %v15655_v35  ;;  %2722 = vmatmul.mubr.f32.vlgmr.msra.gmra.mrb[30].mxu0 %v15655_v35  ;;  %v2995_v12 = vld [vmem:[%s21403_s5 + $0x120] sm:$0xff] }
 0x4c9   : > { %10622 = vmatpush1.bf16.msra.mxu0 %v15450_v22  ;;  %10653 = vmatpush3.bf16.msra.mxu1 %v15653_v20  ;;  %v15682_v22 = vpack.c.bf16 %v2765_v33, %v2762_v27  ;;  %v2973_v27 = vld [vmem:[%s21403_s5 + $0x70] sm:$0xff]  ;;  %v3007_v3 = vld [vmem:[%s21403_s5 + $0x180] sm:$0xff] }
 0x4ca   : > { %10624 = vmatprep.subr.bf16.mxu0 %v15454_v11  ;;  %10654 = vmatprep.subr.bf16.mxu1 %v21780_v51  ;;  %v2768_v11 = vld [vmem:[%s21401_s3 + $0xa0] sm:$0xff]  ;;  %v15849_v33 = vpack.c.bf16 %v2973_v27, %v2969_v9  ;;  %v15948_v9 = vpack.c.bf16 %v2995_v12, %v2991_v18  ;;  %v2993_v27 = vld [vmem:[%s21403_s5 + $0x110] sm:$0xff]  ;;  %v16018_v12 = vpack.c.bf16 %v3014_v60, %v3010_v55 }
 0x4cb   : > { %2860 = vmatprep.mubr.f32.mxu0 %v21805_v7  ;;  %9479 = vmatprep.mubr.msk.f32.mxu1 %vm13371_vm1, %v21805_v7  ;;  %v3011_v18 = vld [vmem:[%s21403_s5 + $0x1a0] sm:$0xff]  ;;  %v3017_v60 = vld [vmem:[%s21403_s5 + $0x1d0] sm:$0xff] }
 0x4cd   : > { %10626 = vmatpush1.bf16.msra.mxu0 %v15472_v31  ;;  %10656 = vmatpush3.bf16.msra.mxu1 %v15667_v17  ;;  %v15694_v31 = vpack.c.bf16 %v2771_v38, %v2768_v11  ;;  %v2976_v11 = vld [vmem:[%s21403_s5 + $0x88] sm:$0xff] }
 0x4ce   : > { %10628 = vmatprep.subr.bf16.mxu0 %v15476_v62  ;;  %10657 = vmatprep.subr.bf16.mxu1 %v21780_v51  ;;  %v2774_v62 = vld [vmem:[%s21401_s3 + $0xd0] sm:$0xff]  ;;  %v2980_v38 = vld [vmem:[%s21403_s5 + $0xa8] sm:$0xff] }
 0x4d1   : > { %10630 = vmatpush1.bf16.msra.mxu0 %v15495_v39  ;;  %10659 = vmatpush3.bf16.msra.mxu1 %v15682_v22  ;;  %v15706_v39 = vpack.c.bf16 %v2777_v49, %v2774_v62  ;;  %v2978_v62 = vld [vmem:[%s21403_s5 + $0x98] sm:$0xff]  ;;  %v15863_v49 = vpack.c.bf16 %v2980_v38, %v2976_v11  ;;  %v2997_v11 = vld [vmem:[%s21403_s5 + $0x130] sm:$0xff] }
 0x4d2   : > { %10632 = vmatprep.subr.bf16.mxu0 %v15499_v36  ;;  %10660 = vmatprep.subr.bf16.mxu1 %v21780_v51  ;;  %v2780_v36 = vld [vmem:[%s21401_s3 + $0x100] sm:$0xff]  ;;  %v15957_v38 = vpack.c.bf16 %v2997_v11, %v2993_v27  ;;  %v16020_v27 = vpack.c.bf16 %v3011_v18, %v3007_v3  ;;  %v3009_v11 = vld [vmem:[%s21403_s5 + $0x190] sm:$0xff] }
 0x4d3   : > { %v3021_v3 = vld [vmem:[%s21403_s5 + $0x1f0] sm:$0xff] }
 0x4d4   : > { %21930 = vst [vmem:[#allocation55_spill] sm:$0xff] %v16020_v27  ;;  %v16065_v18 = vpack.c.bf16 %v3021_v3, %v3017_v60  ;;  %v3025_v3 = vld [vmem:[%s21403_s5 + $0x210] sm:$0xff] }
 0x4d5   : > { %10634 = vmatpush1.bf16.msra.mxu0 %v15515_v2  ;;  %10662 = vmatpush3.bf16.msra.mxu1 %v15694_v31  ;;  %v2785_v2 = vld [vmem:[%s21401_s3 + $0x128] sm:$0xff] }
 0x4d6   : > { %10636 = vmatprep.subr.bf16.mxu0 %v15519_v47  ;;  %10663 = vmatprep.subr.bf16.mxu1 %v21780_v51  ;;  %v15724_v47 = vpack.c.bf16 %v2783_v52, %v2780_v36  ;;  %v15731_v29 = vpack.c.bf16 %v2788_v43, %v2785_v2  ;;  %v2982_v36 = vld [vmem:[%s21403_s5 + $0xb8] sm:$0xff]  ;;  %v2975_v52 = vld [vmem:[%s21403_s5 + $0x80] sm:$0xff]  ;;  %21935 = vst [vmem:[#allocation15_spill] sm:$0xff] %v16065_v18 }
 0x4d7   : > { %v2979_v2 = vld [vmem:[%s21403_s5 + $0xa0] sm:$0xff]  ;;  %v15874_v43 = vpack.c.bf16 %v2982_v36, %v2978_v62  ;;  %v3000_v62 = vld [vmem:[%s21403_s5 + $0x148] sm:$0xff] }
 0x4d8   : > { %v15876_v48 = vpack.c.bf16 %v2979_v2, %v2975_v52  ;;  %v3004_v36 = vld [vmem:[%s21403_s5 + $0x168] sm:$0xff]  ;;  %v3002_v52 = vld [vmem:[%s21403_s5 + $0x158] sm:$0xff] }
 0x4d9   : > { %10638 = vmatpush1.bf16.msra.mxu0 %v15535_v63  ;;  %10665 = vmatpush3.bf16.msra.mxu1 %v15706_v39  ;;  %v2786_v63 = vld [vmem:[%s21401_s3 + $0x130] sm:$0xff]  ;;  %v15971_v2 = vpack.c.bf16 %v3004_v36, %v3000_v62 }
 0x4da   : > { %10640 = vmatprep.subr.bf16.mxu0 %v15539_v1  ;;  %10666 = vmatprep.subr.bf16.mxu1 %v21780_v51  ;;  %v2791_v1 = vld [vmem:[%s21401_s3 + $0x158] sm:$0xff]  ;;  %v15752_v0 = vpack.c.bf16 %v2789_v34, %v2786_v63  ;;  %v2981_v63 = vld [vmem:[%s21403_s5 + $0xb0] sm:$0xff] }
 0x4db   : > { %v15759_v14 = vpack.c.bf16 %v2794_v40, %v2791_v1  ;;  %v15885_v34 = vpack.c.bf16 %v2981_v63, %v2977_v16  ;;  %v2984_v1 = vld [vmem:[%s21403_s5 + $0xc8] sm:$0xff]  ;;  %v3006_v16 = vld [vmem:[%s21403_s5 + $0x178] sm:$0xff]  ;;  %v2999_v63 = vld [vmem:[%s21403_s5 + $0x140] sm:$0xff] }
 0x4dc   : > { %v2988_v40 = vld [vmem:[%s21403_s5 + $0xe8] sm:$0xff]  ;;  %v3013_v62 = vld [vmem:[%s21403_s5 + $0x1b0] sm:$0xff] }
 0x4dd   : > { %10642 = vmatpush1.bf16.msra.mxu0 %v15549_v19  ;;  %10668 = vmatpush3.bf16.msra.mxu1 %v15724_v47  ;;  %v2793_v19 = vld [vmem:[%s21401_s3 + $0x168] sm:$0xff]  ;;  %v16029_v36 = vpack.c.bf16 %v3013_v62, %v3009_v11 }
 0x4de   : > { %10644 = vmatprep.subr.bf16.mxu0 %v15731_v29  ;;  %10669 = vmatprep.subr.bf16.mxu1 %v21780_v51  ;;  %v15772_v6 = vpack.c.bf16 %v2793_v19, %v2790_v4  ;;  %v2986_v4 = vld [vmem:[%s21403_s5 + $0xd8] sm:$0xff]  ;;  %v15899_v19 = vpack.c.bf16 %v2988_v40, %v2984_v1  ;;  %v3003_v1 = vld [vmem:[%s21403_s5 + $0x160] sm:$0xff]  ;;  %v15982_v40 = vpack.c.bf16 %v3006_v16, %v3002_v52  ;;  %v3016_v52 = vld [vmem:[%s21403_s5 + $0x1c8] sm:$0xff] }
 0x4df   : > { %v15910_v56 = vpack.c.bf16 %v2990_v8, %v2986_v4  ;;  %v15984_v4 = vpack.c.bf16 %v3003_v1, %v2999_v63  ;;  %v3001_v8 = vld [vmem:[%s21403_s5 + $0x150] sm:$0xff]  ;;  %21931 = vst [vmem:[#allocation11_spill] sm:$0xff] %v16029_v36  ;;  %v3020_v16 = vld [vmem:[%s21403_s5 + $0x1e8] sm:$0xff]  ;;  %v3018_v63 = vld [vmem:[%s21403_s5 + $0x1d8] sm:$0xff] }
 0x4e0   : > { %v15993_v57 = vpack.c.bf16 %v3005_v41, %v3001_v8  ;;  %v16043_v1 = vpack.c.bf16 %v3020_v16, %v3016_v52  ;;  %v3022_v8 = vld [vmem:[%s21403_s5 + $0x1f8] sm:$0xff]  ;;  %v3015_v41 = vld [vmem:[%s21403_s5 + $0x1c0] sm:$0xff]  ;;  %v3024_v11 = vld [vmem:[%s21403_s5 + $0x208] sm:$0xff] }
 0x4e1   : > { %10646 = vmatpush1.bf16.msra.mxu0 %v15750_v61  ;;  %10671 = vmatpush3.bf16.msra.mxu1 %v15752_v0  ;;  %v16054_v30 = vpack.c.bf16 %v3022_v8, %v3018_v63  ;;  %v16056_v55 = vpack.c.bf16 %v3019_v25, %v3015_v41  ;;  %v3028_v62 = vld [vmem:[%s21403_s5 + $0x228] sm:$0xff]  ;;  %v3026_v52 = vld [vmem:[%s21403_s5 + $0x218] sm:$0xff]  ;;  %v3023_v8 = vld [vmem:[%s21403_s5 + $0x200] sm:$0xff] }
 0x4e2   : > { %10648 = vmatprep.subr.bf16.mxu0 %v15759_v14  ;;  %10672 = vmatprep.subr.bf16.mxu1 %v21780_v51  ;;  %21932 = vst [vmem:[#allocation12_spill] sm:$0xff] %v16043_v1  ;;  %v16079_v16 = vpack.c.bf16 %v3028_v62, %v3024_v11  ;;  %v3030_v63 = vld [vmem:[%s21403_s5 + $0x238] sm:$0xff]  ;;  %v3027_v41 = vld [vmem:[%s21403_s5 + $0x220] sm:$0xff]  ;;  %v3029_v11 = vld [vmem:[%s21403_s5 + $0x230] sm:$0xff] }
 0x4e3   : > { %21933 = vst [vmem:[#allocation13_spill] sm:$0xff] %v16054_v30  ;;  %21934 = vst [vmem:[#allocation14_spill] sm:$0xff] %v16056_v55  ;;  %v16090_v25 = vpack.c.bf16 %v3030_v63, %v3026_v52  ;;  %v16092_v60 = vpack.c.bf16 %v3027_v41, %v3023_v8  ;;  %v16101_v62 = vpack.c.bf16 %v3029_v11, %v3025_v3  ;;  %v3032_v52 = vld [vmem:[%s21403_s5 + $0x248] sm:$0xff]  ;;  %v3034_v8 = vld [vmem:[%s21403_s5 + $0x258] sm:$0xff] }
 0x4e4   : > { %21936 = vst [vmem:[#allocation16_spill] sm:$0xff] %v16079_v16  ;;  %v3036_v63 = vld [vmem:[%s21403_s5 + $0x268] sm:$0xff]  ;;  %v3038_v3 = vld [vmem:[%s21403_s5 + $0x278] sm:$0xff]  ;;  %v3031_v11 = vld [vmem:[%s21403_s5 + $0x240] sm:$0xff] }
 0x4e5   : > { %10650 = vmatpush1.bf16.msra.mxu0 %v15772_v6  ;;  %10674 = vmatpush3.bf16.msra.mxu1 %v15774_v23  ;;  %21937 = vst [vmem:[#allocation17_spill] sm:$0xff] %v16090_v25  ;;  %21938 = vst [vmem:[#allocation18_spill] sm:$0xff] %v16092_v60  ;;  %v16115_v41 = vpack.c.bf16 %v3036_v63, %v3032_v52  ;;  %v3033_v52 = vld [vmem:[%s21403_s5 + $0x250] sm:$0xff] }
 0x4e6   : > { %10676 = vmatprep.subr.bf16.mxu1 %v15791_v50  ;;  %10740 = vmatprep.subr.bf16.mxu0 %v15802_v32  ;;  %21939 = vst [vmem:[#allocation19_spill] sm:$0xff] %v16101_v62  ;;  %v3037_v63 = vld [vmem:[%s21403_s5 + $0x270] sm:$0xff] }
 0x4e7   : > { %21940 = vst [vmem:[#allocation20_spill] sm:$0xff] %v16115_v41 }
 0x4e8   : > { %2861 = vmatmul.mubr.f32.vlgmr.msra.gmra.mrb[8].mxu0 %v15655_v35  ;;  %9480 = vmatmul.mubr.f32.vlgmr.msra.gmra.mrb[40].mxu1 %v15655_v35 }
 0x4e9   : > { %10678 = vmatpush1.bf16.msra.mxu1 %v15804_v5  ;;  %10742 = vmatpush1.bf16.msra.mxu0 %v15813_v58 }
 0x4ea   : > { %10680 = vmatprep.subr.bf16.mxu1 %v15827_v13  ;;  %10744 = vmatprep.subr.bf16.mxu0 %v15838_v42 }
 0x4ed   : > { %10682 = vmatpush1.bf16.msra.mxu1 %v15840_v28  ;;  %10746 = vmatpush1.bf16.msra.mxu0 %v15849_v33 }
 0x4ee   : > { %10684 = vmatprep.subr.bf16.mxu1 %v15863_v49  ;;  %10748 = vmatprep.subr.bf16.mxu0 %v15874_v43 }
 0x4f1   : > { %10686 = vmatpush1.bf16.msra.mxu1 %v15876_v48  ;;  %10750 = vmatpush1.bf16.msra.mxu0 %v15885_v34 }
 0x4f2   : > { %10688 = vmatprep.subr.bf16.mxu1 %v15899_v19  ;;  %10752 = vmatprep.subr.bf16.mxu0 %v15910_v56 }
 0x4f5   : > { %10690 = vmatpush1.bf16.msra.mxu1 %v15912_v44  ;;  %10754 = vmatpush1.bf16.msra.mxu0 %v15921_v45 }
 0x4f6   : > { %10692 = vmatprep.subr.bf16.mxu1 %v15935_v10  ;;  %10756 = vmatprep.subr.bf16.mxu0 %v15946_v21 }
 0x4f9   : > { %10694 = vmatpush1.bf16.msra.mxu1 %v15948_v9  ;;  %10758 = vmatpush1.bf16.msra.mxu0 %v15957_v38 }
 0x4fa   : > { %10696 = vmatprep.subr.bf16.mxu1 %v15971_v2  ;;  %10760 = vmatprep.subr.bf16.mxu0 %v15982_v40 }
 0x4fd   : > { %10698 = vmatpush1.bf16.msra.mxu1 %v15984_v4  ;;  %10762 = vmatpush1.bf16.msra.mxu0 %v15993_v57 }
 0x4fe   : > { %10700 = vmatprep.subr.bf16.mxu1 %v16007_v37  ;;  %10764 = vmatprep.subr.bf16.mxu0 %v16018_v12 }
 0x501   : > { %10702 = vmatpush1.bf16.msra.mxu1 %v16020_v27  ;;  %10766 = vmatpush1.bf16.msra.mxu0 %v16029_v36 }
 0x502   : > { %10704 = vmatprep.subr.bf16.mxu1 %v16043_v1  ;;  %10768 = vmatprep.subr.bf16.mxu0 %v16054_v30 }
 0x505   : > { %10706 = vmatpush1.bf16.msra.mxu1 %v16056_v55  ;;  %10770 = vmatpush1.bf16.msra.mxu0 %v16065_v18  ;;  %v3073_v55 = vld [vmem:[%s21403_s5 + $0x390] sm:$0xff] }
 0x506   : > { %10708 = vmatprep.subr.bf16.mxu1 %v16079_v16  ;;  %10772 = vmatprep.subr.bf16.mxu0 %v16090_v25  ;;  %v16126_v25 = vpack.c.bf16 %v3038_v3, %v3034_v8  ;;  %v3044_v8 = vld [vmem:[%s21403_s5 + $0x2a8] sm:$0xff]  ;;  %v3042_v3 = vld [vmem:[%s21403_s5 + $0x298] sm:$0xff] }
 0x508   : > { %21941 = vst [vmem:[#allocation21_spill] sm:$0xff] %v16126_v25 }
 0x509   : > { %10710 = vmatpush1.bf16.msra.mxu1 %v16092_v60  ;;  %10774 = vmatpush1.bf16.msra.mxu0 %v16101_v62  ;;  %v3035_v60 = vld [vmem:[%s21403_s5 + $0x260] sm:$0xff]  ;;  %v16137_v62 = vpack.c.bf16 %v3037_v63, %v3033_v52  ;;  %v3046_v52 = vld [vmem:[%s21403_s5 + $0x2b8] sm:$0xff] }
 0x50a   : > { %v16128_v16 = vpack.c.bf16 %v3035_v60, %v3031_v11  ;;  %10712 = vmatprep.subr.bf16.mxu1 %v16115_v41  ;;  %10776 = vmatprep.subr.bf16.mxu0 %v16126_v25  ;;  %v3040_v60 = vld [vmem:[%s21403_s5 + $0x288] sm:$0xff]  ;;  %v3039_v63 = vld [vmem:[%s21403_s5 + $0x280] sm:$0xff]  ;;  %v16162_v25 = vpack.c.bf16 %v3046_v52, %v3042_v3  ;;  %v3050_v52 = vld [vmem:[%s21403_s5 + $0x2d8] sm:$0xff] }
 0x50b   : > { %21943 = vst [vmem:[#allocation23_spill] sm:$0xff] %v16137_v62  ;;  %v16151_v11 = vpack.c.bf16 %v3044_v8, %v3040_v60  ;;  %v3041_v60 = vld [vmem:[%s21403_s5 + $0x290] sm:$0xff]  ;;  %v3052_v3 = vld [vmem:[%s21403_s5 + $0x2e8] sm:$0xff] }
 0x50c   : > { %21942 = vst [vmem:[#allocation22_spill] sm:$0xff] %v16128_v16  ;;  %21945 = vst [vmem:[#allocation25_spill] sm:$0xff] %v16162_v25  ;;  %v3045_v8 = vld [vmem:[%s21403_s5 + $0x2b0] sm:$0xff] }
 0x50d   : > { %10714 = vmatpush1.bf16.msra.mxu1 %v16128_v16  ;;  %10778 = vmatpush1.bf16.msra.mxu0 %v16137_v62  ;;  %21944 = vst [vmem:[#allocation24_spill] sm:$0xff] %v16151_v11  ;;  %v3043_v16 = vld [vmem:[%s21403_s5 + $0x2a0] sm:$0xff]  ;;  %v16173_v62 = vpack.c.bf16 %v3045_v8, %v3041_v60  ;;  %v3054_v60 = vld [vmem:[%s21403_s5 + $0x2f8] sm:$0xff] }
 0x50e   : > { %v16164_v41 = vpack.c.bf16 %v3043_v16, %v3039_v63  ;;  %10716 = vmatprep.subr.bf16.mxu1 %v16151_v11  ;;  %10780 = vmatprep.subr.bf16.mxu0 %v16162_v25  ;;  %v3048_v16 = vld [vmem:[%s21403_s5 + $0x2c8] sm:$0xff]  ;;  %v3047_v8 = vld [vmem:[%s21403_s5 + $0x2c0] sm:$0xff]  ;;  %v16198_v25 = vpack.c.bf16 %v3054_v60, %v3050_v52  ;;  %v3058_v60 = vld [vmem:[%s21403_s5 + $0x318] sm:$0xff] }
 0x50f   : > { %21947 = vst [vmem:[#allocation27_spill] sm:$0xff] %v16173_v62  ;;  %v16187_v63 = vpack.c.bf16 %v3052_v3, %v3048_v16  ;;  %v3049_v16 = vld [vmem:[%s21403_s5 + $0x2d0] sm:$0xff]  ;;  %v3060_v52 = vld [vmem:[%s21403_s5 + $0x328] sm:$0xff] }
 0x510   : > { %21946 = vst [vmem:[#allocation26_spill] sm:$0xff] %v16164_v41  ;;  %21949 = vst [vmem:[#allocation29_spill] sm:$0xff] %v16198_v25  ;;  %v3053_v3 = vld [vmem:[%s21403_s5 + $0x2f0] sm:$0xff] }
 0x511   : > { %10718 = vmatpush1.bf16.msra.mxu1 %v16164_v41  ;;  %10782 = vmatpush1.bf16.msra.mxu0 %v16173_v62  ;;  %21948 = vst [vmem:[#allocation28_spill] sm:$0xff] %v16187_v63  ;;  %v3051_v41 = vld [vmem:[%s21403_s5 + $0x2e0] sm:$0xff]  ;;  %v16209_v62 = vpack.c.bf16 %v3053_v3, %v3049_v16  ;;  %v3062_v16 = vld [vmem:[%s21403_s5 + $0x338] sm:$0xff] }
 0x512   : > { %v16200_v11 = vpack.c.bf16 %v3051_v41, %v3047_v8  ;;  %10720 = vmatprep.subr.bf16.mxu1 %v16187_v63  ;;  %10784 = vmatprep.subr.bf16.mxu0 %v16198_v25  ;;  %v3056_v41 = vld [vmem:[%s21403_s5 + $0x308] sm:$0xff]  ;;  %v3055_v3 = vld [vmem:[%s21403_s5 + $0x300] sm:$0xff]  ;;  %v16234_v25 = vpack.c.bf16 %v3062_v16, %v3058_v60  ;;  %v3066_v16 = vld [vmem:[%s21403_s5 + $0x358] sm:$0xff] }
 0x513   : > { %21951 = vst [vmem:[#allocation31_spill] sm:$0xff] %v16209_v62  ;;  %v16223_v8 = vpack.c.bf16 %v3060_v52, %v3056_v41  ;;  %v3057_v41 = vld [vmem:[%s21403_s5 + $0x310] sm:$0xff]  ;;  %v3068_v60 = vld [vmem:[%s21403_s5 + $0x368] sm:$0xff] }
 0x514   : > { %21950 = vst [vmem:[#allocation30_spill] sm:$0xff] %v16200_v11  ;;  %21953 = vst [vmem:[#allocation33_spill] sm:$0xff] %v16234_v25  ;;  %v3061_v52 = vld [vmem:[%s21403_s5 + $0x330] sm:$0xff] }
 0x515   : > { %10722 = vmatpush1.bf16.msra.mxu1 %v16200_v11  ;;  %10786 = vmatpush1.bf16.msra.mxu0 %v16209_v62  ;;  %21952 = vst [vmem:[#allocation32_spill] sm:$0xff] %v16223_v8  ;;  %v3059_v11 = vld [vmem:[%s21403_s5 + $0x320] sm:$0xff]  ;;  %v16245_v62 = vpack.c.bf16 %v3061_v52, %v3057_v41  ;;  %v3070_v41 = vld [vmem:[%s21403_s5 + $0x378] sm:$0xff] }
 0x516   : > { %v16236_v63 = vpack.c.bf16 %v3059_v11, %v3055_v3  ;;  %10724 = vmatprep.subr.bf16.mxu1 %v16223_v8  ;;  %10788 = vmatprep.subr.bf16.mxu0 %v16234_v25  ;;  %v3064_v11 = vld [vmem:[%s21403_s5 + $0x348] sm:$0xff]  ;;  %v3063_v52 = vld [vmem:[%s21403_s5 + $0x340] sm:$0xff]  ;;  %v16270_v25 = vpack.c.bf16 %v3070_v41, %v3066_v16  ;;  %v3074_v16 = vld [vmem:[%s21403_s5 + $0x398] sm:$0xff] }
 0x517   : > { %21955 = vst [vmem:[#allocation35_spill] sm:$0xff] %v16245_v62  ;;  %v16259_v3 = vpack.c.bf16 %v3068_v60, %v3064_v11  ;;  %v3065_v11 = vld [vmem:[%s21403_s5 + $0x350] sm:$0xff]  ;;  %v3078_v41 = vld [vmem:[%s21403_s5 + $0x3b8] sm:$0xff] }
 0x518   : > { %21954 = vst [vmem:[#allocation34_spill] sm:$0xff] %v16236_v63  ;;  %21957 = vst [vmem:[#allocation37_spill] sm:$0xff] %v16270_v25  ;;  %v3069_v60 = vld [vmem:[%s21403_s5 + $0x370] sm:$0xff] }
 0x519   : > { %10726 = vmatpush1.bf16.msra.mxu1 %v16236_v63  ;;  %10790 = vmatpush1.bf16.msra.mxu0 %v16245_v62  ;;  %21956 = vst [vmem:[#allocation36_spill] sm:$0xff] %v16259_v3  ;;  %v3067_v63 = vld [vmem:[%s21403_s5 + $0x360] sm:$0xff]  ;;  %v3072_v62 = vld [vmem:[%s21403_s5 + $0x388] sm:$0xff]  ;;  %v16284_v18 = vpack.c.bf16 %v3069_v60, %v3065_v11  ;;  %v16299_v11 = vpack.c.bf16 %v3078_v41, %v3074_v16 }
 0x51a   : > { %v16272_v8 = vpack.c.bf16 %v3067_v63, %v3063_v52  ;;  %10728 = vmatprep.subr.bf16.mxu1 %v16259_v3  ;;  %v3076_v63 = vld [vmem:[%s21403_s5 + $0x3a8] sm:$0xff]  ;;  %10792 = vmatprep.subr.bf16.mxu0 %v16270_v25  ;;  %v3071_v60 = vld [vmem:[%s21403_s5 + $0x380] sm:$0xff] }
 0x51b   : > { %21959 = vst [vmem:[#allocation39_spill] sm:$0xff] %v16284_v18  ;;  %v16297_v52 = vpack.c.bf16 %v3076_v63, %v3072_v62  ;;  %21961 = vst [vmem:[#allocation41_spill] sm:$0xff] %v16299_v11  ;;  %v3075_v3 = vld [vmem:[%s21403_s5 + $0x3a0] sm:$0xff]  ;;  %v3077_v62 = vld [vmem:[%s21403_s5 + $0x3b0] sm:$0xff] }
 0x51c   : > { %21958 = vst [vmem:[#allocation38_spill] sm:$0xff] %v16272_v8  ;;  %v16311_v25 = vpack.c.bf16 %v3075_v3, %v3071_v60  ;;  %v3080_v63 = vld [vmem:[%s21403_s5 + $0x3c8] sm:$0xff]  ;;  %v16324_v41 = vpack.c.bf16 %v3077_v62, %v3073_v55  ;;  %v3082_v60 = vld [vmem:[%s21403_s5 + $0x3d8] sm:$0xff]  ;;  %v3083_v55 = vld [vmem:[%s21403_s5 + $0x3e0] sm:$0xff] }
 0x51d   : > { %10730 = vmatpush1.bf16.msra.mxu1 %v16272_v8  ;;  %21960 = vst [vmem:[#allocation40_spill] sm:$0xff] %v16297_v52  ;;  %10794 = vmatpush1.bf16.msra.mxu0 %v16284_v18  ;;  %v3084_v16 = vld [vmem:[%s21403_s5 + $0x3e8] sm:$0xff]  ;;  %v3086_v18 = vld [vmem:[%s21403_s5 + $0x3f8] sm:$0xff]  ;;  %v3079_v8 = vld [vmem:[%s21403_s5 + $0x3c0] sm:$0xff] }
 0x51e   : > { %21962 = vst [vmem:[#allocation43_spill] sm:$0xff] %v16311_v25  ;;  %10732 = vmatprep.subr.bf16.mxu1 %v16297_v52  ;;  %10796 = vmatprep.subr.bf16.mxu0 %v16299_v11  ;;  %21963 = vst [vmem:[#allocation44_spill] sm:$0xff] %v16324_v41  ;;  %v16326_v3 = vpack.c.bf16 %v3084_v16, %v3080_v63  ;;  %v16337_v30 = vpack.c.bf16 %v3086_v18, %v3082_v60  ;;  %v3081_v62 = vld [vmem:[%s21403_s5 + $0x3d0] sm:$0xff]  ;;  %v3250_v18 = vld [vmem:[%s21401_s3 + $0x8] sm:$0xff] }
 0x51f   : > { %v3085_v63 = vld [vmem:[%s21403_s5 + $0x3f0] sm:$0xff]  ;;  %v16349_v16 = vpack.c.bf16 %v3083_v55, %v3079_v8  ;;  %v3253_v60 = vld [vmem:[%s21401_s3 + $0x20] sm:$0xff] }
 0x520   : > { %21964 = vst [vmem:[#allocation42_spill] sm:$0xff] %v16326_v3  ;;  %21965 = vst [vmem:[#allocation53_spill] sm:$0xff] %v16337_v30  ;;  %v16359_v11 = vpack.c.bf16 %v3085_v63, %v3081_v62  ;;  %v16362_v52 = vpack.c.bf16 %v3253_v60, %v3250_v18 }
 0x521   : > { %10734 = vmatpush1.bf16.msra.mxu1 %v16311_v25  ;;  %21966 = vst [vmem:[#allocation69_spill] sm:$0xff] %v16349_v16  ;;  %10798 = vmatpush1.bf16.msra.mxu0 %v16324_v41 }
 0x522   : > { %10736 = vmatprep.subr.bf16.mxu1 %v16326_v3  ;;  %21967 = vst [vmem:[#allocation70_spill] sm:$0xff] %v16359_v11  ;;  %10800 = vmatprep.subr.bf16.mxu0 %v16337_v30  ;;  %21968 = vst [vmem:[#allocation71_spill] sm:$0xff] %v16362_v52 }
 0x525   : > { %10738 = vmatpush1.bf16.msra.mxu1 %v16349_v16  ;;  %10802 = vmatpush1.bf16.msra.mxu0 %v16359_v11 }
 0x526   : > { %10835 = vmatprep.subr.bf16.mxu1 %v21780_v51  ;;  %10804 = vmatprep.subr.bf16.mxu0 %v16362_v52 }
 0x59b   : > { %v2652_v8 = vpop.f32.mrb[38].mxu1  ;;  %v2723_v55 = vpop.f32.mrb[30].mxu0 }
 0x59c   : > { %v2653_v41 = vadd.f32 %v2652_v8, %v21927_v26  ;;  %v2654_v25 = vpop.f32.mrb[39].mxu1  ;;  %v2725_v3 = vpop.f32.mrb[31].mxu0  ;;  %v2724_v36 = vadd.f32 %v2723_v55, %v14680_v54 }
 0x59d   : > { %v2655_v63 = vadd.f32 %v2654_v25, %v14671_v24  ;;  %v2726_v1 = vadd.f32 %v2725_v3, %v21928_v15 }
 0x59e   : > { %v8924_v62 = vmul.f32 -1.442695, %v2653_v41 }
 0x59f   : > { %v8925_v18 = vmul.f32 -1.442695, %v2655_v63 }
 0x5a0   : > { %13017 = vpow2.f32 %v8924_v62 }
 0x5a1   : > { %13019 = vpow2.f32 %v8925_v18 }
 0x5aa   : > { %v13018_v60 = vpop.eup %13017 }
 0x5ab   : > { %v2731_v16 = vadd.f32 1.0, %v13018_v60  ;;  %v13020_v11 = vpop.eup %13019 }
 0x5ac   : > { %v2737_v30 = vadd.f32 1.0, %v13020_v11 }
 0x5ad   : > { %13021 = vrcp.f32 %v2731_v16 }
 0x5ae   : > { %13023 = vrcp.f32 %v2737_v30 }
 0x5b7   : > { %v13022_v52 = vpop.eup %13021 }
 0x5b8   : > { %v2740_v8 = vmul.f32 %v13022_v52, %v2726_v1  ;;  %v13024_v11 = vpop.eup %13023 }
 0x5b9   : > { %v2743_v60 = vsub.f32 1.0, %v13024_v11 }
 0x5ba   : > { %v2741_v26 = vadd.f32 %v2740_v8, %v2724_v36  ;;  %v2745_v36 = vmul.f32 %v13024_v11, %v15638_v59  ;;  %v16384_v8 = vld [vmem:[%s21402_s4] ss:$0 sm:$0xff] }
 0x5bb   : > { %v2862_v27 = vpop.f32.mrb[8].mxu0  ;;  %v2933_v41 = vpop.f32.mrb[40].mxu1  ;;  %v3249_v11 = vld [vmem:[%s21401_s3] sm:$0xff] }
 0x5bc   : > { %13025 = vtanh.f32 %v2741_v26  ;;  %v12839_v25 = vadd.f32 %v2862_v27, %v14450_v53  ;;  %v2864_v62 = vpop.f32.mrb[9].mxu0  ;;  %v9481_v63 = vpop.f32.mrb[41].mxu1 }
 0x5bd   : > { %v12840_v16 = vadd.f32 %v2864_v62, %v14459_v46  ;;  %v21969_v62 = vld [vmem:[#allocation57_spill] sm:$0xff] }
 0x5be   : > { %v8926_v18 = vmul.f32 -1.442695, %v12839_v25 }
 0x5bf   : > { %v8927_v3 = vmul.f32 -1.442695, %v12840_v16 }
 0x5c0   : > { %13027 = vpow2.f32 %v8926_v18 }
 0x5c1   : > { %13029 = vpow2.f32 %v8927_v3  ;;  %v3252_v3 = vld [vmem:[%s21401_s3 + $0x18] sm:$0xff] }
 0x5c6   : > { %v13026_v15 = vpop.eup %13025 }
 0x5c7   : > { %v2744_v30 = vmul.f32 %v13026_v15, %v2743_v60  ;;  %v2951_v15 = vadd.f32 %v16384_v8, %v2933_v41  ;;  %v3256_v41 = vld [vmem:[%s21401_s3 + $0x38] sm:$0xff] }
 0x5c9   : > { %v16375_v1 = vadd.f32 %v2745_v36, %v2744_v30  ;;  %v3259_v30 = vld [vmem:[%s21401_s3 + $0x50] sm:$0xff] }
 0x5ca   : > { %v13028_v26 = vpop.eup %13027 }
 0x5cb   : > { %v2941_v52 = vadd.f32 1.0, %v13028_v26  ;;  %2747 = vst [vmem:[%s13480_s24 + $0x18] sm:$0xff] %v16375_v1  ;;  %3151 = vmatprep.mubr.f32.mxu1 %v16375_v1  ;;  %3222 = vmatprep.mubr.f32.mxu0 %v16375_v1  ;;  %v13030_v27 = vpop.eup %13029 }
 0x5cc   : > { %v2948_v55 = vadd.f32 1.0, %v13030_v27 }
 0x5cd   : > { %13031 = vrcp.f32 %v2941_v52  ;;  %v16401_v52 = vpack.c.bf16 %v3252_v3, %v3249_v11  ;;  %v3271_v11 = vld [vmem:[%s21401_s3 + $0xb0] sm:$0xff] }
 0x5ce   : > { %13033 = vrcp.f32 %v2948_v55  ;;  %v16405_v55 = vpack.c.bf16 %v3259_v30, %v3256_v41  ;;  %v3267_v41 = vld [vmem:[%s21401_s3 + $0x90] sm:$0xff]  ;;  %v3270_v30 = vld [vmem:[%s21401_s3 + $0xa8] sm:$0xff] }
 0x5d7   : > { %v13032_v59 = vpop.eup %13031 }
 0x5d8   : > { %v2952_v25 = vmul.f32 %v13032_v59, %v2951_v15  ;;  %v13034_v18 = vpop.eup %13033  ;;  %v3255_v15 = vld [vmem:[%s21401_s3 + $0x30] sm:$0xff]  ;;  %v3258_v59 = vld [vmem:[%s21401_s3 + $0x48] sm:$0xff] }
 0x5d9   : > { %v2955_v16 = vsub.f32 1.0, %v13034_v18  ;;  %v2957_v26 = vmul.f32 %v13034_v18, %v15655_v35  ;;  %v3265_v35 = vld [vmem:[%s21401_s3 + $0x80] sm:$0xff] }
 0x5da   : > { %v2953_v63 = vadd.f32 %v2952_v25, %v21969_v62  ;;  %v3262_v25 = vld [vmem:[%s21401_s3 + $0x68] sm:$0xff]  ;;  %v16423_v62 = vpack.c.bf16 %v3258_v59, %v3255_v15  ;;  %v3261_v18 = vld [vmem:[%s21401_s3 + $0x60] sm:$0xff] }
 0x5db   : > { %v3273_v59 = vld [vmem:[%s21401_s3 + $0xc0] sm:$0xff] }
 0x5dc   : > { %13035 = vtanh.f32 %v2953_v63  ;;  %v16427_v63 = vpack.c.bf16 %v3265_v35, %v3262_v25  ;;  %v3276_v25 = vld [vmem:[%s21401_s3 + $0xd8] sm:$0xff]  ;;  %v3283_v35 = vld [vmem:[%s21401_s3 + $0x110] sm:$0xff] }
 0x5e6   : > { %v13036_v60 = vpop.eup %13035 }
 0x5e7   : > { %v2956_v36 = vmul.f32 %v13036_v60, %v2955_v16  ;;  %v3264_v16 = vld [vmem:[%s21401_s3 + $0x78] sm:$0xff] }
 0x5e8   : > { %v16446_v3 = vpack.c.bf16 %v3264_v16, %v3261_v18  ;;  %v16486_v18 = vpack.c.bf16 %v3276_v25, %v3273_v59  ;;  %v22008_v59 = vld [vmem:[#allocation71_spill] sm:$0xff] }
 0x5e9   : > { %v16403_v27 = vadd.f32 %v2957_v26, %v2956_v36  ;;  %v3277_v36 = vld [vmem:[%s21401_s3 + $0xe0] sm:$0xff]  ;;  %v16466_v26 = vpack.c.bf16 %v3270_v30, %v3267_v41  ;;  %v22004_v41 = vld [vmem:[#allocation42_spill] sm:$0xff] }
 0x5ea   : > { %v22005_v30 = vld [vmem:[#allocation53_spill] sm:$0xff] }
 0x5eb   : > { %3152 = vmatmul.mubr.f32.vlgmr.msra.gmra.mrb[42].mxu1 %v16403_v27  ;;  %3223 = vmatmul.mubr.f32.vlgmr.msra.gmra.mrb[32].mxu0 %v16403_v27 }
 0x5ec   : > { %10806 = vmatpush1.bf16.msra.mxu0 %v16401_v52  ;;  %10837 = vmatpush3.bf16.msra.mxu1 %v15653_v20  ;;  %v3268_v20 = vld [vmem:[%s21401_s3 + $0x98] sm:$0xff] }
 0x5ed   : > { %10808 = vmatprep.subr.bf16.mxu0 %v16405_v55  ;;  %10838 = vmatprep.subr.bf16.mxu1 %v21780_v51  ;;  %v16450_v60 = vpack.c.bf16 %v3271_v11, %v3268_v20  ;;  %v3279_v20 = vld [vmem:[%s21401_s3 + $0xf0] sm:$0xff]  ;;  %v3282_v11 = vld [vmem:[%s21401_s3 + $0x108] sm:$0xff] }
 0x5ee   : > { %3361 = vmatprep.mubr.f32.mxu0 %v21805_v7  ;;  %9514 = vmatprep.mubr.msk.f32.mxu1 %vm13371_vm1, %v21805_v7 }
 0x5f0   : > { %10810 = vmatpush1.bf16.msra.mxu0 %v16423_v62  ;;  %10840 = vmatpush3.bf16.msra.mxu1 %v15667_v17  ;;  %v3274_v17 = vld [vmem:[%s21401_s3 + $0xc8] sm:$0xff] }
 0x5f1   : > { %10812 = vmatprep.subr.bf16.mxu0 %v16427_v63  ;;  %10841 = vmatprep.subr.bf16.mxu1 %v21780_v51  ;;  %v16470_v15 = vpack.c.bf16 %v3277_v36, %v3274_v17  ;;  %v22006_v17 = vld [vmem:[#allocation69_spill] sm:$0xff]  ;;  %v22007_v36 = vld [vmem:[#allocation70_spill] sm:$0xff] }
 0x5f4   : > { %10814 = vmatpush1.bf16.msra.mxu0 %v16446_v3  ;;  %10843 = vmatpush3.bf16.msra.mxu1 %v15682_v22  ;;  %v3280_v22 = vld [vmem:[%s21401_s3 + $0xf8] sm:$0xff] }
 0x5f5   : > { %10816 = vmatprep.subr.bf16.mxu0 %v16450_v60  ;;  %10844 = vmatprep.subr.bf16.mxu1 %v21780_v51  ;;  %v16490_v16 = vpack.c.bf16 %v3283_v35, %v3280_v22  ;;  %v22009_v35 = vld [vmem:[#allocation9_spill] sm:$0xff] }
 0x5f8   : > { %10818 = vmatpush1.bf16.msra.mxu0 %v16466_v26  ;;  %10846 = vmatpush3.bf16.msra.mxu1 %v15694_v31  ;;  %v16500_v31 = vpack.c.bf16 %v3282_v11, %v3279_v20 }
 0x5f9   : > { %10820 = vmatprep.subr.bf16.mxu0 %v16470_v15  ;;  %10847 = vmatprep.subr.bf16.mxu1 %v21780_v51 }
 0x5fc   : > { %10822 = vmatpush1.bf16.msra.mxu0 %v16486_v18  ;;  %10849 = vmatpush3.bf16.msra.mxu1 %v15706_v39  ;;  %v21970_v39 = vld [vmem:[#allocation55_spill] sm:$0xff] }
 0x5fd   : > { %10824 = vmatprep.subr.bf16.mxu0 %v16490_v16  ;;  %10850 = vmatprep.subr.bf16.mxu1 %v21780_v51 }
 0x600   : > { %10826 = vmatpush1.bf16.msra.mxu0 %v16500_v31  ;;  %10852 = vmatpush3.bf16.msra.mxu1 %v15724_v47  ;;  %v21971_v47 = vld [vmem:[#allocation11_spill] sm:$0xff] }
 0x601   : > { %10828 = vmatprep.subr.bf16.mxu0 %v15731_v29  ;;  %10853 = vmatprep.subr.bf16.mxu1 %v21780_v51  ;;  %v21972_v29 = vld [vmem:[#allocation12_spill] sm:$0xff] }
 0x604   : > { %10830 = vmatpush1.bf16.msra.mxu0 %v15750_v61  ;;  %10855 = vmatpush3.bf16.msra.mxu1 %v15752_v0  ;;  %v21973_v61 = vld [vmem:[#allocation13_spill] sm:$0xff]  ;;  %v21974_v0 = vld [vmem:[#allocation14_spill] sm:$0xff] }
 0x605   : > { %10832 = vmatprep.subr.bf16.mxu0 %v15759_v14  ;;  %10856 = vmatprep.subr.bf16.mxu1 %v21780_v51  ;;  %v21975_v14 = vld [vmem:[#allocation15_spill] sm:$0xff] }
 0x608   : > { %10834 = vmatpush1.bf16.msra.mxu0 %v15772_v6  ;;  %10858 = vmatpush3.bf16.msra.mxu1 %v15774_v23  ;;  %v21976_v6 = vld [vmem:[#allocation16_spill] sm:$0xff]  ;;  %v21977_v23 = vld [vmem:[#allocation17_spill] sm:$0xff] }
 0x609   : > { %10860 = vmatprep.subr.bf16.mxu1 %v15791_v50  ;;  %10924 = vmatprep.subr.bf16.mxu0 %v15802_v32  ;;  %v21978_v50 = vld [vmem:[#allocation18_spill] sm:$0xff]  ;;  %v21979_v32 = vld [vmem:[#allocation19_spill] sm:$0xff] }
 0x60b   : > { %3362 = vmatmul.mubr.f32.vlgmr.msra.gmra.mrb[10].mxu0 %v16403_v27  ;;  %9515 = vmatmul.mubr.f32.vlgmr.msra.gmra.mrb[44].mxu1 %v16403_v27 }
 0x60c   : > { %10862 = vmatpush1.bf16.msra.mxu1 %v15804_v5  ;;  %10926 = vmatpush1.bf16.msra.mxu0 %v15813_v58  ;;  %v21980_v5 = vld [vmem:[#allocation20_spill] sm:$0xff]  ;;  %v21981_v58 = vld [vmem:[#allocation21_spill] sm:$0xff] }
 0x60d   : > { %10864 = vmatprep.subr.bf16.mxu1 %v15827_v13  ;;  %10928 = vmatprep.subr.bf16.mxu0 %v15838_v42  ;;  %v21982_v13 = vld [vmem:[#allocation22_spill] sm:$0xff]  ;;  %v21983_v42 = vld [vmem:[#allocation23_spill] sm:$0xff] }
 0x610   : > { %10866 = vmatpush1.bf16.msra.mxu1 %v15840_v28  ;;  %10930 = vmatpush1.bf16.msra.mxu0 %v15849_v33  ;;  %v21984_v28 = vld [vmem:[#allocation24_spill] sm:$0xff]  ;;  %v21985_v33 = vld [vmem:[#allocation25_spill] sm:$0xff] }
 0x611   : > { %10868 = vmatprep.subr.bf16.mxu1 %v15863_v49  ;;  %10932 = vmatprep.subr.bf16.mxu0 %v15874_v43  ;;  %v21986_v49 = vld [vmem:[#allocation26_spill] sm:$0xff]  ;;  %v21987_v43 = vld [vmem:[#allocation27_spill] sm:$0xff] }
 0x614   : > { %10870 = vmatpush1.bf16.msra.mxu1 %v15876_v48  ;;  %10934 = vmatpush1.bf16.msra.mxu0 %v15885_v34  ;;  %v21988_v48 = vld [vmem:[#allocation28_spill] sm:$0xff]  ;;  %v21989_v34 = vld [vmem:[#allocation29_spill] sm:$0xff] }
 0x615   : > { %10872 = vmatprep.subr.bf16.mxu1 %v15899_v19  ;;  %10936 = vmatprep.subr.bf16.mxu0 %v15910_v56  ;;  %v21990_v19 = vld [vmem:[#allocation30_spill] sm:$0xff]  ;;  %v21991_v56 = vld [vmem:[#allocation31_spill] sm:$0xff] }
 0x618   : > { %10874 = vmatpush1.bf16.msra.mxu1 %v15912_v44  ;;  %10938 = vmatpush1.bf16.msra.mxu0 %v15921_v45  ;;  %v21992_v44 = vld [vmem:[#allocation32_spill] sm:$0xff]  ;;  %v21993_v45 = vld [vmem:[#allocation33_spill] sm:$0xff] }
 0x619   : > { %10876 = vmatprep.subr.bf16.mxu1 %v15935_v10  ;;  %10940 = vmatprep.subr.bf16.mxu0 %v15946_v21  ;;  %v21994_v10 = vld [vmem:[#allocation34_spill] sm:$0xff]  ;;  %v21995_v21 = vld [vmem:[#allocation35_spill] sm:$0xff] }
 0x61c   : > { %10878 = vmatpush1.bf16.msra.mxu1 %v15948_v9  ;;  %10942 = vmatpush1.bf16.msra.mxu0 %v15957_v38  ;;  %v21996_v9 = vld [vmem:[#allocation36_spill] sm:$0xff]  ;;  %v21997_v38 = vld [vmem:[#allocation37_spill] sm:$0xff] }
 0x61d   : > { %10880 = vmatprep.subr.bf16.mxu1 %v15971_v2  ;;  %10944 = vmatprep.subr.bf16.mxu0 %v15982_v40  ;;  %v21998_v2 = vld [vmem:[#allocation38_spill] sm:$0xff]  ;;  %v21999_v40 = vld [vmem:[#allocation39_spill] sm:$0xff] }
 0x620   : > { %10882 = vmatpush1.bf16.msra.mxu1 %v15984_v4  ;;  %10946 = vmatpush1.bf16.msra.mxu0 %v15993_v57  ;;  %v22000_v4 = vld [vmem:[#allocation40_spill] sm:$0xff]  ;;  %v22001_v57 = vld [vmem:[#allocation41_spill] sm:$0xff] }
 0x621   : > { %10884 = vmatprep.subr.bf16.mxu1 %v16007_v37  ;;  %10948 = vmatprep.subr.bf16.mxu0 %v16018_v12  ;;  %v22002_v37 = vld [vmem:[#allocation43_spill] sm:$0xff]  ;;  %v22003_v12 = vld [vmem:[#allocation44_spill] sm:$0xff] }
 0x624   : > { %10886 = vmatpush1.bf16.msra.mxu1 %v21970_v39  ;;  %10950 = vmatpush1.bf16.msra.mxu0 %v21971_v47 }
 0x625   : > { %10888 = vmatprep.subr.bf16.mxu1 %v21972_v29  ;;  %10952 = vmatprep.subr.bf16.mxu0 %v21973_v61 }
 0x628   : > { %10890 = vmatpush1.bf16.msra.mxu1 %v21974_v0  ;;  %10954 = vmatpush1.bf16.msra.mxu0 %v21975_v14 }
 0x629   : > { %10892 = vmatprep.subr.bf16.mxu1 %v21976_v6  ;;  %10956 = vmatprep.subr.bf16.mxu0 %v21977_v23 }
 0x62c   : > { %10894 = vmatpush1.bf16.msra.mxu1 %v21978_v50  ;;  %10958 = vmatpush1.bf16.msra.mxu0 %v21979_v32  ;;  %v22010_v50 = vld [vmem:[#allocation10_spill] sm:$0xff] }
 0x62d   : > { %10896 = vmatprep.subr.bf16.mxu1 %v21980_v5  ;;  %10960 = vmatprep.subr.bf16.mxu0 %v21981_v58 }
 0x630   : > { %10898 = vmatpush1.bf16.msra.mxu1 %v21982_v13  ;;  %10962 = vmatpush1.bf16.msra.mxu0 %v21983_v42 }
 0x631   : > { %10900 = vmatprep.subr.bf16.mxu1 %v21984_v28  ;;  %10964 = vmatprep.subr.bf16.mxu0 %v21985_v33 }
 0x634   : > { %10902 = vmatpush1.bf16.msra.mxu1 %v21986_v49  ;;  %10966 = vmatpush1.bf16.msra.mxu0 %v21987_v43 }
 0x635   : > { %10904 = vmatprep.subr.bf16.mxu1 %v21988_v48  ;;  %10968 = vmatprep.subr.bf16.mxu0 %v21989_v34 }
 0x638   : > { %10906 = vmatpush1.bf16.msra.mxu1 %v21990_v19  ;;  %10970 = vmatpush1.bf16.msra.mxu0 %v21991_v56 }
 0x639   : > { %10908 = vmatprep.subr.bf16.mxu1 %v21992_v44  ;;  %10972 = vmatprep.subr.bf16.mxu0 %v21993_v45 }
 0x63c   : > { %10910 = vmatpush1.bf16.msra.mxu1 %v21994_v10  ;;  %10974 = vmatpush1.bf16.msra.mxu0 %v21995_v21 }
 0x63d   : > { %10912 = vmatprep.subr.bf16.mxu1 %v21996_v9  ;;  %10976 = vmatprep.subr.bf16.mxu0 %v21997_v38 }
 0x640   : > { %10914 = vmatpush1.bf16.msra.mxu1 %v21998_v2  ;;  %10978 = vmatpush1.bf16.msra.mxu0 %v21999_v40 }
 0x641   : > { %10916 = vmatprep.subr.bf16.mxu1 %v22000_v4  ;;  %10980 = vmatprep.subr.bf16.mxu0 %v22001_v57 }
 0x644   : > { %10918 = vmatpush1.bf16.msra.mxu1 %v22002_v37  ;;  %10982 = vmatpush1.bf16.msra.mxu0 %v22003_v12 }
 0x645   : > { %10920 = vmatprep.subr.bf16.mxu1 %v22004_v41  ;;  %10984 = vmatprep.subr.bf16.mxu0 %v22005_v30  ;;  %v22011_v30 = vld [vmem:[#allocation56_spill] sm:$0xff] }
 0x648   : > { %10922 = vmatpush1.bf16.msra.mxu1 %v22006_v17  ;;  %10986 = vmatpush1.bf16.msra.mxu0 %v22007_v36 }
 0x649   : > { %10988 = vmatprep.subr.bf16.mxu0 %v22008_v59  ;;  %11019 = vmatprep.subr.bf16.mxu1 %v21780_v51  ;;  %v3752_v59 = vld [vmem:[%s21401_s3 + $0x10] sm:$0xff] }
 0x6be   : > { %v3153_v25 = vpop.f32.mrb[42].mxu1  ;;  %v3224_v22 = vpop.f32.mrb[32].mxu0 }
 0x6bf   : > { %v3154_v20 = vadd.f32 %v3153_v25, %v22009_v35  ;;  %v3155_v11 = vpop.f32.mrb[43].mxu1  ;;  %v3226_v39 = vpop.f32.mrb[33].mxu0  ;;  %v3225_v58 = vadd.f32 %v3224_v22, %v14680_v54  ;;  %v3755_v25 = vld [vmem:[%s21401_s3 + $0x28] sm:$0xff] }
 0x6c0   : > { %v3156_v29 = vadd.f32 %v3155_v11, %v14671_v24  ;;  %v3227_v32 = vadd.f32 %v3226_v39, %v22010_v50  ;;  %v16604_v11 = vpack.c.bf16 %v3755_v25, %v3752_v59  ;;  %v3976_v25 = vld [vmem:[%s21403_s5 + $0x78] sm:$0xff] }
 0x6c1   : > { %v8928_v47 = vmul.f32 -1.442695, %v3154_v20 }
 0x6c2   : > { %v8929_v61 = vmul.f32 -1.442695, %v3156_v29  ;;  %v3761_v29 = vld [vmem:[%s21401_s3 + $0x58] sm:$0xff] }
 0x6c3   : > { %13037 = vpow2.f32 %v8928_v47  ;;  %v3758_v47 = vld [vmem:[%s21401_s3 + $0x40] sm:$0xff] }
 0x6c4   : > { %13039 = vpow2.f32 %v8929_v61  ;;  %v3764_v61 = vld [vmem:[%s21401_s3 + $0x70] sm:$0xff] }
 0x6cd   : > { %v13038_v0 = vpop.eup %13037 }
 0x6ce   : > { %v3232_v14 = vadd.f32 1.0, %v13038_v0  ;;  %v13040_v6 = vpop.eup %13039  ;;  %v3767_v0 = vld [vmem:[%s21401_s3 + $0x88] sm:$0xff] }
 0x6cf   : > { %v3238_v23 = vadd.f32 1.0, %v13040_v6  ;;  %v3779_v6 = vld [vmem:[%s21401_s3 + $0xe8] sm:$0xff] }
 0x6d0   : > { %13041 = vrcp.f32 %v3232_v14  ;;  %v3773_v14 = vld [vmem:[%s21401_s3 + $0xb8] sm:$0xff] }
 0x6d1   : > { %13043 = vrcp.f32 %v3238_v23  ;;  %v3785_v23 = vld [vmem:[%s21401_s3 + $0x118] sm:$0xff] }
 0x6da   : > { %v13042_v5 = vpop.eup %13041 }
 0x6db   : > { %v3241_v13 = vmul.f32 %v13042_v5, %v3227_v32  ;;  %v13044_v56 = vpop.eup %13043  ;;  %v3790_v32 = vld [vmem:[%s21401_s3 + $0x140] sm:$0xff] }
 0x6dc   : > { %v3244_v45 = vsub.f32 1.0, %v13044_v56  ;;  %v3246_v9 = vmul.f32 %v13044_v56, %v16375_v1  ;;  %v3786_v5 = vld [vmem:[%s21401_s3 + $0x120] sm:$0xff] }
 0x6dd   : > { %v3242_v42 = vadd.f32 %v3241_v13, %v3225_v58  ;;  %v3789_v13 = vld [vmem:[%s21401_s3 + $0x138] sm:$0xff] }
 0x6de   : > { %v3363_v28 = vpop.f32.mrb[10].mxu0  ;;  %v3434_v33 = vpop.f32.mrb[44].mxu1 }
 0x6df   : > { %13045 = vtanh.f32 %v3242_v42  ;;  %v12841_v49 = vadd.f32 %v3363_v28, %v14450_v53  ;;  %v3365_v43 = vpop.f32.mrb[11].mxu0  ;;  %v9516_v48 = vpop.f32.mrb[45].mxu1  ;;  %v3452_v37 = vadd.f32 %v16384_v8, %v3434_v33  ;;  %v3791_v42 = vld [vmem:[%s21401_s3 + $0x148] sm:$0xff]  ;;  %v3796_v28 = vld [vmem:[%s21401_s3 + $0x170] sm:$0xff]  ;;  %v16701_v33 = vpack.c.bf16 %v3789_v13, %v3786_v5 }
 0x6e0   : > { %v12842_v19 = vadd.f32 %v3365_v43, %v14459_v46  ;;  %v3792_v43 = vld [vmem:[%s21401_s3 + $0x150] sm:$0xff] }
 0x6e1   : > { %v8930_v34 = vmul.f32 -1.442695, %v12841_v49  ;;  %v3979_v13 = vld [vmem:[%s21403_s5 + $0x90] sm:$0xff] }
 0x6e2   : > { %v8931_v44 = vmul.f32 -1.442695, %v12842_v19  ;;  %v3797_v19 = vld [vmem:[%s21401_s3 + $0x178] sm:$0xff] }
 0x6e3   : > { %13047 = vpow2.f32 %v8930_v34  ;;  %v3794_v34 = vld [vmem:[%s21401_s3 + $0x160] sm:$0xff] }
 0x6e4   : > { %13049 = vpow2.f32 %v8931_v44  ;;  %v16725_v44 = vpack.c.bf16 %v3797_v19, %v3794_v34  ;;  %v3992_v34 = vld [vmem:[%s21403_s5 + $0xf8] sm:$0xff]  ;;  %v3985_v19 = vld [vmem:[%s21403_s5 + $0xc0] sm:$0xff] }
 0x6e9   : > { %v13046_v10 = vpop.eup %13045 }
 0x6ea   : > { %v3245_v21 = vmul.f32 %v13046_v10, %v3244_v45  ;;  %v3962_v45 = vld [vmem:[%s21403_s5 + $0x8] sm:$0xff] }
 0x6eb   : > { %v3966_v10 = vld [vmem:[%s21403_s5 + $0x28] sm:$0xff] }
 0x6ec   : > { %v16589_v38 = vadd.f32 %v3246_v9, %v3245_v21  ;;  %v3964_v21 = vld [vmem:[%s21403_s5 + $0x18] sm:$0xff]  ;;  %v16742_v9 = vpack.c.bf16 %v3966_v10, %v3962_v45  ;;  %v3989_v45 = vld [vmem:[%s21403_s5 + $0xe0] sm:$0xff] }
 0x6ed   : > { %v13048_v2 = vpop.eup %13047 }
 0x6ee   : > { %v3442_v40 = vadd.f32 1.0, %v13048_v2  ;;  %3248 = vst [vmem:[%s13480_s24 + $0x20] sm:$0xff] %v16589_v38  ;;  %3652 = vmatprep.mubr.f32.mxu1 %v16589_v38  ;;  %3723 = vmatprep.mubr.f32.mxu0 %v16589_v38  ;;  %v13050_v4 = vpop.eup %13049  ;;  %v3968_v2 = vld [vmem:[%s21403_s5 + $0x38] sm:$0xff] }
 0x6ef   : > { %v3449_v57 = vadd.f32 1.0, %v13050_v4  ;;  %v3965_v4 = vld [vmem:[%s21403_s5 + $0x20] sm:$0xff] }
 0x6f0   : > { %13051 = vrcp.f32 %v3442_v40  ;;  %v3961_v40 = vld [vmem:[%s21403_s5] sm:$0xff] }
 0x6f1   : > { %13053 = vrcp.f32 %v3449_v57  ;;  %v16753_v57 = vpack.c.bf16 %v3968_v2, %v3964_v21  ;;  %v16863_v21 = vpack.c.bf16 %v3989_v45, %v3985_v19  ;;  %v3987_v2 = vld [vmem:[%s21403_s5 + $0xd0] sm:$0xff] }
 0x6f2   : > { %v4007_v19 = vld [vmem:[%s21403_s5 + $0x170] sm:$0xff] }
 0x6fa   : > { %v13052_v12 = vpop.eup %13051 }
 0x6fb   : > { %v3453_v41 = vmul.f32 %v13052_v12, %v3452_v37  ;;  %v13054_v17 = vpop.eup %13053  ;;  %v16755_v37 = vpack.c.bf16 %v3965_v4, %v3961_v40  ;;  %v3963_v12 = vld [vmem:[%s21403_s5 + $0x10] sm:$0xff] }
 0x6fc   : > { %v3456_v36 = vsub.f32 1.0, %v13054_v17  ;;  %v3458_v8 = vmul.f32 %v13054_v17, %v16403_v27  ;;  %v16618_v27 = vpack.c.bf16 %v3761_v29, %v3758_v47  ;;  %v3974_v17 = vld [vmem:[%s21403_s5 + $0x68] sm:$0xff]  ;;  %v3971_v29 = vld [vmem:[%s21403_s5 + $0x50] sm:$0xff] }
 0x6fd   : > { %v3454_v1 = vadd.f32 %v3453_v41, %v22011_v30  ;;  %v3967_v41 = vld [vmem:[%s21403_s5 + $0x30] sm:$0xff] }
 0x6fe   : > { %v16764_v30 = vpack.c.bf16 %v3967_v41, %v3963_v12  ;;  %v3991_v40 = vld [vmem:[%s21403_s5 + $0xf0] sm:$0xff]  ;;  %v3994_v12 = vld [vmem:[%s21403_s5 + $0x108] sm:$0xff] }
 0x6ff   : > { %13055 = vtanh.f32 %v3454_v1  ;;  %v3970_v1 = vld [vmem:[%s21403_s5 + $0x48] sm:$0xff]  ;;  %v16872_v4 = vpack.c.bf16 %v3991_v40, %v3987_v2 }
 0x700   : > { %v16778_v59 = vpack.c.bf16 %v3974_v17, %v3970_v1  ;;  %v3998_v41 = vld [vmem:[%s21403_s5 + $0x128] sm:$0xff]  ;;  %v3996_v1 = vld [vmem:[%s21403_s5 + $0x118] sm:$0xff] }
 0x701   : > { %v16886_v17 = vpack.c.bf16 %v3998_v41, %v3994_v12  ;;  %v4010_v2 = vld [vmem:[%s21403_s5 + $0x188] sm:$0xff]  ;;  %v4012_v12 = vld [vmem:[%s21403_s5 + $0x198] sm:$0xff] }
 0x702   : > { %v4014_v40 = vld [vmem:[%s21403_s5 + $0x1a8] sm:$0xff] }
 0x703   : > { %v16958_v41 = vpack.c.bf16 %v4014_v40, %v4010_v2  ;;  %v4021_v2 = vld [vmem:[%s21403_s5 + $0x1e0] sm:$0xff] }
 0x709   : > { %v13056_v22 = vpop.eup %13055 }
 0x70a   : > { %v3457_v20 = vmul.f32 %v13056_v22, %v3456_v36  ;;  %v3972_v36 = vld [vmem:[%s21403_s5 + $0x58] sm:$0xff]  ;;  %v3969_v22 = vld [vmem:[%s21403_s5 + $0x40] sm:$0xff] }
 0x70c   : > { %v16606_v39 = vadd.f32 %v3458_v8, %v3457_v20  ;;  %v3973_v20 = vld [vmem:[%s21403_s5 + $0x60] sm:$0xff]  ;;  %v16789_v8 = vpack.c.bf16 %v3976_v25, %v3972_v36  ;;  %v4000_v36 = vld [vmem:[%s21403_s5 + $0x138] sm:$0xff] }
 0x70d   : > { %v16791_v47 = vpack.c.bf16 %v3973_v20, %v3969_v22  ;;  %v3993_v25 = vld [vmem:[%s21403_s5 + $0x100] sm:$0xff]  ;;  %v16897_v20 = vpack.c.bf16 %v4000_v36, %v3996_v1  ;;  %v4016_v1 = vld [vmem:[%s21403_s5 + $0x1b8] sm:$0xff] }
 0x70e   : > { %3653 = vmatmul.mubr.f32.vlgmr.msra.gmra.mrb[46].mxu1 %v16606_v39  ;;  %3724 = vmatmul.mubr.f32.vlgmr.msra.gmra.mrb[34].mxu0 %v16606_v39  ;;  %v3997_v22 = vld [vmem:[%s21403_s5 + $0x120] sm:$0xff] }
 0x70f   : > { %10990 = vmatpush1.bf16.msra.mxu0 %v16401_v52  ;;  %11021 = vmatpush3.bf16.msra.mxu1 %v16604_v11  ;;  %v16633_v52 = vpack.c.bf16 %v3767_v0, %v3764_v61  ;;  %v3975_v61 = vld [vmem:[%s21403_s5 + $0x70] sm:$0xff]  ;;  %v4009_v36 = vld [vmem:[%s21403_s5 + $0x180] sm:$0xff] }
 0x710   : > { %10992 = vmatprep.subr.bf16.mxu0 %v16405_v55  ;;  %11022 = vmatprep.subr.bf16.mxu1 %v21780_v51  ;;  %v3770_v55 = vld [vmem:[%s21401_s3 + $0xa0] sm:$0xff]  ;;  %v16800_v0 = vpack.c.bf16 %v3975_v61, %v3971_v29  ;;  %v16899_v29 = vpack.c.bf16 %v3997_v22, %v3993_v25  ;;  %v3995_v61 = vld [vmem:[%s21403_s5 + $0x110] sm:$0xff]  ;;  %v16969_v22 = vpack.c.bf16 %v4016_v1, %v4012_v12 }
 0x711   : > { %3862 = vmatprep.mubr.f32.mxu0 %v21805_v7  ;;  %9549 = vmatprep.mubr.msk.f32.mxu1 %vm13371_vm1, %v21805_v7  ;;  %v4013_v25 = vld [vmem:[%s21403_s5 + $0x1a0] sm:$0xff]  ;;  %v4019_v1 = vld [vmem:[%s21403_s5 + $0x1d0] sm:$0xff] }
 0x713   : > { %10994 = vmatpush1.bf16.msra.mxu0 %v16423_v62  ;;  %11024 = vmatpush3.bf16.msra.mxu1 %v16618_v27  ;;  %v16645_v62 = vpack.c.bf16 %v3773_v14, %v3770_v55  ;;  %v3978_v55 = vld [vmem:[%s21403_s5 + $0x88] sm:$0xff] }
 0x714   : > { %10996 = vmatprep.subr.bf16.mxu0 %v16427_v63  ;;  %11025 = vmatprep.subr.bf16.mxu1 %v21780_v51  ;;  %v3776_v63 = vld [vmem:[%s21401_s3 + $0xd0] sm:$0xff]  ;;  %v3982_v14 = vld [vmem:[%s21403_s5 + $0xa8] sm:$0xff] }
 0x717   : > { %10998 = vmatpush1.bf16.msra.mxu0 %v16446_v3  ;;  %11027 = vmatpush3.bf16.msra.mxu1 %v16633_v52  ;;  %v16657_v3 = vpack.c.bf16 %v3779_v6, %v3776_v63  ;;  %v3980_v63 = vld [vmem:[%s21403_s5 + $0x98] sm:$0xff]  ;;  %v16814_v6 = vpack.c.bf16 %v3982_v14, %v3978_v55  ;;  %v3999_v55 = vld [vmem:[%s21403_s5 + $0x130] sm:$0xff] }
 0x718   : > { %11000 = vmatprep.subr.bf16.mxu0 %v16450_v60  ;;  %11028 = vmatprep.subr.bf16.mxu1 %v21780_v51  ;;  %v3782_v60 = vld [vmem:[%s21401_s3 + $0x100] sm:$0xff]  ;;  %v16908_v14 = vpack.c.bf16 %v3999_v55, %v3995_v61  ;;  %v16971_v61 = vpack.c.bf16 %v4013_v25, %v4009_v36  ;;  %v4011_v55 = vld [vmem:[%s21403_s5 + $0x190] sm:$0xff] }
 0x719   : > { %v4023_v36 = vld [vmem:[%s21403_s5 + $0x1f0] sm:$0xff] }
 0x71a   : > { %22012 = vst [vmem:[#allocation72_spill] sm:$0xff] %v16971_v61  ;;  %v17016_v25 = vpack.c.bf16 %v4023_v36, %v4019_v1  ;;  %v4027_v36 = vld [vmem:[%s21403_s5 + $0x210] sm:$0xff] }
 0x71b   : > { %11002 = vmatpush1.bf16.msra.mxu0 %v16466_v26  ;;  %11030 = vmatpush3.bf16.msra.mxu1 %v16645_v62  ;;  %v3787_v26 = vld [vmem:[%s21401_s3 + $0x128] sm:$0xff] }
 0x71c   : > { %11004 = vmatprep.subr.bf16.mxu0 %v16470_v15  ;;  %11031 = vmatprep.subr.bf16.mxu1 %v21780_v51  ;;  %v16675_v15 = vpack.c.bf16 %v3785_v23, %v3782_v60  ;;  %v16682_v58 = vpack.c.bf16 %v3790_v32, %v3787_v26  ;;  %v3984_v60 = vld [vmem:[%s21403_s5 + $0xb8] sm:$0xff]  ;;  %v3977_v23 = vld [vmem:[%s21403_s5 + $0x80] sm:$0xff]  ;;  %22017 = vst [vmem:[#allocation12_spill] sm:$0xff] %v17016_v25 }
 0x71d   : > { %v3981_v26 = vld [vmem:[%s21403_s5 + $0xa0] sm:$0xff]  ;;  %v16825_v32 = vpack.c.bf16 %v3984_v60, %v3980_v63  ;;  %v4002_v63 = vld [vmem:[%s21403_s5 + $0x148] sm:$0xff] }
 0x71e   : > { %v16827_v5 = vpack.c.bf16 %v3981_v26, %v3977_v23  ;;  %v4006_v60 = vld [vmem:[%s21403_s5 + $0x168] sm:$0xff]  ;;  %v4004_v23 = vld [vmem:[%s21403_s5 + $0x158] sm:$0xff] }
 0x71f   : > { %11006 = vmatpush1.bf16.msra.mxu0 %v16486_v18  ;;  %11033 = vmatpush3.bf16.msra.mxu1 %v16657_v3  ;;  %v3788_v18 = vld [vmem:[%s21401_s3 + $0x130] sm:$0xff]  ;;  %v16922_v26 = vpack.c.bf16 %v4006_v60, %v4002_v63 }
 0x720   : > { %11008 = vmatprep.subr.bf16.mxu0 %v16490_v16  ;;  %11034 = vmatprep.subr.bf16.mxu1 %v21780_v51  ;;  %v3793_v16 = vld [vmem:[%s21401_s3 + $0x158] sm:$0xff]  ;;  %v16703_v49 = vpack.c.bf16 %v3791_v42, %v3788_v18  ;;  %v3983_v18 = vld [vmem:[%s21403_s5 + $0xb0] sm:$0xff] }
 0x721   : > { %v16710_v48 = vpack.c.bf16 %v3796_v28, %v3793_v16  ;;  %v16836_v42 = vpack.c.bf16 %v3983_v18, %v3979_v13  ;;  %v3986_v16 = vld [vmem:[%s21403_s5 + $0xc8] sm:$0xff]  ;;  %v4008_v13 = vld [vmem:[%s21403_s5 + $0x178] sm:$0xff]  ;;  %v4001_v18 = vld [vmem:[%s21403_s5 + $0x140] sm:$0xff] }
 0x722   : > { %v3990_v28 = vld [vmem:[%s21403_s5 + $0xe8] sm:$0xff]  ;;  %v4015_v63 = vld [vmem:[%s21403_s5 + $0x1b0] sm:$0xff] }
 0x723   : > { %11010 = vmatpush1.bf16.msra.mxu0 %v16500_v31  ;;  %11036 = vmatpush3.bf16.msra.mxu1 %v16675_v15  ;;  %v3795_v31 = vld [vmem:[%s21401_s3 + $0x168] sm:$0xff]  ;;  %v16980_v60 = vpack.c.bf16 %v4015_v63, %v4011_v55 }
 0x724   : > { %11012 = vmatprep.subr.bf16.mxu0 %v16682_v58  ;;  %11037 = vmatprep.subr.bf16.mxu1 %v21780_v51  ;;  %v16723_v56 = vpack.c.bf16 %v3795_v31, %v3792_v43  ;;  %v3988_v43 = vld [vmem:[%s21403_s5 + $0xd8] sm:$0xff]  ;;  %v16850_v31 = vpack.c.bf16 %v3990_v28, %v3986_v16  ;;  %v4005_v16 = vld [vmem:[%s21403_s5 + $0x160] sm:$0xff]  ;;  %v16933_v28 = vpack.c.bf16 %v4008_v13, %v4004_v23  ;;  %v4018_v23 = vld [vmem:[%s21403_s5 + $0x1c8] sm:$0xff] }
 0x725   : > { %v16861_v10 = vpack.c.bf16 %v3992_v34, %v3988_v43  ;;  %v16935_v43 = vpack.c.bf16 %v4005_v16, %v4001_v18  ;;  %v4003_v34 = vld [vmem:[%s21403_s5 + $0x150] sm:$0xff]  ;;  %22013 = vst [vmem:[#allocation54_spill] sm:$0xff] %v16980_v60  ;;  %v4022_v13 = vld [vmem:[%s21403_s5 + $0x1e8] sm:$0xff]  ;;  %v4020_v18 = vld [vmem:[%s21403_s5 + $0x1d8] sm:$0xff] }
 0x726   : > { %v16944_v45 = vpack.c.bf16 %v4007_v19, %v4003_v34  ;;  %v16994_v16 = vpack.c.bf16 %v4022_v13, %v4018_v23  ;;  %v4024_v34 = vld [vmem:[%s21403_s5 + $0x1f8] sm:$0xff]  ;;  %v4017_v19 = vld [vmem:[%s21403_s5 + $0x1c0] sm:$0xff]  ;;  %v4026_v55 = vld [vmem:[%s21403_s5 + $0x208] sm:$0xff] }
 0x727   : > { %11014 = vmatpush1.bf16.msra.mxu0 %v16701_v33  ;;  %11039 = vmatpush3.bf16.msra.mxu1 %v16703_v49  ;;  %v17005_v40 = vpack.c.bf16 %v4024_v34, %v4020_v18  ;;  %v17007_v12 = vpack.c.bf16 %v4021_v2, %v4017_v19  ;;  %v4030_v63 = vld [vmem:[%s21403_s5 + $0x228] sm:$0xff]  ;;  %v4028_v23 = vld [vmem:[%s21403_s5 + $0x218] sm:$0xff]  ;;  %v4025_v34 = vld [vmem:[%s21403_s5 + $0x200] sm:$0xff] }
 0x728   : > { %11016 = vmatprep.subr.bf16.mxu0 %v16710_v48  ;;  %11040 = vmatprep.subr.bf16.mxu1 %v21780_v51  ;;  %22014 = vst [vmem:[#allocation57_spill] sm:$0xff] %v16994_v16  ;;  %v17030_v13 = vpack.c.bf16 %v4030_v63, %v4026_v55  ;;  %v4032_v18 = vld [vmem:[%s21403_s5 + $0x238] sm:$0xff]  ;;  %v4029_v19 = vld [vmem:[%s21403_s5 + $0x220] sm:$0xff]  ;;  %v4031_v55 = vld [vmem:[%s21403_s5 + $0x230] sm:$0xff] }
 0x729   : > { %22015 = vst [vmem:[#allocation55_spill] sm:$0xff] %v17005_v40  ;;  %22016 = vst [vmem:[#allocation11_spill] sm:$0xff] %v17007_v12  ;;  %v17041_v2 = vpack.c.bf16 %v4032_v18, %v4028_v23  ;;  %v17043_v1 = vpack.c.bf16 %v4029_v19, %v4025_v34  ;;  %v17052_v63 = vpack.c.bf16 %v4031_v55, %v4027_v36  ;;  %v4034_v23 = vld [vmem:[%s21403_s5 + $0x248] sm:$0xff]  ;;  %v4036_v34 = vld [vmem:[%s21403_s5 + $0x258] sm:$0xff] }
 0x72a   : > { %22018 = vst [vmem:[#allocation13_spill] sm:$0xff] %v17030_v13  ;;  %v4038_v18 = vld [vmem:[%s21403_s5 + $0x268] sm:$0xff]  ;;  %v4040_v36 = vld [vmem:[%s21403_s5 + $0x278] sm:$0xff]  ;;  %v4033_v55 = vld [vmem:[%s21403_s5 + $0x240] sm:$0xff] }
 0x72b   : > { %11018 = vmatpush1.bf16.msra.mxu0 %v16723_v56  ;;  %11042 = vmatpush3.bf16.msra.mxu1 %v16725_v44  ;;  %22019 = vst [vmem:[#allocation14_spill] sm:$0xff] %v17041_v2  ;;  %22020 = vst [vmem:[#allocation15_spill] sm:$0xff] %v17043_v1  ;;  %v17066_v19 = vpack.c.bf16 %v4038_v18, %v4034_v23  ;;  %v4035_v23 = vld [vmem:[%s21403_s5 + $0x250] sm:$0xff] }
 0x72c   : > { %11044 = vmatprep.subr.bf16.mxu1 %v16742_v9  ;;  %11108 = vmatprep.subr.bf16.mxu0 %v16753_v57  ;;  %22021 = vst [vmem:[#allocation16_spill] sm:$0xff] %v17052_v63  ;;  %v4039_v18 = vld [vmem:[%s21403_s5 + $0x270] sm:$0xff] }
 0x72d   : > { %22022 = vst [vmem:[#allocation17_spill] sm:$0xff] %v17066_v19 }
 0x72e   : > { %3863 = vmatmul.mubr.f32.vlgmr.msra.gmra.mrb[12].mxu0 %v16606_v39  ;;  %9550 = vmatmul.mubr.f32.vlgmr.msra.gmra.mrb[48].mxu1 %v16606_v39 }
 0x72f   : > { %11046 = vmatpush1.bf16.msra.mxu1 %v16755_v37  ;;  %11110 = vmatpush1.bf16.msra.mxu0 %v16764_v30 }
 0x730   : > { %11048 = vmatprep.subr.bf16.mxu1 %v16778_v59  ;;  %11112 = vmatprep.subr.bf16.mxu0 %v16789_v8 }
 0x733   : > { %11050 = vmatpush1.bf16.msra.mxu1 %v16791_v47  ;;  %11114 = vmatpush1.bf16.msra.mxu0 %v16800_v0 }
 0x734   : > { %11052 = vmatprep.subr.bf16.mxu1 %v16814_v6  ;;  %11116 = vmatprep.subr.bf16.mxu0 %v16825_v32 }
 0x737   : > { %11054 = vmatpush1.bf16.msra.mxu1 %v16827_v5  ;;  %11118 = vmatpush1.bf16.msra.mxu0 %v16836_v42 }
 0x738   : > { %11056 = vmatprep.subr.bf16.mxu1 %v16850_v31  ;;  %11120 = vmatprep.subr.bf16.mxu0 %v16861_v10 }
 0x73b   : > { %11058 = vmatpush1.bf16.msra.mxu1 %v16863_v21  ;;  %11122 = vmatpush1.bf16.msra.mxu0 %v16872_v4 }
 0x73c   : > { %11060 = vmatprep.subr.bf16.mxu1 %v16886_v17  ;;  %11124 = vmatprep.subr.bf16.mxu0 %v16897_v20 }
 0x73f   : > { %11062 = vmatpush1.bf16.msra.mxu1 %v16899_v29  ;;  %11126 = vmatpush1.bf16.msra.mxu0 %v16908_v14 }
 0x740   : > { %11064 = vmatprep.subr.bf16.mxu1 %v16922_v26  ;;  %11128 = vmatprep.subr.bf16.mxu0 %v16933_v28 }
 0x743   : > { %11066 = vmatpush1.bf16.msra.mxu1 %v16935_v43  ;;  %11130 = vmatpush1.bf16.msra.mxu0 %v16944_v45 }
 0x744   : > { %11068 = vmatprep.subr.bf16.mxu1 %v16958_v41  ;;  %11132 = vmatprep.subr.bf16.mxu0 %v16969_v22 }
 0x747   : > { %11070 = vmatpush1.bf16.msra.mxu1 %v16971_v61  ;;  %11134 = vmatpush1.bf16.msra.mxu0 %v16980_v60 }
 0x748   : > { %11072 = vmatprep.subr.bf16.mxu1 %v16994_v16  ;;  %11136 = vmatprep.subr.bf16.mxu0 %v17005_v40 }
 0x74b   : > { %11074 = vmatpush1.bf16.msra.mxu1 %v17007_v12  ;;  %11138 = vmatpush1.bf16.msra.mxu0 %v17016_v25  ;;  %v4075_v12 = vld [vmem:[%s21403_s5 + $0x390] sm:$0xff] }
 0x74c   : > { %11076 = vmatprep.subr.bf16.mxu1 %v17030_v13  ;;  %11140 = vmatprep.subr.bf16.mxu0 %v17041_v2  ;;  %v17077_v2 = vpack.c.bf16 %v4040_v36, %v4036_v34  ;;  %v4046_v34 = vld [vmem:[%s21403_s5 + $0x2a8] sm:$0xff]  ;;  %v4044_v36 = vld [vmem:[%s21403_s5 + $0x298] sm:$0xff] }
 0x74e   : > { %22023 = vst [vmem:[#allocation18_spill] sm:$0xff] %v17077_v2 }
 0x74f   : > { %11078 = vmatpush1.bf16.msra.mxu1 %v17043_v1  ;;  %11142 = vmatpush1.bf16.msra.mxu0 %v17052_v63  ;;  %v4037_v1 = vld [vmem:[%s21403_s5 + $0x260] sm:$0xff]  ;;  %v17088_v63 = vpack.c.bf16 %v4039_v18, %v4035_v23  ;;  %v4048_v23 = vld [vmem:[%s21403_s5 + $0x2b8] sm:$0xff] }
 0x750   : > { %v17079_v13 = vpack.c.bf16 %v4037_v1, %v4033_v55  ;;  %11080 = vmatprep.subr.bf16.mxu1 %v17066_v19  ;;  %11144 = vmatprep.subr.bf16.mxu0 %v17077_v2  ;;  %v4042_v1 = vld [vmem:[%s21403_s5 + $0x288] sm:$0xff]  ;;  %v4041_v18 = vld [vmem:[%s21403_s5 + $0x280] sm:$0xff]  ;;  %v17113_v2 = vpack.c.bf16 %v4048_v23, %v4044_v36  ;;  %v4052_v23 = vld [vmem:[%s21403_s5 + $0x2d8] sm:$0xff] }
 0x751   : > { %22025 = vst [vmem:[#allocation20_spill] sm:$0xff] %v17088_v63  ;;  %v17102_v55 = vpack.c.bf16 %v4046_v34, %v4042_v1  ;;  %v4043_v1 = vld [vmem:[%s21403_s5 + $0x290] sm:$0xff]  ;;  %v4054_v36 = vld [vmem:[%s21403_s5 + $0x2e8] sm:$0xff] }
 0x752   : > { %22024 = vst [vmem:[#allocation19_spill] sm:$0xff] %v17079_v13  ;;  %22027 = vst [vmem:[#allocation22_spill] sm:$0xff] %v17113_v2  ;;  %v4047_v34 = vld [vmem:[%s21403_s5 + $0x2b0] sm:$0xff] }
 0x753   : > { %11082 = vmatpush1.bf16.msra.mxu1 %v17079_v13  ;;  %11146 = vmatpush1.bf16.msra.mxu0 %v17088_v63  ;;  %22026 = vst [vmem:[#allocation21_spill] sm:$0xff] %v17102_v55  ;;  %v4045_v13 = vld [vmem:[%s21403_s5 + $0x2a0] sm:$0xff]  ;;  %v17124_v63 = vpack.c.bf16 %v4047_v34, %v4043_v1  ;;  %v4056_v1 = vld [vmem:[%s21403_s5 + $0x2f8] sm:$0xff] }
 0x754   : > { %v17115_v19 = vpack.c.bf16 %v4045_v13, %v4041_v18  ;;  %11084 = vmatprep.subr.bf16.mxu1 %v17102_v55  ;;  %11148 = vmatprep.subr.bf16.mxu0 %v17113_v2  ;;  %v4050_v13 = vld [vmem:[%s21403_s5 + $0x2c8] sm:$0xff]  ;;  %v4049_v34 = vld [vmem:[%s21403_s5 + $0x2c0] sm:$0xff]  ;;  %v17149_v2 = vpack.c.bf16 %v4056_v1, %v4052_v23  ;;  %v4060_v1 = vld [vmem:[%s21403_s5 + $0x318] sm:$0xff] }
 0x755   : > { %22029 = vst [vmem:[#allocation24_spill] sm:$0xff] %v17124_v63  ;;  %v17138_v18 = vpack.c.bf16 %v4054_v36, %v4050_v13  ;;  %v4051_v13 = vld [vmem:[%s21403_s5 + $0x2d0] sm:$0xff]  ;;  %v4062_v23 = vld [vmem:[%s21403_s5 + $0x328] sm:$0xff] }
 0x756   : > { %22028 = vst [vmem:[#allocation23_spill] sm:$0xff] %v17115_v19  ;;  %22031 = vst [vmem:[#allocation26_spill] sm:$0xff] %v17149_v2  ;;  %v4055_v36 = vld [vmem:[%s21403_s5 + $0x2f0] sm:$0xff] }
 0x757   : > { %11086 = vmatpush1.bf16.msra.mxu1 %v17115_v19  ;;  %11150 = vmatpush1.bf16.msra.mxu0 %v17124_v63  ;;  %22030 = vst [vmem:[#allocation25_spill] sm:$0xff] %v17138_v18  ;;  %v4053_v19 = vld [vmem:[%s21403_s5 + $0x2e0] sm:$0xff]  ;;  %v17160_v63 = vpack.c.bf16 %v4055_v36, %v4051_v13  ;;  %v4064_v13 = vld [vmem:[%s21403_s5 + $0x338] sm:$0xff] }
 0x758   : > { %v17151_v55 = vpack.c.bf16 %v4053_v19, %v4049_v34  ;;  %11088 = vmatprep.subr.bf16.mxu1 %v17138_v18  ;;  %11152 = vmatprep.subr.bf16.mxu0 %v17149_v2  ;;  %v4058_v19 = vld [vmem:[%s21403_s5 + $0x308] sm:$0xff]  ;;  %v4057_v36 = vld [vmem:[%s21403_s5 + $0x300] sm:$0xff]  ;;  %v17185_v2 = vpack.c.bf16 %v4064_v13, %v4060_v1  ;;  %v4068_v13 = vld [vmem:[%s21403_s5 + $0x358] sm:$0xff] }
 0x759   : > { %22033 = vst [vmem:[#allocation28_spill] sm:$0xff] %v17160_v63  ;;  %v17174_v34 = vpack.c.bf16 %v4062_v23, %v4058_v19  ;;  %v4059_v19 = vld [vmem:[%s21403_s5 + $0x310] sm:$0xff]  ;;  %v4070_v1 = vld [vmem:[%s21403_s5 + $0x368] sm:$0xff] }
 0x75a   : > { %22032 = vst [vmem:[#allocation27_spill] sm:$0xff] %v17151_v55  ;;  %22035 = vst [vmem:[#allocation30_spill] sm:$0xff] %v17185_v2  ;;  %v4063_v23 = vld [vmem:[%s21403_s5 + $0x330] sm:$0xff] }
 0x75b   : > { %11090 = vmatpush1.bf16.msra.mxu1 %v17151_v55  ;;  %11154 = vmatpush1.bf16.msra.mxu0 %v17160_v63  ;;  %22034 = vst [vmem:[#allocation29_spill] sm:$0xff] %v17174_v34  ;;  %v4061_v55 = vld [vmem:[%s21403_s5 + $0x320] sm:$0xff]  ;;  %v17196_v63 = vpack.c.bf16 %v4063_v23, %v4059_v19  ;;  %v4072_v19 = vld [vmem:[%s21403_s5 + $0x378] sm:$0xff] }
 0x75c   : > { %v17187_v18 = vpack.c.bf16 %v4061_v55, %v4057_v36  ;;  %11092 = vmatprep.subr.bf16.mxu1 %v17174_v34  ;;  %11156 = vmatprep.subr.bf16.mxu0 %v17185_v2  ;;  %v4066_v55 = vld [vmem:[%s21403_s5 + $0x348] sm:$0xff]  ;;  %v4065_v23 = vld [vmem:[%s21403_s5 + $0x340] sm:$0xff]  ;;  %v17221_v2 = vpack.c.bf16 %v4072_v19, %v4068_v13  ;;  %v4076_v13 = vld [vmem:[%s21403_s5 + $0x398] sm:$0xff] }
 0x75d   : > { %22037 = vst [vmem:[#allocation32_spill] sm:$0xff] %v17196_v63  ;;  %v17210_v36 = vpack.c.bf16 %v4070_v1, %v4066_v55  ;;  %v4067_v55 = vld [vmem:[%s21403_s5 + $0x350] sm:$0xff]  ;;  %v4080_v19 = vld [vmem:[%s21403_s5 + $0x3b8] sm:$0xff] }
 0x75e   : > { %22036 = vst [vmem:[#allocation31_spill] sm:$0xff] %v17187_v18  ;;  %22039 = vst [vmem:[#allocation34_spill] sm:$0xff] %v17221_v2  ;;  %v4071_v1 = vld [vmem:[%s21403_s5 + $0x370] sm:$0xff] }
 0x75f   : > { %11094 = vmatpush1.bf16.msra.mxu1 %v17187_v18  ;;  %11158 = vmatpush1.bf16.msra.mxu0 %v17196_v63  ;;  %22038 = vst [vmem:[#allocation33_spill] sm:$0xff] %v17210_v36  ;;  %v4069_v18 = vld [vmem:[%s21403_s5 + $0x360] sm:$0xff]  ;;  %v4074_v63 = vld [vmem:[%s21403_s5 + $0x388] sm:$0xff]  ;;  %v17235_v25 = vpack.c.bf16 %v4071_v1, %v4067_v55  ;;  %v17250_v55 = vpack.c.bf16 %v4080_v19, %v4076_v13 }
 0x760   : > { %v17223_v34 = vpack.c.bf16 %v4069_v18, %v4065_v23  ;;  %11096 = vmatprep.subr.bf16.mxu1 %v17210_v36  ;;  %v4078_v18 = vld [vmem:[%s21403_s5 + $0x3a8] sm:$0xff]  ;;  %11160 = vmatprep.subr.bf16.mxu0 %v17221_v2  ;;  %v4073_v1 = vld [vmem:[%s21403_s5 + $0x380] sm:$0xff] }
 0x761   : > { %22041 = vst [vmem:[#allocation36_spill] sm:$0xff] %v17235_v25  ;;  %v17248_v23 = vpack.c.bf16 %v4078_v18, %v4074_v63  ;;  %22043 = vst [vmem:[#allocation38_spill] sm:$0xff] %v17250_v55  ;;  %v4077_v36 = vld [vmem:[%s21403_s5 + $0x3a0] sm:$0xff]  ;;  %v4079_v63 = vld [vmem:[%s21403_s5 + $0x3b0] sm:$0xff] }
 0x762   : > { %22040 = vst [vmem:[#allocation35_spill] sm:$0xff] %v17223_v34  ;;  %v17262_v2 = vpack.c.bf16 %v4077_v36, %v4073_v1  ;;  %v4082_v18 = vld [vmem:[%s21403_s5 + $0x3c8] sm:$0xff]  ;;  %v17275_v19 = vpack.c.bf16 %v4079_v63, %v4075_v12  ;;  %v4084_v1 = vld [vmem:[%s21403_s5 + $0x3d8] sm:$0xff]  ;;  %v4085_v12 = vld [vmem:[%s21403_s5 + $0x3e0] sm:$0xff] }
 0x763   : > { %11098 = vmatpush1.bf16.msra.mxu1 %v17223_v34  ;;  %22042 = vst [vmem:[#allocation37_spill] sm:$0xff] %v17248_v23  ;;  %11162 = vmatpush1.bf16.msra.mxu0 %v17235_v25  ;;  %v4086_v13 = vld [vmem:[%s21403_s5 + $0x3e8] sm:$0xff]  ;;  %v4088_v25 = vld [vmem:[%s21403_s5 + $0x3f8] sm:$0xff]  ;;  %v4081_v34 = vld [vmem:[%s21403_s5 + $0x3c0] sm:$0xff] }
 0x764   : > { %22044 = vst [vmem:[#allocation39_spill] sm:$0xff] %v17262_v2  ;;  %11100 = vmatprep.subr.bf16.mxu1 %v17248_v23  ;;  %11164 = vmatprep.subr.bf16.mxu0 %v17250_v55  ;;  %22045 = vst [vmem:[#allocation40_spill] sm:$0xff] %v17275_v19  ;;  %v17277_v36 = vpack.c.bf16 %v4086_v13, %v4082_v18  ;;  %v17288_v40 = vpack.c.bf16 %v4088_v25, %v4084_v1  ;;  %v4083_v63 = vld [vmem:[%s21403_s5 + $0x3d0] sm:$0xff]  ;;  %v4252_v25 = vld [vmem:[%s21401_s3 + $0x8] sm:$0xff] }
 0x765   : > { %v4087_v18 = vld [vmem:[%s21403_s5 + $0x3f0] sm:$0xff]  ;;  %v17300_v13 = vpack.c.bf16 %v4085_v12, %v4081_v34  ;;  %v4255_v1 = vld [vmem:[%s21401_s3 + $0x20] sm:$0xff] }
 0x766   : > { %22046 = vst [vmem:[#allocation41_spill] sm:$0xff] %v17277_v36  ;;  %22047 = vst [vmem:[#allocation43_spill] sm:$0xff] %v17288_v40  ;;  %v17310_v55 = vpack.c.bf16 %v4087_v18, %v4083_v63  ;;  %v17313_v23 = vpack.c.bf16 %v4255_v1, %v4252_v25 }
 0x767   : > { %11102 = vmatpush1.bf16.msra.mxu1 %v17262_v2  ;;  %22048 = vst [vmem:[#allocation44_spill] sm:$0xff] %v17300_v13  ;;  %11166 = vmatpush1.bf16.msra.mxu0 %v17275_v19 }
 0x768   : > { %11104 = vmatprep.subr.bf16.mxu1 %v17277_v36  ;;  %22049 = vst [vmem:[#allocation42_spill] sm:$0xff] %v17310_v55  ;;  %11168 = vmatprep.subr.bf16.mxu0 %v17288_v40  ;;  %22050 = vst [vmem:[#allocation53_spill] sm:$0xff] %v17313_v23 }
 0x76b   : > { %11106 = vmatpush1.bf16.msra.mxu1 %v17300_v13  ;;  %11170 = vmatpush1.bf16.msra.mxu0 %v17310_v55 }
 0x76c   : > { %11203 = vmatprep.subr.bf16.mxu1 %v21780_v51  ;;  %11172 = vmatprep.subr.bf16.mxu0 %v17313_v23 }
 0x7e1   : > { %v3654_v34 = vpop.f32.mrb[46].mxu1  ;;  %v3725_v12 = vpop.f32.mrb[34].mxu0 }
 0x7e2   : > { %v3655_v19 = vadd.f32 %v3654_v34, %v22009_v35  ;;  %v3656_v2 = vpop.f32.mrb[47].mxu1  ;;  %v3727_v36 = vpop.f32.mrb[35].mxu0  ;;  %v3726_v60 = vadd.f32 %v3725_v12, %v14680_v54 }
 0x7e3   : > { %v3657_v18 = vadd.f32 %v3656_v2, %v14671_v24  ;;  %v3728_v16 = vadd.f32 %v3727_v36, %v22010_v50 }
 0x7e4   : > { %v8932_v63 = vmul.f32 -1.442695, %v3655_v19 }
 0x7e5   : > { %v8933_v25 = vmul.f32 -1.442695, %v3657_v18 }
 0x7e6   : > { %13057 = vpow2.f32 %v8932_v63 }
 0x7e7   : > { %13059 = vpow2.f32 %v8933_v25 }
 0x7f0   : > { %v13058_v1 = vpop.eup %13057 }
 0x7f1   : > { %v3733_v13 = vadd.f32 1.0, %v13058_v1  ;;  %v13060_v55 = vpop.eup %13059 }
 0x7f2   : > { %v3739_v40 = vadd.f32 1.0, %v13060_v55 }
 0x7f3   : > { %13061 = vrcp.f32 %v3733_v13 }
 0x7f4   : > { %13063 = vrcp.f32 %v3739_v40 }
 0x7fd   : > { %v13062_v23 = vpop.eup %13061 }
 0x7fe   : > { %v3742_v34 = vmul.f32 %v13062_v23, %v3728_v16  ;;  %v13064_v55 = vpop.eup %13063 }
 0x7ff   : > { %v3745_v1 = vsub.f32 1.0, %v13064_v55 }
 0x800   : > { %v3743_v35 = vadd.f32 %v3742_v34, %v3726_v60  ;;  %v3747_v60 = vmul.f32 %v13064_v55, %v16589_v38  ;;  %v17335_v34 = vld [vmem:[%s21402_s4] ss:$0 sm:$0xff] }
 0x801   : > { %v3864_v61 = vpop.f32.mrb[12].mxu0  ;;  %v3935_v19 = vpop.f32.mrb[48].mxu1  ;;  %v4251_v55 = vld [vmem:[%s21401_s3] sm:$0xff] }
 0x802   : > { %13065 = vtanh.f32 %v3743_v35  ;;  %v12843_v2 = vadd.f32 %v3864_v61, %v14450_v53  ;;  %v3866_v63 = vpop.f32.mrb[13].mxu0  ;;  %v9551_v18 = vpop.f32.mrb[49].mxu1 }
 0x803   : > { %v12844_v13 = vadd.f32 %v3866_v63, %v14459_v46  ;;  %v22051_v63 = vld [vmem:[#allocation59_spill] sm:$0xff] }
 0x804   : > { %v8934_v25 = vmul.f32 -1.442695, %v12843_v2 }
 0x805   : > { %v8935_v36 = vmul.f32 -1.442695, %v12844_v13 }
 0x806   : > { %13067 = vpow2.f32 %v8934_v25 }
 0x807   : > { %13069 = vpow2.f32 %v8935_v36  ;;  %v4254_v36 = vld [vmem:[%s21401_s3 + $0x18] sm:$0xff] }
 0x80c   : > { %v13066_v50 = vpop.eup %13065 }
 0x80d   : > { %v3746_v40 = vmul.f32 %v13066_v50, %v3745_v1  ;;  %v3953_v50 = vadd.f32 %v17335_v34, %v3935_v19  ;;  %v4258_v19 = vld [vmem:[%s21401_s3 + $0x38] sm:$0xff] }
 0x80f   : > { %v17326_v16 = vadd.f32 %v3747_v60, %v3746_v40  ;;  %v4261_v40 = vld [vmem:[%s21401_s3 + $0x50] sm:$0xff] }
 0x810   : > { %v13068_v35 = vpop.eup %13067 }
 0x811   : > { %v3943_v23 = vadd.f32 1.0, %v13068_v35  ;;  %3749 = vst [vmem:[%s13480_s24 + $0x28] sm:$0xff] %v17326_v16  ;;  %4153 = vmatprep.mubr.f32.mxu1 %v17326_v16  ;;  %4224 = vmatprep.mubr.f32.mxu0 %v17326_v16  ;;  %v13070_v61 = vpop.eup %13069 }
 0x812   : > { %v3950_v12 = vadd.f32 1.0, %v13070_v61 }
 0x813   : > { %13071 = vrcp.f32 %v3943_v23  ;;  %v17352_v23 = vpack.c.bf16 %v4254_v36, %v4251_v55  ;;  %v4273_v55 = vld [vmem:[%s21401_s3 + $0xb0] sm:$0xff] }
 0x814   : > { %13073 = vrcp.f32 %v3950_v12  ;;  %v17356_v12 = vpack.c.bf16 %v4261_v40, %v4258_v19  ;;  %v4269_v19 = vld [vmem:[%s21401_s3 + $0x90] sm:$0xff]  ;;  %v4272_v40 = vld [vmem:[%s21401_s3 + $0xa8] sm:$0xff] }
 0x81d   : > { %v13072_v38 = vpop.eup %13071 }
 0x81e   : > { %v3954_v2 = vmul.f32 %v13072_v38, %v3953_v50  ;;  %v13074_v25 = vpop.eup %13073  ;;  %v4257_v50 = vld [vmem:[%s21401_s3 + $0x30] sm:$0xff]  ;;  %v4260_v38 = vld [vmem:[%s21401_s3 + $0x48] sm:$0xff] }
 0x81f   : > { %v3957_v13 = vsub.f32 1.0, %v13074_v25  ;;  %v3959_v35 = vmul.f32 %v13074_v25, %v16606_v39  ;;  %v4267_v39 = vld [vmem:[%s21401_s3 + $0x80] sm:$0xff] }
 0x820   : > { %v3955_v18 = vadd.f32 %v3954_v2, %v22051_v63  ;;  %v4264_v2 = vld [vmem:[%s21401_s3 + $0x68] sm:$0xff]  ;;  %v17374_v63 = vpack.c.bf16 %v4260_v38, %v4257_v50  ;;  %v4263_v25 = vld [vmem:[%s21401_s3 + $0x60] sm:$0xff] }
 0x821   : > { %v4275_v38 = vld [vmem:[%s21401_s3 + $0xc0] sm:$0xff] }
 0x822   : > { %13075 = vtanh.f32 %v3955_v18  ;;  %v17378_v18 = vpack.c.bf16 %v4267_v39, %v4264_v2  ;;  %v4278_v2 = vld [vmem:[%s21401_s3 + $0xd8] sm:$0xff]  ;;  %v4285_v39 = vld [vmem:[%s21401_s3 + $0x110] sm:$0xff] }
 0x82c   : > { %v13076_v1 = vpop.eup %13075 }
 0x82d   : > { %v3958_v60 = vmul.f32 %v13076_v1, %v3957_v13  ;;  %v4266_v13 = vld [vmem:[%s21401_s3 + $0x78] sm:$0xff] }
 0x82e   : > { %v17397_v36 = vpack.c.bf16 %v4266_v13, %v4263_v25  ;;  %v17437_v25 = vpack.c.bf16 %v4278_v2, %v4275_v38  ;;  %v22090_v38 = vld [vmem:[#allocation53_spill] sm:$0xff] }
 0x82f   : > { %v17354_v61 = vadd.f32 %v3959_v35, %v3958_v60  ;;  %v4279_v60 = vld [vmem:[%s21401_s3 + $0xe0] sm:$0xff]  ;;  %v17417_v35 = vpack.c.bf16 %v4272_v40, %v4269_v19  ;;  %v22087_v40 = vld [vmem:[#allocation43_spill] sm:$0xff] }
 0x830   : > { %v22086_v19 = vld [vmem:[#allocation41_spill] sm:$0xff] }
 0x831   : > { %4154 = vmatmul.mubr.f32.vlgmr.msra.gmra.mrb[50].mxu1 %v17354_v61  ;;  %4225 = vmatmul.mubr.f32.vlgmr.msra.gmra.mrb[36].mxu0 %v17354_v61 }
 0x832   : > { %11174 = vmatpush1.bf16.msra.mxu0 %v17352_v23  ;;  %11205 = vmatpush3.bf16.msra.mxu1 %v16604_v11  ;;  %v4270_v11 = vld [vmem:[%s21401_s3 + $0x98] sm:$0xff] }
 0x833   : > { %11176 = vmatprep.subr.bf16.mxu0 %v17356_v12  ;;  %11206 = vmatprep.subr.bf16.mxu1 %v21780_v51  ;;  %v17401_v1 = vpack.c.bf16 %v4273_v55, %v4270_v11  ;;  %v4281_v11 = vld [vmem:[%s21401_s3 + $0xf0] sm:$0xff]  ;;  %v4284_v55 = vld [vmem:[%s21401_s3 + $0x108] sm:$0xff] }
 0x834   : > { %4363 = vmatprep.mubr.f32.mxu0 %v21805_v7  ;;  %9584 = vmatprep.mubr.msk.f32.mxu1 %vm13371_vm1, %v21805_v7 }
 0x836   : > { %11178 = vmatpush1.bf16.msra.mxu0 %v17374_v63  ;;  %11208 = vmatpush3.bf16.msra.mxu1 %v16618_v27  ;;  %v4276_v27 = vld [vmem:[%s21401_s3 + $0xc8] sm:$0xff] }
 0x837   : > { %11180 = vmatprep.subr.bf16.mxu0 %v17378_v18  ;;  %11209 = vmatprep.subr.bf16.mxu1 %v21780_v51  ;;  %v17421_v50 = vpack.c.bf16 %v4279_v60, %v4276_v27  ;;  %v22088_v27 = vld [vmem:[#allocation44_spill] sm:$0xff]  ;;  %v22089_v60 = vld [vmem:[#allocation42_spill] sm:$0xff] }
 0x83a   : > { %11182 = vmatpush1.bf16.msra.mxu0 %v17397_v36  ;;  %11211 = vmatpush3.bf16.msra.mxu1 %v16633_v52  ;;  %v4282_v52 = vld [vmem:[%s21401_s3 + $0xf8] sm:$0xff] }
 0x83b   : > { %11184 = vmatprep.subr.bf16.mxu0 %v17401_v1  ;;  %11212 = vmatprep.subr.bf16.mxu1 %v21780_v51  ;;  %v17441_v13 = vpack.c.bf16 %v4285_v39, %v4282_v52  ;;  %v22091_v39 = vld [vmem:[#allocation9_spill] sm:$0xff] }
 0x83e   : > { %11186 = vmatpush1.bf16.msra.mxu0 %v17417_v35  ;;  %11214 = vmatpush3.bf16.msra.mxu1 %v16645_v62  ;;  %v17451_v62 = vpack.c.bf16 %v4284_v55, %v4281_v11 }
 0x83f   : > { %11188 = vmatprep.subr.bf16.mxu0 %v17421_v50  ;;  %11215 = vmatprep.subr.bf16.mxu1 %v21780_v51 }
 0x842   : > { %11190 = vmatpush1.bf16.msra.mxu0 %v17437_v25  ;;  %11217 = vmatpush3.bf16.msra.mxu1 %v16657_v3  ;;  %v22052_v3 = vld [vmem:[#allocation72_spill] sm:$0xff] }
 0x843   : > { %11192 = vmatprep.subr.bf16.mxu0 %v17441_v13  ;;  %11218 = vmatprep.subr.bf16.mxu1 %v21780_v51 }
 0x846   : > { %11194 = vmatpush1.bf16.msra.mxu0 %v17451_v62  ;;  %11220 = vmatpush3.bf16.msra.mxu1 %v16675_v15  ;;  %v22053_v15 = vld [vmem:[#allocation54_spill] sm:$0xff] }
 0x847   : > { %11196 = vmatprep.subr.bf16.mxu0 %v16682_v58  ;;  %11221 = vmatprep.subr.bf16.mxu1 %v21780_v51  ;;  %v22054_v58 = vld [vmem:[#allocation57_spill] sm:$0xff] }
 0x84a   : > { %11198 = vmatpush1.bf16.msra.mxu0 %v16701_v33  ;;  %11223 = vmatpush3.bf16.msra.mxu1 %v16703_v49  ;;  %v22055_v33 = vld [vmem:[#allocation55_spill] sm:$0xff] }
 0x84b   : > { %11200 = vmatprep.subr.bf16.mxu0 %v16710_v48  ;;  %11224 = vmatprep.subr.bf16.mxu1 %v21780_v51  ;;  %v22056_v49 = vld [vmem:[#allocation11_spill] sm:$0xff]  ;;  %v22057_v48 = vld [vmem:[#allocation12_spill] sm:$0xff] }
 0x84e   : > { %11202 = vmatpush1.bf16.msra.mxu0 %v16723_v56  ;;  %11226 = vmatpush3.bf16.msra.mxu1 %v16725_v44  ;;  %v22058_v56 = vld [vmem:[#allocation13_spill] sm:$0xff]  ;;  %v22059_v44 = vld [vmem:[#allocation14_spill] sm:$0xff] }
 0x84f   : > { %11228 = vmatprep.subr.bf16.mxu1 %v16742_v9  ;;  %11292 = vmatprep.subr.bf16.mxu0 %v16753_v57  ;;  %v22060_v9 = vld [vmem:[#allocation15_spill] sm:$0xff]  ;;  %v22061_v57 = vld [vmem:[#allocation16_spill] sm:$0xff] }
 0x851   : > { %4364 = vmatmul.mubr.f32.vlgmr.msra.gmra.mrb[14].mxu0 %v17354_v61  ;;  %9585 = vmatmul.mubr.f32.vlgmr.msra.gmra.mrb[52].mxu1 %v17354_v61 }
 0x852   : > { %11230 = vmatpush1.bf16.msra.mxu1 %v16755_v37  ;;  %11294 = vmatpush1.bf16.msra.mxu0 %v16764_v30  ;;  %v22062_v37 = vld [vmem:[#allocation17_spill] sm:$0xff]  ;;  %v22063_v30 = vld [vmem:[#allocation18_spill] sm:$0xff] }
 0x853   : > { %11232 = vmatprep.subr.bf16.mxu1 %v16778_v59  ;;  %11296 = vmatprep.subr.bf16.mxu0 %v16789_v8  ;;  %v22064_v59 = vld [vmem:[#allocation19_spill] sm:$0xff]  ;;  %v22065_v8 = vld [vmem:[#allocation20_spill] sm:$0xff] }
 0x856   : > { %11234 = vmatpush1.bf16.msra.mxu1 %v16791_v47  ;;  %11298 = vmatpush1.bf16.msra.mxu0 %v16800_v0  ;;  %v22066_v47 = vld [vmem:[#allocation21_spill] sm:$0xff]  ;;  %v22067_v0 = vld [vmem:[#allocation22_spill] sm:$0xff] }
 0x857   : > { %11236 = vmatprep.subr.bf16.mxu1 %v16814_v6  ;;  %11300 = vmatprep.subr.bf16.mxu0 %v16825_v32  ;;  %v22068_v6 = vld [vmem:[#allocation23_spill] sm:$0xff]  ;;  %v22069_v32 = vld [vmem:[#allocation24_spill] sm:$0xff] }
 0x85a   : > { %11238 = vmatpush1.bf16.msra.mxu1 %v16827_v5  ;;  %11302 = vmatpush1.bf16.msra.mxu0 %v16836_v42  ;;  %v22070_v5 = vld [vmem:[#allocation25_spill] sm:$0xff]  ;;  %v22071_v42 = vld [vmem:[#allocation26_spill] sm:$0xff] }
 0x85b   : > { %11240 = vmatprep.subr.bf16.mxu1 %v16850_v31  ;;  %11304 = vmatprep.subr.bf16.mxu0 %v16861_v10  ;;  %v22072_v31 = vld [vmem:[#allocation27_spill] sm:$0xff]  ;;  %v22073_v10 = vld [vmem:[#allocation28_spill] sm:$0xff] }
 0x85e   : > { %11242 = vmatpush1.bf16.msra.mxu1 %v16863_v21  ;;  %11306 = vmatpush1.bf16.msra.mxu0 %v16872_v4  ;;  %v22074_v21 = vld [vmem:[#allocation29_spill] sm:$0xff]  ;;  %v22075_v4 = vld [vmem:[#allocation30_spill] sm:$0xff] }
 0x85f   : > { %11244 = vmatprep.subr.bf16.mxu1 %v16886_v17  ;;  %11308 = vmatprep.subr.bf16.mxu0 %v16897_v20  ;;  %v22076_v17 = vld [vmem:[#allocation31_spill] sm:$0xff]  ;;  %v22077_v20 = vld [vmem:[#allocation32_spill] sm:$0xff] }
 0x862   : > { %11246 = vmatpush1.bf16.msra.mxu1 %v16899_v29  ;;  %11310 = vmatpush1.bf16.msra.mxu0 %v16908_v14  ;;  %v22078_v29 = vld [vmem:[#allocation33_spill] sm:$0xff]  ;;  %v22079_v14 = vld [vmem:[#allocation34_spill] sm:$0xff] }
 0x863   : > { %11248 = vmatprep.subr.bf16.mxu1 %v16922_v26  ;;  %11312 = vmatprep.subr.bf16.mxu0 %v16933_v28  ;;  %v22080_v26 = vld [vmem:[#allocation35_spill] sm:$0xff]  ;;  %v22081_v28 = vld [vmem:[#allocation36_spill] sm:$0xff] }
 0x866   : > { %11250 = vmatpush1.bf16.msra.mxu1 %v16935_v43  ;;  %11314 = vmatpush1.bf16.msra.mxu0 %v16944_v45  ;;  %v22082_v43 = vld [vmem:[#allocation37_spill] sm:$0xff]  ;;  %v22083_v45 = vld [vmem:[#allocation38_spill] sm:$0xff] }
 0x867   : > { %11252 = vmatprep.subr.bf16.mxu1 %v16958_v41  ;;  %11316 = vmatprep.subr.bf16.mxu0 %v16969_v22  ;;  %v22084_v41 = vld [vmem:[#allocation39_spill] sm:$0xff]  ;;  %v22085_v22 = vld [vmem:[#allocation40_spill] sm:$0xff] }
 0x86a   : > { %11254 = vmatpush1.bf16.msra.mxu1 %v22052_v3  ;;  %11318 = vmatpush1.bf16.msra.mxu0 %v22053_v15 }
 0x86b   : > { %11256 = vmatprep.subr.bf16.mxu1 %v22054_v58  ;;  %11320 = vmatprep.subr.bf16.mxu0 %v22055_v33 }
 0x86e   : > { %11258 = vmatpush1.bf16.msra.mxu1 %v22056_v49  ;;  %11322 = vmatpush1.bf16.msra.mxu0 %v22057_v48 }
 0x86f   : > { %11260 = vmatprep.subr.bf16.mxu1 %v22058_v56  ;;  %11324 = vmatprep.subr.bf16.mxu0 %v22059_v44 }
 0x872   : > { %11262 = vmatpush1.bf16.msra.mxu1 %v22060_v9  ;;  %11326 = vmatpush1.bf16.msra.mxu0 %v22061_v57  ;;  %v22092_v9 = vld [vmem:[#allocation10_spill] sm:$0xff] }
 0x873   : > { %11264 = vmatprep.subr.bf16.mxu1 %v22062_v37  ;;  %11328 = vmatprep.subr.bf16.mxu0 %v22063_v30 }
 0x876   : > { %11266 = vmatpush1.bf16.msra.mxu1 %v22064_v59  ;;  %11330 = vmatpush1.bf16.msra.mxu0 %v22065_v8 }
 0x877   : > { %11268 = vmatprep.subr.bf16.mxu1 %v22066_v47  ;;  %11332 = vmatprep.subr.bf16.mxu0 %v22067_v0 }
 0x87a   : > { %11270 = vmatpush1.bf16.msra.mxu1 %v22068_v6  ;;  %11334 = vmatpush1.bf16.msra.mxu0 %v22069_v32 }
 0x87b   : > { %11272 = vmatprep.subr.bf16.mxu1 %v22070_v5  ;;  %11336 = vmatprep.subr.bf16.mxu0 %v22071_v42 }
 0x87e   : > { %11274 = vmatpush1.bf16.msra.mxu1 %v22072_v31  ;;  %11338 = vmatpush1.bf16.msra.mxu0 %v22073_v10 }
 0x87f   : > { %11276 = vmatprep.subr.bf16.mxu1 %v22074_v21  ;;  %11340 = vmatprep.subr.bf16.mxu0 %v22075_v4 }
 0x882   : > { %11278 = vmatpush1.bf16.msra.mxu1 %v22076_v17  ;;  %11342 = vmatpush1.bf16.msra.mxu0 %v22077_v20 }
 0x883   : > { %11280 = vmatprep.subr.bf16.mxu1 %v22078_v29  ;;  %11344 = vmatprep.subr.bf16.mxu0 %v22079_v14 }
 0x886   : > { %11282 = vmatpush1.bf16.msra.mxu1 %v22080_v26  ;;  %11346 = vmatpush1.bf16.msra.mxu0 %v22081_v28 }
 0x887   : > { %11284 = vmatprep.subr.bf16.mxu1 %v22082_v43  ;;  %11348 = vmatprep.subr.bf16.mxu0 %v22083_v45 }
 0x88a   : > { %11286 = vmatpush1.bf16.msra.mxu1 %v22084_v41  ;;  %11350 = vmatpush1.bf16.msra.mxu0 %v22085_v22 }
 0x88b   : > { %11288 = vmatprep.subr.bf16.mxu1 %v22086_v19  ;;  %11352 = vmatprep.subr.bf16.mxu0 %v22087_v40  ;;  %v22093_v40 = vld [vmem:[#allocation58_spill] sm:$0xff] }
 0x88e   : > { %11290 = vmatpush1.bf16.msra.mxu1 %v22088_v27  ;;  %11354 = vmatpush1.bf16.msra.mxu0 %v22089_v60 }
 0x88f   : > { %11356 = vmatprep.subr.bf16.mxu0 %v22090_v38  ;;  %11387 = vmatprep.subr.bf16.mxu1 %v21780_v51  ;;  %v4754_v38 = vld [vmem:[%s21401_s3 + $0x10] sm:$0xff] }
 0x904   : > { %v4155_v2 = vpop.f32.mrb[50].mxu1  ;;  %v4226_v52 = vpop.f32.mrb[36].mxu0 }
 0x905   : > { %v4156_v11 = vadd.f32 %v4155_v2, %v22091_v39  ;;  %v4157_v55 = vpop.f32.mrb[51].mxu1  ;;  %v4228_v3 = vpop.f32.mrb[37].mxu0  ;;  %v4227_v30 = vadd.f32 %v4226_v52, %v14680_v54  ;;  %v4757_v2 = vld [vmem:[%s21401_s3 + $0x28] sm:$0xff] }
 0x906   : > { %v4158_v58 = vadd.f32 %v4157_v55, %v14671_v24  ;;  %v4229_v57 = vadd.f32 %v4228_v3, %v22092_v9  ;;  %v17555_v55 = vpack.c.bf16 %v4757_v2, %v4754_v38  ;;  %v4978_v2 = vld [vmem:[%s21403_s5 + $0x78] sm:$0xff] }
 0x907   : > { %v8936_v15 = vmul.f32 -1.442695, %v4156_v11 }
 0x908   : > { %v8937_v33 = vmul.f32 -1.442695, %v4158_v58  ;;  %v4763_v58 = vld [vmem:[%s21401_s3 + $0x58] sm:$0xff] }
 0x909   : > { %13077 = vpow2.f32 %v8936_v15  ;;  %v4760_v15 = vld [vmem:[%s21401_s3 + $0x40] sm:$0xff] }
 0x90a   : > { %13079 = vpow2.f32 %v8937_v33  ;;  %v4766_v33 = vld [vmem:[%s21401_s3 + $0x70] sm:$0xff] }
 0x913   : > { %v13078_v49 = vpop.eup %13077 }
 0x914   : > { %v4234_v48 = vadd.f32 1.0, %v13078_v49  ;;  %v13080_v56 = vpop.eup %13079  ;;  %v4769_v49 = vld [vmem:[%s21401_s3 + $0x88] sm:$0xff] }
 0x915   : > { %v4240_v44 = vadd.f32 1.0, %v13080_v56  ;;  %v4781_v56 = vld [vmem:[%s21401_s3 + $0xe8] sm:$0xff] }
 0x916   : > { %13081 = vrcp.f32 %v4234_v48  ;;  %v4775_v48 = vld [vmem:[%s21401_s3 + $0xb8] sm:$0xff] }
 0x917   : > { %13083 = vrcp.f32 %v4240_v44  ;;  %v4787_v44 = vld [vmem:[%s21401_s3 + $0x118] sm:$0xff] }
 0x920   : > { %v13082_v37 = vpop.eup %13081 }
 0x921   : > { %v4243_v59 = vmul.f32 %v13082_v37, %v4229_v57  ;;  %v13084_v10 = vpop.eup %13083  ;;  %v4792_v57 = vld [vmem:[%s21401_s3 + $0x140] sm:$0xff] }
 0x922   : > { %v4246_v4 = vsub.f32 1.0, %v13084_v10  ;;  %v4248_v29 = vmul.f32 %v13084_v10, %v17326_v16  ;;  %v4788_v37 = vld [vmem:[%s21401_s3 + $0x120] sm:$0xff] }
 0x923   : > { %v4244_v8 = vadd.f32 %v4243_v59, %v4227_v30  ;;  %v4791_v59 = vld [vmem:[%s21401_s3 + $0x138] sm:$0xff] }
 0x924   : > { %v4365_v47 = vpop.f32.mrb[14].mxu0  ;;  %v4436_v0 = vpop.f32.mrb[52].mxu1 }
 0x925   : > { %13085 = vtanh.f32 %v4244_v8  ;;  %v12845_v6 = vadd.f32 %v4365_v47, %v14450_v53  ;;  %v4367_v32 = vpop.f32.mrb[15].mxu0  ;;  %v9586_v5 = vpop.f32.mrb[53].mxu1  ;;  %v4454_v41 = vadd.f32 %v17335_v34, %v4436_v0  ;;  %v4793_v8 = vld [vmem:[%s21401_s3 + $0x148] sm:$0xff]  ;;  %v4798_v47 = vld [vmem:[%s21401_s3 + $0x170] sm:$0xff]  ;;  %v17652_v0 = vpack.c.bf16 %v4791_v59, %v4788_v37 }
 0x926   : > { %v12846_v31 = vadd.f32 %v4367_v32, %v14459_v46  ;;  %v4794_v32 = vld [vmem:[%s21401_s3 + $0x150] sm:$0xff] }
 0x927   : > { %v8938_v42 = vmul.f32 -1.442695, %v12845_v6  ;;  %v4981_v59 = vld [vmem:[%s21403_s5 + $0x90] sm:$0xff] }
 0x928   : > { %v8939_v21 = vmul.f32 -1.442695, %v12846_v31  ;;  %v4799_v31 = vld [vmem:[%s21401_s3 + $0x178] sm:$0xff] }
 0x929   : > { %13087 = vpow2.f32 %v8938_v42  ;;  %v4796_v42 = vld [vmem:[%s21401_s3 + $0x160] sm:$0xff] }
 0x92a   : > { %13089 = vpow2.f32 %v8939_v21  ;;  %v17676_v21 = vpack.c.bf16 %v4799_v31, %v4796_v42  ;;  %v4994_v42 = vld [vmem:[%s21403_s5 + $0xf8] sm:$0xff]  ;;  %v4987_v31 = vld [vmem:[%s21403_s5 + $0xc0] sm:$0xff] }
 0x92f   : > { %v13086_v17 = vpop.eup %13085 }
 0x930   : > { %v4247_v20 = vmul.f32 %v13086_v17, %v4246_v4  ;;  %v4964_v4 = vld [vmem:[%s21403_s5 + $0x8] sm:$0xff] }
 0x931   : > { %v4968_v17 = vld [vmem:[%s21403_s5 + $0x28] sm:$0xff] }
 0x932   : > { %v17540_v14 = vadd.f32 %v4248_v29, %v4247_v20  ;;  %v4966_v20 = vld [vmem:[%s21403_s5 + $0x18] sm:$0xff]  ;;  %v17693_v29 = vpack.c.bf16 %v4968_v17, %v4964_v4  ;;  %v4991_v4 = vld [vmem:[%s21403_s5 + $0xe0] sm:$0xff] }
 0x933   : > { %v13088_v26 = vpop.eup %13087 }
 0x934   : > { %v4444_v28 = vadd.f32 1.0, %v13088_v26  ;;  %4250 = vst [vmem:[%s13480_s24 + $0x30] sm:$0xff] %v17540_v14  ;;  %4654 = vmatprep.mubr.f32.mxu1 %v17540_v14  ;;  %4725 = vmatprep.mubr.f32.mxu0 %v17540_v14  ;;  %v13090_v43 = vpop.eup %13089  ;;  %v4970_v26 = vld [vmem:[%s21403_s5 + $0x38] sm:$0xff] }
 0x935   : > { %v4451_v45 = vadd.f32 1.0, %v13090_v43  ;;  %v4967_v43 = vld [vmem:[%s21403_s5 + $0x20] sm:$0xff] }
 0x936   : > { %13091 = vrcp.f32 %v4444_v28  ;;  %v4963_v28 = vld [vmem:[%s21403_s5] sm:$0xff] }
 0x937   : > { %13093 = vrcp.f32 %v4451_v45  ;;  %v17704_v45 = vpack.c.bf16 %v4970_v26, %v4966_v20  ;;  %v17814_v20 = vpack.c.bf16 %v4991_v4, %v4987_v31  ;;  %v4989_v26 = vld [vmem:[%s21403_s5 + $0xd0] sm:$0xff] }
 0x938   : > { %v5009_v31 = vld [vmem:[%s21403_s5 + $0x170] sm:$0xff] }
 0x940   : > { %v13092_v22 = vpop.eup %13091 }
 0x941   : > { %v4455_v19 = vmul.f32 %v13092_v22, %v4454_v41  ;;  %v13094_v27 = vpop.eup %13093  ;;  %v17706_v41 = vpack.c.bf16 %v4967_v43, %v4963_v28  ;;  %v4965_v22 = vld [vmem:[%s21403_s5 + $0x10] sm:$0xff] }
 0x942   : > { %v4458_v60 = vsub.f32 1.0, %v13094_v27  ;;  %v4460_v34 = vmul.f32 %v13094_v27, %v17354_v61  ;;  %v17569_v61 = vpack.c.bf16 %v4763_v58, %v4760_v15  ;;  %v4976_v27 = vld [vmem:[%s21403_s5 + $0x68] sm:$0xff]  ;;  %v4973_v58 = vld [vmem:[%s21403_s5 + $0x50] sm:$0xff] }
 0x943   : > { %v4456_v16 = vadd.f32 %v4455_v19, %v22093_v40  ;;  %v4969_v19 = vld [vmem:[%s21403_s5 + $0x30] sm:$0xff] }
 0x944   : > { %v17715_v40 = vpack.c.bf16 %v4969_v19, %v4965_v22  ;;  %v4993_v28 = vld [vmem:[%s21403_s5 + $0xf0] sm:$0xff]  ;;  %v4996_v22 = vld [vmem:[%s21403_s5 + $0x108] sm:$0xff] }
 0x945   : > { %13095 = vtanh.f32 %v4456_v16  ;;  %v4972_v16 = vld [vmem:[%s21403_s5 + $0x48] sm:$0xff]  ;;  %v17823_v43 = vpack.c.bf16 %v4993_v28, %v4989_v26 }
 0x946   : > { %v17729_v38 = vpack.c.bf16 %v4976_v27, %v4972_v16  ;;  %v5000_v19 = vld [vmem:[%s21403_s5 + $0x128] sm:$0xff]  ;;  %v4998_v16 = vld [vmem:[%s21403_s5 + $0x118] sm:$0xff] }
 0x947   : > { %v17837_v27 = vpack.c.bf16 %v5000_v19, %v4996_v22  ;;  %v5012_v26 = vld [vmem:[%s21403_s5 + $0x188] sm:$0xff]  ;;  %v5014_v22 = vld [vmem:[%s21403_s5 + $0x198] sm:$0xff] }
 0x948   : > { %v5016_v28 = vld [vmem:[%s21403_s5 + $0x1a8] sm:$0xff] }
 0x949   : > { %v17909_v19 = vpack.c.bf16 %v5016_v28, %v5012_v26  ;;  %v5023_v26 = vld [vmem:[%s21403_s5 + $0x1e0] sm:$0xff] }
 0x94f   : > { %v13096_v52 = vpop.eup %13095 }
 0x950   : > { %v4459_v11 = vmul.f32 %v13096_v52, %v4458_v60  ;;  %v4974_v60 = vld [vmem:[%s21403_s5 + $0x58] sm:$0xff]  ;;  %v4971_v52 = vld [vmem:[%s21403_s5 + $0x40] sm:$0xff] }
 0x952   : > { %v17557_v3 = vadd.f32 %v4460_v34, %v4459_v11  ;;  %v4975_v11 = vld [vmem:[%s21403_s5 + $0x60] sm:$0xff]  ;;  %v17740_v34 = vpack.c.bf16 %v4978_v2, %v4974_v60  ;;  %v5002_v60 = vld [vmem:[%s21403_s5 + $0x138] sm:$0xff] }
 0x953   : > { %v17742_v15 = vpack.c.bf16 %v4975_v11, %v4971_v52  ;;  %v4995_v2 = vld [vmem:[%s21403_s5 + $0x100] sm:$0xff]  ;;  %v17848_v11 = vpack.c.bf16 %v5002_v60, %v4998_v16  ;;  %v5018_v16 = vld [vmem:[%s21403_s5 + $0x1b8] sm:$0xff] }
 0x954   : > { %4655 = vmatmul.mubr.f32.vlgmr.msra.gmra.mrb[54].mxu1 %v17557_v3  ;;  %4726 = vmatmul.mubr.f32.vlgmr.msra.gmra.mrb[38].mxu0 %v17557_v3  ;;  %v4999_v52 = vld [vmem:[%s21403_s5 + $0x120] sm:$0xff] }
 0x955   : > { %11358 = vmatpush1.bf16.msra.mxu0 %v17352_v23  ;;  %11389 = vmatpush3.bf16.msra.mxu1 %v17555_v55  ;;  %v17584_v23 = vpack.c.bf16 %v4769_v49, %v4766_v33  ;;  %v4977_v33 = vld [vmem:[%s21403_s5 + $0x70] sm:$0xff]  ;;  %v5011_v60 = vld [vmem:[%s21403_s5 + $0x180] sm:$0xff] }
 0x956   : > { %11360 = vmatprep.subr.bf16.mxu0 %v17356_v12  ;;  %11390 = vmatprep.subr.bf16.mxu1 %v21780_v51  ;;  %v4772_v12 = vld [vmem:[%s21401_s3 + $0xa0] sm:$0xff]  ;;  %v17751_v49 = vpack.c.bf16 %v4977_v33, %v4973_v58  ;;  %v17850_v58 = vpack.c.bf16 %v4999_v52, %v4995_v2  ;;  %v4997_v33 = vld [vmem:[%s21403_s5 + $0x110] sm:$0xff]  ;;  %v17920_v52 = vpack.c.bf16 %v5018_v16, %v5014_v22 }
 0x957   : > { %4864 = vmatprep.mubr.f32.mxu0 %v21805_v7  ;;  %9619 = vmatprep.mubr.msk.f32.mxu1 %vm13371_vm1, %v21805_v7  ;;  %v5015_v2 = vld [vmem:[%s21403_s5 + $0x1a0] sm:$0xff]  ;;  %v5021_v16 = vld [vmem:[%s21403_s5 + $0x1d0] sm:$0xff] }
 0x959   : > { %11362 = vmatpush1.bf16.msra.mxu0 %v17374_v63  ;;  %11392 = vmatpush3.bf16.msra.mxu1 %v17569_v61  ;;  %v17596_v63 = vpack.c.bf16 %v4775_v48, %v4772_v12  ;;  %v4980_v12 = vld [vmem:[%s21403_s5 + $0x88] sm:$0xff] }
 0x95a   : > { %11364 = vmatprep.subr.bf16.mxu0 %v17378_v18  ;;  %11393 = vmatprep.subr.bf16.mxu1 %v21780_v51  ;;  %v4778_v18 = vld [vmem:[%s21401_s3 + $0xd0] sm:$0xff]  ;;  %v4984_v48 = vld [vmem:[%s21403_s5 + $0xa8] sm:$0xff] }
 0x95d   : > { %11366 = vmatpush1.bf16.msra.mxu0 %v17397_v36  ;;  %11395 = vmatpush3.bf16.msra.mxu1 %v17584_v23  ;;  %v17608_v36 = vpack.c.bf16 %v4781_v56, %v4778_v18  ;;  %v4982_v18 = vld [vmem:[%s21403_s5 + $0x98] sm:$0xff]  ;;  %v17765_v56 = vpack.c.bf16 %v4984_v48, %v4980_v12  ;;  %v5001_v12 = vld [vmem:[%s21403_s5 + $0x130] sm:$0xff] }
 0x95e   : > { %11368 = vmatprep.subr.bf16.mxu0 %v17401_v1  ;;  %11396 = vmatprep.subr.bf16.mxu1 %v21780_v51  ;;  %v4784_v1 = vld [vmem:[%s21401_s3 + $0x100] sm:$0xff]  ;;  %v17859_v48 = vpack.c.bf16 %v5001_v12, %v4997_v33  ;;  %v17922_v33 = vpack.c.bf16 %v5015_v2, %v5011_v60  ;;  %v5013_v12 = vld [vmem:[%s21403_s5 + $0x190] sm:$0xff] }
 0x95f   : > { %v5025_v60 = vld [vmem:[%s21403_s5 + $0x1f0] sm:$0xff] }
 0x960   : > { %22094 = vst [vmem:[#allocation69_spill] sm:$0xff] %v17922_v33  ;;  %v17967_v2 = vpack.c.bf16 %v5025_v60, %v5021_v16  ;;  %v5029_v60 = vld [vmem:[%s21403_s5 + $0x210] sm:$0xff] }
 0x961   : > { %11370 = vmatpush1.bf16.msra.mxu0 %v17417_v35  ;;  %11398 = vmatpush3.bf16.msra.mxu1 %v17596_v63  ;;  %v4789_v35 = vld [vmem:[%s21401_s3 + $0x128] sm:$0xff] }
 0x962   : > { %11372 = vmatprep.subr.bf16.mxu0 %v17421_v50  ;;  %11399 = vmatprep.subr.bf16.mxu1 %v21780_v51  ;;  %v17626_v50 = vpack.c.bf16 %v4787_v44, %v4784_v1  ;;  %v17633_v30 = vpack.c.bf16 %v4792_v57, %v4789_v35  ;;  %v4986_v1 = vld [vmem:[%s21403_s5 + $0xb8] sm:$0xff]  ;;  %v4979_v44 = vld [vmem:[%s21403_s5 + $0x80] sm:$0xff]  ;;  %22099 = vst [vmem:[#allocation72_spill] sm:$0xff] %v17967_v2 }
 0x963   : > { %v4983_v35 = vld [vmem:[%s21403_s5 + $0xa0] sm:$0xff]  ;;  %v17776_v57 = vpack.c.bf16 %v4986_v1, %v4982_v18  ;;  %v5004_v18 = vld [vmem:[%s21403_s5 + $0x148] sm:$0xff] }
 0x964   : > { %v17778_v37 = vpack.c.bf16 %v4983_v35, %v4979_v44  ;;  %v5008_v1 = vld [vmem:[%s21403_s5 + $0x168] sm:$0xff]  ;;  %v5006_v44 = vld [vmem:[%s21403_s5 + $0x158] sm:$0xff] }
 0x965   : > { %11374 = vmatpush1.bf16.msra.mxu0 %v17437_v25  ;;  %11401 = vmatpush3.bf16.msra.mxu1 %v17608_v36  ;;  %v4790_v25 = vld [vmem:[%s21401_s3 + $0x130] sm:$0xff]  ;;  %v17873_v35 = vpack.c.bf16 %v5008_v1, %v5004_v18 }
 0x966   : > { %11376 = vmatprep.subr.bf16.mxu0 %v17441_v13  ;;  %11402 = vmatprep.subr.bf16.mxu1 %v21780_v51  ;;  %v4795_v13 = vld [vmem:[%s21401_s3 + $0x158] sm:$0xff]  ;;  %v17654_v6 = vpack.c.bf16 %v4793_v8, %v4790_v25  ;;  %v4985_v25 = vld [vmem:[%s21403_s5 + $0xb0] sm:$0xff] }
 0x967   : > { %v17661_v5 = vpack.c.bf16 %v4798_v47, %v4795_v13  ;;  %v17787_v8 = vpack.c.bf16 %v4985_v25, %v4981_v59  ;;  %v4988_v13 = vld [vmem:[%s21403_s5 + $0xc8] sm:$0xff]  ;;  %v5010_v59 = vld [vmem:[%s21403_s5 + $0x178] sm:$0xff]  ;;  %v5003_v25 = vld [vmem:[%s21403_s5 + $0x140] sm:$0xff] }
 0x968   : > { %v4992_v47 = vld [vmem:[%s21403_s5 + $0xe8] sm:$0xff]  ;;  %v5017_v18 = vld [vmem:[%s21403_s5 + $0x1b0] sm:$0xff] }
 0x969   : > { %11378 = vmatpush1.bf16.msra.mxu0 %v17451_v62  ;;  %11404 = vmatpush3.bf16.msra.mxu1 %v17626_v50  ;;  %v4797_v62 = vld [vmem:[%s21401_s3 + $0x168] sm:$0xff]  ;;  %v17931_v1 = vpack.c.bf16 %v5017_v18, %v5013_v12 }
 0x96a   : > { %11380 = vmatprep.subr.bf16.mxu0 %v17633_v30  ;;  %11405 = vmatprep.subr.bf16.mxu1 %v21780_v51  ;;  %v17674_v10 = vpack.c.bf16 %v4797_v62, %v4794_v32  ;;  %v4990_v32 = vld [vmem:[%s21403_s5 + $0xd8] sm:$0xff]  ;;  %v17801_v62 = vpack.c.bf16 %v4992_v47, %v4988_v13  ;;  %v5007_v13 = vld [vmem:[%s21403_s5 + $0x160] sm:$0xff]  ;;  %v17884_v47 = vpack.c.bf16 %v5010_v59, %v5006_v44  ;;  %v5020_v44 = vld [vmem:[%s21403_s5 + $0x1c8] sm:$0xff] }
 0x96b   : > { %v17812_v17 = vpack.c.bf16 %v4994_v42, %v4990_v32  ;;  %v17886_v32 = vpack.c.bf16 %v5007_v13, %v5003_v25  ;;  %v5005_v42 = vld [vmem:[%s21403_s5 + $0x150] sm:$0xff]  ;;  %22095 = vst [vmem:[#allocation70_spill] sm:$0xff] %v17931_v1  ;;  %v5024_v59 = vld [vmem:[%s21403_s5 + $0x1e8] sm:$0xff]  ;;  %v5022_v25 = vld [vmem:[%s21403_s5 + $0x1d8] sm:$0xff] }
 0x96c   : > { %v17895_v4 = vpack.c.bf16 %v5009_v31, %v5005_v42  ;;  %v17945_v13 = vpack.c.bf16 %v5024_v59, %v5020_v44  ;;  %v5026_v42 = vld [vmem:[%s21403_s5 + $0x1f8] sm:$0xff]  ;;  %v5019_v31 = vld [vmem:[%s21403_s5 + $0x1c0] sm:$0xff]  ;;  %v5028_v12 = vld [vmem:[%s21403_s5 + $0x208] sm:$0xff] }
 0x96d   : > { %11382 = vmatpush1.bf16.msra.mxu0 %v17652_v0  ;;  %11407 = vmatpush3.bf16.msra.mxu1 %v17654_v6  ;;  %v17956_v28 = vpack.c.bf16 %v5026_v42, %v5022_v25  ;;  %v17958_v22 = vpack.c.bf16 %v5023_v26, %v5019_v31  ;;  %v5032_v18 = vld [vmem:[%s21403_s5 + $0x228] sm:$0xff]  ;;  %v5030_v44 = vld [vmem:[%s21403_s5 + $0x218] sm:$0xff]  ;;  %v5027_v42 = vld [vmem:[%s21403_s5 + $0x200] sm:$0xff] }
 0x96e   : > { %11384 = vmatprep.subr.bf16.mxu0 %v17661_v5  ;;  %11408 = vmatprep.subr.bf16.mxu1 %v21780_v51  ;;  %22096 = vst [vmem:[#allocation71_spill] sm:$0xff] %v17945_v13  ;;  %v17981_v59 = vpack.c.bf16 %v5032_v18, %v5028_v12  ;;  %v5034_v25 = vld [vmem:[%s21403_s5 + $0x238] sm:$0xff]  ;;  %v5031_v31 = vld [vmem:[%s21403_s5 + $0x220] sm:$0xff]  ;;  %v5033_v12 = vld [vmem:[%s21403_s5 + $0x230] sm:$0xff] }
 0x96f   : > { %22097 = vst [vmem:[#allocation56_spill] sm:$0xff] %v17956_v28  ;;  %22098 = vst [vmem:[#allocation59_spill] sm:$0xff] %v17958_v22  ;;  %v17992_v26 = vpack.c.bf16 %v5034_v25, %v5030_v44  ;;  %v17994_v16 = vpack.c.bf16 %v5031_v31, %v5027_v42  ;;  %v18003_v18 = vpack.c.bf16 %v5033_v12, %v5029_v60  ;;  %v5036_v44 = vld [vmem:[%s21403_s5 + $0x248] sm:$0xff]  ;;  %v5038_v42 = vld [vmem:[%s21403_s5 + $0x258] sm:$0xff] }
 0x970   : > { %22100 = vst [vmem:[#allocation54_spill] sm:$0xff] %v17981_v59  ;;  %v5040_v25 = vld [vmem:[%s21403_s5 + $0x268] sm:$0xff]  ;;  %v5042_v60 = vld [vmem:[%s21403_s5 + $0x278] sm:$0xff]  ;;  %v5035_v12 = vld [vmem:[%s21403_s5 + $0x240] sm:$0xff] }
 0x971   : > { %11386 = vmatpush1.bf16.msra.mxu0 %v17674_v10  ;;  %11410 = vmatpush3.bf16.msra.mxu1 %v17676_v21  ;;  %22101 = vst [vmem:[#allocation57_spill] sm:$0xff] %v17992_v26  ;;  %22102 = vst [vmem:[#allocation55_spill] sm:$0xff] %v17994_v16  ;;  %v18017_v31 = vpack.c.bf16 %v5040_v25, %v5036_v44  ;;  %v5037_v44 = vld [vmem:[%s21403_s5 + $0x250] sm:$0xff] }
 0x972   : > { %11412 = vmatprep.subr.bf16.mxu1 %v17693_v29  ;;  %11476 = vmatprep.subr.bf16.mxu0 %v17704_v45  ;;  %22103 = vst [vmem:[#allocation11_spill] sm:$0xff] %v18003_v18  ;;  %v5041_v25 = vld [vmem:[%s21403_s5 + $0x270] sm:$0xff] }
 0x973   : > { %22104 = vst [vmem:[#allocation12_spill] sm:$0xff] %v18017_v31 }
 0x974   : > { %4865 = vmatmul.mubr.f32.vlgmr.msra.gmra.mrb[16].mxu0 %v17557_v3  ;;  %9620 = vmatmul.mubr.f32.vlgmr.msra.gmra.mrb[56].mxu1 %v17557_v3 }
 0x975   : > { %11414 = vmatpush1.bf16.msra.mxu1 %v17706_v41  ;;  %11478 = vmatpush1.bf16.msra.mxu0 %v17715_v40 }
 0x976   : > { %11416 = vmatprep.subr.bf16.mxu1 %v17729_v38  ;;  %11480 = vmatprep.subr.bf16.mxu0 %v17740_v34 }
 0x979   : > { %11418 = vmatpush1.bf16.msra.mxu1 %v17742_v15  ;;  %11482 = vmatpush1.bf16.msra.mxu0 %v17751_v49 }
 0x97a   : > { %11420 = vmatprep.subr.bf16.mxu1 %v17765_v56  ;;  %11484 = vmatprep.subr.bf16.mxu0 %v17776_v57 }
 0x97d   : > { %11422 = vmatpush1.bf16.msra.mxu1 %v17778_v37  ;;  %11486 = vmatpush1.bf16.msra.mxu0 %v17787_v8 }
 0x97e   : > { %11424 = vmatprep.subr.bf16.mxu1 %v17801_v62  ;;  %11488 = vmatprep.subr.bf16.mxu0 %v17812_v17 }
 0x981   : > { %11426 = vmatpush1.bf16.msra.mxu1 %v17814_v20  ;;  %11490 = vmatpush1.bf16.msra.mxu0 %v17823_v43 }
 0x982   : > { %11428 = vmatprep.subr.bf16.mxu1 %v17837_v27  ;;  %11492 = vmatprep.subr.bf16.mxu0 %v17848_v11 }
 0x985   : > { %11430 = vmatpush1.bf16.msra.mxu1 %v17850_v58  ;;  %11494 = vmatpush1.bf16.msra.mxu0 %v17859_v48 }
 0x986   : > { %11432 = vmatprep.subr.bf16.mxu1 %v17873_v35  ;;  %11496 = vmatprep.subr.bf16.mxu0 %v17884_v47 }
 0x989   : > { %11434 = vmatpush1.bf16.msra.mxu1 %v17886_v32  ;;  %11498 = vmatpush1.bf16.msra.mxu0 %v17895_v4 }
 0x98a   : > { %11436 = vmatprep.subr.bf16.mxu1 %v17909_v19  ;;  %11500 = vmatprep.subr.bf16.mxu0 %v17920_v52 }
 0x98d   : > { %11438 = vmatpush1.bf16.msra.mxu1 %v17922_v33  ;;  %11502 = vmatpush1.bf16.msra.mxu0 %v17931_v1 }
 0x98e   : > { %11440 = vmatprep.subr.bf16.mxu1 %v17945_v13  ;;  %11504 = vmatprep.subr.bf16.mxu0 %v17956_v28 }
 0x991   : > { %11442 = vmatpush1.bf16.msra.mxu1 %v17958_v22  ;;  %11506 = vmatpush1.bf16.msra.mxu0 %v17967_v2  ;;  %v5077_v22 = vld [vmem:[%s21403_s5 + $0x390] sm:$0xff] }
 0x992   : > { %11444 = vmatprep.subr.bf16.mxu1 %v17981_v59  ;;  %11508 = vmatprep.subr.bf16.mxu0 %v17992_v26  ;;  %v18028_v26 = vpack.c.bf16 %v5042_v60, %v5038_v42  ;;  %v5048_v42 = vld [vmem:[%s21403_s5 + $0x2a8] sm:$0xff]  ;;  %v5046_v60 = vld [vmem:[%s21403_s5 + $0x298] sm:$0xff] }
 0x994   : > { %22105 = vst [vmem:[#allocation13_spill] sm:$0xff] %v18028_v26 }
 0x995   : > { %11446 = vmatpush1.bf16.msra.mxu1 %v17994_v16  ;;  %11510 = vmatpush1.bf16.msra.mxu0 %v18003_v18  ;;  %v5039_v16 = vld [vmem:[%s21403_s5 + $0x260] sm:$0xff]  ;;  %v18039_v18 = vpack.c.bf16 %v5041_v25, %v5037_v44  ;;  %v5050_v44 = vld [vmem:[%s21403_s5 + $0x2b8] sm:$0xff] }
 0x996   : > { %v18030_v59 = vpack.c.bf16 %v5039_v16, %v5035_v12  ;;  %11448 = vmatprep.subr.bf16.mxu1 %v18017_v31  ;;  %11512 = vmatprep.subr.bf16.mxu0 %v18028_v26  ;;  %v5044_v16 = vld [vmem:[%s21403_s5 + $0x288] sm:$0xff]  ;;  %v5043_v25 = vld [vmem:[%s21403_s5 + $0x280] sm:$0xff]  ;;  %v18064_v26 = vpack.c.bf16 %v5050_v44, %v5046_v60  ;;  %v5054_v44 = vld [vmem:[%s21403_s5 + $0x2d8] sm:$0xff] }
 0x997   : > { %22107 = vst [vmem:[#allocation15_spill] sm:$0xff] %v18039_v18  ;;  %v18053_v12 = vpack.c.bf16 %v5048_v42, %v5044_v16  ;;  %v5045_v16 = vld [vmem:[%s21403_s5 + $0x290] sm:$0xff]  ;;  %v5056_v60 = vld [vmem:[%s21403_s5 + $0x2e8] sm:$0xff] }
 0x998   : > { %22106 = vst [vmem:[#allocation14_spill] sm:$0xff] %v18030_v59  ;;  %22109 = vst [vmem:[#allocation17_spill] sm:$0xff] %v18064_v26  ;;  %v5049_v42 = vld [vmem:[%s21403_s5 + $0x2b0] sm:$0xff] }
 0x999   : > { %11450 = vmatpush1.bf16.msra.mxu1 %v18030_v59  ;;  %11514 = vmatpush1.bf16.msra.mxu0 %v18039_v18  ;;  %22108 = vst [vmem:[#allocation16_spill] sm:$0xff] %v18053_v12  ;;  %v5047_v59 = vld [vmem:[%s21403_s5 + $0x2a0] sm:$0xff]  ;;  %v18075_v18 = vpack.c.bf16 %v5049_v42, %v5045_v16  ;;  %v5058_v16 = vld [vmem:[%s21403_s5 + $0x2f8] sm:$0xff] }
 0x99a   : > { %v18066_v31 = vpack.c.bf16 %v5047_v59, %v5043_v25  ;;  %11452 = vmatprep.subr.bf16.mxu1 %v18053_v12  ;;  %11516 = vmatprep.subr.bf16.mxu0 %v18064_v26  ;;  %v5052_v59 = vld [vmem:[%s21403_s5 + $0x2c8] sm:$0xff]  ;;  %v5051_v42 = vld [vmem:[%s21403_s5 + $0x2c0] sm:$0xff]  ;;  %v18100_v26 = vpack.c.bf16 %v5058_v16, %v5054_v44  ;;  %v5062_v16 = vld [vmem:[%s21403_s5 + $0x318] sm:$0xff] }
 0x99b   : > { %22111 = vst [vmem:[#allocation19_spill] sm:$0xff] %v18075_v18  ;;  %v18089_v25 = vpack.c.bf16 %v5056_v60, %v5052_v59  ;;  %v5053_v59 = vld [vmem:[%s21403_s5 + $0x2d0] sm:$0xff]  ;;  %v5064_v44 = vld [vmem:[%s21403_s5 + $0x328] sm:$0xff] }
 0x99c   : > { %22110 = vst [vmem:[#allocation18_spill] sm:$0xff] %v18066_v31  ;;  %22113 = vst [vmem:[#allocation21_spill] sm:$0xff] %v18100_v26  ;;  %v5057_v60 = vld [vmem:[%s21403_s5 + $0x2f0] sm:$0xff] }
 0x99d   : > { %11454 = vmatpush1.bf16.msra.mxu1 %v18066_v31  ;;  %11518 = vmatpush1.bf16.msra.mxu0 %v18075_v18  ;;  %22112 = vst [vmem:[#allocation20_spill] sm:$0xff] %v18089_v25  ;;  %v5055_v31 = vld [vmem:[%s21403_s5 + $0x2e0] sm:$0xff]  ;;  %v18111_v18 = vpack.c.bf16 %v5057_v60, %v5053_v59  ;;  %v5066_v59 = vld [vmem:[%s21403_s5 + $0x338] sm:$0xff] }
 0x99e   : > { %v18102_v12 = vpack.c.bf16 %v5055_v31, %v5051_v42  ;;  %11456 = vmatprep.subr.bf16.mxu1 %v18089_v25  ;;  %11520 = vmatprep.subr.bf16.mxu0 %v18100_v26  ;;  %v5060_v31 = vld [vmem:[%s21403_s5 + $0x308] sm:$0xff]  ;;  %v5059_v60 = vld [vmem:[%s21403_s5 + $0x300] sm:$0xff]  ;;  %v18136_v26 = vpack.c.bf16 %v5066_v59, %v5062_v16  ;;  %v5070_v59 = vld [vmem:[%s21403_s5 + $0x358] sm:$0xff] }
 0x99f   : > { %22115 = vst [vmem:[#allocation23_spill] sm:$0xff] %v18111_v18  ;;  %v18125_v42 = vpack.c.bf16 %v5064_v44, %v5060_v31  ;;  %v5061_v31 = vld [vmem:[%s21403_s5 + $0x310] sm:$0xff]  ;;  %v5072_v16 = vld [vmem:[%s21403_s5 + $0x368] sm:$0xff] }
 0x9a0   : > { %22114 = vst [vmem:[#allocation22_spill] sm:$0xff] %v18102_v12  ;;  %22117 = vst [vmem:[#allocation25_spill] sm:$0xff] %v18136_v26  ;;  %v5065_v44 = vld [vmem:[%s21403_s5 + $0x330] sm:$0xff] }
 0x9a1   : > { %11458 = vmatpush1.bf16.msra.mxu1 %v18102_v12  ;;  %11522 = vmatpush1.bf16.msra.mxu0 %v18111_v18  ;;  %22116 = vst [vmem:[#allocation24_spill] sm:$0xff] %v18125_v42  ;;  %v5063_v12 = vld [vmem:[%s21403_s5 + $0x320] sm:$0xff]  ;;  %v18147_v18 = vpack.c.bf16 %v5065_v44, %v5061_v31  ;;  %v5074_v31 = vld [vmem:[%s21403_s5 + $0x378] sm:$0xff] }
 0x9a2   : > { %v18138_v25 = vpack.c.bf16 %v5063_v12, %v5059_v60  ;;  %11460 = vmatprep.subr.bf16.mxu1 %v18125_v42  ;;  %11524 = vmatprep.subr.bf16.mxu0 %v18136_v26  ;;  %v5068_v12 = vld [vmem:[%s21403_s5 + $0x348] sm:$0xff]  ;;  %v5067_v44 = vld [vmem:[%s21403_s5 + $0x340] sm:$0xff]  ;;  %v18172_v26 = vpack.c.bf16 %v5074_v31, %v5070_v59  ;;  %v5078_v59 = vld [vmem:[%s21403_s5 + $0x398] sm:$0xff] }
 0x9a3   : > { %22119 = vst [vmem:[#allocation27_spill] sm:$0xff] %v18147_v18  ;;  %v18161_v60 = vpack.c.bf16 %v5072_v16, %v5068_v12  ;;  %v5069_v12 = vld [vmem:[%s21403_s5 + $0x350] sm:$0xff]  ;;  %v5082_v31 = vld [vmem:[%s21403_s5 + $0x3b8] sm:$0xff] }
 0x9a4   : > { %22118 = vst [vmem:[#allocation26_spill] sm:$0xff] %v18138_v25  ;;  %22121 = vst [vmem:[#allocation29_spill] sm:$0xff] %v18172_v26  ;;  %v5073_v16 = vld [vmem:[%s21403_s5 + $0x370] sm:$0xff] }
 0x9a5   : > { %11462 = vmatpush1.bf16.msra.mxu1 %v18138_v25  ;;  %11526 = vmatpush1.bf16.msra.mxu0 %v18147_v18  ;;  %22120 = vst [vmem:[#allocation28_spill] sm:$0xff] %v18161_v60  ;;  %v5071_v25 = vld [vmem:[%s21403_s5 + $0x360] sm:$0xff]  ;;  %v5076_v18 = vld [vmem:[%s21403_s5 + $0x388] sm:$0xff]  ;;  %v18186_v2 = vpack.c.bf16 %v5073_v16, %v5069_v12  ;;  %v18201_v12 = vpack.c.bf16 %v5082_v31, %v5078_v59 }
 0x9a6   : > { %v18174_v42 = vpack.c.bf16 %v5071_v25, %v5067_v44  ;;  %11464 = vmatprep.subr.bf16.mxu1 %v18161_v60  ;;  %v5080_v25 = vld [vmem:[%s21403_s5 + $0x3a8] sm:$0xff]  ;;  %11528 = vmatprep.subr.bf16.mxu0 %v18172_v26  ;;  %v5075_v16 = vld [vmem:[%s21403_s5 + $0x380] sm:$0xff] }
 0x9a7   : > { %22123 = vst [vmem:[#allocation31_spill] sm:$0xff] %v18186_v2  ;;  %v18199_v44 = vpack.c.bf16 %v5080_v25, %v5076_v18  ;;  %22125 = vst [vmem:[#allocation33_spill] sm:$0xff] %v18201_v12  ;;  %v5079_v60 = vld [vmem:[%s21403_s5 + $0x3a0] sm:$0xff]  ;;  %v5081_v18 = vld [vmem:[%s21403_s5 + $0x3b0] sm:$0xff] }
 0x9a8   : > { %22122 = vst [vmem:[#allocation30_spill] sm:$0xff] %v18174_v42  ;;  %v18213_v26 = vpack.c.bf16 %v5079_v60, %v5075_v16  ;;  %v5084_v25 = vld [vmem:[%s21403_s5 + $0x3c8] sm:$0xff]  ;;  %v18226_v31 = vpack.c.bf16 %v5081_v18, %v5077_v22  ;;  %v5086_v16 = vld [vmem:[%s21403_s5 + $0x3d8] sm:$0xff]  ;;  %v5087_v22 = vld [vmem:[%s21403_s5 + $0x3e0] sm:$0xff] }
 0x9a9   : > { %11466 = vmatpush1.bf16.msra.mxu1 %v18174_v42  ;;  %22124 = vst [vmem:[#allocation32_spill] sm:$0xff] %v18199_v44  ;;  %11530 = vmatpush1.bf16.msra.mxu0 %v18186_v2  ;;  %v5088_v59 = vld [vmem:[%s21403_s5 + $0x3e8] sm:$0xff]  ;;  %v5090_v2 = vld [vmem:[%s21403_s5 + $0x3f8] sm:$0xff]  ;;  %v5083_v42 = vld [vmem:[%s21403_s5 + $0x3c0] sm:$0xff] }
 0x9aa   : > { %22126 = vst [vmem:[#allocation34_spill] sm:$0xff] %v18213_v26  ;;  %11468 = vmatprep.subr.bf16.mxu1 %v18199_v44  ;;  %11532 = vmatprep.subr.bf16.mxu0 %v18201_v12  ;;  %22127 = vst [vmem:[#allocation35_spill] sm:$0xff] %v18226_v31  ;;  %v18228_v60 = vpack.c.bf16 %v5088_v59, %v5084_v25  ;;  %v18239_v28 = vpack.c.bf16 %v5090_v2, %v5086_v16  ;;  %v5085_v18 = vld [vmem:[%s21403_s5 + $0x3d0] sm:$0xff]  ;;  %v5254_v2 = vld [vmem:[%s21401_s3 + $0x8] sm:$0xff] }
 0x9ab   : > { %v5089_v25 = vld [vmem:[%s21403_s5 + $0x3f0] sm:$0xff]  ;;  %v18251_v59 = vpack.c.bf16 %v5087_v22, %v5083_v42  ;;  %v5257_v16 = vld [vmem:[%s21401_s3 + $0x20] sm:$0xff] }
 0x9ac   : > { %22128 = vst [vmem:[#allocation36_spill] sm:$0xff] %v18228_v60  ;;  %22129 = vst [vmem:[#allocation37_spill] sm:$0xff] %v18239_v28  ;;  %v18261_v12 = vpack.c.bf16 %v5089_v25, %v5085_v18  ;;  %v18264_v44 = vpack.c.bf16 %v5257_v16, %v5254_v2 }
 0x9ad   : > { %11470 = vmatpush1.bf16.msra.mxu1 %v18213_v26  ;;  %22130 = vst [vmem:[#allocation38_spill] sm:$0xff] %v18251_v59  ;;  %11534 = vmatpush1.bf16.msra.mxu0 %v18226_v31 }
 0x9ae   : > { %11472 = vmatprep.subr.bf16.mxu1 %v18228_v60  ;;  %22131 = vst [vmem:[#allocation39_spill] sm:$0xff] %v18261_v12  ;;  %11536 = vmatprep.subr.bf16.mxu0 %v18239_v28  ;;  %22132 = vst [vmem:[#allocation40_spill] sm:$0xff] %v18264_v44 }
 0x9b1   : > { %11474 = vmatpush1.bf16.msra.mxu1 %v18251_v59  ;;  %11538 = vmatpush1.bf16.msra.mxu0 %v18261_v12 }
 0x9b2   : > { %11571 = vmatprep.subr.bf16.mxu1 %v21780_v51  ;;  %11540 = vmatprep.subr.bf16.mxu0 %v18264_v44 }
 0xa27   : > { %v4656_v42 = vpop.f32.mrb[54].mxu1  ;;  %v4727_v22 = vpop.f32.mrb[38].mxu0 }
 0xa28   : > { %v4657_v31 = vadd.f32 %v4656_v42, %v22091_v39  ;;  %v4658_v26 = vpop.f32.mrb[55].mxu1  ;;  %v4729_v60 = vpop.f32.mrb[39].mxu0  ;;  %v4728_v1 = vadd.f32 %v4727_v22, %v14680_v54 }
 0xa29   : > { %v4659_v25 = vadd.f32 %v4658_v26, %v14671_v24  ;;  %v4730_v13 = vadd.f32 %v4729_v60, %v22092_v9 }
 0xa2a   : > { %v8940_v18 = vmul.f32 -1.442695, %v4657_v31 }
 0xa2b   : > { %v8941_v2 = vmul.f32 -1.442695, %v4659_v25 }
 0xa2c   : > { %13097 = vpow2.f32 %v8940_v18 }
 0xa2d   : > { %13099 = vpow2.f32 %v8941_v2 }
 0xa36   : > { %v13098_v16 = vpop.eup %13097 }
 0xa37   : > { %v4735_v59 = vadd.f32 1.0, %v13098_v16  ;;  %v13100_v12 = vpop.eup %13099 }
 0xa38   : > { %v4741_v28 = vadd.f32 1.0, %v13100_v12 }
 0xa39   : > { %13101 = vrcp.f32 %v4735_v59 }
 0xa3a   : > { %13103 = vrcp.f32 %v4741_v28 }
 0xa43   : > { %v13102_v44 = vpop.eup %13101 }
 0xa44   : > { %v4744_v42 = vmul.f32 %v13102_v44, %v4730_v13  ;;  %v13104_v12 = vpop.eup %13103 }
 0xa45   : > { %v4747_v16 = vsub.f32 1.0, %v13104_v12 }
 0xa46   : > { %v4745_v39 = vadd.f32 %v4744_v42, %v4728_v1  ;;  %v4749_v1 = vmul.f32 %v13104_v12, %v17540_v14  ;;  %v18286_v42 = vld [vmem:[%s21402_s4] ss:$0 sm:$0xff] }
 0xa47   : > { %v4866_v33 = vpop.f32.mrb[16].mxu0  ;;  %v4937_v31 = vpop.f32.mrb[56].mxu1  ;;  %v5253_v12 = vld [vmem:[%s21401_s3] sm:$0xff] }
 0xa48   : > { %13105 = vtanh.f32 %v4745_v39  ;;  %v12847_v26 = vadd.f32 %v4866_v33, %v14450_v53  ;;  %v4868_v18 = vpop.f32.mrb[17].mxu0  ;;  %v9621_v25 = vpop.f32.mrb[57].mxu1 }
 0xa49   : > { %v12848_v59 = vadd.f32 %v4868_v18, %v14459_v46  ;;  %v22133_v18 = vld [vmem:[#allocation61_spill] sm:$0xff] }
 0xa4a   : > { %v8942_v2 = vmul.f32 -1.442695, %v12847_v26 }
 0xa4b   : > { %v8943_v60 = vmul.f32 -1.442695, %v12848_v59 }
 0xa4c   : > { %13107 = vpow2.f32 %v8942_v2 }
 0xa4d   : > { %13109 = vpow2.f32 %v8943_v60  ;;  %v5256_v60 = vld [vmem:[%s21401_s3 + $0x18] sm:$0xff] }
 0xa52   : > { %v13106_v9 = vpop.eup %13105 }
 0xa53   : > { %v4748_v28 = vmul.f32 %v13106_v9, %v4747_v16  ;;  %v4955_v9 = vadd.f32 %v18286_v42, %v4937_v31  ;;  %v5260_v31 = vld [vmem:[%s21401_s3 + $0x38] sm:$0xff] }
 0xa55   : > { %v18277_v13 = vadd.f32 %v4749_v1, %v4748_v28  ;;  %v5263_v28 = vld [vmem:[%s21401_s3 + $0x50] sm:$0xff] }
 0xa56   : > { %v13108_v39 = vpop.eup %13107 }
 0xa57   : > { %v4945_v44 = vadd.f32 1.0, %v13108_v39  ;;  %4751 = vst [vmem:[%s13480_s24 + $0x38] sm:$0xff] %v18277_v13  ;;  %5155 = vmatprep.mubr.f32.mxu1 %v18277_v13  ;;  %5226 = vmatprep.mubr.f32.mxu0 %v18277_v13  ;;  %v13110_v33 = vpop.eup %13109 }
 0xa58   : > { %v4952_v22 = vadd.f32 1.0, %v13110_v33 }
 0xa59   : > { %13111 = vrcp.f32 %v4945_v44  ;;  %v18303_v44 = vpack.c.bf16 %v5256_v60, %v5253_v12  ;;  %v5275_v12 = vld [vmem:[%s21401_s3 + $0xb0] sm:$0xff] }
 0xa5a   : > { %13113 = vrcp.f32 %v4952_v22  ;;  %v18307_v22 = vpack.c.bf16 %v5263_v28, %v5260_v31  ;;  %v5271_v31 = vld [vmem:[%s21401_s3 + $0x90] sm:$0xff]  ;;  %v5274_v28 = vld [vmem:[%s21401_s3 + $0xa8] sm:$0xff] }
 0xa63   : > { %v13112_v14 = vpop.eup %13111 }
 0xa64   : > { %v4956_v26 = vmul.f32 %v13112_v14, %v4955_v9  ;;  %v13114_v2 = vpop.eup %13113  ;;  %v5259_v9 = vld [vmem:[%s21401_s3 + $0x30] sm:$0xff]  ;;  %v5262_v14 = vld [vmem:[%s21401_s3 + $0x48] sm:$0xff] }
 0xa65   : > { %v4959_v59 = vsub.f32 1.0, %v13114_v2  ;;  %v4961_v39 = vmul.f32 %v13114_v2, %v17557_v3  ;;  %v5269_v3 = vld [vmem:[%s21401_s3 + $0x80] sm:$0xff] }
 0xa66   : > { %v4957_v25 = vadd.f32 %v4956_v26, %v22133_v18  ;;  %v5266_v26 = vld [vmem:[%s21401_s3 + $0x68] sm:$0xff]  ;;  %v18325_v18 = vpack.c.bf16 %v5262_v14, %v5259_v9  ;;  %v5265_v2 = vld [vmem:[%s21401_s3 + $0x60] sm:$0xff] }
 0xa67   : > { %v5277_v14 = vld [vmem:[%s21401_s3 + $0xc0] sm:$0xff] }
 0xa68   : > { %13115 = vtanh.f32 %v4957_v25  ;;  %v18329_v25 = vpack.c.bf16 %v5269_v3, %v5266_v26  ;;  %v5280_v26 = vld [vmem:[%s21401_s3 + $0xd8] sm:$0xff]  ;;  %v5287_v3 = vld [vmem:[%s21401_s3 + $0x110] sm:$0xff] }
 0xa72   : > { %v13116_v16 = vpop.eup %13115 }
 0xa73   : > { %v4960_v1 = vmul.f32 %v13116_v16, %v4959_v59  ;;  %v5268_v59 = vld [vmem:[%s21401_s3 + $0x78] sm:$0xff] }
 0xa74   : > { %v18348_v60 = vpack.c.bf16 %v5268_v59, %v5265_v2  ;;  %v18388_v2 = vpack.c.bf16 %v5280_v26, %v5277_v14  ;;  %v22172_v14 = vld [vmem:[#allocation40_spill] sm:$0xff] }
 0xa75   : > { %v18305_v33 = vadd.f32 %v4961_v39, %v4960_v1  ;;  %v5281_v1 = vld [vmem:[%s21401_s3 + $0xe0] sm:$0xff]  ;;  %v18368_v39 = vpack.c.bf16 %v5274_v28, %v5271_v31  ;;  %v22168_v31 = vld [vmem:[#allocation36_spill] sm:$0xff] }
 0xa76   : > { %v22169_v28 = vld [vmem:[#allocation37_spill] sm:$0xff] }
 0xa77   : > { %5156 = vmatmul.mubr.f32.vlgmr.msra.gmra.mrb[58].mxu1 %v18305_v33  ;;  %5227 = vmatmul.mubr.f32.vlgmr.msra.gmra.mrb[40].mxu0 %v18305_v33 }
 0xa78   : > { %11542 = vmatpush1.bf16.msra.mxu0 %v18303_v44  ;;  %11573 = vmatpush3.bf16.msra.mxu1 %v17555_v55  ;;  %v5272_v55 = vld [vmem:[%s21401_s3 + $0x98] sm:$0xff] }
 0xa79   : > { %11544 = vmatprep.subr.bf16.mxu0 %v18307_v22  ;;  %11574 = vmatprep.subr.bf16.mxu1 %v21780_v51  ;;  %v18352_v16 = vpack.c.bf16 %v5275_v12, %v5272_v55  ;;  %v5283_v55 = vld [vmem:[%s21401_s3 + $0xf0] sm:$0xff]  ;;  %v5286_v12 = vld [vmem:[%s21401_s3 + $0x108] sm:$0xff] }
 0xa7a   : > { %5365 = vmatprep.mubr.f32.mxu0 %v21805_v7  ;;  %9654 = vmatprep.mubr.msk.f32.mxu1 %vm13371_vm1, %v21805_v7 }
 0xa7c   : > { %11546 = vmatpush1.bf16.msra.mxu0 %v18325_v18  ;;  %11576 = vmatpush3.bf16.msra.mxu1 %v17569_v61  ;;  %v5278_v61 = vld [vmem:[%s21401_s3 + $0xc8] sm:$0xff] }
 0xa7d   : > { %11548 = vmatprep.subr.bf16.mxu0 %v18329_v25  ;;  %11577 = vmatprep.subr.bf16.mxu1 %v21780_v51  ;;  %v18372_v9 = vpack.c.bf16 %v5281_v1, %v5278_v61  ;;  %v22170_v61 = vld [vmem:[#allocation38_spill] sm:$0xff]  ;;  %v22171_v1 = vld [vmem:[#allocation39_spill] sm:$0xff] }
 0xa80   : > { %11550 = vmatpush1.bf16.msra.mxu0 %v18348_v60  ;;  %11579 = vmatpush3.bf16.msra.mxu1 %v17584_v23  ;;  %v5284_v23 = vld [vmem:[%s21401_s3 + $0xf8] sm:$0xff] }
 0xa81   : > { %11552 = vmatprep.subr.bf16.mxu0 %v18352_v16  ;;  %11580 = vmatprep.subr.bf16.mxu1 %v21780_v51  ;;  %v18392_v59 = vpack.c.bf16 %v5287_v3, %v5284_v23  ;;  %v22173_v3 = vld [vmem:[#allocation9_spill] sm:$0xff] }
 0xa84   : > { %11554 = vmatpush1.bf16.msra.mxu0 %v18368_v39  ;;  %11582 = vmatpush3.bf16.msra.mxu1 %v17596_v63  ;;  %v18402_v63 = vpack.c.bf16 %v5286_v12, %v5283_v55 }
 0xa85   : > { %11556 = vmatprep.subr.bf16.mxu0 %v18372_v9  ;;  %11583 = vmatprep.subr.bf16.mxu1 %v21780_v51 }
 0xa88   : > { %11558 = vmatpush1.bf16.msra.mxu0 %v18388_v2  ;;  %11585 = vmatpush3.bf16.msra.mxu1 %v17608_v36  ;;  %v22134_v36 = vld [vmem:[#allocation69_spill] sm:$0xff] }
 0xa89   : > { %11560 = vmatprep.subr.bf16.mxu0 %v18392_v59  ;;  %11586 = vmatprep.subr.bf16.mxu1 %v21780_v51 }
 0xa8c   : > { %11562 = vmatpush1.bf16.msra.mxu0 %v18402_v63  ;;  %11588 = vmatpush3.bf16.msra.mxu1 %v17626_v50  ;;  %v22135_v50 = vld [vmem:[#allocation70_spill] sm:$0xff] }
 0xa8d   : > { %11564 = vmatprep.subr.bf16.mxu0 %v17633_v30  ;;  %11589 = vmatprep.subr.bf16.mxu1 %v21780_v51  ;;  %v22136_v30 = vld [vmem:[#allocation71_spill] sm:$0xff] }
 0xa90   : > { %11566 = vmatpush1.bf16.msra.mxu0 %v17652_v0  ;;  %11591 = vmatpush3.bf16.msra.mxu1 %v17654_v6  ;;  %v22137_v0 = vld [vmem:[#allocation56_spill] sm:$0xff]  ;;  %v22138_v6 = vld [vmem:[#allocation59_spill] sm:$0xff] }
 0xa91   : > { %11568 = vmatprep.subr.bf16.mxu0 %v17661_v5  ;;  %11592 = vmatprep.subr.bf16.mxu1 %v21780_v51  ;;  %v22139_v5 = vld [vmem:[#allocation72_spill] sm:$0xff] }
 0xa94   : > { %11570 = vmatpush1.bf16.msra.mxu0 %v17674_v10  ;;  %11594 = vmatpush3.bf16.msra.mxu1 %v17676_v21  ;;  %v22140_v10 = vld [vmem:[#allocation54_spill] sm:$0xff]  ;;  %v22141_v21 = vld [vmem:[#allocation57_spill] sm:$0xff] }
 0xa95   : > { %11596 = vmatprep.subr.bf16.mxu1 %v17693_v29  ;;  %11660 = vmatprep.subr.bf16.mxu0 %v17704_v45  ;;  %v22142_v29 = vld [vmem:[#allocation55_spill] sm:$0xff] }
 0xa96   : > { %v22143_v45 = vld [vmem:[#allocation11_spill] sm:$0xff] }
 0xa97   : > { %5366 = vmatmul.mubr.f32.vlgmr.msra.gmra.mrb[18].mxu0 %v18305_v33  ;;  %9655 = vmatmul.mubr.f32.vlgmr.msra.gmra.mrb[60].mxu1 %v18305_v33 }
 0xa98   : > { %11598 = vmatpush1.bf16.msra.mxu1 %v17706_v41  ;;  %11662 = vmatpush1.bf16.msra.mxu0 %v17715_v40  ;;  %v22144_v41 = vld [vmem:[#allocation12_spill] sm:$0xff]  ;;  %v22145_v40 = vld [vmem:[#allocation13_spill] sm:$0xff] }
 0xa99   : > { %11600 = vmatprep.subr.bf16.mxu1 %v17729_v38  ;;  %11664 = vmatprep.subr.bf16.mxu0 %v17740_v34  ;;  %v22146_v38 = vld [vmem:[#allocation14_spill] sm:$0xff]  ;;  %v22147_v34 = vld [vmem:[#allocation15_spill] sm:$0xff] }
 0xa9c   : > { %11602 = vmatpush1.bf16.msra.mxu1 %v17742_v15  ;;  %11666 = vmatpush1.bf16.msra.mxu0 %v17751_v49  ;;  %v22148_v15 = vld [vmem:[#allocation16_spill] sm:$0xff]  ;;  %v22149_v49 = vld [vmem:[#allocation17_spill] sm:$0xff] }
 0xa9d   : > { %11604 = vmatprep.subr.bf16.mxu1 %v17765_v56  ;;  %11668 = vmatprep.subr.bf16.mxu0 %v17776_v57  ;;  %v22150_v56 = vld [vmem:[#allocation18_spill] sm:$0xff]  ;;  %v22151_v57 = vld [vmem:[#allocation19_spill] sm:$0xff] }
 0xaa0   : > { %11606 = vmatpush1.bf16.msra.mxu1 %v17778_v37  ;;  %11670 = vmatpush1.bf16.msra.mxu0 %v17787_v8  ;;  %v22152_v37 = vld [vmem:[#allocation20_spill] sm:$0xff]  ;;  %v22153_v8 = vld [vmem:[#allocation21_spill] sm:$0xff] }
 0xaa1   : > { %11608 = vmatprep.subr.bf16.mxu1 %v17801_v62  ;;  %11672 = vmatprep.subr.bf16.mxu0 %v17812_v17  ;;  %v22154_v62 = vld [vmem:[#allocation22_spill] sm:$0xff]  ;;  %v22155_v17 = vld [vmem:[#allocation23_spill] sm:$0xff] }
 0xaa4   : > { %11610 = vmatpush1.bf16.msra.mxu1 %v17814_v20  ;;  %11674 = vmatpush1.bf16.msra.mxu0 %v17823_v43  ;;  %v22156_v20 = vld [vmem:[#allocation24_spill] sm:$0xff]  ;;  %v22157_v43 = vld [vmem:[#allocation25_spill] sm:$0xff] }
 0xaa5   : > { %11612 = vmatprep.subr.bf16.mxu1 %v17837_v27  ;;  %11676 = vmatprep.subr.bf16.mxu0 %v17848_v11  ;;  %v22158_v27 = vld [vmem:[#allocation26_spill] sm:$0xff]  ;;  %v22159_v11 = vld [vmem:[#allocation27_spill] sm:$0xff] }
 0xaa8   : > { %11614 = vmatpush1.bf16.msra.mxu1 %v17850_v58  ;;  %11678 = vmatpush1.bf16.msra.mxu0 %v17859_v48  ;;  %v22160_v58 = vld [vmem:[#allocation28_spill] sm:$0xff]  ;;  %v22161_v48 = vld [vmem:[#allocation29_spill] sm:$0xff] }
 0xaa9   : > { %11616 = vmatprep.subr.bf16.mxu1 %v17873_v35  ;;  %11680 = vmatprep.subr.bf16.mxu0 %v17884_v47  ;;  %v22162_v35 = vld [vmem:[#allocation30_spill] sm:$0xff]  ;;  %v22163_v47 = vld [vmem:[#allocation31_spill] sm:$0xff] }
 0xaac   : > { %11618 = vmatpush1.bf16.msra.mxu1 %v17886_v32  ;;  %11682 = vmatpush1.bf16.msra.mxu0 %v17895_v4  ;;  %v22164_v32 = vld [vmem:[#allocation32_spill] sm:$0xff]  ;;  %v22165_v4 = vld [vmem:[#allocation33_spill] sm:$0xff] }
 0xaad   : > { %11620 = vmatprep.subr.bf16.mxu1 %v17909_v19  ;;  %11684 = vmatprep.subr.bf16.mxu0 %v17920_v52  ;;  %v22166_v19 = vld [vmem:[#allocation34_spill] sm:$0xff]  ;;  %v22167_v52 = vld [vmem:[#allocation35_spill] sm:$0xff] }
 0xab0   : > { %11622 = vmatpush1.bf16.msra.mxu1 %v22134_v36  ;;  %11686 = vmatpush1.bf16.msra.mxu0 %v22135_v50 }
 0xab1   : > { %11624 = vmatprep.subr.bf16.mxu1 %v22136_v30  ;;  %11688 = vmatprep.subr.bf16.mxu0 %v22137_v0 }
 0xab4   : > { %11626 = vmatpush1.bf16.msra.mxu1 %v22138_v6  ;;  %11690 = vmatpush1.bf16.msra.mxu0 %v22139_v5 }
 0xab5   : > { %11628 = vmatprep.subr.bf16.mxu1 %v22140_v10  ;;  %11692 = vmatprep.subr.bf16.mxu0 %v22141_v21 }
 0xab8   : > { %11630 = vmatpush1.bf16.msra.mxu1 %v22142_v29  ;;  %11694 = vmatpush1.bf16.msra.mxu0 %v22143_v45  ;;  %v22174_v29 = vld [vmem:[#allocation10_spill] sm:$0xff] }
 0xab9   : > { %11632 = vmatprep.subr.bf16.mxu1 %v22144_v41  ;;  %11696 = vmatprep.subr.bf16.mxu0 %v22145_v40 }
 0xabc   : > { %11634 = vmatpush1.bf16.msra.mxu1 %v22146_v38  ;;  %11698 = vmatpush1.bf16.msra.mxu0 %v22147_v34 }
 0xabd   : > { %11636 = vmatprep.subr.bf16.mxu1 %v22148_v15  ;;  %11700 = vmatprep.subr.bf16.mxu0 %v22149_v49 }
 0xac0   : > { %11638 = vmatpush1.bf16.msra.mxu1 %v22150_v56  ;;  %11702 = vmatpush1.bf16.msra.mxu0 %v22151_v57 }
 0xac1   : > { %11640 = vmatprep.subr.bf16.mxu1 %v22152_v37  ;;  %11704 = vmatprep.subr.bf16.mxu0 %v22153_v8 }
 0xac4   : > { %11642 = vmatpush1.bf16.msra.mxu1 %v22154_v62  ;;  %11706 = vmatpush1.bf16.msra.mxu0 %v22155_v17 }
 0xac5   : > { %11644 = vmatprep.subr.bf16.mxu1 %v22156_v20  ;;  %11708 = vmatprep.subr.bf16.mxu0 %v22157_v43 }
 0xac8   : > { %11646 = vmatpush1.bf16.msra.mxu1 %v22158_v27  ;;  %11710 = vmatpush1.bf16.msra.mxu0 %v22159_v11 }
 0xac9   : > { %11648 = vmatprep.subr.bf16.mxu1 %v22160_v58  ;;  %11712 = vmatprep.subr.bf16.mxu0 %v22161_v48 }
 0xacc   : > { %11650 = vmatpush1.bf16.msra.mxu1 %v22162_v35  ;;  %11714 = vmatpush1.bf16.msra.mxu0 %v22163_v47 }
 0xacd   : > { %11652 = vmatprep.subr.bf16.mxu1 %v22164_v32  ;;  %11716 = vmatprep.subr.bf16.mxu0 %v22165_v4 }
 0xad0   : > { %11654 = vmatpush1.bf16.msra.mxu1 %v22166_v19  ;;  %11718 = vmatpush1.bf16.msra.mxu0 %v22167_v52 }
 0xad1   : > { %11656 = vmatprep.subr.bf16.mxu1 %v22168_v31  ;;  %11720 = vmatprep.subr.bf16.mxu0 %v22169_v28  ;;  %v22175_v28 = vld [vmem:[#allocation60_spill] sm:$0xff] }
 0xad4   : > { %11658 = vmatpush1.bf16.msra.mxu1 %v22170_v61  ;;  %11722 = vmatpush1.bf16.msra.mxu0 %v22171_v1 }
 0xad5   : > { %11724 = vmatprep.subr.bf16.mxu0 %v22172_v14  ;;  %11755 = vmatprep.subr.bf16.mxu1 %v21780_v51  ;;  %v5756_v14 = vld [vmem:[%s21401_s3 + $0x10] sm:$0xff] }
 0xb4a   : > { %v5157_v26 = vpop.f32.mrb[58].mxu1  ;;  %v5228_v23 = vpop.f32.mrb[40].mxu0 }
 0xb4b   : > { %v5158_v55 = vadd.f32 %v5157_v26, %v22173_v3  ;;  %v5159_v12 = vpop.f32.mrb[59].mxu1  ;;  %v5230_v36 = vpop.f32.mrb[41].mxu0  ;;  %v5229_v40 = vadd.f32 %v5228_v23, %v14680_v54  ;;  %v5759_v26 = vld [vmem:[%s21401_s3 + $0x28] sm:$0xff] }
 0xb4c   : > { %v5160_v30 = vadd.f32 %v5159_v12, %v14671_v24  ;;  %v5231_v45 = vadd.f32 %v5230_v36, %v22174_v29  ;;  %v18506_v12 = vpack.c.bf16 %v5759_v26, %v5756_v14  ;;  %v5980_v26 = vld [vmem:[%s21403_s5 + $0x78] sm:$0xff] }
 0xb4d   : > { %v8944_v50 = vmul.f32 -1.442695, %v5158_v55 }
 0xb4e   : > { %v8945_v0 = vmul.f32 -1.442695, %v5160_v30  ;;  %v5765_v30 = vld [vmem:[%s21401_s3 + $0x58] sm:$0xff] }
 0xb4f   : > { %13117 = vpow2.f32 %v8944_v50  ;;  %v5762_v50 = vld [vmem:[%s21401_s3 + $0x40] sm:$0xff] }
 0xb50   : > { %13119 = vpow2.f32 %v8945_v0  ;;  %v5768_v0 = vld [vmem:[%s21401_s3 + $0x70] sm:$0xff] }
 0xb59   : > { %v13118_v6 = vpop.eup %13117 }
 0xb5a   : > { %v5236_v5 = vadd.f32 1.0, %v13118_v6  ;;  %v13120_v10 = vpop.eup %13119  ;;  %v5771_v6 = vld [vmem:[%s21401_s3 + $0x88] sm:$0xff] }
 0xb5b   : > { %v5242_v21 = vadd.f32 1.0, %v13120_v10  ;;  %v5783_v10 = vld [vmem:[%s21401_s3 + $0xe8] sm:$0xff] }
 0xb5c   : > { %13121 = vrcp.f32 %v5236_v5  ;;  %v5777_v5 = vld [vmem:[%s21401_s3 + $0xb8] sm:$0xff] }
 0xb5d   : > { %13123 = vrcp.f32 %v5242_v21  ;;  %v5789_v21 = vld [vmem:[%s21401_s3 + $0x118] sm:$0xff] }
 0xb66   : > { %v13122_v41 = vpop.eup %13121 }
 0xb67   : > { %v5245_v38 = vmul.f32 %v13122_v41, %v5231_v45  ;;  %v13124_v17 = vpop.eup %13123  ;;  %v5794_v45 = vld [vmem:[%s21401_s3 + $0x140] sm:$0xff] }
 0xb68   : > { %v5248_v43 = vsub.f32 1.0, %v13124_v17  ;;  %v5250_v58 = vmul.f32 %v13124_v17, %v18277_v13  ;;  %v5790_v41 = vld [vmem:[%s21401_s3 + $0x120] sm:$0xff] }
 0xb69   : > { %v5246_v34 = vadd.f32 %v5245_v38, %v5229_v40  ;;  %v5793_v38 = vld [vmem:[%s21401_s3 + $0x138] sm:$0xff] }
 0xb6a   : > { %v5367_v15 = vpop.f32.mrb[18].mxu0  ;;  %v5438_v49 = vpop.f32.mrb[60].mxu1 }
 0xb6b   : > { %13125 = vtanh.f32 %v5246_v34  ;;  %v12849_v56 = vadd.f32 %v5367_v15, %v14450_v53  ;;  %v5369_v57 = vpop.f32.mrb[19].mxu0  ;;  %v9656_v37 = vpop.f32.mrb[61].mxu1  ;;  %v5456_v19 = vadd.f32 %v18286_v42, %v5438_v49  ;;  %v5795_v34 = vld [vmem:[%s21401_s3 + $0x148] sm:$0xff]  ;;  %v5800_v15 = vld [vmem:[%s21401_s3 + $0x170] sm:$0xff]  ;;  %v18603_v49 = vpack.c.bf16 %v5793_v38, %v5790_v41 }
 0xb6c   : > { %v12850_v62 = vadd.f32 %v5369_v57, %v14459_v46  ;;  %v5796_v57 = vld [vmem:[%s21401_s3 + $0x150] sm:$0xff] }
 0xb6d   : > { %v8946_v8 = vmul.f32 -1.442695, %v12849_v56  ;;  %v5983_v38 = vld [vmem:[%s21403_s5 + $0x90] sm:$0xff] }
 0xb6e   : > { %v8947_v20 = vmul.f32 -1.442695, %v12850_v62  ;;  %v5801_v62 = vld [vmem:[%s21401_s3 + $0x178] sm:$0xff] }
 0xb6f   : > { %13127 = vpow2.f32 %v8946_v8  ;;  %v5798_v8 = vld [vmem:[%s21401_s3 + $0x160] sm:$0xff] }
 0xb70   : > { %13129 = vpow2.f32 %v8947_v20  ;;  %v18627_v20 = vpack.c.bf16 %v5801_v62, %v5798_v8  ;;  %v5996_v8 = vld [vmem:[%s21403_s5 + $0xf8] sm:$0xff]  ;;  %v5989_v62 = vld [vmem:[%s21403_s5 + $0xc0] sm:$0xff] }
 0xb75   : > { %v13126_v27 = vpop.eup %13125 }
 0xb76   : > { %v5249_v11 = vmul.f32 %v13126_v27, %v5248_v43  ;;  %v5966_v43 = vld [vmem:[%s21403_s5 + $0x8] sm:$0xff] }
 0xb77   : > { %v5970_v27 = vld [vmem:[%s21403_s5 + $0x28] sm:$0xff] }
 0xb78   : > { %v18491_v48 = vadd.f32 %v5250_v58, %v5249_v11  ;;  %v5968_v11 = vld [vmem:[%s21403_s5 + $0x18] sm:$0xff]  ;;  %v18644_v58 = vpack.c.bf16 %v5970_v27, %v5966_v43  ;;  %v5993_v43 = vld [vmem:[%s21403_s5 + $0xe0] sm:$0xff] }
 0xb79   : > { %v13128_v35 = vpop.eup %13127 }
 0xb7a   : > { %v5446_v47 = vadd.f32 1.0, %v13128_v35  ;;  %5252 = vst [vmem:[%s13480_s24 + $0x40] sm:$0xff] %v18491_v48  ;;  %5656 = vmatprep.mubr.f32.mxu1 %v18491_v48  ;;  %5727 = vmatprep.mubr.f32.mxu0 %v18491_v48  ;;  %v13130_v32 = vpop.eup %13129  ;;  %v5972_v35 = vld [vmem:[%s21403_s5 + $0x38] sm:$0xff] }
 0xb7b   : > { %v5453_v4 = vadd.f32 1.0, %v13130_v32  ;;  %v5969_v32 = vld [vmem:[%s21403_s5 + $0x20] sm:$0xff] }
 0xb7c   : > { %13131 = vrcp.f32 %v5446_v47  ;;  %v5965_v47 = vld [vmem:[%s21403_s5] sm:$0xff] }
 0xb7d   : > { %13133 = vrcp.f32 %v5453_v4  ;;  %v18655_v4 = vpack.c.bf16 %v5972_v35, %v5968_v11  ;;  %v18765_v11 = vpack.c.bf16 %v5993_v43, %v5989_v62  ;;  %v5991_v35 = vld [vmem:[%s21403_s5 + $0xd0] sm:$0xff] }
 0xb7e   : > { %v6011_v62 = vld [vmem:[%s21403_s5 + $0x170] sm:$0xff] }
 0xb86   : > { %v13132_v52 = vpop.eup %13131 }
 0xb87   : > { %v5457_v31 = vmul.f32 %v13132_v52, %v5456_v19  ;;  %v13134_v61 = vpop.eup %13133  ;;  %v18657_v19 = vpack.c.bf16 %v5969_v32, %v5965_v47  ;;  %v5967_v52 = vld [vmem:[%s21403_s5 + $0x10] sm:$0xff] }
 0xb88   : > { %v5460_v1 = vsub.f32 1.0, %v13134_v61  ;;  %v5462_v42 = vmul.f32 %v13134_v61, %v18305_v33  ;;  %v18520_v33 = vpack.c.bf16 %v5765_v30, %v5762_v50  ;;  %v5978_v61 = vld [vmem:[%s21403_s5 + $0x68] sm:$0xff]  ;;  %v5975_v30 = vld [vmem:[%s21403_s5 + $0x50] sm:$0xff] }
 0xb89   : > { %v5458_v13 = vadd.f32 %v5457_v31, %v22175_v28  ;;  %v5971_v31 = vld [vmem:[%s21403_s5 + $0x30] sm:$0xff] }
 0xb8a   : > { %v18666_v28 = vpack.c.bf16 %v5971_v31, %v5967_v52  ;;  %v5995_v47 = vld [vmem:[%s21403_s5 + $0xf0] sm:$0xff]  ;;  %v5998_v52 = vld [vmem:[%s21403_s5 + $0x108] sm:$0xff] }
 0xb8b   : > { %13135 = vtanh.f32 %v5458_v13  ;;  %v5974_v13 = vld [vmem:[%s21403_s5 + $0x48] sm:$0xff]  ;;  %v18774_v32 = vpack.c.bf16 %v5995_v47, %v5991_v35 }
 0xb8c   : > { %v18680_v14 = vpack.c.bf16 %v5978_v61, %v5974_v13  ;;  %v6002_v31 = vld [vmem:[%s21403_s5 + $0x128] sm:$0xff]  ;;  %v6000_v13 = vld [vmem:[%s21403_s5 + $0x118] sm:$0xff] }
 0xb8d   : > { %v18788_v61 = vpack.c.bf16 %v6002_v31, %v5998_v52  ;;  %v6014_v35 = vld [vmem:[%s21403_s5 + $0x188] sm:$0xff]  ;;  %v6016_v52 = vld [vmem:[%s21403_s5 + $0x198] sm:$0xff] }
 0xb8e   : > { %v6018_v47 = vld [vmem:[%s21403_s5 + $0x1a8] sm:$0xff] }
 0xb8f   : > { %v18860_v31 = vpack.c.bf16 %v6018_v47, %v6014_v35  ;;  %v6025_v35 = vld [vmem:[%s21403_s5 + $0x1e0] sm:$0xff] }
 0xb95   : > { %v13136_v23 = vpop.eup %13135 }
 0xb96   : > { %v5461_v55 = vmul.f32 %v13136_v23, %v5460_v1  ;;  %v5976_v1 = vld [vmem:[%s21403_s5 + $0x58] sm:$0xff]  ;;  %v5973_v23 = vld [vmem:[%s21403_s5 + $0x40] sm:$0xff] }
 0xb98   : > { %v18508_v36 = vadd.f32 %v5462_v42, %v5461_v55  ;;  %v5977_v55 = vld [vmem:[%s21403_s5 + $0x60] sm:$0xff]  ;;  %v18691_v42 = vpack.c.bf16 %v5980_v26, %v5976_v1  ;;  %v6004_v1 = vld [vmem:[%s21403_s5 + $0x138] sm:$0xff] }
 0xb99   : > { %v18693_v50 = vpack.c.bf16 %v5977_v55, %v5973_v23  ;;  %v5997_v26 = vld [vmem:[%s21403_s5 + $0x100] sm:$0xff]  ;;  %v18799_v55 = vpack.c.bf16 %v6004_v1, %v6000_v13  ;;  %v6020_v13 = vld [vmem:[%s21403_s5 + $0x1b8] sm:$0xff] }
 0xb9a   : > { %5657 = vmatmul.mubr.f32.vlgmr.msra.gmra.mrb[62].mxu1 %v18508_v36  ;;  %5728 = vmatmul.mubr.f32.vlgmr.msra.gmra.mrb[42].mxu0 %v18508_v36  ;;  %v6001_v23 = vld [vmem:[%s21403_s5 + $0x120] sm:$0xff] }
 0xb9b   : > { %11726 = vmatpush1.bf16.msra.mxu0 %v18303_v44  ;;  %11757 = vmatpush3.bf16.msra.mxu1 %v18506_v12  ;;  %v18535_v44 = vpack.c.bf16 %v5771_v6, %v5768_v0  ;;  %v5979_v0 = vld [vmem:[%s21403_s5 + $0x70] sm:$0xff]  ;;  %v6013_v1 = vld [vmem:[%s21403_s5 + $0x180] sm:$0xff] }
 0xb9c   : > { %11728 = vmatprep.subr.bf16.mxu0 %v18307_v22  ;;  %11758 = vmatprep.subr.bf16.mxu1 %v21780_v51  ;;  %v5774_v22 = vld [vmem:[%s21401_s3 + $0xa0] sm:$0xff]  ;;  %v18702_v6 = vpack.c.bf16 %v5979_v0, %v5975_v30  ;;  %v18801_v30 = vpack.c.bf16 %v6001_v23, %v5997_v26  ;;  %v5999_v0 = vld [vmem:[%s21403_s5 + $0x110] sm:$0xff]  ;;  %v18871_v23 = vpack.c.bf16 %v6020_v13, %v6016_v52 }
 0xb9d   : > { %5866 = vmatprep.mubr.f32.mxu0 %v21805_v7  ;;  %9689 = vmatprep.mubr.msk.f32.mxu1 %vm13371_vm1, %v21805_v7  ;;  %v6017_v26 = vld [vmem:[%s21403_s5 + $0x1a0] sm:$0xff]  ;;  %v6023_v13 = vld [vmem:[%s21403_s5 + $0x1d0] sm:$0xff] }
 0xb9f   : > { %11730 = vmatpush1.bf16.msra.mxu0 %v18325_v18  ;;  %11760 = vmatpush3.bf16.msra.mxu1 %v18520_v33  ;;  %v18547_v18 = vpack.c.bf16 %v5777_v5, %v5774_v22  ;;  %v5982_v22 = vld [vmem:[%s21403_s5 + $0x88] sm:$0xff] }
 0xba0   : > { %11732 = vmatprep.subr.bf16.mxu0 %v18329_v25  ;;  %11761 = vmatprep.subr.bf16.mxu1 %v21780_v51  ;;  %v5780_v25 = vld [vmem:[%s21401_s3 + $0xd0] sm:$0xff]  ;;  %v5986_v5 = vld [vmem:[%s21403_s5 + $0xa8] sm:$0xff] }
 0xba3   : > { %11734 = vmatpush1.bf16.msra.mxu0 %v18348_v60  ;;  %11763 = vmatpush3.bf16.msra.mxu1 %v18535_v44  ;;  %v18559_v60 = vpack.c.bf16 %v5783_v10, %v5780_v25  ;;  %v5984_v25 = vld [vmem:[%s21403_s5 + $0x98] sm:$0xff]  ;;  %v18716_v10 = vpack.c.bf16 %v5986_v5, %v5982_v22  ;;  %v6003_v22 = vld [vmem:[%s21403_s5 + $0x130] sm:$0xff] }
 0xba4   : > { %11736 = vmatprep.subr.bf16.mxu0 %v18352_v16  ;;  %11764 = vmatprep.subr.bf16.mxu1 %v21780_v51  ;;  %v5786_v16 = vld [vmem:[%s21401_s3 + $0x100] sm:$0xff]  ;;  %v18810_v5 = vpack.c.bf16 %v6003_v22, %v5999_v0  ;;  %v18873_v0 = vpack.c.bf16 %v6017_v26, %v6013_v1  ;;  %v6015_v22 = vld [vmem:[%s21403_s5 + $0x190] sm:$0xff] }
 0xba5   : > { %v6027_v1 = vld [vmem:[%s21403_s5 + $0x1f0] sm:$0xff] }
 0xba6   : > { %22176 = vst [vmem:[#allocation41_spill] sm:$0xff] %v18873_v0  ;;  %v18918_v26 = vpack.c.bf16 %v6027_v1, %v6023_v13  ;;  %v6031_v1 = vld [vmem:[%s21403_s5 + $0x210] sm:$0xff] }
 0xba7   : > { %11738 = vmatpush1.bf16.msra.mxu0 %v18368_v39  ;;  %11766 = vmatpush3.bf16.msra.mxu1 %v18547_v18  ;;  %v5791_v39 = vld [vmem:[%s21401_s3 + $0x128] sm:$0xff] }
 0xba8   : > { %11740 = vmatprep.subr.bf16.mxu0 %v18372_v9  ;;  %11767 = vmatprep.subr.bf16.mxu1 %v21780_v51  ;;  %v18577_v9 = vpack.c.bf16 %v5789_v21, %v5786_v16  ;;  %v18584_v40 = vpack.c.bf16 %v5794_v45, %v5791_v39  ;;  %v5988_v16 = vld [vmem:[%s21403_s5 + $0xb8] sm:$0xff]  ;;  %v5981_v21 = vld [vmem:[%s21403_s5 + $0x80] sm:$0xff]  ;;  %22181 = vst [vmem:[#allocation58_spill] sm:$0xff] %v18918_v26 }
 0xba9   : > { %v5985_v39 = vld [vmem:[%s21403_s5 + $0xa0] sm:$0xff]  ;;  %v18727_v45 = vpack.c.bf16 %v5988_v16, %v5984_v25  ;;  %v6006_v25 = vld [vmem:[%s21403_s5 + $0x148] sm:$0xff] }
 0xbaa   : > { %v18729_v41 = vpack.c.bf16 %v5985_v39, %v5981_v21  ;;  %v6010_v16 = vld [vmem:[%s21403_s5 + $0x168] sm:$0xff]  ;;  %v6008_v21 = vld [vmem:[%s21403_s5 + $0x158] sm:$0xff] }
 0xbab   : > { %11742 = vmatpush1.bf16.msra.mxu0 %v18388_v2  ;;  %11769 = vmatpush3.bf16.msra.mxu1 %v18559_v60  ;;  %v5792_v2 = vld [vmem:[%s21401_s3 + $0x130] sm:$0xff]  ;;  %v18824_v39 = vpack.c.bf16 %v6010_v16, %v6006_v25 }
 0xbac   : > { %11744 = vmatprep.subr.bf16.mxu0 %v18392_v59  ;;  %11770 = vmatprep.subr.bf16.mxu1 %v21780_v51  ;;  %v5797_v59 = vld [vmem:[%s21401_s3 + $0x158] sm:$0xff]  ;;  %v18605_v56 = vpack.c.bf16 %v5795_v34, %v5792_v2  ;;  %v5987_v2 = vld [vmem:[%s21403_s5 + $0xb0] sm:$0xff] }
 0xbad   : > { %v18612_v37 = vpack.c.bf16 %v5800_v15, %v5797_v59  ;;  %v18738_v34 = vpack.c.bf16 %v5987_v2, %v5983_v38  ;;  %v5990_v59 = vld [vmem:[%s21403_s5 + $0xc8] sm:$0xff]  ;;  %v6012_v38 = vld [vmem:[%s21403_s5 + $0x178] sm:$0xff]  ;;  %v6005_v2 = vld [vmem:[%s21403_s5 + $0x140] sm:$0xff] }
 0xbae   : > { %v5994_v15 = vld [vmem:[%s21403_s5 + $0xe8] sm:$0xff]  ;;  %v6019_v25 = vld [vmem:[%s21403_s5 + $0x1b0] sm:$0xff] }
 0xbaf   : > { %11746 = vmatpush1.bf16.msra.mxu0 %v18402_v63  ;;  %11772 = vmatpush3.bf16.msra.mxu1 %v18577_v9  ;;  %v5799_v63 = vld [vmem:[%s21401_s3 + $0x168] sm:$0xff]  ;;  %v18882_v16 = vpack.c.bf16 %v6019_v25, %v6015_v22 }
 0xbb0   : > { %11748 = vmatprep.subr.bf16.mxu0 %v18584_v40  ;;  %11773 = vmatprep.subr.bf16.mxu1 %v21780_v51  ;;  %v18625_v17 = vpack.c.bf16 %v5799_v63, %v5796_v57  ;;  %v5992_v57 = vld [vmem:[%s21403_s5 + $0xd8] sm:$0xff]  ;;  %v18752_v63 = vpack.c.bf16 %v5994_v15, %v5990_v59  ;;  %v6009_v59 = vld [vmem:[%s21403_s5 + $0x160] sm:$0xff]  ;;  %v18835_v15 = vpack.c.bf16 %v6012_v38, %v6008_v21  ;;  %v6022_v21 = vld [vmem:[%s21403_s5 + $0x1c8] sm:$0xff] }
 0xbb1   : > { %v18763_v27 = vpack.c.bf16 %v5996_v8, %v5992_v57  ;;  %v18837_v57 = vpack.c.bf16 %v6009_v59, %v6005_v2  ;;  %v6007_v8 = vld [vmem:[%s21403_s5 + $0x150] sm:$0xff]  ;;  %22177 = vst [vmem:[#allocation43_spill] sm:$0xff] %v18882_v16  ;;  %v6026_v38 = vld [vmem:[%s21403_s5 + $0x1e8] sm:$0xff]  ;;  %v6024_v2 = vld [vmem:[%s21403_s5 + $0x1d8] sm:$0xff] }
 0xbb2   : > { %v18846_v43 = vpack.c.bf16 %v6011_v62, %v6007_v8  ;;  %v18896_v59 = vpack.c.bf16 %v6026_v38, %v6022_v21  ;;  %v6028_v8 = vld [vmem:[%s21403_s5 + $0x1f8] sm:$0xff]  ;;  %v6021_v62 = vld [vmem:[%s21403_s5 + $0x1c0] sm:$0xff]  ;;  %v6030_v22 = vld [vmem:[%s21403_s5 + $0x208] sm:$0xff] }
 0xbb3   : > { %11750 = vmatpush1.bf16.msra.mxu0 %v18603_v49  ;;  %11775 = vmatpush3.bf16.msra.mxu1 %v18605_v56  ;;  %v18907_v47 = vpack.c.bf16 %v6028_v8, %v6024_v2  ;;  %v18909_v52 = vpack.c.bf16 %v6025_v35, %v6021_v62  ;;  %v6034_v25 = vld [vmem:[%s21403_s5 + $0x228] sm:$0xff]  ;;  %v6032_v21 = vld [vmem:[%s21403_s5 + $0x218] sm:$0xff]  ;;  %v6029_v8 = vld [vmem:[%s21403_s5 + $0x200] sm:$0xff] }
 0xbb4   : > { %11752 = vmatprep.subr.bf16.mxu0 %v18612_v37  ;;  %11776 = vmatprep.subr.bf16.mxu1 %v21780_v51  ;;  %22178 = vst [vmem:[#allocation44_spill] sm:$0xff] %v18896_v59  ;;  %v18932_v38 = vpack.c.bf16 %v6034_v25, %v6030_v22  ;;  %v6036_v2 = vld [vmem:[%s21403_s5 + $0x238] sm:$0xff]  ;;  %v6033_v62 = vld [vmem:[%s21403_s5 + $0x220] sm:$0xff]  ;;  %v6035_v22 = vld [vmem:[%s21403_s5 + $0x230] sm:$0xff] }
 0xbb5   : > { %22179 = vst [vmem:[#allocation42_spill] sm:$0xff] %v18907_v47  ;;  %22180 = vst [vmem:[#allocation53_spill] sm:$0xff] %v18909_v52  ;;  %v18943_v35 = vpack.c.bf16 %v6036_v2, %v6032_v21  ;;  %v18945_v13 = vpack.c.bf16 %v6033_v62, %v6029_v8  ;;  %v18954_v25 = vpack.c.bf16 %v6035_v22, %v6031_v1  ;;  %v6038_v21 = vld [vmem:[%s21403_s5 + $0x248] sm:$0xff]  ;;  %v6040_v8 = vld [vmem:[%s21403_s5 + $0x258] sm:$0xff] }
 0xbb6   : > { %22182 = vst [vmem:[#allocation61_spill] sm:$0xff] %v18932_v38  ;;  %v6042_v2 = vld [vmem:[%s21403_s5 + $0x268] sm:$0xff]  ;;  %v6044_v1 = vld [vmem:[%s21403_s5 + $0x278] sm:$0xff]  ;;  %v6037_v22 = vld [vmem:[%s21403_s5 + $0x240] sm:$0xff] }
 0xbb7   : > { %11754 = vmatpush1.bf16.msra.mxu0 %v18625_v17  ;;  %11778 = vmatpush3.bf16.msra.mxu1 %v18627_v20  ;;  %22183 = vst [vmem:[#allocation69_spill] sm:$0xff] %v18943_v35  ;;  %22184 = vst [vmem:[#allocation70_spill] sm:$0xff] %v18945_v13  ;;  %v18968_v62 = vpack.c.bf16 %v6042_v2, %v6038_v21  ;;  %v6039_v21 = vld [vmem:[%s21403_s5 + $0x250] sm:$0xff] }
 0xbb8   : > { %11780 = vmatprep.subr.bf16.mxu1 %v18644_v58  ;;  %11844 = vmatprep.subr.bf16.mxu0 %v18655_v4  ;;  %22185 = vst [vmem:[#allocation71_spill] sm:$0xff] %v18954_v25  ;;  %v6043_v2 = vld [vmem:[%s21403_s5 + $0x270] sm:$0xff] }
 0xbb9   : > { %22186 = vst [vmem:[#allocation56_spill] sm:$0xff] %v18968_v62 }
 0xbba   : > { %5867 = vmatmul.mubr.f32.vlgmr.msra.gmra.mrb[20].mxu0 %v18508_v36  ;;  %9690 = vmatmul.mubr.f32.vlgmr.msra.gmra.mrb[64].mxu1 %v18508_v36 }
 0xbbb   : > { %11782 = vmatpush1.bf16.msra.mxu1 %v18657_v19  ;;  %11846 = vmatpush1.bf16.msra.mxu0 %v18666_v28 }
 0xbbc   : > { %11784 = vmatprep.subr.bf16.mxu1 %v18680_v14  ;;  %11848 = vmatprep.subr.bf16.mxu0 %v18691_v42 }
 0xbbf   : > { %11786 = vmatpush1.bf16.msra.mxu1 %v18693_v50  ;;  %11850 = vmatpush1.bf16.msra.mxu0 %v18702_v6 }
 0xbc0   : > { %11788 = vmatprep.subr.bf16.mxu1 %v18716_v10  ;;  %11852 = vmatprep.subr.bf16.mxu0 %v18727_v45 }
 0xbc3   : > { %11790 = vmatpush1.bf16.msra.mxu1 %v18729_v41  ;;  %11854 = vmatpush1.bf16.msra.mxu0 %v18738_v34 }
 0xbc4   : > { %11792 = vmatprep.subr.bf16.mxu1 %v18752_v63  ;;  %11856 = vmatprep.subr.bf16.mxu0 %v18763_v27 }
 0xbc7   : > { %11794 = vmatpush1.bf16.msra.mxu1 %v18765_v11  ;;  %11858 = vmatpush1.bf16.msra.mxu0 %v18774_v32 }
 0xbc8   : > { %11796 = vmatprep.subr.bf16.mxu1 %v18788_v61  ;;  %11860 = vmatprep.subr.bf16.mxu0 %v18799_v55 }
 0xbcb   : > { %11798 = vmatpush1.bf16.msra.mxu1 %v18801_v30  ;;  %11862 = vmatpush1.bf16.msra.mxu0 %v18810_v5 }
 0xbcc   : > { %11800 = vmatprep.subr.bf16.mxu1 %v18824_v39  ;;  %11864 = vmatprep.subr.bf16.mxu0 %v18835_v15 }
 0xbcf   : > { %11802 = vmatpush1.bf16.msra.mxu1 %v18837_v57  ;;  %11866 = vmatpush1.bf16.msra.mxu0 %v18846_v43 }
 0xbd0   : > { %11804 = vmatprep.subr.bf16.mxu1 %v18860_v31  ;;  %11868 = vmatprep.subr.bf16.mxu0 %v18871_v23 }
 0xbd3   : > { %11806 = vmatpush1.bf16.msra.mxu1 %v18873_v0  ;;  %11870 = vmatpush1.bf16.msra.mxu0 %v18882_v16 }
 0xbd4   : > { %11808 = vmatprep.subr.bf16.mxu1 %v18896_v59  ;;  %11872 = vmatprep.subr.bf16.mxu0 %v18907_v47 }
 0xbd7   : > { %11810 = vmatpush1.bf16.msra.mxu1 %v18909_v52  ;;  %11874 = vmatpush1.bf16.msra.mxu0 %v18918_v26  ;;  %v6079_v52 = vld [vmem:[%s21403_s5 + $0x390] sm:$0xff] }
 0xbd8   : > { %11812 = vmatprep.subr.bf16.mxu1 %v18932_v38  ;;  %11876 = vmatprep.subr.bf16.mxu0 %v18943_v35  ;;  %v18979_v35 = vpack.c.bf16 %v6044_v1, %v6040_v8  ;;  %v6050_v8 = vld [vmem:[%s21403_s5 + $0x2a8] sm:$0xff]  ;;  %v6048_v1 = vld [vmem:[%s21403_s5 + $0x298] sm:$0xff] }
 0xbda   : > { %22187 = vst [vmem:[#allocation59_spill] sm:$0xff] %v18979_v35 }
 0xbdb   : > { %11814 = vmatpush1.bf16.msra.mxu1 %v18945_v13  ;;  %11878 = vmatpush1.bf16.msra.mxu0 %v18954_v25  ;;  %v6041_v13 = vld [vmem:[%s21403_s5 + $0x260] sm:$0xff]  ;;  %v18990_v25 = vpack.c.bf16 %v6043_v2, %v6039_v21  ;;  %v6052_v21 = vld [vmem:[%s21403_s5 + $0x2b8] sm:$0xff] }
 0xbdc   : > { %v18981_v38 = vpack.c.bf16 %v6041_v13, %v6037_v22  ;;  %11816 = vmatprep.subr.bf16.mxu1 %v18968_v62  ;;  %11880 = vmatprep.subr.bf16.mxu0 %v18979_v35  ;;  %v6046_v13 = vld [vmem:[%s21403_s5 + $0x288] sm:$0xff]  ;;  %v6045_v2 = vld [vmem:[%s21403_s5 + $0x280] sm:$0xff]  ;;  %v19015_v35 = vpack.c.bf16 %v6052_v21, %v6048_v1  ;;  %v6056_v21 = vld [vmem:[%s21403_s5 + $0x2d8] sm:$0xff] }
 0xbdd   : > { %22189 = vst [vmem:[#allocation54_spill] sm:$0xff] %v18990_v25  ;;  %v19004_v22 = vpack.c.bf16 %v6050_v8, %v6046_v13  ;;  %v6047_v13 = vld [vmem:[%s21403_s5 + $0x290] sm:$0xff]  ;;  %v6058_v1 = vld [vmem:[%s21403_s5 + $0x2e8] sm:$0xff] }
 0xbde   : > { %22188 = vst [vmem:[#allocation72_spill] sm:$0xff] %v18981_v38  ;;  %22191 = vst [vmem:[#allocation55_spill] sm:$0xff] %v19015_v35  ;;  %v6051_v8 = vld [vmem:[%s21403_s5 + $0x2b0] sm:$0xff] }
 0xbdf   : > { %11818 = vmatpush1.bf16.msra.mxu1 %v18981_v38  ;;  %11882 = vmatpush1.bf16.msra.mxu0 %v18990_v25  ;;  %22190 = vst [vmem:[#allocation57_spill] sm:$0xff] %v19004_v22  ;;  %v6049_v38 = vld [vmem:[%s21403_s5 + $0x2a0] sm:$0xff]  ;;  %v19026_v25 = vpack.c.bf16 %v6051_v8, %v6047_v13  ;;  %v6060_v13 = vld [vmem:[%s21403_s5 + $0x2f8] sm:$0xff] }
 0xbe0   : > { %v19017_v62 = vpack.c.bf16 %v6049_v38, %v6045_v2  ;;  %11820 = vmatprep.subr.bf16.mxu1 %v19004_v22  ;;  %11884 = vmatprep.subr.bf16.mxu0 %v19015_v35  ;;  %v6054_v38 = vld [vmem:[%s21403_s5 + $0x2c8] sm:$0xff]  ;;  %v6053_v8 = vld [vmem:[%s21403_s5 + $0x2c0] sm:$0xff]  ;;  %v19051_v35 = vpack.c.bf16 %v6060_v13, %v6056_v21  ;;  %v6064_v13 = vld [vmem:[%s21403_s5 + $0x318] sm:$0xff] }
 0xbe1   : > { %22193 = vst [vmem:[#allocation12_spill] sm:$0xff] %v19026_v25  ;;  %v19040_v2 = vpack.c.bf16 %v6058_v1, %v6054_v38  ;;  %v6055_v38 = vld [vmem:[%s21403_s5 + $0x2d0] sm:$0xff]  ;;  %v6066_v21 = vld [vmem:[%s21403_s5 + $0x328] sm:$0xff] }
 0xbe2   : > { %22192 = vst [vmem:[#allocation11_spill] sm:$0xff] %v19017_v62  ;;  %22195 = vst [vmem:[#allocation14_spill] sm:$0xff] %v19051_v35  ;;  %v6059_v1 = vld [vmem:[%s21403_s5 + $0x2f0] sm:$0xff] }
 0xbe3   : > { %11822 = vmatpush1.bf16.msra.mxu1 %v19017_v62  ;;  %11886 = vmatpush1.bf16.msra.mxu0 %v19026_v25  ;;  %22194 = vst [vmem:[#allocation13_spill] sm:$0xff] %v19040_v2  ;;  %v6057_v62 = vld [vmem:[%s21403_s5 + $0x2e0] sm:$0xff]  ;;  %v19062_v25 = vpack.c.bf16 %v6059_v1, %v6055_v38  ;;  %v6068_v38 = vld [vmem:[%s21403_s5 + $0x338] sm:$0xff] }
 0xbe4   : > { %v19053_v22 = vpack.c.bf16 %v6057_v62, %v6053_v8  ;;  %11824 = vmatprep.subr.bf16.mxu1 %v19040_v2  ;;  %11888 = vmatprep.subr.bf16.mxu0 %v19051_v35  ;;  %v6062_v62 = vld [vmem:[%s21403_s5 + $0x308] sm:$0xff]  ;;  %v6061_v1 = vld [vmem:[%s21403_s5 + $0x300] sm:$0xff]  ;;  %v19087_v35 = vpack.c.bf16 %v6068_v38, %v6064_v13  ;;  %v6072_v38 = vld [vmem:[%s21403_s5 + $0x358] sm:$0xff] }
 0xbe5   : > { %22197 = vst [vmem:[#allocation16_spill] sm:$0xff] %v19062_v25  ;;  %v19076_v8 = vpack.c.bf16 %v6066_v21, %v6062_v62  ;;  %v6063_v62 = vld [vmem:[%s21403_s5 + $0x310] sm:$0xff]  ;;  %v6074_v13 = vld [vmem:[%s21403_s5 + $0x368] sm:$0xff] }
 0xbe6   : > { %22196 = vst [vmem:[#allocation15_spill] sm:$0xff] %v19053_v22  ;;  %22199 = vst [vmem:[#allocation18_spill] sm:$0xff] %v19087_v35  ;;  %v6067_v21 = vld [vmem:[%s21403_s5 + $0x330] sm:$0xff] }
 0xbe7   : > { %11826 = vmatpush1.bf16.msra.mxu1 %v19053_v22  ;;  %11890 = vmatpush1.bf16.msra.mxu0 %v19062_v25  ;;  %22198 = vst [vmem:[#allocation17_spill] sm:$0xff] %v19076_v8  ;;  %v6065_v22 = vld [vmem:[%s21403_s5 + $0x320] sm:$0xff]  ;;  %v19098_v25 = vpack.c.bf16 %v6067_v21, %v6063_v62  ;;  %v6076_v62 = vld [vmem:[%s21403_s5 + $0x378] sm:$0xff] }
 0xbe8   : > { %v19089_v2 = vpack.c.bf16 %v6065_v22, %v6061_v1  ;;  %11828 = vmatprep.subr.bf16.mxu1 %v19076_v8  ;;  %11892 = vmatprep.subr.bf16.mxu0 %v19087_v35  ;;  %v6070_v22 = vld [vmem:[%s21403_s5 + $0x348] sm:$0xff]  ;;  %v6069_v21 = vld [vmem:[%s21403_s5 + $0x340] sm:$0xff]  ;;  %v19123_v35 = vpack.c.bf16 %v6076_v62, %v6072_v38  ;;  %v6080_v38 = vld [vmem:[%s21403_s5 + $0x398] sm:$0xff] }
 0xbe9   : > { %22201 = vst [vmem:[#allocation20_spill] sm:$0xff] %v19098_v25  ;;  %v19112_v1 = vpack.c.bf16 %v6074_v13, %v6070_v22  ;;  %v6071_v22 = vld [vmem:[%s21403_s5 + $0x350] sm:$0xff]  ;;  %v6084_v62 = vld [vmem:[%s21403_s5 + $0x3b8] sm:$0xff] }
 0xbea   : > { %22200 = vst [vmem:[#allocation19_spill] sm:$0xff] %v19089_v2  ;;  %22203 = vst [vmem:[#allocation22_spill] sm:$0xff] %v19123_v35  ;;  %v6075_v13 = vld [vmem:[%s21403_s5 + $0x370] sm:$0xff] }
 0xbeb   : > { %11830 = vmatpush1.bf16.msra.mxu1 %v19089_v2  ;;  %11894 = vmatpush1.bf16.msra.mxu0 %v19098_v25  ;;  %22202 = vst [vmem:[#allocation21_spill] sm:$0xff] %v19112_v1  ;;  %v6073_v2 = vld [vmem:[%s21403_s5 + $0x360] sm:$0xff]  ;;  %v6078_v25 = vld [vmem:[%s21403_s5 + $0x388] sm:$0xff]  ;;  %v19137_v26 = vpack.c.bf16 %v6075_v13, %v6071_v22  ;;  %v19152_v22 = vpack.c.bf16 %v6084_v62, %v6080_v38 }
 0xbec   : > { %v19125_v8 = vpack.c.bf16 %v6073_v2, %v6069_v21  ;;  %11832 = vmatprep.subr.bf16.mxu1 %v19112_v1  ;;  %v6082_v2 = vld [vmem:[%s21403_s5 + $0x3a8] sm:$0xff]  ;;  %11896 = vmatprep.subr.bf16.mxu0 %v19123_v35  ;;  %v6077_v13 = vld [vmem:[%s21403_s5 + $0x380] sm:$0xff] }
 0xbed   : > { %22205 = vst [vmem:[#allocation24_spill] sm:$0xff] %v19137_v26  ;;  %v19150_v21 = vpack.c.bf16 %v6082_v2, %v6078_v25  ;;  %22207 = vst [vmem:[#allocation26_spill] sm:$0xff] %v19152_v22  ;;  %v6081_v1 = vld [vmem:[%s21403_s5 + $0x3a0] sm:$0xff]  ;;  %v6083_v25 = vld [vmem:[%s21403_s5 + $0x3b0] sm:$0xff] }
 0xbee   : > { %22204 = vst [vmem:[#allocation23_spill] sm:$0xff] %v19125_v8  ;;  %v19164_v35 = vpack.c.bf16 %v6081_v1, %v6077_v13  ;;  %v6086_v2 = vld [vmem:[%s21403_s5 + $0x3c8] sm:$0xff]  ;;  %v19177_v62 = vpack.c.bf16 %v6083_v25, %v6079_v52  ;;  %v6088_v13 = vld [vmem:[%s21403_s5 + $0x3d8] sm:$0xff]  ;;  %v6089_v52 = vld [vmem:[%s21403_s5 + $0x3e0] sm:$0xff] }
 0xbef   : > { %11834 = vmatpush1.bf16.msra.mxu1 %v19125_v8  ;;  %22206 = vst [vmem:[#allocation25_spill] sm:$0xff] %v19150_v21  ;;  %11898 = vmatpush1.bf16.msra.mxu0 %v19137_v26  ;;  %v6090_v38 = vld [vmem:[%s21403_s5 + $0x3e8] sm:$0xff]  ;;  %v6092_v26 = vld [vmem:[%s21403_s5 + $0x3f8] sm:$0xff]  ;;  %v6085_v8 = vld [vmem:[%s21403_s5 + $0x3c0] sm:$0xff] }
 0xbf0   : > { %22208 = vst [vmem:[#allocation27_spill] sm:$0xff] %v19164_v35  ;;  %11836 = vmatprep.subr.bf16.mxu1 %v19150_v21  ;;  %11900 = vmatprep.subr.bf16.mxu0 %v19152_v22  ;;  %22209 = vst [vmem:[#allocation28_spill] sm:$0xff] %v19177_v62  ;;  %v19179_v1 = vpack.c.bf16 %v6090_v38, %v6086_v2  ;;  %v19190_v47 = vpack.c.bf16 %v6092_v26, %v6088_v13  ;;  %v6087_v25 = vld [vmem:[%s21403_s5 + $0x3d0] sm:$0xff]  ;;  %v6256_v26 = vld [vmem:[%s21401_s3 + $0x8] sm:$0xff] }
 0xbf1   : > { %v6091_v2 = vld [vmem:[%s21403_s5 + $0x3f0] sm:$0xff]  ;;  %v19202_v38 = vpack.c.bf16 %v6089_v52, %v6085_v8  ;;  %v6259_v13 = vld [vmem:[%s21401_s3 + $0x20] sm:$0xff] }
 0xbf2   : > { %22210 = vst [vmem:[#allocation29_spill] sm:$0xff] %v19179_v1  ;;  %22211 = vst [vmem:[#allocation30_spill] sm:$0xff] %v19190_v47  ;;  %v19212_v22 = vpack.c.bf16 %v6091_v2, %v6087_v25  ;;  %v19215_v21 = vpack.c.bf16 %v6259_v13, %v6256_v26 }
 0xbf3   : > { %11838 = vmatpush1.bf16.msra.mxu1 %v19164_v35  ;;  %22212 = vst [vmem:[#allocation31_spill] sm:$0xff] %v19202_v38  ;;  %11902 = vmatpush1.bf16.msra.mxu0 %v19177_v62 }
 0xbf4   : > { %11840 = vmatprep.subr.bf16.mxu1 %v19179_v1  ;;  %22213 = vst [vmem:[#allocation32_spill] sm:$0xff] %v19212_v22  ;;  %11904 = vmatprep.subr.bf16.mxu0 %v19190_v47  ;;  %22214 = vst [vmem:[#allocation33_spill] sm:$0xff] %v19215_v21 }
 0xbf7   : > { %11842 = vmatpush1.bf16.msra.mxu1 %v19202_v38  ;;  %11906 = vmatpush1.bf16.msra.mxu0 %v19212_v22 }
 0xbf8   : > { %11939 = vmatprep.subr.bf16.mxu1 %v21780_v51  ;;  %11908 = vmatprep.subr.bf16.mxu0 %v19215_v21 }
 0xc6d   : > { %v5658_v8 = vpop.f32.mrb[62].mxu1  ;;  %v5729_v52 = vpop.f32.mrb[42].mxu0 }
 0xc6e   : > { %v5659_v62 = vadd.f32 %v5658_v8, %v22173_v3  ;;  %v5660_v35 = vpop.f32.mrb[63].mxu1  ;;  %v5731_v1 = vpop.f32.mrb[43].mxu0  ;;  %v5730_v16 = vadd.f32 %v5729_v52, %v14680_v54 }
 0xc6f   : > { %v5661_v2 = vadd.f32 %v5660_v35, %v14671_v24  ;;  %v5732_v59 = vadd.f32 %v5731_v1, %v22174_v29 }
 0xc70   : > { %v8948_v25 = vmul.f32 -1.442695, %v5659_v62 }
 0xc71   : > { %v8949_v26 = vmul.f32 -1.442695, %v5661_v2 }
 0xc72   : > { %13137 = vpow2.f32 %v8948_v25 }
 0xc73   : > { %13139 = vpow2.f32 %v8949_v26 }
 0xc7c   : > { %v13138_v13 = vpop.eup %13137 }
 0xc7d   : > { %v5737_v38 = vadd.f32 1.0, %v13138_v13  ;;  %v13140_v22 = vpop.eup %13139 }
 0xc7e   : > { %v5743_v47 = vadd.f32 1.0, %v13140_v22 }
 0xc7f   : > { %13141 = vrcp.f32 %v5737_v38 }
 0xc80   : > { %13143 = vrcp.f32 %v5743_v47 }
 0xc89   : > { %v13142_v21 = vpop.eup %13141 }
 0xc8a   : > { %v5746_v8 = vmul.f32 %v13142_v21, %v5732_v59  ;;  %v13144_v22 = vpop.eup %13143 }
 0xc8b   : > { %v5749_v13 = vsub.f32 1.0, %v13144_v22 }
 0xc8c   : > { %v5747_v3 = vadd.f32 %v5746_v8, %v5730_v16  ;;  %v5751_v16 = vmul.f32 %v13144_v22, %v18491_v48  ;;  %v19237_v8 = vld [vmem:[%s21402_s4] ss:$0 sm:$0xff] }
 0xc8d   : > { %v5868_v0 = vpop.f32.mrb[20].mxu0  ;;  %v5939_v62 = vpop.f32.mrb[64].mxu1  ;;  %v6255_v22 = vld [vmem:[%s21401_s3] sm:$0xff] }
 0xc8e   : > { %13145 = vtanh.f32 %v5747_v3  ;;  %v12851_v35 = vadd.f32 %v5868_v0, %v14450_v53  ;;  %v5870_v25 = vpop.f32.mrb[21].mxu0  ;;  %v9691_v2 = vpop.f32.mrb[65].mxu1 }
 0xc8f   : > { %v12852_v38 = vadd.f32 %v5870_v25, %v14459_v46  ;;  %v22215_v25 = vld [vmem:[#allocation63_spill] sm:$0xff] }
 0xc90   : > { %v8950_v26 = vmul.f32 -1.442695, %v12851_v35 }
 0xc91   : > { %v8951_v1 = vmul.f32 -1.442695, %v12852_v38 }
 0xc92   : > { %13147 = vpow2.f32 %v8950_v26 }
 0xc93   : > { %13149 = vpow2.f32 %v8951_v1  ;;  %v6258_v1 = vld [vmem:[%s21401_s3 + $0x18] sm:$0xff] }
 0xc98   : > { %v13146_v29 = vpop.eup %13145 }
 0xc99   : > { %v5750_v47 = vmul.f32 %v13146_v29, %v5749_v13  ;;  %v5957_v29 = vadd.f32 %v19237_v8, %v5939_v62  ;;  %v6262_v62 = vld [vmem:[%s21401_s3 + $0x38] sm:$0xff] }
 0xc9b   : > { %v19228_v59 = vadd.f32 %v5751_v16, %v5750_v47  ;;  %v6265_v47 = vld [vmem:[%s21401_s3 + $0x50] sm:$0xff] }
 0xc9c   : > { %v13148_v3 = vpop.eup %13147 }
 0xc9d   : > { %v5947_v21 = vadd.f32 1.0, %v13148_v3  ;;  %5753 = vst [vmem:[%s13480_s24 + $0x48] sm:$0xff] %v19228_v59  ;;  %6157 = vmatprep.mubr.f32.mxu1 %v19228_v59  ;;  %6228 = vmatprep.mubr.f32.mxu0 %v19228_v59  ;;  %v13150_v0 = vpop.eup %13149 }
 0xc9e   : > { %v5954_v52 = vadd.f32 1.0, %v13150_v0 }
 0xc9f   : > { %13151 = vrcp.f32 %v5947_v21  ;;  %v19254_v21 = vpack.c.bf16 %v6258_v1, %v6255_v22  ;;  %v6277_v22 = vld [vmem:[%s21401_s3 + $0xb0] sm:$0xff] }
 0xca0   : > { %13153 = vrcp.f32 %v5954_v52  ;;  %v19258_v52 = vpack.c.bf16 %v6265_v47, %v6262_v62  ;;  %v6273_v62 = vld [vmem:[%s21401_s3 + $0x90] sm:$0xff]  ;;  %v6276_v47 = vld [vmem:[%s21401_s3 + $0xa8] sm:$0xff] }
 0xca9   : > { %v13152_v48 = vpop.eup %13151 }
 0xcaa   : > { %v5958_v35 = vmul.f32 %v13152_v48, %v5957_v29  ;;  %v13154_v26 = vpop.eup %13153  ;;  %v6261_v29 = vld [vmem:[%s21401_s3 + $0x30] sm:$0xff]  ;;  %v6264_v48 = vld [vmem:[%s21401_s3 + $0x48] sm:$0xff] }
 0xcab   : > { %v5961_v38 = vsub.f32 1.0, %v13154_v26  ;;  %v5963_v3 = vmul.f32 %v13154_v26, %v18508_v36  ;;  %v6271_v36 = vld [vmem:[%s21401_s3 + $0x80] sm:$0xff] }
 0xcac   : > { %v5959_v2 = vadd.f32 %v5958_v35, %v22215_v25  ;;  %v6268_v35 = vld [vmem:[%s21401_s3 + $0x68] sm:$0xff]  ;;  %v19276_v25 = vpack.c.bf16 %v6264_v48, %v6261_v29  ;;  %v6267_v26 = vld [vmem:[%s21401_s3 + $0x60] sm:$0xff] }
 0xcad   : > { %v6279_v48 = vld [vmem:[%s21401_s3 + $0xc0] sm:$0xff] }
 0xcae   : > { %13155 = vtanh.f32 %v5959_v2  ;;  %v19280_v2 = vpack.c.bf16 %v6271_v36, %v6268_v35  ;;  %v6282_v35 = vld [vmem:[%s21401_s3 + $0xd8] sm:$0xff]  ;;  %v6289_v36 = vld [vmem:[%s21401_s3 + $0x110] sm:$0xff] }
 0xcb8   : > { %v13156_v13 = vpop.eup %13155 }
 0xcb9   : > { %v5962_v16 = vmul.f32 %v13156_v13, %v5961_v38  ;;  %v6270_v38 = vld [vmem:[%s21401_s3 + $0x78] sm:$0xff] }
 0xcba   : > { %v19299_v1 = vpack.c.bf16 %v6270_v38, %v6267_v26  ;;  %v19339_v26 = vpack.c.bf16 %v6282_v35, %v6279_v48  ;;  %v22254_v48 = vld [vmem:[#allocation33_spill] sm:$0xff] }
 0xcbb   : > { %v19256_v0 = vadd.f32 %v5963_v3, %v5962_v16  ;;  %v6283_v16 = vld [vmem:[%s21401_s3 + $0xe0] sm:$0xff]  ;;  %v19319_v3 = vpack.c.bf16 %v6276_v47, %v6273_v62  ;;  %v22251_v47 = vld [vmem:[#allocation30_spill] sm:$0xff] }
 0xcbc   : > { %v22250_v62 = vld [vmem:[#allocation29_spill] sm:$0xff] }
 0xcbd   : > { %6158 = vmatmul.mubr.f32.vlgmr.msra.gmra.mrb[66].mxu1 %v19256_v0  ;;  %6229 = vmatmul.mubr.f32.vlgmr.msra.gmra.mrb[44].mxu0 %v19256_v0 }
 0xcbe   : > { %11910 = vmatpush1.bf16.msra.mxu0 %v19254_v21  ;;  %11941 = vmatpush3.bf16.msra.mxu1 %v18506_v12  ;;  %v6274_v12 = vld [vmem:[%s21401_s3 + $0x98] sm:$0xff] }
 0xcbf   : > { %11912 = vmatprep.subr.bf16.mxu0 %v19258_v52  ;;  %11942 = vmatprep.subr.bf16.mxu1 %v21780_v51  ;;  %v19303_v13 = vpack.c.bf16 %v6277_v22, %v6274_v12  ;;  %v6285_v12 = vld [vmem:[%s21401_s3 + $0xf0] sm:$0xff]  ;;  %v6288_v22 = vld [vmem:[%s21401_s3 + $0x108] sm:$0xff] }
 0xcc0   : > { %6367 = vmatprep.mubr.f32.mxu0 %v21805_v7  ;;  %9724 = vmatprep.mubr.msk.f32.mxu1 %vm13371_vm1, %v21805_v7 }
 0xcc2   : > { %11914 = vmatpush1.bf16.msra.mxu0 %v19276_v25  ;;  %11944 = vmatpush3.bf16.msra.mxu1 %v18520_v33  ;;  %v6280_v33 = vld [vmem:[%s21401_s3 + $0xc8] sm:$0xff] }
 0xcc3   : > { %11916 = vmatprep.subr.bf16.mxu0 %v19280_v2  ;;  %11945 = vmatprep.subr.bf16.mxu1 %v21780_v51  ;;  %v19323_v29 = vpack.c.bf16 %v6283_v16, %v6280_v33  ;;  %v22252_v33 = vld [vmem:[#allocation31_spill] sm:$0xff]  ;;  %v22253_v16 = vld [vmem:[#allocation32_spill] sm:$0xff] }
 0xcc6   : > { %11918 = vmatpush1.bf16.msra.mxu0 %v19299_v1  ;;  %11947 = vmatpush3.bf16.msra.mxu1 %v18535_v44  ;;  %v6286_v44 = vld [vmem:[%s21401_s3 + $0xf8] sm:$0xff] }
 0xcc7   : > { %11920 = vmatprep.subr.bf16.mxu0 %v19303_v13  ;;  %11948 = vmatprep.subr.bf16.mxu1 %v21780_v51  ;;  %v19343_v38 = vpack.c.bf16 %v6289_v36, %v6286_v44  ;;  %v22255_v36 = vld [vmem:[#allocation9_spill] sm:$0xff] }
 0xcca   : > { %11922 = vmatpush1.bf16.msra.mxu0 %v19319_v3  ;;  %11950 = vmatpush3.bf16.msra.mxu1 %v18547_v18  ;;  %v19353_v18 = vpack.c.bf16 %v6288_v22, %v6285_v12 }
 0xccb   : > { %11924 = vmatprep.subr.bf16.mxu0 %v19323_v29  ;;  %11951 = vmatprep.subr.bf16.mxu1 %v21780_v51 }
 0xcce   : > { %11926 = vmatpush1.bf16.msra.mxu0 %v19339_v26  ;;  %11953 = vmatpush3.bf16.msra.mxu1 %v18559_v60  ;;  %v22216_v60 = vld [vmem:[#allocation41_spill] sm:$0xff] }
 0xccf   : > { %11928 = vmatprep.subr.bf16.mxu0 %v19343_v38  ;;  %11954 = vmatprep.subr.bf16.mxu1 %v21780_v51 }
 0xcd2   : > { %11930 = vmatpush1.bf16.msra.mxu0 %v19353_v18  ;;  %11956 = vmatpush3.bf16.msra.mxu1 %v18577_v9  ;;  %v22217_v9 = vld [vmem:[#allocation43_spill] sm:$0xff] }
 0xcd3   : > { %11932 = vmatprep.subr.bf16.mxu0 %v18584_v40  ;;  %11957 = vmatprep.subr.bf16.mxu1 %v21780_v51  ;;  %v22218_v40 = vld [vmem:[#allocation44_spill] sm:$0xff] }
 0xcd6   : > { %11934 = vmatpush1.bf16.msra.mxu0 %v18603_v49  ;;  %11959 = vmatpush3.bf16.msra.mxu1 %v18605_v56  ;;  %v22219_v49 = vld [vmem:[#allocation42_spill] sm:$0xff]  ;;  %v22220_v56 = vld [vmem:[#allocation53_spill] sm:$0xff] }
 0xcd7   : > { %11936 = vmatprep.subr.bf16.mxu0 %v18612_v37  ;;  %11960 = vmatprep.subr.bf16.mxu1 %v21780_v51  ;;  %v22221_v37 = vld [vmem:[#allocation58_spill] sm:$0xff] }
 0xcda   : > { %11938 = vmatpush1.bf16.msra.mxu0 %v18625_v17  ;;  %11962 = vmatpush3.bf16.msra.mxu1 %v18627_v20  ;;  %v22222_v17 = vld [vmem:[#allocation61_spill] sm:$0xff] }
 0xcdb   : > { %11964 = vmatprep.subr.bf16.mxu1 %v18644_v58  ;;  %12028 = vmatprep.subr.bf16.mxu0 %v18655_v4  ;;  %v22223_v20 = vld [vmem:[#allocation69_spill] sm:$0xff]  ;;  %v22224_v58 = vld [vmem:[#allocation70_spill] sm:$0xff]  ;;  %v22225_v4 = vld [vmem:[#allocation71_spill] sm:$0xff] }
 0xcdd   : > { %6368 = vmatmul.mubr.f32.vlgmr.msra.gmra.mrb[22].mxu0 %v19256_v0  ;;  %9725 = vmatmul.mubr.f32.vlgmr.msra.gmra.mrb[68].mxu1 %v19256_v0 }
 0xcde   : > { %11966 = vmatpush1.bf16.msra.mxu1 %v18657_v19  ;;  %12030 = vmatpush1.bf16.msra.mxu0 %v18666_v28  ;;  %v22226_v19 = vld [vmem:[#allocation56_spill] sm:$0xff]  ;;  %v22227_v28 = vld [vmem:[#allocation59_spill] sm:$0xff] }
 0xcdf   : > { %11968 = vmatprep.subr.bf16.mxu1 %v18680_v14  ;;  %12032 = vmatprep.subr.bf16.mxu0 %v18691_v42  ;;  %v22228_v14 = vld [vmem:[#allocation72_spill] sm:$0xff]  ;;  %v22229_v42 = vld [vmem:[#allocation54_spill] sm:$0xff] }
 0xce2   : > { %11970 = vmatpush1.bf16.msra.mxu1 %v18693_v50  ;;  %12034 = vmatpush1.bf16.msra.mxu0 %v18702_v6  ;;  %v22230_v50 = vld [vmem:[#allocation57_spill] sm:$0xff]  ;;  %v22231_v6 = vld [vmem:[#allocation55_spill] sm:$0xff] }
 0xce3   : > { %11972 = vmatprep.subr.bf16.mxu1 %v18716_v10  ;;  %12036 = vmatprep.subr.bf16.mxu0 %v18727_v45  ;;  %v22232_v10 = vld [vmem:[#allocation11_spill] sm:$0xff]  ;;  %v22233_v45 = vld [vmem:[#allocation12_spill] sm:$0xff] }
 0xce6   : > { %11974 = vmatpush1.bf16.msra.mxu1 %v18729_v41  ;;  %12038 = vmatpush1.bf16.msra.mxu0 %v18738_v34  ;;  %v22234_v41 = vld [vmem:[#allocation13_spill] sm:$0xff]  ;;  %v22235_v34 = vld [vmem:[#allocation14_spill] sm:$0xff] }
 0xce7   : > { %11976 = vmatprep.subr.bf16.mxu1 %v18752_v63  ;;  %12040 = vmatprep.subr.bf16.mxu0 %v18763_v27  ;;  %v22236_v63 = vld [vmem:[#allocation15_spill] sm:$0xff]  ;;  %v22237_v27 = vld [vmem:[#allocation16_spill] sm:$0xff] }
 0xcea   : > { %11978 = vmatpush1.bf16.msra.mxu1 %v18765_v11  ;;  %12042 = vmatpush1.bf16.msra.mxu0 %v18774_v32  ;;  %v22238_v11 = vld [vmem:[#allocation17_spill] sm:$0xff]  ;;  %v22239_v32 = vld [vmem:[#allocation18_spill] sm:$0xff] }
 0xceb   : > { %11980 = vmatprep.subr.bf16.mxu1 %v18788_v61  ;;  %12044 = vmatprep.subr.bf16.mxu0 %v18799_v55  ;;  %v22240_v61 = vld [vmem:[#allocation19_spill] sm:$0xff]  ;;  %v22241_v55 = vld [vmem:[#allocation20_spill] sm:$0xff] }
 0xcee   : > { %11982 = vmatpush1.bf16.msra.mxu1 %v18801_v30  ;;  %12046 = vmatpush1.bf16.msra.mxu0 %v18810_v5  ;;  %v22242_v30 = vld [vmem:[#allocation21_spill] sm:$0xff]  ;;  %v22243_v5 = vld [vmem:[#allocation22_spill] sm:$0xff] }
 0xcef   : > { %11984 = vmatprep.subr.bf16.mxu1 %v18824_v39  ;;  %12048 = vmatprep.subr.bf16.mxu0 %v18835_v15  ;;  %v22244_v39 = vld [vmem:[#allocation23_spill] sm:$0xff]  ;;  %v22245_v15 = vld [vmem:[#allocation24_spill] sm:$0xff] }
 0xcf2   : > { %11986 = vmatpush1.bf16.msra.mxu1 %v18837_v57  ;;  %12050 = vmatpush1.bf16.msra.mxu0 %v18846_v43  ;;  %v22246_v57 = vld [vmem:[#allocation25_spill] sm:$0xff]  ;;  %v22247_v43 = vld [vmem:[#allocation26_spill] sm:$0xff] }
 0xcf3   : > { %11988 = vmatprep.subr.bf16.mxu1 %v18860_v31  ;;  %12052 = vmatprep.subr.bf16.mxu0 %v18871_v23  ;;  %v22248_v31 = vld [vmem:[#allocation27_spill] sm:$0xff]  ;;  %v22249_v23 = vld [vmem:[#allocation28_spill] sm:$0xff] }
 0xcf6   : > { %11990 = vmatpush1.bf16.msra.mxu1 %v22216_v60  ;;  %12054 = vmatpush1.bf16.msra.mxu0 %v22217_v9 }
 0xcf7   : > { %11992 = vmatprep.subr.bf16.mxu1 %v22218_v40  ;;  %12056 = vmatprep.subr.bf16.mxu0 %v22219_v49 }
 0xcfa   : > { %11994 = vmatpush1.bf16.msra.mxu1 %v22220_v56  ;;  %12058 = vmatpush1.bf16.msra.mxu0 %v22221_v37 }
 0xcfb   : > { %11996 = vmatprep.subr.bf16.mxu1 %v22222_v17  ;;  %12060 = vmatprep.subr.bf16.mxu0 %v22223_v20 }
 0xcfe   : > { %11998 = vmatpush1.bf16.msra.mxu1 %v22224_v58  ;;  %12062 = vmatpush1.bf16.msra.mxu0 %v22225_v4  ;;  %v22256_v58 = vld [vmem:[#allocation10_spill] sm:$0xff] }
 0xcff   : > { %12000 = vmatprep.subr.bf16.mxu1 %v22226_v19  ;;  %12064 = vmatprep.subr.bf16.mxu0 %v22227_v28 }
 0xd02   : > { %12002 = vmatpush1.bf16.msra.mxu1 %v22228_v14  ;;  %12066 = vmatpush1.bf16.msra.mxu0 %v22229_v42 }
 0xd03   : > { %12004 = vmatprep.subr.bf16.mxu1 %v22230_v50  ;;  %12068 = vmatprep.subr.bf16.mxu0 %v22231_v6 }
 0xd06   : > { %12006 = vmatpush1.bf16.msra.mxu1 %v22232_v10  ;;  %12070 = vmatpush1.bf16.msra.mxu0 %v22233_v45 }
 0xd07   : > { %12008 = vmatprep.subr.bf16.mxu1 %v22234_v41  ;;  %12072 = vmatprep.subr.bf16.mxu0 %v22235_v34 }
 0xd0a   : > { %12010 = vmatpush1.bf16.msra.mxu1 %v22236_v63  ;;  %12074 = vmatpush1.bf16.msra.mxu0 %v22237_v27 }
 0xd0b   : > { %12012 = vmatprep.subr.bf16.mxu1 %v22238_v11  ;;  %12076 = vmatprep.subr.bf16.mxu0 %v22239_v32 }
 0xd0e   : > { %12014 = vmatpush1.bf16.msra.mxu1 %v22240_v61  ;;  %12078 = vmatpush1.bf16.msra.mxu0 %v22241_v55 }
 0xd0f   : > { %12016 = vmatprep.subr.bf16.mxu1 %v22242_v30  ;;  %12080 = vmatprep.subr.bf16.mxu0 %v22243_v5 }
 0xd12   : > { %12018 = vmatpush1.bf16.msra.mxu1 %v22244_v39  ;;  %12082 = vmatpush1.bf16.msra.mxu0 %v22245_v15 }
 0xd13   : > { %12020 = vmatprep.subr.bf16.mxu1 %v22246_v57  ;;  %12084 = vmatprep.subr.bf16.mxu0 %v22247_v43 }
 0xd16   : > { %12022 = vmatpush1.bf16.msra.mxu1 %v22248_v31  ;;  %12086 = vmatpush1.bf16.msra.mxu0 %v22249_v23 }
 0xd17   : > { %12024 = vmatprep.subr.bf16.mxu1 %v22250_v62  ;;  %12088 = vmatprep.subr.bf16.mxu0 %v22251_v47  ;;  %v22257_v47 = vld [vmem:[#allocation62_spill] sm:$0xff] }
 0xd1a   : > { %12026 = vmatpush1.bf16.msra.mxu1 %v22252_v33  ;;  %12090 = vmatpush1.bf16.msra.mxu0 %v22253_v16 }
 0xd1b   : > { %12092 = vmatprep.subr.bf16.mxu0 %v22254_v48  ;;  %12123 = vmatprep.subr.bf16.mxu1 %v21780_v51  ;;  %v6758_v48 = vld [vmem:[%s21401_s3 + $0x10] sm:$0xff] }
 0xd90   : > { %v6159_v35 = vpop.f32.mrb[66].mxu1  ;;  %v6230_v44 = vpop.f32.mrb[44].mxu0 }
 0xd91   : > { %v6160_v12 = vadd.f32 %v6159_v35, %v22255_v36  ;;  %v6161_v22 = vpop.f32.mrb[67].mxu1  ;;  %v6232_v60 = vpop.f32.mrb[45].mxu0  ;;  %v6231_v28 = vadd.f32 %v6230_v44, %v14680_v54  ;;  %v6761_v35 = vld [vmem:[%s21401_s3 + $0x28] sm:$0xff] }
 0xd92   : > { %v6162_v40 = vadd.f32 %v6161_v22, %v14671_v24  ;;  %v6233_v4 = vadd.f32 %v6232_v60, %v22256_v58  ;;  %v19457_v22 = vpack.c.bf16 %v6761_v35, %v6758_v48  ;;  %v6982_v35 = vld [vmem:[%s21403_s5 + $0x78] sm:$0xff] }
 0xd93   : > { %v8952_v9 = vmul.f32 -1.442695, %v6160_v12 }
 0xd94   : > { %v8953_v49 = vmul.f32 -1.442695, %v6162_v40  ;;  %v6767_v40 = vld [vmem:[%s21401_s3 + $0x58] sm:$0xff] }
 0xd95   : > { %13157 = vpow2.f32 %v8952_v9  ;;  %v6764_v9 = vld [vmem:[%s21401_s3 + $0x40] sm:$0xff] }
 0xd96   : > { %13159 = vpow2.f32 %v8953_v49  ;;  %v6770_v49 = vld [vmem:[%s21401_s3 + $0x70] sm:$0xff] }
 0xd9f   : > { %v13158_v56 = vpop.eup %13157 }
 0xda0   : > { %v6238_v37 = vadd.f32 1.0, %v13158_v56  ;;  %v13160_v17 = vpop.eup %13159  ;;  %v6773_v56 = vld [vmem:[%s21401_s3 + $0x88] sm:$0xff] }
 0xda1   : > { %v6244_v20 = vadd.f32 1.0, %v13160_v17  ;;  %v6785_v17 = vld [vmem:[%s21401_s3 + $0xe8] sm:$0xff] }
 0xda2   : > { %13161 = vrcp.f32 %v6238_v37  ;;  %v6779_v37 = vld [vmem:[%s21401_s3 + $0xb8] sm:$0xff] }
 0xda3   : > { %13163 = vrcp.f32 %v6244_v20  ;;  %v6791_v20 = vld [vmem:[%s21401_s3 + $0x118] sm:$0xff] }
 0xdac   : > { %v13162_v19 = vpop.eup %13161 }
 0xdad   : > { %v6247_v14 = vmul.f32 %v13162_v19, %v6233_v4  ;;  %v13164_v27 = vpop.eup %13163  ;;  %v6796_v4 = vld [vmem:[%s21401_s3 + $0x140] sm:$0xff] }
 0xdae   : > { %v6250_v32 = vsub.f32 1.0, %v13164_v27  ;;  %v6252_v30 = vmul.f32 %v13164_v27, %v19228_v59  ;;  %v6792_v19 = vld [vmem:[%s21401_s3 + $0x120] sm:$0xff] }
 0xdaf   : > { %v6248_v42 = vadd.f32 %v6247_v14, %v6231_v28  ;;  %v6795_v14 = vld [vmem:[%s21401_s3 + $0x138] sm:$0xff] }
 0xdb0   : > { %v6369_v50 = vpop.f32.mrb[22].mxu0  ;;  %v6440_v6 = vpop.f32.mrb[68].mxu1 }
 0xdb1   : > { %13165 = vtanh.f32 %v6248_v42  ;;  %v12853_v10 = vadd.f32 %v6369_v50, %v14450_v53  ;;  %v6371_v45 = vpop.f32.mrb[23].mxu0  ;;  %v9726_v41 = vpop.f32.mrb[69].mxu1  ;;  %v6458_v31 = vadd.f32 %v19237_v8, %v6440_v6  ;;  %v6797_v42 = vld [vmem:[%s21401_s3 + $0x148] sm:$0xff]  ;;  %v6802_v50 = vld [vmem:[%s21401_s3 + $0x170] sm:$0xff]  ;;  %v19554_v6 = vpack.c.bf16 %v6795_v14, %v6792_v19 }
 0xdb2   : > { %v12854_v63 = vadd.f32 %v6371_v45, %v14459_v46  ;;  %v6798_v45 = vld [vmem:[%s21401_s3 + $0x150] sm:$0xff] }
 0xdb3   : > { %v8954_v34 = vmul.f32 -1.442695, %v12853_v10  ;;  %v6985_v14 = vld [vmem:[%s21403_s5 + $0x90] sm:$0xff] }
 0xdb4   : > { %v8955_v11 = vmul.f32 -1.442695, %v12854_v63  ;;  %v6803_v63 = vld [vmem:[%s21401_s3 + $0x178] sm:$0xff] }
 0xdb5   : > { %13167 = vpow2.f32 %v8954_v34  ;;  %v6800_v34 = vld [vmem:[%s21401_s3 + $0x160] sm:$0xff] }
 0xdb6   : > { %13169 = vpow2.f32 %v8955_v11  ;;  %v19578_v11 = vpack.c.bf16 %v6803_v63, %v6800_v34  ;;  %v6998_v34 = vld [vmem:[%s21403_s5 + $0xf8] sm:$0xff]  ;;  %v6991_v63 = vld [vmem:[%s21403_s5 + $0xc0] sm:$0xff] }
 0xdbb   : > { %v13166_v61 = vpop.eup %13165 }
 0xdbc   : > { %v6251_v55 = vmul.f32 %v13166_v61, %v6250_v32  ;;  %v6968_v32 = vld [vmem:[%s21403_s5 + $0x8] sm:$0xff] }
 0xdbd   : > { %v6972_v61 = vld [vmem:[%s21403_s5 + $0x28] sm:$0xff] }
 0xdbe   : > { %v19442_v5 = vadd.f32 %v6252_v30, %v6251_v55  ;;  %v6970_v55 = vld [vmem:[%s21403_s5 + $0x18] sm:$0xff]  ;;  %v19595_v30 = vpack.c.bf16 %v6972_v61, %v6968_v32  ;;  %v6995_v32 = vld [vmem:[%s21403_s5 + $0xe0] sm:$0xff] }
 0xdbf   : > { %v13168_v39 = vpop.eup %13167 }
 0xdc0   : > { %v6448_v15 = vadd.f32 1.0, %v13168_v39  ;;  %6254 = vst [vmem:[%s13480_s24 + $0x50] sm:$0xff] %v19442_v5  ;;  %6658 = vmatprep.mubr.f32.mxu1 %v19442_v5  ;;  %6729 = vmatprep.mubr.f32.mxu0 %v19442_v5  ;;  %v13170_v57 = vpop.eup %13169  ;;  %v6974_v39 = vld [vmem:[%s21403_s5 + $0x38] sm:$0xff] }
 0xdc1   : > { %v6455_v43 = vadd.f32 1.0, %v13170_v57  ;;  %v6971_v57 = vld [vmem:[%s21403_s5 + $0x20] sm:$0xff] }
 0xdc2   : > { %13171 = vrcp.f32 %v6448_v15  ;;  %v6967_v15 = vld [vmem:[%s21403_s5] sm:$0xff] }
 0xdc3   : > { %13173 = vrcp.f32 %v6455_v43  ;;  %v19606_v43 = vpack.c.bf16 %v6974_v39, %v6970_v55  ;;  %v19716_v55 = vpack.c.bf16 %v6995_v32, %v6991_v63  ;;  %v6993_v39 = vld [vmem:[%s21403_s5 + $0xd0] sm:$0xff] }
 0xdc4   : > { %v7013_v63 = vld [vmem:[%s21403_s5 + $0x170] sm:$0xff] }
 0xdcc   : > { %v13172_v23 = vpop.eup %13171 }
 0xdcd   : > { %v6459_v62 = vmul.f32 %v13172_v23, %v6458_v31  ;;  %v13174_v33 = vpop.eup %13173  ;;  %v19608_v31 = vpack.c.bf16 %v6971_v57, %v6967_v15  ;;  %v6969_v23 = vld [vmem:[%s21403_s5 + $0x10] sm:$0xff] }
 0xdce   : > { %v6462_v16 = vsub.f32 1.0, %v13174_v33  ;;  %v6464_v8 = vmul.f32 %v13174_v33, %v19256_v0  ;;  %v19471_v0 = vpack.c.bf16 %v6767_v40, %v6764_v9  ;;  %v6980_v33 = vld [vmem:[%s21403_s5 + $0x68] sm:$0xff]  ;;  %v6977_v40 = vld [vmem:[%s21403_s5 + $0x50] sm:$0xff] }
 0xdcf   : > { %v6460_v59 = vadd.f32 %v6459_v62, %v22257_v47  ;;  %v6973_v62 = vld [vmem:[%s21403_s5 + $0x30] sm:$0xff] }
 0xdd0   : > { %v19617_v47 = vpack.c.bf16 %v6973_v62, %v6969_v23  ;;  %v6997_v15 = vld [vmem:[%s21403_s5 + $0xf0] sm:$0xff]  ;;  %v7000_v23 = vld [vmem:[%s21403_s5 + $0x108] sm:$0xff] }
 0xdd1   : > { %13175 = vtanh.f32 %v6460_v59  ;;  %v6976_v59 = vld [vmem:[%s21403_s5 + $0x48] sm:$0xff]  ;;  %v19725_v57 = vpack.c.bf16 %v6997_v15, %v6993_v39 }
 0xdd2   : > { %v19631_v48 = vpack.c.bf16 %v6980_v33, %v6976_v59  ;;  %v7004_v62 = vld [vmem:[%s21403_s5 + $0x128] sm:$0xff]  ;;  %v7002_v59 = vld [vmem:[%s21403_s5 + $0x118] sm:$0xff] }
 0xdd3   : > { %v19739_v33 = vpack.c.bf16 %v7004_v62, %v7000_v23  ;;  %v7016_v39 = vld [vmem:[%s21403_s5 + $0x188] sm:$0xff]  ;;  %v7018_v23 = vld [vmem:[%s21403_s5 + $0x198] sm:$0xff] }
 0xdd4   : > { %v7020_v15 = vld [vmem:[%s21403_s5 + $0x1a8] sm:$0xff] }
 0xdd5   : > { %v19811_v62 = vpack.c.bf16 %v7020_v15, %v7016_v39  ;;  %v7027_v39 = vld [vmem:[%s21403_s5 + $0x1e0] sm:$0xff] }
 0xddb   : > { %v13176_v44 = vpop.eup %13175 }
 0xddc   : > { %v6463_v12 = vmul.f32 %v13176_v44, %v6462_v16  ;;  %v6978_v16 = vld [vmem:[%s21403_s5 + $0x58] sm:$0xff]  ;;  %v6975_v44 = vld [vmem:[%s21403_s5 + $0x40] sm:$0xff] }
 0xdde   : > { %v19459_v60 = vadd.f32 %v6464_v8, %v6463_v12  ;;  %v6979_v12 = vld [vmem:[%s21403_s5 + $0x60] sm:$0xff]  ;;  %v19642_v8 = vpack.c.bf16 %v6982_v35, %v6978_v16  ;;  %v7006_v16 = vld [vmem:[%s21403_s5 + $0x138] sm:$0xff] }
 0xddf   : > { %v19644_v9 = vpack.c.bf16 %v6979_v12, %v6975_v44  ;;  %v6999_v35 = vld [vmem:[%s21403_s5 + $0x100] sm:$0xff]  ;;  %v19750_v12 = vpack.c.bf16 %v7006_v16, %v7002_v59  ;;  %v7022_v59 = vld [vmem:[%s21403_s5 + $0x1b8] sm:$0xff] }
 0xde0   : > { %6659 = vmatmul.mubr.f32.vlgmr.msra.gmra.mrb[70].mxu1 %v19459_v60  ;;  %6730 = vmatmul.mubr.f32.vlgmr.msra.gmra.mrb[46].mxu0 %v19459_v60  ;;  %v7003_v44 = vld [vmem:[%s21403_s5 + $0x120] sm:$0xff] }
 0xde1   : > { %12094 = vmatpush1.bf16.msra.mxu0 %v19254_v21  ;;  %12125 = vmatpush3.bf16.msra.mxu1 %v19457_v22  ;;  %v19486_v21 = vpack.c.bf16 %v6773_v56, %v6770_v49  ;;  %v6981_v49 = vld [vmem:[%s21403_s5 + $0x70] sm:$0xff]  ;;  %v7015_v16 = vld [vmem:[%s21403_s5 + $0x180] sm:$0xff] }
 0xde2   : > { %12096 = vmatprep.subr.bf16.mxu0 %v19258_v52  ;;  %12126 = vmatprep.subr.bf16.mxu1 %v21780_v51  ;;  %v6776_v52 = vld [vmem:[%s21401_s3 + $0xa0] sm:$0xff]  ;;  %v19653_v56 = vpack.c.bf16 %v6981_v49, %v6977_v40  ;;  %v19752_v40 = vpack.c.bf16 %v7003_v44, %v6999_v35  ;;  %v7001_v49 = vld [vmem:[%s21403_s5 + $0x110] sm:$0xff]  ;;  %v19822_v44 = vpack.c.bf16 %v7022_v59, %v7018_v23 }
 0xde3   : > { %6868 = vmatprep.mubr.f32.mxu0 %v21805_v7  ;;  %9759 = vmatprep.mubr.msk.f32.mxu1 %vm13371_vm1, %v21805_v7  ;;  %v7019_v35 = vld [vmem:[%s21403_s5 + $0x1a0] sm:$0xff]  ;;  %v7025_v59 = vld [vmem:[%s21403_s5 + $0x1d0] sm:$0xff] }
 0xde5   : > { %12098 = vmatpush1.bf16.msra.mxu0 %v19276_v25  ;;  %12128 = vmatpush3.bf16.msra.mxu1 %v19471_v0  ;;  %v19498_v25 = vpack.c.bf16 %v6779_v37, %v6776_v52  ;;  %v6984_v52 = vld [vmem:[%s21403_s5 + $0x88] sm:$0xff] }
 0xde6   : > { %12100 = vmatprep.subr.bf16.mxu0 %v19280_v2  ;;  %12129 = vmatprep.subr.bf16.mxu1 %v21780_v51  ;;  %v6782_v2 = vld [vmem:[%s21401_s3 + $0xd0] sm:$0xff]  ;;  %v6988_v37 = vld [vmem:[%s21403_s5 + $0xa8] sm:$0xff] }
 0xde9   : > { %12102 = vmatpush1.bf16.msra.mxu0 %v19299_v1  ;;  %12131 = vmatpush3.bf16.msra.mxu1 %v19486_v21  ;;  %v19510_v1 = vpack.c.bf16 %v6785_v17, %v6782_v2  ;;  %v6986_v2 = vld [vmem:[%s21403_s5 + $0x98] sm:$0xff]  ;;  %v19667_v17 = vpack.c.bf16 %v6988_v37, %v6984_v52  ;;  %v7005_v52 = vld [vmem:[%s21403_s5 + $0x130] sm:$0xff] }
 0xdea   : > { %12104 = vmatprep.subr.bf16.mxu0 %v19303_v13  ;;  %12132 = vmatprep.subr.bf16.mxu1 %v21780_v51  ;;  %v6788_v13 = vld [vmem:[%s21401_s3 + $0x100] sm:$0xff]  ;;  %v19761_v37 = vpack.c.bf16 %v7005_v52, %v7001_v49  ;;  %v19824_v49 = vpack.c.bf16 %v7019_v35, %v7015_v16  ;;  %v7017_v52 = vld [vmem:[%s21403_s5 + $0x190] sm:$0xff] }
 0xdeb   : > { %v7029_v16 = vld [vmem:[%s21403_s5 + $0x1f0] sm:$0xff] }
 0xdec   : > { %22258 = vst [vmem:[#allocation34_spill] sm:$0xff] %v19824_v49  ;;  %v19869_v35 = vpack.c.bf16 %v7029_v16, %v7025_v59  ;;  %v7033_v16 = vld [vmem:[%s21403_s5 + $0x210] sm:$0xff] }
 0xded   : > { %12106 = vmatpush1.bf16.msra.mxu0 %v19319_v3  ;;  %12134 = vmatpush3.bf16.msra.mxu1 %v19498_v25  ;;  %v6793_v3 = vld [vmem:[%s21401_s3 + $0x128] sm:$0xff] }
 0xdee   : > { %12108 = vmatprep.subr.bf16.mxu0 %v19323_v29  ;;  %12135 = vmatprep.subr.bf16.mxu1 %v21780_v51  ;;  %v19528_v29 = vpack.c.bf16 %v6791_v20, %v6788_v13  ;;  %v19535_v28 = vpack.c.bf16 %v6796_v4, %v6793_v3  ;;  %v6990_v13 = vld [vmem:[%s21403_s5 + $0xb8] sm:$0xff]  ;;  %v6983_v20 = vld [vmem:[%s21403_s5 + $0x80] sm:$0xff]  ;;  %22263 = vst [vmem:[#allocation39_spill] sm:$0xff] %v19869_v35 }
 0xdef   : > { %v6987_v3 = vld [vmem:[%s21403_s5 + $0xa0] sm:$0xff]  ;;  %v19678_v4 = vpack.c.bf16 %v6990_v13, %v6986_v2  ;;  %v7008_v2 = vld [vmem:[%s21403_s5 + $0x148] sm:$0xff] }
 0xdf0   : > { %v19680_v19 = vpack.c.bf16 %v6987_v3, %v6983_v20  ;;  %v7012_v13 = vld [vmem:[%s21403_s5 + $0x168] sm:$0xff]  ;;  %v7010_v20 = vld [vmem:[%s21403_s5 + $0x158] sm:$0xff] }
 0xdf1   : > { %12110 = vmatpush1.bf16.msra.mxu0 %v19339_v26  ;;  %12137 = vmatpush3.bf16.msra.mxu1 %v19510_v1  ;;  %v6794_v26 = vld [vmem:[%s21401_s3 + $0x130] sm:$0xff]  ;;  %v19775_v3 = vpack.c.bf16 %v7012_v13, %v7008_v2 }
 0xdf2   : > { %12112 = vmatprep.subr.bf16.mxu0 %v19343_v38  ;;  %12138 = vmatprep.subr.bf16.mxu1 %v21780_v51  ;;  %v6799_v38 = vld [vmem:[%s21401_s3 + $0x158] sm:$0xff]  ;;  %v19556_v10 = vpack.c.bf16 %v6797_v42, %v6794_v26  ;;  %v6989_v26 = vld [vmem:[%s21403_s5 + $0xb0] sm:$0xff] }
 0xdf3   : > { %v19563_v41 = vpack.c.bf16 %v6802_v50, %v6799_v38  ;;  %v19689_v42 = vpack.c.bf16 %v6989_v26, %v6985_v14  ;;  %v6992_v38 = vld [vmem:[%s21403_s5 + $0xc8] sm:$0xff]  ;;  %v7014_v14 = vld [vmem:[%s21403_s5 + $0x178] sm:$0xff]  ;;  %v7007_v26 = vld [vmem:[%s21403_s5 + $0x140] sm:$0xff] }
 0xdf4   : > { %v6996_v50 = vld [vmem:[%s21403_s5 + $0xe8] sm:$0xff]  ;;  %v7021_v2 = vld [vmem:[%s21403_s5 + $0x1b0] sm:$0xff] }
 0xdf5   : > { %12114 = vmatpush1.bf16.msra.mxu0 %v19353_v18  ;;  %12140 = vmatpush3.bf16.msra.mxu1 %v19528_v29  ;;  %v6801_v18 = vld [vmem:[%s21401_s3 + $0x168] sm:$0xff]  ;;  %v19833_v13 = vpack.c.bf16 %v7021_v2, %v7017_v52 }
 0xdf6   : > { %12116 = vmatprep.subr.bf16.mxu0 %v19535_v28  ;;  %12141 = vmatprep.subr.bf16.mxu1 %v21780_v51  ;;  %v19576_v27 = vpack.c.bf16 %v6801_v18, %v6798_v45  ;;  %v6994_v45 = vld [vmem:[%s21403_s5 + $0xd8] sm:$0xff]  ;;  %v19703_v18 = vpack.c.bf16 %v6996_v50, %v6992_v38  ;;  %v7011_v38 = vld [vmem:[%s21403_s5 + $0x160] sm:$0xff]  ;;  %v19786_v50 = vpack.c.bf16 %v7014_v14, %v7010_v20  ;;  %v7024_v20 = vld [vmem:[%s21403_s5 + $0x1c8] sm:$0xff] }
 0xdf7   : > { %v19714_v61 = vpack.c.bf16 %v6998_v34, %v6994_v45  ;;  %v19788_v45 = vpack.c.bf16 %v7011_v38, %v7007_v26  ;;  %v7009_v34 = vld [vmem:[%s21403_s5 + $0x150] sm:$0xff]  ;;  %22259 = vst [vmem:[#allocation35_spill] sm:$0xff] %v19833_v13  ;;  %v7028_v14 = vld [vmem:[%s21403_s5 + $0x1e8] sm:$0xff]  ;;  %v7026_v26 = vld [vmem:[%s21403_s5 + $0x1d8] sm:$0xff] }
 0xdf8   : > { %v19797_v32 = vpack.c.bf16 %v7013_v63, %v7009_v34  ;;  %v19847_v38 = vpack.c.bf16 %v7028_v14, %v7024_v20  ;;  %v7030_v34 = vld [vmem:[%s21403_s5 + $0x1f8] sm:$0xff]  ;;  %v7023_v63 = vld [vmem:[%s21403_s5 + $0x1c0] sm:$0xff]  ;;  %v7032_v52 = vld [vmem:[%s21403_s5 + $0x208] sm:$0xff] }
 0xdf9   : > { %12118 = vmatpush1.bf16.msra.mxu0 %v19554_v6  ;;  %12143 = vmatpush3.bf16.msra.mxu1 %v19556_v10  ;;  %v19858_v15 = vpack.c.bf16 %v7030_v34, %v7026_v26  ;;  %v19860_v23 = vpack.c.bf16 %v7027_v39, %v7023_v63  ;;  %v7036_v2 = vld [vmem:[%s21403_s5 + $0x228] sm:$0xff]  ;;  %v7034_v20 = vld [vmem:[%s21403_s5 + $0x218] sm:$0xff]  ;;  %v7031_v34 = vld [vmem:[%s21403_s5 + $0x200] sm:$0xff] }
 0xdfa   : > { %12120 = vmatprep.subr.bf16.mxu0 %v19563_v41  ;;  %12144 = vmatprep.subr.bf16.mxu1 %v21780_v51  ;;  %22260 = vst [vmem:[#allocation36_spill] sm:$0xff] %v19847_v38  ;;  %v19883_v14 = vpack.c.bf16 %v7036_v2, %v7032_v52  ;;  %v7038_v26 = vld [vmem:[%s21403_s5 + $0x238] sm:$0xff]  ;;  %v7035_v63 = vld [vmem:[%s21403_s5 + $0x220] sm:$0xff]  ;;  %v7037_v52 = vld [vmem:[%s21403_s5 + $0x230] sm:$0xff] }
 0xdfb   : > { %22261 = vst [vmem:[#allocation37_spill] sm:$0xff] %v19858_v15  ;;  %22262 = vst [vmem:[#allocation38_spill] sm:$0xff] %v19860_v23  ;;  %v19894_v39 = vpack.c.bf16 %v7038_v26, %v7034_v20  ;;  %v19896_v59 = vpack.c.bf16 %v7035_v63, %v7031_v34  ;;  %v19905_v2 = vpack.c.bf16 %v7037_v52, %v7033_v16  ;;  %v7040_v20 = vld [vmem:[%s21403_s5 + $0x248] sm:$0xff]  ;;  %v7042_v34 = vld [vmem:[%s21403_s5 + $0x258] sm:$0xff] }
 0xdfc   : > { %22264 = vst [vmem:[#allocation40_spill] sm:$0xff] %v19883_v14  ;;  %v7044_v26 = vld [vmem:[%s21403_s5 + $0x268] sm:$0xff]  ;;  %v7046_v16 = vld [vmem:[%s21403_s5 + $0x278] sm:$0xff]  ;;  %v7039_v52 = vld [vmem:[%s21403_s5 + $0x240] sm:$0xff] }
 0xdfd   : > { %12122 = vmatpush1.bf16.msra.mxu0 %v19576_v27  ;;  %12146 = vmatpush3.bf16.msra.mxu1 %v19578_v11  ;;  %22265 = vst [vmem:[#allocation60_spill] sm:$0xff] %v19894_v39  ;;  %22266 = vst [vmem:[#allocation63_spill] sm:$0xff] %v19896_v59  ;;  %v19919_v63 = vpack.c.bf16 %v7044_v26, %v7040_v20  ;;  %v7041_v20 = vld [vmem:[%s21403_s5 + $0x250] sm:$0xff] }
 0xdfe   : > { %12148 = vmatprep.subr.bf16.mxu1 %v19595_v30  ;;  %12212 = vmatprep.subr.bf16.mxu0 %v19606_v43  ;;  %22267 = vst [vmem:[#allocation41_spill] sm:$0xff] %v19905_v2  ;;  %v7045_v26 = vld [vmem:[%s21403_s5 + $0x270] sm:$0xff] }
 0xdff   : > { %22268 = vst [vmem:[#allocation43_spill] sm:$0xff] %v19919_v63 }
 0xe00   : > { %6869 = vmatmul.mubr.f32.vlgmr.msra.gmra.mrb[48].mxu0 %v19459_v60  ;;  %9760 = vmatmul.mubr.f32.vlgmr.msra.gmra.mrb[72].mxu1 %v19459_v60 }
 0xe01   : > { %12150 = vmatpush1.bf16.msra.mxu1 %v19608_v31  ;;  %12214 = vmatpush1.bf16.msra.mxu0 %v19617_v47 }
 0xe02   : > { %12152 = vmatprep.subr.bf16.mxu1 %v19631_v48  ;;  %12216 = vmatprep.subr.bf16.mxu0 %v19642_v8 }
 0xe05   : > { %12154 = vmatpush1.bf16.msra.mxu1 %v19644_v9  ;;  %12218 = vmatpush1.bf16.msra.mxu0 %v19653_v56 }
 0xe06   : > { %12156 = vmatprep.subr.bf16.mxu1 %v19667_v17  ;;  %12220 = vmatprep.subr.bf16.mxu0 %v19678_v4 }
 0xe09   : > { %12158 = vmatpush1.bf16.msra.mxu1 %v19680_v19  ;;  %12222 = vmatpush1.bf16.msra.mxu0 %v19689_v42 }
 0xe0a   : > { %12160 = vmatprep.subr.bf16.mxu1 %v19703_v18  ;;  %12224 = vmatprep.subr.bf16.mxu0 %v19714_v61 }
 0xe0d   : > { %12162 = vmatpush1.bf16.msra.mxu1 %v19716_v55  ;;  %12226 = vmatpush1.bf16.msra.mxu0 %v19725_v57 }
 0xe0e   : > { %12164 = vmatprep.subr.bf16.mxu1 %v19739_v33  ;;  %12228 = vmatprep.subr.bf16.mxu0 %v19750_v12 }
 0xe11   : > { %12166 = vmatpush1.bf16.msra.mxu1 %v19752_v40  ;;  %12230 = vmatpush1.bf16.msra.mxu0 %v19761_v37 }
 0xe12   : > { %12168 = vmatprep.subr.bf16.mxu1 %v19775_v3  ;;  %12232 = vmatprep.subr.bf16.mxu0 %v19786_v50 }
 0xe15   : > { %12170 = vmatpush1.bf16.msra.mxu1 %v19788_v45  ;;  %12234 = vmatpush1.bf16.msra.mxu0 %v19797_v32 }
 0xe16   : > { %12172 = vmatprep.subr.bf16.mxu1 %v19811_v62  ;;  %12236 = vmatprep.subr.bf16.mxu0 %v19822_v44 }
 0xe19   : > { %12174 = vmatpush1.bf16.msra.mxu1 %v19824_v49  ;;  %12238 = vmatpush1.bf16.msra.mxu0 %v19833_v13 }
 0xe1a   : > { %12176 = vmatprep.subr.bf16.mxu1 %v19847_v38  ;;  %12240 = vmatprep.subr.bf16.mxu0 %v19858_v15 }
 0xe1d   : > { %12178 = vmatpush1.bf16.msra.mxu1 %v19860_v23  ;;  %12242 = vmatpush1.bf16.msra.mxu0 %v19869_v35  ;;  %v7081_v23 = vld [vmem:[%s21403_s5 + $0x390] sm:$0xff] }
 0xe1e   : > { %12180 = vmatprep.subr.bf16.mxu1 %v19883_v14  ;;  %12244 = vmatprep.subr.bf16.mxu0 %v19894_v39  ;;  %v19930_v39 = vpack.c.bf16 %v7046_v16, %v7042_v34  ;;  %v7052_v34 = vld [vmem:[%s21403_s5 + $0x2a8] sm:$0xff]  ;;  %v7050_v16 = vld [vmem:[%s21403_s5 + $0x298] sm:$0xff] }
 0xe20   : > { %22269 = vst [vmem:[#allocation44_spill] sm:$0xff] %v19930_v39 }
 0xe21   : > { %12182 = vmatpush1.bf16.msra.mxu1 %v19896_v59  ;;  %12246 = vmatpush1.bf16.msra.mxu0 %v19905_v2  ;;  %v7043_v59 = vld [vmem:[%s21403_s5 + $0x260] sm:$0xff]  ;;  %v19941_v2 = vpack.c.bf16 %v7045_v26, %v7041_v20  ;;  %v7054_v20 = vld [vmem:[%s21403_s5 + $0x2b8] sm:$0xff] }
 0xe22   : > { %v19932_v14 = vpack.c.bf16 %v7043_v59, %v7039_v52  ;;  %12184 = vmatprep.subr.bf16.mxu1 %v19919_v63  ;;  %12248 = vmatprep.subr.bf16.mxu0 %v19930_v39  ;;  %v7048_v59 = vld [vmem:[%s21403_s5 + $0x288] sm:$0xff]  ;;  %v7047_v26 = vld [vmem:[%s21403_s5 + $0x280] sm:$0xff]  ;;  %v19966_v39 = vpack.c.bf16 %v7054_v20, %v7050_v16  ;;  %v7058_v20 = vld [vmem:[%s21403_s5 + $0x2d8] sm:$0xff] }
 0xe23   : > { %22271 = vst [vmem:[#allocation53_spill] sm:$0xff] %v19941_v2  ;;  %v19955_v52 = vpack.c.bf16 %v7052_v34, %v7048_v59  ;;  %v7049_v59 = vld [vmem:[%s21403_s5 + $0x290] sm:$0xff]  ;;  %v7060_v16 = vld [vmem:[%s21403_s5 + $0x2e8] sm:$0xff] }
 0xe24   : > { %22270 = vst [vmem:[#allocation42_spill] sm:$0xff] %v19932_v14  ;;  %22273 = vst [vmem:[#allocation61_spill] sm:$0xff] %v19966_v39  ;;  %v7053_v34 = vld [vmem:[%s21403_s5 + $0x2b0] sm:$0xff] }
 0xe25   : > { %12186 = vmatpush1.bf16.msra.mxu1 %v19932_v14  ;;  %12250 = vmatpush1.bf16.msra.mxu0 %v19941_v2  ;;  %22272 = vst [vmem:[#allocation58_spill] sm:$0xff] %v19955_v52  ;;  %v7051_v14 = vld [vmem:[%s21403_s5 + $0x2a0] sm:$0xff]  ;;  %v19977_v2 = vpack.c.bf16 %v7053_v34, %v7049_v59  ;;  %v7062_v59 = vld [vmem:[%s21403_s5 + $0x2f8] sm:$0xff] }
 0xe26   : > { %v19968_v63 = vpack.c.bf16 %v7051_v14, %v7047_v26  ;;  %12188 = vmatprep.subr.bf16.mxu1 %v19955_v52  ;;  %12252 = vmatprep.subr.bf16.mxu0 %v19966_v39  ;;  %v7056_v14 = vld [vmem:[%s21403_s5 + $0x2c8] sm:$0xff]  ;;  %v7055_v34 = vld [vmem:[%s21403_s5 + $0x2c0] sm:$0xff]  ;;  %v20002_v39 = vpack.c.bf16 %v7062_v59, %v7058_v20  ;;  %v7066_v59 = vld [vmem:[%s21403_s5 + $0x318] sm:$0xff] }
 0xe27   : > { %22275 = vst [vmem:[#allocation70_spill] sm:$0xff] %v19977_v2  ;;  %v19991_v26 = vpack.c.bf16 %v7060_v16, %v7056_v14  ;;  %v7057_v14 = vld [vmem:[%s21403_s5 + $0x2d0] sm:$0xff]  ;;  %v7068_v20 = vld [vmem:[%s21403_s5 + $0x328] sm:$0xff] }
 0xe28   : > { %22274 = vst [vmem:[#allocation69_spill] sm:$0xff] %v19968_v63  ;;  %22277 = vst [vmem:[#allocation56_spill] sm:$0xff] %v20002_v39  ;;  %v7061_v16 = vld [vmem:[%s21403_s5 + $0x2f0] sm:$0xff] }
 0xe29   : > { %12190 = vmatpush1.bf16.msra.mxu1 %v19968_v63  ;;  %12254 = vmatpush1.bf16.msra.mxu0 %v19977_v2  ;;  %22276 = vst [vmem:[#allocation71_spill] sm:$0xff] %v19991_v26  ;;  %v7059_v63 = vld [vmem:[%s21403_s5 + $0x2e0] sm:$0xff]  ;;  %v20013_v2 = vpack.c.bf16 %v7061_v16, %v7057_v14  ;;  %v7070_v14 = vld [vmem:[%s21403_s5 + $0x338] sm:$0xff] }
 0xe2a   : > { %v20004_v52 = vpack.c.bf16 %v7059_v63, %v7055_v34  ;;  %12192 = vmatprep.subr.bf16.mxu1 %v19991_v26  ;;  %12256 = vmatprep.subr.bf16.mxu0 %v20002_v39  ;;  %v7064_v63 = vld [vmem:[%s21403_s5 + $0x308] sm:$0xff]  ;;  %v7063_v16 = vld [vmem:[%s21403_s5 + $0x300] sm:$0xff]  ;;  %v20038_v39 = vpack.c.bf16 %v7070_v14, %v7066_v59  ;;  %v7074_v14 = vld [vmem:[%s21403_s5 + $0x358] sm:$0xff] }
 0xe2b   : > { %22279 = vst [vmem:[#allocation72_spill] sm:$0xff] %v20013_v2  ;;  %v20027_v34 = vpack.c.bf16 %v7068_v20, %v7064_v63  ;;  %v7065_v63 = vld [vmem:[%s21403_s5 + $0x310] sm:$0xff]  ;;  %v7076_v59 = vld [vmem:[%s21403_s5 + $0x368] sm:$0xff] }
 0xe2c   : > { %22278 = vst [vmem:[#allocation59_spill] sm:$0xff] %v20004_v52  ;;  %22281 = vst [vmem:[#allocation57_spill] sm:$0xff] %v20038_v39  ;;  %v7069_v20 = vld [vmem:[%s21403_s5 + $0x330] sm:$0xff] }
 0xe2d   : > { %12194 = vmatpush1.bf16.msra.mxu1 %v20004_v52  ;;  %12258 = vmatpush1.bf16.msra.mxu0 %v20013_v2  ;;  %22280 = vst [vmem:[#allocation54_spill] sm:$0xff] %v20027_v34  ;;  %v7067_v52 = vld [vmem:[%s21403_s5 + $0x320] sm:$0xff]  ;;  %v20049_v2 = vpack.c.bf16 %v7069_v20, %v7065_v63  ;;  %v7078_v63 = vld [vmem:[%s21403_s5 + $0x378] sm:$0xff] }
 0xe2e   : > { %v20040_v26 = vpack.c.bf16 %v7067_v52, %v7063_v16  ;;  %12196 = vmatprep.subr.bf16.mxu1 %v20027_v34  ;;  %12260 = vmatprep.subr.bf16.mxu0 %v20038_v39  ;;  %v7072_v52 = vld [vmem:[%s21403_s5 + $0x348] sm:$0xff]  ;;  %v7071_v20 = vld [vmem:[%s21403_s5 + $0x340] sm:$0xff]  ;;  %v20074_v39 = vpack.c.bf16 %v7078_v63, %v7074_v14  ;;  %v7082_v14 = vld [vmem:[%s21403_s5 + $0x398] sm:$0xff] }
 0xe2f   : > { %22283 = vst [vmem:[#allocation11_spill] sm:$0xff] %v20049_v2  ;;  %v20063_v16 = vpack.c.bf16 %v7076_v59, %v7072_v52  ;;  %v7073_v52 = vld [vmem:[%s21403_s5 + $0x350] sm:$0xff]  ;;  %v7086_v63 = vld [vmem:[%s21403_s5 + $0x3b8] sm:$0xff] }
 0xe30   : > { %22282 = vst [vmem:[#allocation55_spill] sm:$0xff] %v20040_v26  ;;  %22285 = vst [vmem:[#allocation13_spill] sm:$0xff] %v20074_v39  ;;  %v7077_v59 = vld [vmem:[%s21403_s5 + $0x370] sm:$0xff] }
 0xe31   : > { %12198 = vmatpush1.bf16.msra.mxu1 %v20040_v26  ;;  %12262 = vmatpush1.bf16.msra.mxu0 %v20049_v2  ;;  %22284 = vst [vmem:[#allocation12_spill] sm:$0xff] %v20063_v16  ;;  %v7075_v26 = vld [vmem:[%s21403_s5 + $0x360] sm:$0xff]  ;;  %v7080_v2 = vld [vmem:[%s21403_s5 + $0x388] sm:$0xff]  ;;  %v20088_v35 = vpack.c.bf16 %v7077_v59, %v7073_v52  ;;  %v20103_v52 = vpack.c.bf16 %v7086_v63, %v7082_v14 }
 0xe32   : > { %v20076_v34 = vpack.c.bf16 %v7075_v26, %v7071_v20  ;;  %12200 = vmatprep.subr.bf16.mxu1 %v20063_v16  ;;  %v7084_v26 = vld [vmem:[%s21403_s5 + $0x3a8] sm:$0xff]  ;;  %12264 = vmatprep.subr.bf16.mxu0 %v20074_v39  ;;  %v7079_v59 = vld [vmem:[%s21403_s5 + $0x380] sm:$0xff] }
 0xe33   : > { %22287 = vst [vmem:[#allocation15_spill] sm:$0xff] %v20088_v35  ;;  %v20101_v20 = vpack.c.bf16 %v7084_v26, %v7080_v2  ;;  %22289 = vst [vmem:[#allocation17_spill] sm:$0xff] %v20103_v52  ;;  %v7083_v16 = vld [vmem:[%s21403_s5 + $0x3a0] sm:$0xff]  ;;  %v7085_v2 = vld [vmem:[%s21403_s5 + $0x3b0] sm:$0xff] }
 0xe34   : > { %22286 = vst [vmem:[#allocation14_spill] sm:$0xff] %v20076_v34  ;;  %v20115_v39 = vpack.c.bf16 %v7083_v16, %v7079_v59  ;;  %v7088_v26 = vld [vmem:[%s21403_s5 + $0x3c8] sm:$0xff]  ;;  %v20128_v63 = vpack.c.bf16 %v7085_v2, %v7081_v23  ;;  %v7090_v59 = vld [vmem:[%s21403_s5 + $0x3d8] sm:$0xff]  ;;  %v7091_v23 = vld [vmem:[%s21403_s5 + $0x3e0] sm:$0xff] }
 0xe35   : > { %12202 = vmatpush1.bf16.msra.mxu1 %v20076_v34  ;;  %22288 = vst [vmem:[#allocation16_spill] sm:$0xff] %v20101_v20  ;;  %12266 = vmatpush1.bf16.msra.mxu0 %v20088_v35  ;;  %v7092_v14 = vld [vmem:[%s21403_s5 + $0x3e8] sm:$0xff]  ;;  %v7094_v35 = vld [vmem:[%s21403_s5 + $0x3f8] sm:$0xff]  ;;  %v7087_v34 = vld [vmem:[%s21403_s5 + $0x3c0] sm:$0xff] }
 0xe36   : > { %22290 = vst [vmem:[#allocation18_spill] sm:$0xff] %v20115_v39  ;;  %12204 = vmatprep.subr.bf16.mxu1 %v20101_v20  ;;  %12268 = vmatprep.subr.bf16.mxu0 %v20103_v52  ;;  %22291 = vst [vmem:[#allocation19_spill] sm:$0xff] %v20128_v63  ;;  %v20130_v16 = vpack.c.bf16 %v7092_v14, %v7088_v26  ;;  %v20141_v15 = vpack.c.bf16 %v7094_v35, %v7090_v59  ;;  %v7089_v2 = vld [vmem:[%s21403_s5 + $0x3d0] sm:$0xff]  ;;  %v7258_v35 = vld [vmem:[%s21401_s3 + $0x8] sm:$0xff] }
 0xe37   : > { %v7093_v26 = vld [vmem:[%s21403_s5 + $0x3f0] sm:$0xff]  ;;  %v20153_v14 = vpack.c.bf16 %v7091_v23, %v7087_v34  ;;  %v7261_v59 = vld [vmem:[%s21401_s3 + $0x20] sm:$0xff] }
 0xe38   : > { %22292 = vst [vmem:[#allocation20_spill] sm:$0xff] %v20130_v16  ;;  %22293 = vst [vmem:[#allocation21_spill] sm:$0xff] %v20141_v15  ;;  %v20163_v52 = vpack.c.bf16 %v7093_v26, %v7089_v2  ;;  %v20166_v20 = vpack.c.bf16 %v7261_v59, %v7258_v35 }
 0xe39   : > { %12206 = vmatpush1.bf16.msra.mxu1 %v20115_v39  ;;  %22294 = vst [vmem:[#allocation22_spill] sm:$0xff] %v20153_v14  ;;  %12270 = vmatpush1.bf16.msra.mxu0 %v20128_v63 }
 0xe3a   : > { %12208 = vmatprep.subr.bf16.mxu1 %v20130_v16  ;;  %22295 = vst [vmem:[#allocation23_spill] sm:$0xff] %v20163_v52  ;;  %12272 = vmatprep.subr.bf16.mxu0 %v20141_v15  ;;  %22296 = vst [vmem:[#allocation24_spill] sm:$0xff] %v20166_v20 }
 0xe3d   : > { %12210 = vmatpush1.bf16.msra.mxu1 %v20153_v14  ;;  %12274 = vmatpush1.bf16.msra.mxu0 %v20163_v52 }
 0xe3e   : > { %12307 = vmatprep.subr.bf16.mxu1 %v21780_v51  ;;  %12276 = vmatprep.subr.bf16.mxu0 %v20166_v20 }
 0xeb3   : > { %v6660_v34 = vpop.f32.mrb[70].mxu1  ;;  %v6731_v23 = vpop.f32.mrb[46].mxu0 }
 0xeb4   : > { %v6661_v63 = vadd.f32 %v6660_v34, %v22255_v36  ;;  %v6662_v39 = vpop.f32.mrb[71].mxu1  ;;  %v6733_v16 = vpop.f32.mrb[47].mxu0  ;;  %v6732_v13 = vadd.f32 %v6731_v23, %v14680_v54  ;;  %v22297_v36 = vld [vmem:[#allocation45_spill] sm:$0xff] }
 0xeb5   : > { %v6663_v26 = vadd.f32 %v6662_v39, %v14671_v24  ;;  %v6734_v38 = vadd.f32 %v6733_v16, %v22256_v58  ;;  %v22298_v39 = vld [vmem:[#allocation46_spill] sm:$0xff] }
 0xeb6   : > { %v8956_v2 = vmul.f32 -1.442695, %v6661_v63  ;;  %v545_v63 = vadd.f32 %v22297_v36, %v14450_v53 }
 0xeb7   : > { %v8957_v35 = vmul.f32 -1.442695, %v6663_v26 }
 0xeb8   : > { %13177 = vpow2.f32 %v8956_v2  ;;  %v547_v2 = vadd.f32 %v22298_v39, %v14459_v46 }
 0xeb9   : > { %13179 = vpow2.f32 %v8957_v35 }
 0xec2   : > { %v13178_v59 = vpop.eup %13177 }
 0xec3   : > { %v6739_v14 = vadd.f32 1.0, %v13178_v59  ;;  %v13180_v52 = vpop.eup %13179 }
 0xec4   : > { %v6745_v15 = vadd.f32 1.0, %v13180_v52 }
 0xec5   : > { %13181 = vrcp.f32 %v6739_v14 }
 0xec6   : > { %13183 = vrcp.f32 %v6745_v15 }
 0xecf   : > { %v13182_v20 = vpop.eup %13181 }
 0xed0   : > { %v6748_v34 = vmul.f32 %v13182_v20, %v6734_v38  ;;  %v13184_v23 = vpop.eup %13183 }
 0xed1   : > { %v6751_v38 = vsub.f32 1.0, %v13184_v23 }
 0xed2   : > { %v6749_v49 = vadd.f32 %v6748_v34, %v6732_v13  ;;  %v6753_v13 = vmul.f32 %v13184_v23, %v19442_v5  ;;  %v7260_v23 = vld [vmem:[%s21401_s3 + $0x18] sm:$0xff] }
 0xed3   : > { %v6870_v26 = vpop.f32.mrb[48].mxu0  ;;  %v6941_v35 = vpop.f32.mrb[72].mxu1 }
 0xed4   : > { %13185 = vtanh.f32 %v6749_v49  ;;  %v6945_v14 = vadd.f32 %v6870_v26, %v545_v63  ;;  %v6872_v52 = vpop.f32.mrb[49].mxu0  ;;  %v9761_v59 = vpop.f32.mrb[73].mxu1  ;;  %v20190_v63 = vld [vmem:[%s21402_s4] ss:$0 sm:$0xff] }
 0xed5   : > { %v6952_v16 = vadd.f32 %v6872_v52, %v547_v2  ;;  %v6959_v5 = vadd.f32 %v20190_v63, %v6941_v35  ;;  %v7264_v35 = vld [vmem:[%s21401_s3 + $0x38] sm:$0xff] }
 0xed6   : > { %v8958_v58 = vmul.f32 -1.442695, %v6945_v14  ;;  %v22299_v14 = vld [vmem:[#allocation65_spill] sm:$0xff] }
 0xed7   : > { %v8959_v15 = vmul.f32 -1.442695, %v6952_v16 }
 0xed8   : > { %13187 = vpow2.f32 %v8958_v58 }
 0xed9   : > { %13189 = vpow2.f32 %v8959_v15 }
 0xede   : > { %v13186_v20 = vpop.eup %13185 }
 0xedf   : > { %v6752_v36 = vmul.f32 %v13186_v20, %v6751_v38  ;;  %v7267_v38 = vld [vmem:[%s21401_s3 + $0x50] sm:$0xff] }
 0xee1   : > { %v20181_v34 = vadd.f32 %v6753_v13, %v6752_v36 }
 0xee2   : > { %v13188_v39 = vpop.eup %13187 }
 0xee3   : > { %v6949_v46 = vadd.f32 1.0, %v13188_v39  ;;  %6755 = vst [vmem:[%s13480_s24 + $0x58] sm:$0xff] %v20181_v34  ;;  %7159 = vmatprep.mubr.f32.mxu1 %v20181_v34  ;;  %7230 = vmatprep.mubr.f32.mxu0 %v20181_v34  ;;  %v13190_v58 = vpop.eup %13189 }
 0xee4   : > { %v6956_v49 = vadd.f32 1.0, %v13190_v58  ;;  %v20211_v58 = vpack.c.bf16 %v7267_v38, %v7264_v35  ;;  %v7278_v35 = vld [vmem:[%s21401_s3 + $0xa8] sm:$0xff]  ;;  %v7285_v38 = vld [vmem:[%s21401_s3 + $0xe0] sm:$0xff] }
 0xee5   : > { %13191 = vrcp.f32 %v6949_v46  ;;  %v7257_v46 = vld [vmem:[%s21401_s3] sm:$0xff] }
 0xee6   : > { %13193 = vrcp.f32 %v6956_v49  ;;  %v20207_v13 = vpack.c.bf16 %v7260_v23, %v7257_v46  ;;  %v7263_v49 = vld [vmem:[%s21401_s3 + $0x30] sm:$0xff] }
 0xeef   : > { %v13192_v2 = vpop.eup %13191 }
 0xef0   : > { %v6960_v26 = vmul.f32 %v13192_v2, %v6959_v5  ;;  %v13194_v59 = vpop.eup %13193  ;;  %v7266_v5 = vld [vmem:[%s21401_s3 + $0x48] sm:$0xff] }
 0xef1   : > { %v6963_v16 = vsub.f32 1.0, %v13194_v59  ;;  %v6965_v36 = vmul.f32 %v13194_v59, %v19459_v60  ;;  %v7270_v2 = vld [vmem:[%s21401_s3 + $0x68] sm:$0xff]  ;;  %v7273_v60 = vld [vmem:[%s21401_s3 + $0x80] sm:$0xff]  ;;  %v7272_v59 = vld [vmem:[%s21401_s3 + $0x78] sm:$0xff] }
 0xef2   : > { %v6961_v52 = vadd.f32 %v6960_v26, %v22299_v14  ;;  %v20229_v26 = vpack.c.bf16 %v7266_v5, %v7263_v49  ;;  %v20233_v14 = vpack.c.bf16 %v7273_v60, %v7270_v2  ;;  %v7281_v49 = vld [vmem:[%s21401_s3 + $0xc0] sm:$0xff]  ;;  %v7284_v5 = vld [vmem:[%s21401_s3 + $0xd8] sm:$0xff]  ;;  %v7291_v2 = vld [vmem:[%s21401_s3 + $0x110] sm:$0xff] }
 0xef3   : > { %v20292_v60 = vpack.c.bf16 %v7284_v5, %v7281_v49 }
 0xef4   : > { %13195 = vtanh.f32 %v6961_v52  ;;  %v7269_v52 = vld [vmem:[%s21401_s3 + $0x60] sm:$0xff] }
 0xef5   : > { %v20252_v46 = vpack.c.bf16 %v7272_v59, %v7269_v52  ;;  %v7287_v59 = vld [vmem:[%s21401_s3 + $0xf0] sm:$0xff] }
 0xefe   : > { %v13196_v15 = vpop.eup %13195 }
 0xeff   : > { %v6964_v20 = vmul.f32 %v13196_v15, %v6963_v16  ;;  %v7279_v16 = vld [vmem:[%s21401_s3 + $0xb0] sm:$0xff] }
 0xf00   : > { %v7275_v15 = vld [vmem:[%s21401_s3 + $0x90] sm:$0xff] }
 0xf01   : > { %v20209_v39 = vadd.f32 %v6965_v36, %v6964_v20  ;;  %v20272_v20 = vpack.c.bf16 %v7278_v35, %v7275_v15  ;;  %v22335_v15 = vld [vmem:[#allocation21_spill] sm:$0xff]  ;;  %v22336_v35 = vld [vmem:[#allocation22_spill] sm:$0xff] }
 0xf03   : > { %7160 = vmatmul.mubr.f32.vlgmr.msra.gmra.mrb[74].mxu1 %v20209_v39  ;;  %7231 = vmatmul.mubr.f32.vlgmr.msra.gmra.mrb[50].mxu0 %v20209_v39 }
 0xf04   : > { %12278 = vmatpush1.bf16.msra.mxu0 %v20207_v13  ;;  %12309 = vmatpush3.bf16.msra.mxu1 %v19457_v22  ;;  %v7276_v22 = vld [vmem:[%s21401_s3 + $0x98] sm:$0xff] }
 0xf05   : > { %12280 = vmatprep.subr.bf16.mxu0 %v20211_v58  ;;  %12310 = vmatprep.subr.bf16.mxu1 %v21780_v51  ;;  %v20256_v23 = vpack.c.bf16 %v7279_v16, %v7276_v22  ;;  %v7290_v22 = vld [vmem:[%s21401_s3 + $0x108] sm:$0xff]  ;;  %v22334_v16 = vld [vmem:[#allocation20_spill] sm:$0xff] }
 0xf06   : > { %7369 = vmatprep.mubr.f32.mxu0 %v21805_v7  ;;  %9794 = vmatprep.mubr.msk.f32.mxu1 %vm13371_vm1, %v21805_v7 }
 0xf08   : > { %12282 = vmatpush1.bf16.msra.mxu0 %v20229_v26  ;;  %12312 = vmatpush3.bf16.msra.mxu1 %v19471_v0  ;;  %v7282_v0 = vld [vmem:[%s21401_s3 + $0xc8] sm:$0xff] }
 0xf09   : > { %12284 = vmatprep.subr.bf16.mxu0 %v20233_v14  ;;  %12313 = vmatprep.subr.bf16.mxu1 %v21780_v51  ;;  %v20276_v36 = vpack.c.bf16 %v7285_v38, %v7282_v0  ;;  %v22337_v0 = vld [vmem:[#allocation23_spill] sm:$0xff]  ;;  %v22338_v38 = vld [vmem:[#allocation24_spill] sm:$0xff] }
 0xf0c   : > { %12286 = vmatpush1.bf16.msra.mxu0 %v20252_v46  ;;  %12315 = vmatpush3.bf16.msra.mxu1 %v19486_v21  ;;  %v7288_v21 = vld [vmem:[%s21401_s3 + $0xf8] sm:$0xff] }
 0xf0d   : > { %12288 = vmatprep.subr.bf16.mxu0 %v20256_v23  ;;  %12316 = vmatprep.subr.bf16.mxu1 %v21780_v51  ;;  %v20296_v52 = vpack.c.bf16 %v7291_v2, %v7288_v21  ;;  %v22339_v21 = vld [vmem:[#allocation9_spill] sm:$0xff] }
 0xf10   : > { %12290 = vmatpush1.bf16.msra.mxu0 %v20272_v20  ;;  %12318 = vmatpush3.bf16.msra.mxu1 %v19498_v25  ;;  %v20306_v25 = vpack.c.bf16 %v7290_v22, %v7287_v59 }
 0xf11   : > { %12292 = vmatprep.subr.bf16.mxu0 %v20276_v36  ;;  %12319 = vmatprep.subr.bf16.mxu1 %v21780_v51 }
 0xf14   : > { %12294 = vmatpush1.bf16.msra.mxu0 %v20292_v60  ;;  %12321 = vmatpush3.bf16.msra.mxu1 %v19510_v1  ;;  %v22300_v1 = vld [vmem:[#allocation34_spill] sm:$0xff] }
 0xf15   : > { %12296 = vmatprep.subr.bf16.mxu0 %v20296_v52  ;;  %12322 = vmatprep.subr.bf16.mxu1 %v21780_v51 }
 0xf18   : > { %12298 = vmatpush1.bf16.msra.mxu0 %v20306_v25  ;;  %12324 = vmatpush3.bf16.msra.mxu1 %v19528_v29  ;;  %v22301_v29 = vld [vmem:[#allocation35_spill] sm:$0xff] }
 0xf19   : > { %12300 = vmatprep.subr.bf16.mxu0 %v19535_v28  ;;  %12325 = vmatprep.subr.bf16.mxu1 %v21780_v51  ;;  %v22302_v28 = vld [vmem:[#allocation36_spill] sm:$0xff] }
 0xf1c   : > { %12302 = vmatpush1.bf16.msra.mxu0 %v19554_v6  ;;  %12327 = vmatpush3.bf16.msra.mxu1 %v19556_v10  ;;  %v22303_v6 = vld [vmem:[#allocation37_spill] sm:$0xff]  ;;  %v22304_v10 = vld [vmem:[#allocation38_spill] sm:$0xff] }
 0xf1d   : > { %12304 = vmatprep.subr.bf16.mxu0 %v19563_v41  ;;  %12328 = vmatprep.subr.bf16.mxu1 %v21780_v51  ;;  %v22305_v41 = vld [vmem:[#allocation39_spill] sm:$0xff] }
 0xf20   : > { %12306 = vmatpush1.bf16.msra.mxu0 %v19576_v27  ;;  %12330 = vmatpush3.bf16.msra.mxu1 %v19578_v11  ;;  %v22306_v27 = vld [vmem:[#allocation40_spill] sm:$0xff] }
 0xf21   : > { %12332 = vmatprep.subr.bf16.mxu1 %v19595_v30  ;;  %12396 = vmatprep.subr.bf16.mxu0 %v19606_v43  ;;  %v22307_v11 = vld [vmem:[#allocation60_spill] sm:$0xff]  ;;  %v22308_v30 = vld [vmem:[#allocation63_spill] sm:$0xff]  ;;  %v22309_v43 = vld [vmem:[#allocation41_spill] sm:$0xff] }
 0xf23   : > { %7370 = vmatmul.mubr.f32.vlgmr.msra.gmra.mrb[52].mxu0 %v20209_v39  ;;  %9795 = vmatmul.mubr.f32.vlgmr.msra.gmra.mrb[76].mxu1 %v20209_v39 }
 0xf24   : > { %12334 = vmatpush1.bf16.msra.mxu1 %v19608_v31  ;;  %12398 = vmatpush1.bf16.msra.mxu0 %v19617_v47  ;;  %v22310_v31 = vld [vmem:[#allocation43_spill] sm:$0xff]  ;;  %v22311_v47 = vld [vmem:[#allocation44_spill] sm:$0xff] }
 0xf25   : > { %12336 = vmatprep.subr.bf16.mxu1 %v19631_v48  ;;  %12400 = vmatprep.subr.bf16.mxu0 %v19642_v8  ;;  %v22312_v48 = vld [vmem:[#allocation42_spill] sm:$0xff]  ;;  %v22313_v8 = vld [vmem:[#allocation53_spill] sm:$0xff] }
 0xf28   : > { %12338 = vmatpush1.bf16.msra.mxu1 %v19644_v9  ;;  %12402 = vmatpush1.bf16.msra.mxu0 %v19653_v56  ;;  %v22314_v9 = vld [vmem:[#allocation58_spill] sm:$0xff]  ;;  %v22315_v56 = vld [vmem:[#allocation61_spill] sm:$0xff] }
 0xf29   : > { %12340 = vmatprep.subr.bf16.mxu1 %v19667_v17  ;;  %12404 = vmatprep.subr.bf16.mxu0 %v19678_v4  ;;  %v22316_v17 = vld [vmem:[#allocation69_spill] sm:$0xff]  ;;  %v22317_v4 = vld [vmem:[#allocation70_spill] sm:$0xff] }
 0xf2c   : > { %12342 = vmatpush1.bf16.msra.mxu1 %v19680_v19  ;;  %12406 = vmatpush1.bf16.msra.mxu0 %v19689_v42  ;;  %v22318_v19 = vld [vmem:[#allocation71_spill] sm:$0xff]  ;;  %v22319_v42 = vld [vmem:[#allocation56_spill] sm:$0xff] }
 0xf2d   : > { %12344 = vmatprep.subr.bf16.mxu1 %v19703_v18  ;;  %12408 = vmatprep.subr.bf16.mxu0 %v19714_v61  ;;  %v22320_v18 = vld [vmem:[#allocation59_spill] sm:$0xff]  ;;  %v22321_v61 = vld [vmem:[#allocation72_spill] sm:$0xff] }
 0xf30   : > { %12346 = vmatpush1.bf16.msra.mxu1 %v19716_v55  ;;  %12410 = vmatpush1.bf16.msra.mxu0 %v19725_v57  ;;  %v22322_v55 = vld [vmem:[#allocation54_spill] sm:$0xff]  ;;  %v22323_v57 = vld [vmem:[#allocation57_spill] sm:$0xff] }
 0xf31   : > { %12348 = vmatprep.subr.bf16.mxu1 %v19739_v33  ;;  %12412 = vmatprep.subr.bf16.mxu0 %v19750_v12  ;;  %v22324_v33 = vld [vmem:[#allocation55_spill] sm:$0xff] }
 0xf32   : > { %v22325_v12 = vld [vmem:[#allocation11_spill] sm:$0xff] }
 0xf34   : > { %12350 = vmatpush1.bf16.msra.mxu1 %v19752_v40  ;;  %12414 = vmatpush1.bf16.msra.mxu0 %v19761_v37  ;;  %v22326_v40 = vld [vmem:[#allocation12_spill] sm:$0xff]  ;;  %v22327_v37 = vld [vmem:[#allocation13_spill] sm:$0xff] }
 0xf35   : > { %12352 = vmatprep.subr.bf16.mxu1 %v19775_v3  ;;  %12416 = vmatprep.subr.bf16.mxu0 %v19786_v50  ;;  %v22328_v3 = vld [vmem:[#allocation14_spill] sm:$0xff]  ;;  %v22329_v50 = vld [vmem:[#allocation15_spill] sm:$0xff] }
 0xf38   : > { %12354 = vmatpush1.bf16.msra.mxu1 %v19788_v45  ;;  %12418 = vmatpush1.bf16.msra.mxu0 %v19797_v32  ;;  %v22330_v45 = vld [vmem:[#allocation16_spill] sm:$0xff]  ;;  %v22331_v32 = vld [vmem:[#allocation17_spill] sm:$0xff] }
 0xf39   : > { %12356 = vmatprep.subr.bf16.mxu1 %v19811_v62  ;;  %12420 = vmatprep.subr.bf16.mxu0 %v19822_v44  ;;  %v22332_v62 = vld [vmem:[#allocation18_spill] sm:$0xff]  ;;  %v22333_v44 = vld [vmem:[#allocation19_spill] sm:$0xff] }
 0xf3c   : > { %12358 = vmatpush1.bf16.msra.mxu1 %v22300_v1  ;;  %12422 = vmatpush1.bf16.msra.mxu0 %v22301_v29 }
 0xf3d   : > { %12360 = vmatprep.subr.bf16.mxu1 %v22302_v28  ;;  %12424 = vmatprep.subr.bf16.mxu0 %v22303_v6 }
 0xf40   : > { %12362 = vmatpush1.bf16.msra.mxu1 %v22304_v10  ;;  %12426 = vmatpush1.bf16.msra.mxu0 %v22305_v41 }
 0xf41   : > { %12364 = vmatprep.subr.bf16.mxu1 %v22306_v27  ;;  %12428 = vmatprep.subr.bf16.mxu0 %v22307_v11  ;;  %v22340_v11 = vld [vmem:[#allocation10_spill] sm:$0xff] }
 0xf44   : > { %12366 = vmatpush1.bf16.msra.mxu1 %v22308_v30  ;;  %12430 = vmatpush1.bf16.msra.mxu0 %v22309_v43 }
 0xf45   : > { %12368 = vmatprep.subr.bf16.mxu1 %v22310_v31  ;;  %12432 = vmatprep.subr.bf16.mxu0 %v22311_v47 }
 0xf48   : > { %12370 = vmatpush1.bf16.msra.mxu1 %v22312_v48  ;;  %12434 = vmatpush1.bf16.msra.mxu0 %v22313_v8  ;;  %v22341_v48 = vld [vmem:[#allocation47_spill] sm:$0xff] }
 0xf49   : > { %12372 = vmatprep.subr.bf16.mxu1 %v22314_v9  ;;  %12436 = vmatprep.subr.bf16.mxu0 %v22315_v56  ;;  %v551_v8 = vadd.f32 %v22341_v48, %v14450_v53  ;;  %v22342_v56 = vld [vmem:[#allocation68_spill] sm:$0xff]  ;;  %v7798_v48 = vld [vmem:[%s21401_s3 + $0x140] sm:$0xff] }
 0xf4c   : > { %12374 = vmatpush1.bf16.msra.mxu1 %v22316_v17  ;;  %12438 = vmatpush1.bf16.msra.mxu0 %v22317_v4  ;;  %v22343_v17 = vld [vmem:[#allocation48_spill] sm:$0xff] }
 0xf4d   : > { %12376 = vmatprep.subr.bf16.mxu1 %v22318_v19  ;;  %12440 = vmatprep.subr.bf16.mxu0 %v22319_v42  ;;  %v553_v4 = vadd.f32 %v22343_v17, %v22342_v56  ;;  %v7797_v17 = vld [vmem:[%s21401_s3 + $0x138] sm:$0xff] }
 0xf50   : > { %12378 = vmatpush1.bf16.msra.mxu1 %v22320_v18  ;;  %12442 = vmatpush1.bf16.msra.mxu0 %v22321_v61 }
 0xf51   : > { %12380 = vmatprep.subr.bf16.mxu1 %v22322_v55  ;;  %12444 = vmatprep.subr.bf16.mxu0 %v22323_v57 }
 0xf54   : > { %12382 = vmatpush1.bf16.msra.mxu1 %v22324_v33  ;;  %12446 = vmatpush1.bf16.msra.mxu0 %v22325_v12 }
 0xf55   : > { %12384 = vmatprep.subr.bf16.mxu1 %v22326_v40  ;;  %12448 = vmatprep.subr.bf16.mxu0 %v22327_v37 }
 0xf58   : > { %12386 = vmatpush1.bf16.msra.mxu1 %v22328_v3  ;;  %12450 = vmatpush1.bf16.msra.mxu0 %v22329_v50 }
 0xf59   : > { %12388 = vmatprep.subr.bf16.mxu1 %v22330_v45  ;;  %12452 = vmatprep.subr.bf16.mxu0 %v22331_v32 }
 0xf5c   : > { %12390 = vmatpush1.bf16.msra.mxu1 %v22332_v62  ;;  %12454 = vmatpush1.bf16.msra.mxu0 %v22333_v44 }
 0xf5d   : > { %12392 = vmatprep.subr.bf16.mxu1 %v22334_v16  ;;  %12456 = vmatprep.subr.bf16.mxu0 %v22335_v15 }
 0xf60   : > { %12394 = vmatpush1.bf16.msra.mxu1 %v22336_v35  ;;  %12458 = vmatpush1.bf16.msra.mxu0 %v22337_v0 }
 0xf61   : > { %12460 = vmatprep.subr.bf16.mxu0 %v22338_v38  ;;  %12491 = vmatprep.subr.bf16.mxu1 %v21780_v51 }
 0xfd6   : > { %v7161_v49 = vpop.f32.mrb[74].mxu1  ;;  %v7232_v5 = vpop.f32.mrb[50].mxu0 }
 0xfd7   : > { %v7162_v2 = vadd.f32 %v7161_v49, %v22339_v21  ;;  %v7163_v59 = vpop.f32.mrb[75].mxu1  ;;  %v7234_v22 = vpop.f32.mrb[51].mxu0  ;;  %v7233_v31 = vadd.f32 %v7232_v5, %v14680_v54  ;;  %v22344_v49 = vld [vmem:[#allocation64_spill] sm:$0xff] }
 0xfd8   : > { %v7164_v29 = vadd.f32 %v7163_v59, %v14671_v24  ;;  %v7235_v30 = vadd.f32 %v7234_v22, %v22340_v11  ;;  %v7760_v59 = vld [vmem:[%s21401_s3 + $0x10] sm:$0xff]  ;;  %v7763_v22 = vld [vmem:[%s21401_s3 + $0x28] sm:$0xff] }
 0xfd9   : > { %v8960_v1 = vmul.f32 -1.442695, %v7162_v2 }
 0xfda   : > { %v8961_v28 = vmul.f32 -1.442695, %v7164_v29 }
 0xfdb   : > { %13197 = vpow2.f32 %v8960_v1 }
 0xfdc   : > { %13199 = vpow2.f32 %v8961_v28  ;;  %v20412_v28 = vpack.c.bf16 %v7763_v22, %v7760_v59  ;;  %v7984_v22 = vld [vmem:[%s21403_s5 + $0x78] sm:$0xff] }
 0xfe5   : > { %v13198_v6 = vpop.eup %13197 }
 0xfe6   : > { %v7240_v10 = vadd.f32 1.0, %v13198_v6  ;;  %v13200_v41 = vpop.eup %13199 }
 0xfe7   : > { %v7246_v27 = vadd.f32 1.0, %v13200_v41  ;;  %v7769_v41 = vld [vmem:[%s21401_s3 + $0x58] sm:$0xff] }
 0xfe8   : > { %13201 = vrcp.f32 %v7240_v10  ;;  %v7766_v10 = vld [vmem:[%s21401_s3 + $0x40] sm:$0xff] }
 0xfe9   : > { %13203 = vrcp.f32 %v7246_v27  ;;  %v7772_v27 = vld [vmem:[%s21401_s3 + $0x70] sm:$0xff] }
 0xff2   : > { %v13202_v43 = vpop.eup %13201 }
 0xff3   : > { %v7249_v47 = vmul.f32 %v13202_v43, %v7235_v30  ;;  %v13204_v12 = vpop.eup %13203  ;;  %v7775_v30 = vld [vmem:[%s21401_s3 + $0x88] sm:$0xff]  ;;  %v7781_v43 = vld [vmem:[%s21401_s3 + $0xb8] sm:$0xff] }
 0xff4   : > { %v7252_v37 = vsub.f32 1.0, %v13204_v12  ;;  %v7254_v45 = vmul.f32 %v13204_v12, %v20181_v34 }
 0xff5   : > { %v7250_v9 = vadd.f32 %v7249_v47, %v7233_v31  ;;  %v7787_v31 = vld [vmem:[%s21401_s3 + $0xe8] sm:$0xff]  ;;  %v7793_v47 = vld [vmem:[%s21401_s3 + $0x118] sm:$0xff] }
 0xff6   : > { %v7371_v19 = vpop.f32.mrb[52].mxu0  ;;  %v7442_v42 = vpop.f32.mrb[76].mxu1 }
 0xff7   : > { %13205 = vtanh.f32 %v7250_v9  ;;  %v7446_v18 = vadd.f32 %v7371_v19, %v551_v8  ;;  %v7373_v61 = vpop.f32.mrb[53].mxu0  ;;  %v9796_v55 = vpop.f32.mrb[77].mxu1  ;;  %v7460_v35 = vadd.f32 %v20190_v63, %v7442_v42  ;;  %v7794_v8 = vld [vmem:[%s21401_s3 + $0x120] sm:$0xff]  ;;  %v7804_v19 = vld [vmem:[%s21401_s3 + $0x170] sm:$0xff] }
 0xff8   : > { %v7453_v57 = vadd.f32 %v7373_v61, %v553_v4  ;;  %v7799_v4 = vld [vmem:[%s21401_s3 + $0x148] sm:$0xff]  ;;  %v20509_v42 = vpack.c.bf16 %v7797_v17, %v7794_v8  ;;  %v7800_v61 = vld [vmem:[%s21401_s3 + $0x150] sm:$0xff] }
 0xff9   : > { %v8962_v33 = vmul.f32 -1.442695, %v7446_v18  ;;  %v7987_v17 = vld [vmem:[%s21403_s5 + $0x90] sm:$0xff] }
 0xffa   : > { %v8963_v40 = vmul.f32 -1.442695, %v7453_v57  ;;  %v7802_v57 = vld [vmem:[%s21401_s3 + $0x160] sm:$0xff] }
 0xffb   : > { %13207 = vpow2.f32 %v8962_v33  ;;  %v7805_v33 = vld [vmem:[%s21401_s3 + $0x178] sm:$0xff] }
 0xffc   : > { %13209 = vpow2.f32 %v8963_v40  ;;  %v20533_v40 = vpack.c.bf16 %v7805_v33, %v7802_v57  ;;  %v8000_v57 = vld [vmem:[%s21403_s5 + $0xf8] sm:$0xff]  ;;  %v7993_v33 = vld [vmem:[%s21403_s5 + $0xc0] sm:$0xff] }
0x1001   : > { %v13206_v3 = vpop.eup %13205 }
0x1002   : > { %v7253_v50 = vmul.f32 %v13206_v3, %v7252_v37  ;;  %v7970_v37 = vld [vmem:[%s21403_s5 + $0x8] sm:$0xff] }
0x1003   : > { %v7974_v3 = vld [vmem:[%s21403_s5 + $0x28] sm:$0xff] }
0x1004   : > { %v20397_v32 = vadd.f32 %v7254_v45, %v7253_v50  ;;  %v7972_v50 = vld [vmem:[%s21403_s5 + $0x18] sm:$0xff]  ;;  %v20550_v45 = vpack.c.bf16 %v7974_v3, %v7970_v37  ;;  %v7997_v37 = vld [vmem:[%s21403_s5 + $0xe0] sm:$0xff] }
0x1005   : > { %v13208_v62 = vpop.eup %13207 }
0x1006   : > { %v7450_v44 = vadd.f32 1.0, %v13208_v62  ;;  %7256 = vst [vmem:[%s13480_s24 + $0x60] sm:$0xff] %v20397_v32  ;;  %7660 = vmatprep.mubr.f32.mxu1 %v20397_v32  ;;  %7731 = vmatprep.mubr.f32.mxu0 %v20397_v32  ;;  %v13210_v16 = vpop.eup %13209  ;;  %v7976_v62 = vld [vmem:[%s21403_s5 + $0x38] sm:$0xff] }
0x1007   : > { %v7457_v15 = vadd.f32 1.0, %v13210_v16  ;;  %v7973_v16 = vld [vmem:[%s21403_s5 + $0x20] sm:$0xff] }
0x1008   : > { %13211 = vrcp.f32 %v7450_v44  ;;  %v7969_v44 = vld [vmem:[%s21403_s5] sm:$0xff] }
0x1009   : > { %13213 = vrcp.f32 %v7457_v15  ;;  %v20561_v15 = vpack.c.bf16 %v7976_v62, %v7972_v50  ;;  %v20671_v50 = vpack.c.bf16 %v7997_v37, %v7993_v33  ;;  %v7995_v62 = vld [vmem:[%s21403_s5 + $0xd0] sm:$0xff] }
0x100a   : > { %v8015_v33 = vld [vmem:[%s21403_s5 + $0x170] sm:$0xff] }
0x1012   : > { %v13212_v0 = vpop.eup %13211 }
0x1013   : > { %v7461_v38 = vmul.f32 %v13212_v0, %v7460_v35  ;;  %v13214_v5 = vpop.eup %13213  ;;  %v20563_v35 = vpack.c.bf16 %v7973_v16, %v7969_v44  ;;  %v7971_v0 = vld [vmem:[%s21403_s5 + $0x10] sm:$0xff] }
0x1014   : > { %v7464_v2 = vsub.f32 1.0, %v13214_v5  ;;  %v7466_v63 = vmul.f32 %v13214_v5, %v20209_v39  ;;  %v20426_v39 = vpack.c.bf16 %v7769_v41, %v7766_v10  ;;  %v7982_v5 = vld [vmem:[%s21403_s5 + $0x68] sm:$0xff]  ;;  %v7979_v41 = vld [vmem:[%s21403_s5 + $0x50] sm:$0xff] }
0x1015   : > { %v7462_v34 = vadd.f32 %v7461_v38, %v22344_v49  ;;  %v7975_v38 = vld [vmem:[%s21403_s5 + $0x30] sm:$0xff] }
0x1016   : > { %v20572_v49 = vpack.c.bf16 %v7975_v38, %v7971_v0  ;;  %v7999_v44 = vld [vmem:[%s21403_s5 + $0xf0] sm:$0xff]  ;;  %v8002_v0 = vld [vmem:[%s21403_s5 + $0x108] sm:$0xff] }
0x1017   : > { %13215 = vtanh.f32 %v7462_v34  ;;  %v7978_v34 = vld [vmem:[%s21403_s5 + $0x48] sm:$0xff]  ;;  %v20680_v16 = vpack.c.bf16 %v7999_v44, %v7995_v62 }
0x1018   : > { %v20586_v59 = vpack.c.bf16 %v7982_v5, %v7978_v34  ;;  %v8006_v38 = vld [vmem:[%s21403_s5 + $0x128] sm:$0xff]  ;;  %v8004_v34 = vld [vmem:[%s21403_s5 + $0x118] sm:$0xff] }
0x1019   : > { %v20694_v5 = vpack.c.bf16 %v8006_v38, %v8002_v0  ;;  %v8018_v62 = vld [vmem:[%s21403_s5 + $0x188] sm:$0xff]  ;;  %v8020_v0 = vld [vmem:[%s21403_s5 + $0x198] sm:$0xff] }
0x101a   : > { %v8022_v44 = vld [vmem:[%s21403_s5 + $0x1a8] sm:$0xff] }
0x101b   : > { %v20766_v38 = vpack.c.bf16 %v8022_v44, %v8018_v62  ;;  %v8029_v62 = vld [vmem:[%s21403_s5 + $0x1e0] sm:$0xff] }
0x1021   : > { %v13216_v1 = vpop.eup %13215 }
0x1022   : > { %v7465_v29 = vmul.f32 %v13216_v1, %v7464_v2  ;;  %v7980_v2 = vld [vmem:[%s21403_s5 + $0x58] sm:$0xff]  ;;  %v7977_v1 = vld [vmem:[%s21403_s5 + $0x40] sm:$0xff] }
0x1024   : > { %v20414_v6 = vadd.f32 %v7466_v63, %v7465_v29  ;;  %v7981_v29 = vld [vmem:[%s21403_s5 + $0x60] sm:$0xff]  ;;  %v20597_v63 = vpack.c.bf16 %v7984_v22, %v7980_v2  ;;  %v8008_v2 = vld [vmem:[%s21403_s5 + $0x138] sm:$0xff] }
0x1025   : > { %v20599_v10 = vpack.c.bf16 %v7981_v29, %v7977_v1  ;;  %v8001_v22 = vld [vmem:[%s21403_s5 + $0x100] sm:$0xff]  ;;  %v20705_v29 = vpack.c.bf16 %v8008_v2, %v8004_v34  ;;  %v8024_v34 = vld [vmem:[%s21403_s5 + $0x1b8] sm:$0xff] }
0x1026   : > { %7661 = vmatmul.mubr.f32.vlgmr.msra.gmra.mrb[78].mxu1 %v20414_v6  ;;  %7732 = vmatmul.mubr.f32.vlgmr.msra.gmra.mrb[54].mxu0 %v20414_v6  ;;  %v8005_v1 = vld [vmem:[%s21403_s5 + $0x120] sm:$0xff] }
0x1027   : > { %12462 = vmatpush1.bf16.msra.mxu0 %v20207_v13  ;;  %12493 = vmatpush3.bf16.msra.mxu1 %v20412_v28  ;;  %v20441_v13 = vpack.c.bf16 %v7775_v30, %v7772_v27  ;;  %v7983_v27 = vld [vmem:[%s21403_s5 + $0x70] sm:$0xff]  ;;  %v8017_v2 = vld [vmem:[%s21403_s5 + $0x180] sm:$0xff] }
0x1028   : > { %12464 = vmatprep.subr.bf16.mxu0 %v20211_v58  ;;  %12494 = vmatprep.subr.bf16.mxu1 %v21780_v51  ;;  %v7778_v58 = vld [vmem:[%s21401_s3 + $0xa0] sm:$0xff]  ;;  %v20608_v30 = vpack.c.bf16 %v7983_v27, %v7979_v41  ;;  %v20707_v41 = vpack.c.bf16 %v8005_v1, %v8001_v22  ;;  %v8003_v27 = vld [vmem:[%s21403_s5 + $0x110] sm:$0xff]  ;;  %v20777_v1 = vpack.c.bf16 %v8024_v34, %v8020_v0 }
0x1029   : > { %7870 = vmatprep.mubr.f32.mxu0 %v21805_v7  ;;  %9829 = vmatprep.mubr.msk.f32.mxu1 %vm13371_vm1, %v21805_v7  ;;  %v8021_v22 = vld [vmem:[%s21403_s5 + $0x1a0] sm:$0xff]  ;;  %v8027_v34 = vld [vmem:[%s21403_s5 + $0x1d0] sm:$0xff] }
0x102b   : > { %12466 = vmatpush1.bf16.msra.mxu0 %v20229_v26  ;;  %12496 = vmatpush3.bf16.msra.mxu1 %v20426_v39  ;;  %v20453_v26 = vpack.c.bf16 %v7781_v43, %v7778_v58  ;;  %v7986_v58 = vld [vmem:[%s21403_s5 + $0x88] sm:$0xff] }
0x102c   : > { %12468 = vmatprep.subr.bf16.mxu0 %v20233_v14  ;;  %12497 = vmatprep.subr.bf16.mxu1 %v21780_v51  ;;  %v7784_v14 = vld [vmem:[%s21401_s3 + $0xd0] sm:$0xff]  ;;  %v7990_v43 = vld [vmem:[%s21403_s5 + $0xa8] sm:$0xff] }
0x102f   : > { %12470 = vmatpush1.bf16.msra.mxu0 %v20252_v46  ;;  %12499 = vmatpush3.bf16.msra.mxu1 %v20441_v13  ;;  %v20465_v46 = vpack.c.bf16 %v7787_v31, %v7784_v14  ;;  %v7988_v14 = vld [vmem:[%s21403_s5 + $0x98] sm:$0xff]  ;;  %v20622_v31 = vpack.c.bf16 %v7990_v43, %v7986_v58  ;;  %v8007_v58 = vld [vmem:[%s21403_s5 + $0x130] sm:$0xff] }
0x1030   : > { %12472 = vmatprep.subr.bf16.mxu0 %v20256_v23  ;;  %12500 = vmatprep.subr.bf16.mxu1 %v21780_v51  ;;  %v7790_v23 = vld [vmem:[%s21401_s3 + $0x100] sm:$0xff]  ;;  %v20716_v43 = vpack.c.bf16 %v8007_v58, %v8003_v27  ;;  %v20779_v27 = vpack.c.bf16 %v8021_v22, %v8017_v2  ;;  %v8019_v58 = vld [vmem:[%s21403_s5 + $0x190] sm:$0xff] }
0x1031   : > { %v8031_v2 = vld [vmem:[%s21403_s5 + $0x1f0] sm:$0xff] }
0x1032   : > { %22345 = vst [vmem:[#allocation25_spill] sm:$0xff] %v20779_v27  ;;  %v20824_v22 = vpack.c.bf16 %v8031_v2, %v8027_v34  ;;  %v8035_v2 = vld [vmem:[%s21403_s5 + $0x210] sm:$0xff] }
0x1033   : > { %12474 = vmatpush1.bf16.msra.mxu0 %v20272_v20  ;;  %12502 = vmatpush3.bf16.msra.mxu1 %v20453_v26  ;;  %v7795_v20 = vld [vmem:[%s21401_s3 + $0x128] sm:$0xff] }
0x1034   : > { %12476 = vmatprep.subr.bf16.mxu0 %v20276_v36  ;;  %12503 = vmatprep.subr.bf16.mxu1 %v21780_v51  ;;  %v20483_v36 = vpack.c.bf16 %v7793_v47, %v7790_v23  ;;  %v20490_v9 = vpack.c.bf16 %v7798_v48, %v7795_v20  ;;  %v7992_v23 = vld [vmem:[%s21403_s5 + $0xb8] sm:$0xff]  ;;  %v7985_v47 = vld [vmem:[%s21403_s5 + $0x80] sm:$0xff]  ;;  %22350 = vst [vmem:[#allocation30_spill] sm:$0xff] %v20824_v22 }
0x1035   : > { %v7989_v20 = vld [vmem:[%s21403_s5 + $0xa0] sm:$0xff]  ;;  %v20633_v48 = vpack.c.bf16 %v7992_v23, %v7988_v14  ;;  %v8010_v14 = vld [vmem:[%s21403_s5 + $0x148] sm:$0xff] }
0x1036   : > { %v20635_v8 = vpack.c.bf16 %v7989_v20, %v7985_v47  ;;  %v8014_v23 = vld [vmem:[%s21403_s5 + $0x168] sm:$0xff]  ;;  %v8012_v47 = vld [vmem:[%s21403_s5 + $0x158] sm:$0xff] }
0x1037   : > { %12478 = vmatpush1.bf16.msra.mxu0 %v20292_v60  ;;  %12505 = vmatpush3.bf16.msra.mxu1 %v20465_v46  ;;  %v7796_v60 = vld [vmem:[%s21401_s3 + $0x130] sm:$0xff]  ;;  %v20730_v20 = vpack.c.bf16 %v8014_v23, %v8010_v14 }
0x1038   : > { %12480 = vmatprep.subr.bf16.mxu0 %v20296_v52  ;;  %12506 = vmatprep.subr.bf16.mxu1 %v21780_v51  ;;  %v7801_v52 = vld [vmem:[%s21401_s3 + $0x158] sm:$0xff]  ;;  %v20511_v18 = vpack.c.bf16 %v7799_v4, %v7796_v60  ;;  %v7991_v60 = vld [vmem:[%s21403_s5 + $0xb0] sm:$0xff] }
0x1039   : > { %v20518_v55 = vpack.c.bf16 %v7804_v19, %v7801_v52  ;;  %v20644_v4 = vpack.c.bf16 %v7991_v60, %v7987_v17  ;;  %v7994_v52 = vld [vmem:[%s21403_s5 + $0xc8] sm:$0xff]  ;;  %v8016_v17 = vld [vmem:[%s21403_s5 + $0x178] sm:$0xff]  ;;  %v8009_v60 = vld [vmem:[%s21403_s5 + $0x140] sm:$0xff] }
0x103a   : > { %v7998_v19 = vld [vmem:[%s21403_s5 + $0xe8] sm:$0xff]  ;;  %v8023_v14 = vld [vmem:[%s21403_s5 + $0x1b0] sm:$0xff] }
0x103b   : > { %12482 = vmatpush1.bf16.msra.mxu0 %v20306_v25  ;;  %12508 = vmatpush3.bf16.msra.mxu1 %v20483_v36  ;;  %v7803_v25 = vld [vmem:[%s21401_s3 + $0x168] sm:$0xff]  ;;  %v20788_v23 = vpack.c.bf16 %v8023_v14, %v8019_v58 }
0x103c   : > { %12484 = vmatprep.subr.bf16.mxu0 %v20490_v9  ;;  %12509 = vmatprep.subr.bf16.mxu1 %v21780_v51  ;;  %v20531_v12 = vpack.c.bf16 %v7803_v25, %v7800_v61  ;;  %v7996_v61 = vld [vmem:[%s21403_s5 + $0xd8] sm:$0xff]  ;;  %v20658_v25 = vpack.c.bf16 %v7998_v19, %v7994_v52  ;;  %v8013_v52 = vld [vmem:[%s21403_s5 + $0x160] sm:$0xff]  ;;  %v20741_v19 = vpack.c.bf16 %v8016_v17, %v8012_v47  ;;  %v8026_v47 = vld [vmem:[%s21403_s5 + $0x1c8] sm:$0xff] }
0x103d   : > { %v20669_v3 = vpack.c.bf16 %v8000_v57, %v7996_v61  ;;  %v20743_v61 = vpack.c.bf16 %v8013_v52, %v8009_v60  ;;  %v8011_v57 = vld [vmem:[%s21403_s5 + $0x150] sm:$0xff]  ;;  %22346 = vst [vmem:[#allocation26_spill] sm:$0xff] %v20788_v23  ;;  %v8030_v17 = vld [vmem:[%s21403_s5 + $0x1e8] sm:$0xff]  ;;  %v8028_v60 = vld [vmem:[%s21403_s5 + $0x1d8] sm:$0xff] }
0x103e   : > { %v20752_v37 = vpack.c.bf16 %v8015_v33, %v8011_v57  ;;  %v20802_v52 = vpack.c.bf16 %v8030_v17, %v8026_v47  ;;  %v8032_v57 = vld [vmem:[%s21403_s5 + $0x1f8] sm:$0xff]  ;;  %v8025_v33 = vld [vmem:[%s21403_s5 + $0x1c0] sm:$0xff]  ;;  %v8034_v58 = vld [vmem:[%s21403_s5 + $0x208] sm:$0xff] }
0x103f   : > { %12486 = vmatpush1.bf16.msra.mxu0 %v20509_v42  ;;  %12511 = vmatpush3.bf16.msra.mxu1 %v20511_v18  ;;  %v20813_v44 = vpack.c.bf16 %v8032_v57, %v8028_v60  ;;  %v20815_v0 = vpack.c.bf16 %v8029_v62, %v8025_v33  ;;  %v8038_v14 = vld [vmem:[%s21403_s5 + $0x228] sm:$0xff]  ;;  %v8036_v47 = vld [vmem:[%s21403_s5 + $0x218] sm:$0xff]  ;;  %v8033_v57 = vld [vmem:[%s21403_s5 + $0x200] sm:$0xff] }
0x1040   : > { %12488 = vmatprep.subr.bf16.mxu0 %v20518_v55  ;;  %12512 = vmatprep.subr.bf16.mxu1 %v21780_v51  ;;  %22347 = vst [vmem:[#allocation27_spill] sm:$0xff] %v20802_v52  ;;  %v20838_v17 = vpack.c.bf16 %v8038_v14, %v8034_v58  ;;  %v8040_v60 = vld [vmem:[%s21403_s5 + $0x238] sm:$0xff]  ;;  %v8037_v33 = vld [vmem:[%s21403_s5 + $0x220] sm:$0xff]  ;;  %v8039_v58 = vld [vmem:[%s21403_s5 + $0x230] sm:$0xff] }
0x1041   : > { %22348 = vst [vmem:[#allocation28_spill] sm:$0xff] %v20813_v44  ;;  %22349 = vst [vmem:[#allocation29_spill] sm:$0xff] %v20815_v0  ;;  %v20849_v62 = vpack.c.bf16 %v8040_v60, %v8036_v47  ;;  %v20851_v34 = vpack.c.bf16 %v8037_v33, %v8033_v57  ;;  %v20860_v14 = vpack.c.bf16 %v8039_v58, %v8035_v2  ;;  %v8042_v47 = vld [vmem:[%s21403_s5 + $0x248] sm:$0xff]  ;;  %v8044_v57 = vld [vmem:[%s21403_s5 + $0x258] sm:$0xff] }
0x1042   : > { %22351 = vst [vmem:[#allocation31_spill] sm:$0xff] %v20838_v17  ;;  %v8046_v60 = vld [vmem:[%s21403_s5 + $0x268] sm:$0xff]  ;;  %v8048_v2 = vld [vmem:[%s21403_s5 + $0x278] sm:$0xff]  ;;  %v8041_v58 = vld [vmem:[%s21403_s5 + $0x240] sm:$0xff] }
0x1043   : > { %12490 = vmatpush1.bf16.msra.mxu0 %v20531_v12  ;;  %12514 = vmatpush3.bf16.msra.mxu1 %v20533_v40  ;;  %22352 = vst [vmem:[#allocation32_spill] sm:$0xff] %v20849_v62  ;;  %22353 = vst [vmem:[#allocation33_spill] sm:$0xff] %v20851_v34  ;;  %v20874_v33 = vpack.c.bf16 %v8046_v60, %v8042_v47  ;;  %v8043_v47 = vld [vmem:[%s21403_s5 + $0x250] sm:$0xff] }
0x1044   : > { %12516 = vmatprep.subr.bf16.mxu1 %v20550_v45  ;;  %12580 = vmatprep.subr.bf16.mxu0 %v20561_v15  ;;  %22354 = vst [vmem:[#allocation62_spill] sm:$0xff] %v20860_v14  ;;  %v8047_v60 = vld [vmem:[%s21403_s5 + $0x270] sm:$0xff] }
0x1045   : > { %22355 = vst [vmem:[#allocation45_spill] sm:$0xff] %v20874_v33 }
0x1046   : > { %7871 = vmatmul.mubr.f32.vlgmr.msra.gmra.mrb[56].mxu0 %v20414_v6  ;;  %9830 = vmatmul.mubr.f32.vlgmr.msra.gmra.mrb[80].mxu1 %v20414_v6 }
0x1047   : > { %12518 = vmatpush1.bf16.msra.mxu1 %v20563_v35  ;;  %12582 = vmatpush1.bf16.msra.mxu0 %v20572_v49 }
0x1048   : > { %12520 = vmatprep.subr.bf16.mxu1 %v20586_v59  ;;  %12584 = vmatprep.subr.bf16.mxu0 %v20597_v63 }
0x104b   : > { %12522 = vmatpush1.bf16.msra.mxu1 %v20599_v10  ;;  %12586 = vmatpush1.bf16.msra.mxu0 %v20608_v30 }
0x104c   : > { %12524 = vmatprep.subr.bf16.mxu1 %v20622_v31  ;;  %12588 = vmatprep.subr.bf16.mxu0 %v20633_v48 }
0x104f   : > { %12526 = vmatpush1.bf16.msra.mxu1 %v20635_v8  ;;  %12590 = vmatpush1.bf16.msra.mxu0 %v20644_v4 }
0x1050   : > { %12528 = vmatprep.subr.bf16.mxu1 %v20658_v25  ;;  %12592 = vmatprep.subr.bf16.mxu0 %v20669_v3 }
0x1053   : > { %12530 = vmatpush1.bf16.msra.mxu1 %v20671_v50  ;;  %12594 = vmatpush1.bf16.msra.mxu0 %v20680_v16 }
0x1054   : > { %12532 = vmatprep.subr.bf16.mxu1 %v20694_v5  ;;  %12596 = vmatprep.subr.bf16.mxu0 %v20705_v29 }
0x1057   : > { %12534 = vmatpush1.bf16.msra.mxu1 %v20707_v41  ;;  %12598 = vmatpush1.bf16.msra.mxu0 %v20716_v43 }
0x1058   : > { %12536 = vmatprep.subr.bf16.mxu1 %v20730_v20  ;;  %12600 = vmatprep.subr.bf16.mxu0 %v20741_v19 }
0x105b   : > { %12538 = vmatpush1.bf16.msra.mxu1 %v20743_v61  ;;  %12602 = vmatpush1.bf16.msra.mxu0 %v20752_v37 }
0x105c   : > { %12540 = vmatprep.subr.bf16.mxu1 %v20766_v38  ;;  %12604 = vmatprep.subr.bf16.mxu0 %v20777_v1 }
0x105f   : > { %12542 = vmatpush1.bf16.msra.mxu1 %v20779_v27  ;;  %12606 = vmatpush1.bf16.msra.mxu0 %v20788_v23 }
0x1060   : > { %12544 = vmatprep.subr.bf16.mxu1 %v20802_v52  ;;  %12608 = vmatprep.subr.bf16.mxu0 %v20813_v44 }
0x1063   : > { %12546 = vmatpush1.bf16.msra.mxu1 %v20815_v0  ;;  %12610 = vmatpush1.bf16.msra.mxu0 %v20824_v22  ;;  %v8083_v0 = vld [vmem:[%s21403_s5 + $0x390] sm:$0xff] }
0x1064   : > { %12548 = vmatprep.subr.bf16.mxu1 %v20838_v17  ;;  %12612 = vmatprep.subr.bf16.mxu0 %v20849_v62  ;;  %v20885_v62 = vpack.c.bf16 %v8048_v2, %v8044_v57  ;;  %v8054_v57 = vld [vmem:[%s21403_s5 + $0x2a8] sm:$0xff]  ;;  %v8052_v2 = vld [vmem:[%s21403_s5 + $0x298] sm:$0xff] }
0x1066   : > { %22356 = vst [vmem:[#allocation46_spill] sm:$0xff] %v20885_v62 }
0x1067   : > { %12550 = vmatpush1.bf16.msra.mxu1 %v20851_v34  ;;  %12614 = vmatpush1.bf16.msra.mxu0 %v20860_v14  ;;  %v8045_v34 = vld [vmem:[%s21403_s5 + $0x260] sm:$0xff]  ;;  %v20896_v14 = vpack.c.bf16 %v8047_v60, %v8043_v47  ;;  %v8056_v47 = vld [vmem:[%s21403_s5 + $0x2b8] sm:$0xff] }
0x1068   : > { %v20887_v17 = vpack.c.bf16 %v8045_v34, %v8041_v58  ;;  %12552 = vmatprep.subr.bf16.mxu1 %v20874_v33  ;;  %12616 = vmatprep.subr.bf16.mxu0 %v20885_v62  ;;  %v8050_v34 = vld [vmem:[%s21403_s5 + $0x288] sm:$0xff]  ;;  %v8049_v60 = vld [vmem:[%s21403_s5 + $0x280] sm:$0xff]  ;;  %v20921_v62 = vpack.c.bf16 %v8056_v47, %v8052_v2  ;;  %v8060_v47 = vld [vmem:[%s21403_s5 + $0x2d8] sm:$0xff] }
0x1069   : > { %22358 = vst [vmem:[#allocation34_spill] sm:$0xff] %v20896_v14  ;;  %v20910_v58 = vpack.c.bf16 %v8054_v57, %v8050_v34  ;;  %v8051_v34 = vld [vmem:[%s21403_s5 + $0x290] sm:$0xff]  ;;  %v8062_v2 = vld [vmem:[%s21403_s5 + $0x2e8] sm:$0xff] }
0x106a   : > { %22357 = vst [vmem:[#allocation65_spill] sm:$0xff] %v20887_v17  ;;  %22360 = vst [vmem:[#allocation36_spill] sm:$0xff] %v20921_v62  ;;  %v8055_v57 = vld [vmem:[%s21403_s5 + $0x2b0] sm:$0xff] }
0x106b   : > { %12554 = vmatpush1.bf16.msra.mxu1 %v20887_v17  ;;  %12618 = vmatpush1.bf16.msra.mxu0 %v20896_v14  ;;  %22359 = vst [vmem:[#allocation35_spill] sm:$0xff] %v20910_v58  ;;  %v8053_v17 = vld [vmem:[%s21403_s5 + $0x2a0] sm:$0xff]  ;;  %v20932_v14 = vpack.c.bf16 %v8055_v57, %v8051_v34  ;;  %v8064_v34 = vld [vmem:[%s21403_s5 + $0x2f8] sm:$0xff] }
0x106c   : > { %v20923_v33 = vpack.c.bf16 %v8053_v17, %v8049_v60  ;;  %12556 = vmatprep.subr.bf16.mxu1 %v20910_v58  ;;  %12620 = vmatprep.subr.bf16.mxu0 %v20921_v62  ;;  %v8058_v17 = vld [vmem:[%s21403_s5 + $0x2c8] sm:$0xff]  ;;  %v8057_v57 = vld [vmem:[%s21403_s5 + $0x2c0] sm:$0xff]  ;;  %v20957_v62 = vpack.c.bf16 %v8064_v34, %v8060_v47  ;;  %v8068_v34 = vld [vmem:[%s21403_s5 + $0x318] sm:$0xff] }
0x106d   : > { %22362 = vst [vmem:[#allocation38_spill] sm:$0xff] %v20932_v14  ;;  %v20946_v60 = vpack.c.bf16 %v8062_v2, %v8058_v17  ;;  %v8059_v17 = vld [vmem:[%s21403_s5 + $0x2d0] sm:$0xff]  ;;  %v8070_v47 = vld [vmem:[%s21403_s5 + $0x328] sm:$0xff] }
0x106e   : > { %22361 = vst [vmem:[#allocation37_spill] sm:$0xff] %v20923_v33  ;;  %22364 = vst [vmem:[#allocation40_spill] sm:$0xff] %v20957_v62  ;;  %v8063_v2 = vld [vmem:[%s21403_s5 + $0x2f0] sm:$0xff] }
0x106f   : > { %12558 = vmatpush1.bf16.msra.mxu1 %v20923_v33  ;;  %12622 = vmatpush1.bf16.msra.mxu0 %v20932_v14  ;;  %22363 = vst [vmem:[#allocation39_spill] sm:$0xff] %v20946_v60  ;;  %v8061_v33 = vld [vmem:[%s21403_s5 + $0x2e0] sm:$0xff]  ;;  %v20968_v14 = vpack.c.bf16 %v8063_v2, %v8059_v17  ;;  %v8072_v17 = vld [vmem:[%s21403_s5 + $0x338] sm:$0xff] }
0x1070   : > { %v20959_v58 = vpack.c.bf16 %v8061_v33, %v8057_v57  ;;  %12560 = vmatprep.subr.bf16.mxu1 %v20946_v60  ;;  %12624 = vmatprep.subr.bf16.mxu0 %v20957_v62  ;;  %v8066_v33 = vld [vmem:[%s21403_s5 + $0x308] sm:$0xff]  ;;  %v8065_v2 = vld [vmem:[%s21403_s5 + $0x300] sm:$0xff]  ;;  %v20993_v62 = vpack.c.bf16 %v8072_v17, %v8068_v34  ;;  %v8076_v17 = vld [vmem:[%s21403_s5 + $0x358] sm:$0xff] }
0x1071   : > { %22366 = vst [vmem:[#allocation63_spill] sm:$0xff] %v20968_v14  ;;  %v20982_v57 = vpack.c.bf16 %v8070_v47, %v8066_v33  ;;  %v8067_v33 = vld [vmem:[%s21403_s5 + $0x310] sm:$0xff]  ;;  %v8078_v34 = vld [vmem:[%s21403_s5 + $0x368] sm:$0xff] }
0x1072   : > { %22365 = vst [vmem:[#allocation60_spill] sm:$0xff] %v20959_v58  ;;  %22368 = vst [vmem:[#allocation43_spill] sm:$0xff] %v20993_v62  ;;  %v8071_v47 = vld [vmem:[%s21403_s5 + $0x330] sm:$0xff] }
0x1073   : > { %12562 = vmatpush1.bf16.msra.mxu1 %v20959_v58  ;;  %12626 = vmatpush1.bf16.msra.mxu0 %v20968_v14  ;;  %22367 = vst [vmem:[#allocation41_spill] sm:$0xff] %v20982_v57  ;;  %v8069_v58 = vld [vmem:[%s21403_s5 + $0x320] sm:$0xff]  ;;  %v21004_v14 = vpack.c.bf16 %v8071_v47, %v8067_v33  ;;  %v8080_v33 = vld [vmem:[%s21403_s5 + $0x378] sm:$0xff] }
0x1074   : > { %v20995_v60 = vpack.c.bf16 %v8069_v58, %v8065_v2  ;;  %12564 = vmatprep.subr.bf16.mxu1 %v20982_v57  ;;  %12628 = vmatprep.subr.bf16.mxu0 %v20993_v62  ;;  %v8074_v58 = vld [vmem:[%s21403_s5 + $0x348] sm:$0xff]  ;;  %v8073_v47 = vld [vmem:[%s21403_s5 + $0x340] sm:$0xff]  ;;  %v21029_v62 = vpack.c.bf16 %v8080_v33, %v8076_v17  ;;  %v8084_v17 = vld [vmem:[%s21403_s5 + $0x398] sm:$0xff] }
0x1075   : > { %22370 = vst [vmem:[#allocation42_spill] sm:$0xff] %v21004_v14  ;;  %v21018_v2 = vpack.c.bf16 %v8078_v34, %v8074_v58  ;;  %v8075_v58 = vld [vmem:[%s21403_s5 + $0x350] sm:$0xff]  ;;  %v8088_v33 = vld [vmem:[%s21403_s5 + $0x3b8] sm:$0xff] }
0x1076   : > { %22369 = vst [vmem:[#allocation44_spill] sm:$0xff] %v20995_v60  ;;  %22372 = vst [vmem:[#allocation58_spill] sm:$0xff] %v21029_v62  ;;  %v8079_v34 = vld [vmem:[%s21403_s5 + $0x370] sm:$0xff] }
0x1077   : > { %12566 = vmatpush1.bf16.msra.mxu1 %v20995_v60  ;;  %12630 = vmatpush1.bf16.msra.mxu0 %v21004_v14  ;;  %22371 = vst [vmem:[#allocation53_spill] sm:$0xff] %v21018_v2  ;;  %v8077_v60 = vld [vmem:[%s21403_s5 + $0x360] sm:$0xff]  ;;  %v8082_v14 = vld [vmem:[%s21403_s5 + $0x388] sm:$0xff]  ;;  %v21043_v22 = vpack.c.bf16 %v8079_v34, %v8075_v58  ;;  %v21058_v58 = vpack.c.bf16 %v8088_v33, %v8084_v17 }
0x1078   : > { %v21031_v57 = vpack.c.bf16 %v8077_v60, %v8073_v47  ;;  %12568 = vmatprep.subr.bf16.mxu1 %v21018_v2  ;;  %v8086_v60 = vld [vmem:[%s21403_s5 + $0x3a8] sm:$0xff]  ;;  %12632 = vmatprep.subr.bf16.mxu0 %v21029_v62  ;;  %v8081_v34 = vld [vmem:[%s21403_s5 + $0x380] sm:$0xff] }
0x1079   : > { %22374 = vst [vmem:[#allocation69_spill] sm:$0xff] %v21043_v22  ;;  %v21056_v47 = vpack.c.bf16 %v8086_v60, %v8082_v14  ;;  %22376 = vst [vmem:[#allocation71_spill] sm:$0xff] %v21058_v58  ;;  %v8085_v2 = vld [vmem:[%s21403_s5 + $0x3a0] sm:$0xff]  ;;  %v8087_v14 = vld [vmem:[%s21403_s5 + $0x3b0] sm:$0xff] }
0x107a   : > { %22373 = vst [vmem:[#allocation61_spill] sm:$0xff] %v21031_v57  ;;  %v21070_v62 = vpack.c.bf16 %v8085_v2, %v8081_v34  ;;  %v8090_v60 = vld [vmem:[%s21403_s5 + $0x3c8] sm:$0xff]  ;;  %v21083_v33 = vpack.c.bf16 %v8087_v14, %v8083_v0  ;;  %v8092_v34 = vld [vmem:[%s21403_s5 + $0x3d8] sm:$0xff]  ;;  %v8093_v0 = vld [vmem:[%s21403_s5 + $0x3e0] sm:$0xff] }
0x107b   : > { %12570 = vmatpush1.bf16.msra.mxu1 %v21031_v57  ;;  %22375 = vst [vmem:[#allocation70_spill] sm:$0xff] %v21056_v47  ;;  %12634 = vmatpush1.bf16.msra.mxu0 %v21043_v22  ;;  %v8094_v17 = vld [vmem:[%s21403_s5 + $0x3e8] sm:$0xff]  ;;  %v8096_v22 = vld [vmem:[%s21403_s5 + $0x3f8] sm:$0xff]  ;;  %v8089_v57 = vld [vmem:[%s21403_s5 + $0x3c0] sm:$0xff] }
0x107c   : > { %22377 = vst [vmem:[#allocation56_spill] sm:$0xff] %v21070_v62  ;;  %12572 = vmatprep.subr.bf16.mxu1 %v21056_v47  ;;  %12636 = vmatprep.subr.bf16.mxu0 %v21058_v58  ;;  %22378 = vst [vmem:[#allocation59_spill] sm:$0xff] %v21083_v33  ;;  %v21085_v2 = vpack.c.bf16 %v8094_v17, %v8090_v60  ;;  %v21096_v44 = vpack.c.bf16 %v8096_v22, %v8092_v34  ;;  %v8091_v14 = vld [vmem:[%s21403_s5 + $0x3d0] sm:$0xff]  ;;  %v8260_v22 = vld [vmem:[%s21401_s3 + $0x8] sm:$0xff] }
0x107d   : > { %v8095_v60 = vld [vmem:[%s21403_s5 + $0x3f0] sm:$0xff]  ;;  %v21108_v17 = vpack.c.bf16 %v8093_v0, %v8089_v57  ;;  %v8263_v34 = vld [vmem:[%s21401_s3 + $0x20] sm:$0xff] }
0x107e   : > { %22379 = vst [vmem:[#allocation72_spill] sm:$0xff] %v21085_v2  ;;  %22380 = vst [vmem:[#allocation54_spill] sm:$0xff] %v21096_v44  ;;  %v21118_v58 = vpack.c.bf16 %v8095_v60, %v8091_v14  ;;  %v12643_v47 = vpack.c.bf16 %v8263_v34, %v8260_v22 }
0x107f   : > { %12574 = vmatpush1.bf16.msra.mxu1 %v21070_v62  ;;  %22381 = vst [vmem:[#allocation57_spill] sm:$0xff] %v21108_v17  ;;  %12638 = vmatpush1.bf16.msra.mxu0 %v21083_v33 }
0x1080   : > { %12576 = vmatprep.subr.bf16.mxu1 %v21085_v2  ;;  %22382 = vst [vmem:[#allocation55_spill] sm:$0xff] %v21118_v58  ;;  %12640 = vmatprep.subr.bf16.mxu0 %v21096_v44 }
0x1083   : > { %12578 = vmatpush1.bf16.msra.mxu1 %v21108_v17  ;;  %12642 = vmatpush1.bf16.msra.mxu0 %v21118_v58 }
0x1084   : > { %12675 = vmatprep.subr.bf16.mxu1 %v21780_v51  ;;  %12644 = vmatprep.subr.bf16.mxu0 %v12643_v47 }
0x10f9   : > { %v7662_v57 = vpop.f32.mrb[78].mxu1  ;;  %v7733_v0 = vpop.f32.mrb[54].mxu0 }
0x10fa   : > { %v7663_v62 = vadd.f32 %v7662_v57, %v22339_v21  ;;  %v7664_v52 = vpop.f32.mrb[79].mxu1  ;;  %v7735_v33 = vpop.f32.mrb[55].mxu0  ;;  %v7734_v2 = vadd.f32 %v7733_v0, %v14680_v54  ;;  %v22383_v21 = vld [vmem:[#allocation49_spill] sm:$0xff] }
0x10fb   : > { %v7665_v14 = vadd.f32 %v7664_v52, %v14671_v24  ;;  %v7736_v44 = vadd.f32 %v7735_v33, %v22340_v11 }
0x10fc   : > { %v8964_v23 = vmul.f32 -1.442695, %v7663_v62  ;;  %v557_v62 = vadd.f32 %v22383_v21, %v14450_v53 }
0x10fd   : > { %v8965_v60 = vmul.f32 -1.442695, %v7665_v14 }
0x10fe   : > { %13217 = vpow2.f32 %v8964_v23  ;;  %v22384_v23 = vld [vmem:[#allocation50_spill] sm:$0xff] }
0x10ff   : > { %13219 = vpow2.f32 %v8965_v60  ;;  %v559_v52 = vadd.f32 %v22384_v23, %v22342_v56 }
0x1108   : > { %v13218_v22 = vpop.eup %13217 }
0x1109   : > { %v7741_v34 = vadd.f32 1.0, %v13218_v22  ;;  %v13220_v17 = vpop.eup %13219 }
0x110a   : > { %v7747_v58 = vadd.f32 1.0, %v13220_v17 }
0x110b   : > { %13221 = vrcp.f32 %v7741_v34 }
0x110c   : > { %13223 = vrcp.f32 %v7747_v58 }
0x1115   : > { %v13222_v47 = vpop.eup %13221 }
0x1116   : > { %v7750_v57 = vmul.f32 %v13222_v47, %v7736_v44  ;;  %v13224_v0 = vpop.eup %13223 }
0x1117   : > { %v7753_v44 = vsub.f32 1.0, %v13224_v0 }
0x1118   : > { %v7751_v27 = vadd.f32 %v7750_v57, %v7734_v2  ;;  %v7755_v2 = vmul.f32 %v13224_v0, %v20397_v32  ;;  %v8262_v0 = vld [vmem:[%s21401_s3 + $0x18] sm:$0xff] }
0x1119   : > { %v7872_v14 = vpop.f32.mrb[56].mxu0  ;;  %v7943_v60 = vpop.f32.mrb[80].mxu1 }
0x111a   : > { %13225 = vtanh.f32 %v7751_v27  ;;  %v7947_v22 = vadd.f32 %v7872_v14, %v557_v62  ;;  %v7874_v17 = vpop.f32.mrb[57].mxu0  ;;  %v9831_v34 = vpop.f32.mrb[81].mxu1  ;;  %v21142_v62 = vld [vmem:[%s21402_s4] ss:$0 sm:$0xff] }
0x111b   : > { %v7954_v33 = vadd.f32 %v7874_v17, %v559_v52  ;;  %v7961_v32 = vadd.f32 %v21142_v62, %v7943_v60  ;;  %v8266_v60 = vld [vmem:[%s21401_s3 + $0x38] sm:$0xff] }
0x111c   : > { %v8966_v11 = vmul.f32 -1.442695, %v7947_v22  ;;  %v22385_v22 = vld [vmem:[#allocation67_spill] sm:$0xff] }
0x111d   : > { %v8967_v58 = vmul.f32 -1.442695, %v7954_v33 }
0x111e   : > { %13227 = vpow2.f32 %v8966_v11 }
0x111f   : > { %13229 = vpow2.f32 %v8967_v58 }
0x1124   : > { %v13226_v47 = vpop.eup %13225 }
0x1125   : > { %v7754_v21 = vmul.f32 %v13226_v47, %v7753_v44  ;;  %v8269_v44 = vld [vmem:[%s21401_s3 + $0x50] sm:$0xff] }
0x1127   : > { %v21133_v57 = vadd.f32 %v7755_v2, %v7754_v21 }
0x1128   : > { %v13228_v23 = vpop.eup %13227 }
0x1129   : > { %v7951_v56 = vadd.f32 1.0, %v13228_v23  ;;  %7757 = vst [vmem:[%s13480_s24 + $0x68] sm:$0xff] %v21133_v57  ;;  %8161 = vmatprep.mubr.f32.mxu1 %v21133_v57  ;;  %8232 = vmatprep.mubr.f32.mxu0 %v21133_v57  ;;  %v13230_v11 = vpop.eup %13229 }
0x112a   : > { %v7958_v27 = vadd.f32 1.0, %v13230_v11  ;;  %v12647_v11 = vpack.c.bf16 %v8269_v44, %v8266_v60  ;;  %v8280_v60 = vld [vmem:[%s21401_s3 + $0xa8] sm:$0xff] }
0x112b   : > { %13231 = vrcp.f32 %v7951_v56  ;;  %v8259_v56 = vld [vmem:[%s21401_s3] sm:$0xff] }
0x112c   : > { %13233 = vrcp.f32 %v7958_v27  ;;  %v12645_v2 = vpack.c.bf16 %v8262_v0, %v8259_v56  ;;  %v8265_v27 = vld [vmem:[%s21401_s3 + $0x30] sm:$0xff] }
0x1135   : > { %v13232_v52 = vpop.eup %13231 }
0x1136   : > { %v7962_v14 = vmul.f32 %v13232_v52, %v7961_v32  ;;  %v13234_v34 = vpop.eup %13233  ;;  %v8268_v32 = vld [vmem:[%s21401_s3 + $0x48] sm:$0xff] }
0x1137   : > { %v7965_v33 = vsub.f32 1.0, %v13234_v34  ;;  %v7967_v21 = vmul.f32 %v13234_v34, %v20414_v6  ;;  %v8272_v52 = vld [vmem:[%s21401_s3 + $0x68] sm:$0xff]  ;;  %v8275_v6 = vld [vmem:[%s21401_s3 + $0x80] sm:$0xff]  ;;  %v8274_v34 = vld [vmem:[%s21401_s3 + $0x78] sm:$0xff] }
0x1138   : > { %v7963_v17 = vadd.f32 %v7962_v14, %v22385_v22  ;;  %v12649_v14 = vpack.c.bf16 %v8268_v32, %v8265_v27  ;;  %v12651_v22 = vpack.c.bf16 %v8275_v6, %v8272_v52  ;;  %v8289_v52 = vld [vmem:[%s21401_s3 + $0xf0] sm:$0xff]  ;;  %v8292_v6 = vld [vmem:[%s21401_s3 + $0x108] sm:$0xff] }
0x113a   : > { %13235 = vtanh.f32 %v7963_v17  ;;  %v8271_v17 = vld [vmem:[%s21401_s3 + $0x60] sm:$0xff] }
0x113b   : > { %v12653_v56 = vpack.c.bf16 %v8274_v34, %v8271_v17  ;;  %v22423_v17 = vld [vmem:[#allocation55_spill] sm:$0xff] }
0x1144   : > { %v13236_v58 = vpop.eup %13235 }
0x1145   : > { %v7966_v47 = vmul.f32 %v13236_v58, %v7965_v33  ;;  %v8278_v33 = vld [vmem:[%s21401_s3 + $0x98] sm:$0xff]  ;;  %v8277_v58 = vld [vmem:[%s21401_s3 + $0x90] sm:$0xff] }
0x1146   : > { %v12657_v44 = vpack.c.bf16 %v8280_v60, %v8277_v58 }
0x1147   : > { %v21159_v23 = vadd.f32 %v7967_v21, %v7966_v47  ;;  %v8283_v21 = vld [vmem:[%s21401_s3 + $0xc0] sm:$0xff] }
0x1149   : > { %8162 = vmatmul.mubr.f32.vlgmr.msra.gmra.mrb[82].mxu1 %v21159_v23  ;;  %8233 = vmatmul.mubr.f32.vlgmr.msra.gmra.mrb[58].mxu0 %v21159_v23 }
0x114a   : > { %12646 = vmatpush1.bf16.msra.mxu0 %v12645_v2  ;;  %12677 = vmatpush3.bf16.msra.mxu1 %v20412_v28  ;;  %v8281_v28 = vld [vmem:[%s21401_s3 + $0xb0] sm:$0xff]  ;;  %v8286_v2 = vld [vmem:[%s21401_s3 + $0xd8] sm:$0xff] }
0x114b   : > { %12648 = vmatprep.subr.bf16.mxu0 %v12647_v11  ;;  %12678 = vmatprep.subr.bf16.mxu1 %v21780_v51  ;;  %v12655_v0 = vpack.c.bf16 %v8281_v28, %v8278_v33  ;;  %v8290_v11 = vld [vmem:[%s21401_s3 + $0xf8] sm:$0xff]  ;;  %v12661_v27 = vpack.c.bf16 %v8286_v2, %v8283_v21  ;;  %v22424_v28 = vld [vmem:[#allocation9_spill] sm:$0xff] }
0x114c   : > { %8371 = vmatprep.mubr.f32.mxu0 %v21805_v7  ;;  %9864 = vmatprep.mubr.msk.f32.mxu1 %vm13371_vm1, %v21805_v7  ;;  %v8284_v7 = vld [vmem:[%s21401_s3 + $0xc8] sm:$0xff] }
0x114e   : > { %12650 = vmatpush1.bf16.msra.mxu0 %v12649_v14  ;;  %12680 = vmatpush3.bf16.msra.mxu1 %v20426_v39  ;;  %v8287_v39 = vld [vmem:[%s21401_s3 + $0xe0] sm:$0xff]  ;;  %v12665_v14 = vpack.c.bf16 %v8292_v6, %v8289_v52  ;;  %v22426_v6 = vld [vmem:[#allocation51_spill] sm:$0xff] }
0x114f   : > { %12652 = vmatprep.subr.bf16.mxu0 %v12651_v22  ;;  %12681 = vmatprep.subr.bf16.mxu1 %v21780_v51  ;;  %v12659_v47 = vpack.c.bf16 %v8287_v39, %v8284_v7  ;;  %v22422_v22 = vld [vmem:[#allocation57_spill] sm:$0xff] }
0x1152   : > { %12654 = vmatpush1.bf16.msra.mxu0 %v12653_v56  ;;  %12683 = vmatpush3.bf16.msra.mxu1 %v20441_v13  ;;  %v8293_v13 = vld [vmem:[%s21401_s3 + $0x110] sm:$0xff] }
0x1153   : > { %12656 = vmatprep.subr.bf16.mxu0 %v12655_v0  ;;  %12684 = vmatprep.subr.bf16.mxu1 %v21780_v51  ;;  %v12663_v32 = vpack.c.bf16 %v8293_v13, %v8290_v11  ;;  %v22425_v11 = vld [vmem:[#allocation10_spill] sm:$0xff] }
0x1156   : > { %12658 = vmatpush1.bf16.msra.mxu0 %v12657_v44  ;;  %12686 = vmatpush3.bf16.msra.mxu1 %v20453_v26  ;;  %v22387_v26 = vld [vmem:[#allocation26_spill] sm:$0xff] }
0x1157   : > { %12660 = vmatprep.subr.bf16.mxu0 %v12659_v47  ;;  %12687 = vmatprep.subr.bf16.mxu1 %v21780_v51 }
0x115a   : > { %12662 = vmatpush1.bf16.msra.mxu0 %v12661_v27  ;;  %12689 = vmatpush3.bf16.msra.mxu1 %v20465_v46  ;;  %v22388_v46 = vld [vmem:[#allocation27_spill] sm:$0xff] }
0x115b   : > { %12664 = vmatprep.subr.bf16.mxu0 %v12663_v32  ;;  %12690 = vmatprep.subr.bf16.mxu1 %v21780_v51 }
0x115e   : > { %12666 = vmatpush1.bf16.msra.mxu0 %v12665_v14  ;;  %12692 = vmatpush3.bf16.msra.mxu1 %v20483_v36  ;;  %v22389_v36 = vld [vmem:[#allocation28_spill] sm:$0xff]  ;;  %v563_v14 = vadd.f32 %v22426_v6, %v14450_v53 }
0x115f   : > { %12668 = vmatprep.subr.bf16.mxu0 %v20490_v9  ;;  %12693 = vmatprep.subr.bf16.mxu1 %v21780_v51  ;;  %v22390_v9 = vld [vmem:[#allocation29_spill] sm:$0xff] }
0x1162   : > { %12670 = vmatpush1.bf16.msra.mxu0 %v20509_v42  ;;  %12695 = vmatpush3.bf16.msra.mxu1 %v20511_v18  ;;  %v22391_v42 = vld [vmem:[#allocation30_spill] sm:$0xff]  ;;  %v22392_v18 = vld [vmem:[#allocation31_spill] sm:$0xff] }
0x1163   : > { %12672 = vmatprep.subr.bf16.mxu0 %v20518_v55  ;;  %12696 = vmatprep.subr.bf16.mxu1 %v21780_v51  ;;  %v22386_v51 = vld [vmem:[#allocation25_spill] sm:$0xff]  ;;  %v22393_v55 = vld [vmem:[#allocation32_spill] sm:$0xff] }
0x1166   : > { %12674 = vmatpush1.bf16.msra.mxu0 %v20531_v12  ;;  %12698 = vmatpush3.bf16.msra.mxu1 %v20533_v40  ;;  %v22394_v12 = vld [vmem:[#allocation33_spill] sm:$0xff]  ;;  %v22395_v40 = vld [vmem:[#allocation62_spill] sm:$0xff] }
0x1167   : > { %12700 = vmatprep.subr.bf16.mxu1 %v20550_v45  ;;  %12764 = vmatprep.subr.bf16.mxu0 %v20561_v15  ;;  %v22396_v45 = vld [vmem:[#allocation45_spill] sm:$0xff]  ;;  %v22397_v15 = vld [vmem:[#allocation46_spill] sm:$0xff] }
0x1169   : > { %8372 = vmatmul.mubr.f32.vlgmr.msra.gmra.mrb[60].mxu0 %v21159_v23  ;;  %9865 = vmatmul.mubr.f32.vlgmr.msra.gmra.mrb[84].mxu1 %v21159_v23 }
0x116a   : > { %12702 = vmatpush1.bf16.msra.mxu1 %v20563_v35  ;;  %12766 = vmatpush1.bf16.msra.mxu0 %v20572_v49  ;;  %v22398_v35 = vld [vmem:[#allocation65_spill] sm:$0xff]  ;;  %v22399_v49 = vld [vmem:[#allocation34_spill] sm:$0xff] }
0x116b   : > { %12704 = vmatprep.subr.bf16.mxu1 %v20586_v59  ;;  %12768 = vmatprep.subr.bf16.mxu0 %v20597_v63  ;;  %v22400_v59 = vld [vmem:[#allocation35_spill] sm:$0xff]  ;;  %v22401_v63 = vld [vmem:[#allocation36_spill] sm:$0xff] }
0x116e   : > { %12706 = vmatpush1.bf16.msra.mxu1 %v20599_v10  ;;  %12770 = vmatpush1.bf16.msra.mxu0 %v20608_v30  ;;  %v22402_v10 = vld [vmem:[#allocation37_spill] sm:$0xff]  ;;  %v22403_v30 = vld [vmem:[#allocation38_spill] sm:$0xff] }
0x116f   : > { %12708 = vmatprep.subr.bf16.mxu1 %v20622_v31  ;;  %12772 = vmatprep.subr.bf16.mxu0 %v20633_v48  ;;  %v22404_v31 = vld [vmem:[#allocation39_spill] sm:$0xff]  ;;  %v22405_v48 = vld [vmem:[#allocation40_spill] sm:$0xff] }
0x1172   : > { %12710 = vmatpush1.bf16.msra.mxu1 %v20635_v8  ;;  %12774 = vmatpush1.bf16.msra.mxu0 %v20644_v4  ;;  %v22406_v8 = vld [vmem:[#allocation60_spill] sm:$0xff]  ;;  %v22407_v4 = vld [vmem:[#allocation63_spill] sm:$0xff] }
0x1173   : > { %12712 = vmatprep.subr.bf16.mxu1 %v20658_v25  ;;  %12776 = vmatprep.subr.bf16.mxu0 %v20669_v3  ;;  %v22408_v25 = vld [vmem:[#allocation41_spill] sm:$0xff]  ;;  %v22409_v3 = vld [vmem:[#allocation43_spill] sm:$0xff] }
0x1176   : > { %12714 = vmatpush1.bf16.msra.mxu1 %v20671_v50  ;;  %12778 = vmatpush1.bf16.msra.mxu0 %v20680_v16  ;;  %v22410_v50 = vld [vmem:[#allocation44_spill] sm:$0xff]  ;;  %v22411_v16 = vld [vmem:[#allocation42_spill] sm:$0xff] }
0x1177   : > { %12716 = vmatprep.subr.bf16.mxu1 %v20694_v5  ;;  %12780 = vmatprep.subr.bf16.mxu0 %v20705_v29  ;;  %v22412_v5 = vld [vmem:[#allocation53_spill] sm:$0xff]  ;;  %v22413_v29 = vld [vmem:[#allocation58_spill] sm:$0xff] }
0x117a   : > { %12718 = vmatpush1.bf16.msra.mxu1 %v20707_v41  ;;  %12782 = vmatpush1.bf16.msra.mxu0 %v20716_v43  ;;  %v22414_v41 = vld [vmem:[#allocation61_spill] sm:$0xff] }
0x117b   : > { %12720 = vmatprep.subr.bf16.mxu1 %v20730_v20  ;;  %12784 = vmatprep.subr.bf16.mxu0 %v20741_v19  ;;  %v22415_v43 = vld [vmem:[#allocation69_spill] sm:$0xff]  ;;  %v22416_v20 = vld [vmem:[#allocation70_spill] sm:$0xff]  ;;  %v22417_v19 = vld [vmem:[#allocation71_spill] sm:$0xff] }
0x117e   : > { %12722 = vmatpush1.bf16.msra.mxu1 %v20743_v61  ;;  %12786 = vmatpush1.bf16.msra.mxu0 %v20752_v37  ;;  %v22418_v61 = vld [vmem:[#allocation56_spill] sm:$0xff]  ;;  %v22419_v37 = vld [vmem:[#allocation59_spill] sm:$0xff] }
0x117f   : > { %12724 = vmatprep.subr.bf16.mxu1 %v20766_v38  ;;  %12788 = vmatprep.subr.bf16.mxu0 %v20777_v1  ;;  %v22420_v38 = vld [vmem:[#allocation72_spill] sm:$0xff]  ;;  %v22421_v1 = vld [vmem:[#allocation54_spill] sm:$0xff] }
0x1182   : > { %12726 = vmatpush1.bf16.msra.mxu1 %v22386_v51  ;;  %12790 = vmatpush1.bf16.msra.mxu0 %v22387_v26  ;;  %v22427_v26 = vld [vmem:[#allocation68_spill] sm:$0xff] }
0x1183   : > { %12728 = vmatprep.subr.bf16.mxu1 %v22388_v46  ;;  %12792 = vmatprep.subr.bf16.mxu0 %v22389_v36  ;;  %v22428_v46 = vld [vmem:[#allocation52_spill] sm:$0xff] }
0x1184   : > { %v565_v36 = vadd.f32 %v22428_v46, %v22427_v26 }
0x1186   : > { %12730 = vmatpush1.bf16.msra.mxu1 %v22390_v9  ;;  %12794 = vmatpush1.bf16.msra.mxu0 %v22391_v42 }
0x1187   : > { %12732 = vmatprep.subr.bf16.mxu1 %v22392_v18  ;;  %12796 = vmatprep.subr.bf16.mxu0 %v22393_v55 }
0x118a   : > { %12734 = vmatpush1.bf16.msra.mxu1 %v22394_v12  ;;  %12798 = vmatpush1.bf16.msra.mxu0 %v22395_v40 }
0x118b   : > { %12736 = vmatprep.subr.bf16.mxu1 %v22396_v45  ;;  %12800 = vmatprep.subr.bf16.mxu0 %v22397_v15 }
0x118e   : > { %12738 = vmatpush1.bf16.msra.mxu1 %v22398_v35  ;;  %12802 = vmatpush1.bf16.msra.mxu0 %v22399_v49 }
0x118f   : > { %12740 = vmatprep.subr.bf16.mxu1 %v22400_v59  ;;  %12804 = vmatprep.subr.bf16.mxu0 %v22401_v63 }
0x1192   : > { %12742 = vmatpush1.bf16.msra.mxu1 %v22402_v10  ;;  %12806 = vmatpush1.bf16.msra.mxu0 %v22403_v30 }
0x1193   : > { %12744 = vmatprep.subr.bf16.mxu1 %v22404_v31  ;;  %12808 = vmatprep.subr.bf16.mxu0 %v22405_v48 }
0x1196   : > { %12746 = vmatpush1.bf16.msra.mxu1 %v22406_v8  ;;  %12810 = vmatpush1.bf16.msra.mxu0 %v22407_v4 }
0x1197   : > { %12748 = vmatprep.subr.bf16.mxu1 %v22408_v25  ;;  %12812 = vmatprep.subr.bf16.mxu0 %v22409_v3 }
0x119a   : > { %12750 = vmatpush1.bf16.msra.mxu1 %v22410_v50  ;;  %12814 = vmatpush1.bf16.msra.mxu0 %v22411_v16  ;;  %v22429_v50 = vld [vmem:[#allocation66_spill] sm:$0xff] }
0x119b   : > { %12752 = vmatprep.subr.bf16.mxu1 %v22412_v5  ;;  %12816 = vmatprep.subr.bf16.mxu0 %v22413_v29 }
0x119e   : > { %12754 = vmatpush1.bf16.msra.mxu1 %v22414_v41  ;;  %12818 = vmatpush1.bf16.msra.mxu0 %v22415_v43 }
0x119f   : > { %12756 = vmatprep.subr.bf16.mxu1 %v22416_v20  ;;  %12820 = vmatprep.subr.bf16.mxu0 %v22417_v19 }
0x11a2   : > { %12758 = vmatpush1.bf16.msra.mxu1 %v22418_v61  ;;  %12822 = vmatpush1.bf16.msra.mxu0 %v22419_v37 }
0x11a3   : > { %12760 = vmatprep.subr.bf16.mxu1 %v22420_v38  ;;  %12824 = vmatprep.subr.bf16.mxu0 %v22421_v1 }
0x11a6   : > { %12762 = vmatpush1.bf16.msra.mxu1 %v22422_v22  ;;  %12826 = vmatpush1.bf16.msra.mxu0 %v22423_v17 }
0x121c   : > { %v8163_v34 = vpop.f32.mrb[82].mxu1  ;;  %v8234_v33 = vpop.f32.mrb[58].mxu0 }
0x121d   : > { %v8164_v56 = vadd.f32 %v8163_v34, %v22424_v28  ;;  %v8165_v0 = vpop.f32.mrb[83].mxu1  ;;  %v8236_v58 = vpop.f32.mrb[59].mxu0  ;;  %v8235_v32 = vadd.f32 %v8234_v33, %v14680_v54 }
0x121e   : > { %v8166_v7 = vadd.f32 %v8165_v0, %v14671_v24  ;;  %v8237_v13 = vadd.f32 %v8236_v58, %v22425_v11 }
0x121f   : > { %v8968_v60 = vmul.f32 -1.442695, %v8164_v56 }
0x1220   : > { %v8969_v39 = vmul.f32 -1.442695, %v8166_v7 }
0x1221   : > { %13237 = vpow2.f32 %v8968_v60 }
0x1222   : > { %13239 = vpow2.f32 %v8969_v39 }
0x122b   : > { %v13238_v44 = vpop.eup %13237 }
0x122c   : > { %v8242_v47 = vadd.f32 1.0, %v13238_v44  ;;  %v13240_v21 = vpop.eup %13239 }
0x122d   : > { %v8248_v2 = vadd.f32 1.0, %v13240_v21 }
0x122e   : > { %13241 = vrcp.f32 %v8242_v47 }
0x122f   : > { %13243 = vrcp.f32 %v8248_v2 }
0x1238   : > { %v13242_v27 = vpop.eup %13241 }
0x1239   : > { %v8251_v52 = vmul.f32 %v13242_v27, %v8237_v13  ;;  %v13244_v15 = vpop.eup %13243 }
0x123a   : > { %v8254_v49 = vsub.f32 1.0, %v13244_v15  ;;  %v8256_v63 = vmul.f32 %v13244_v15, %v21133_v57 }
0x123b   : > { %v8252_v51 = vadd.f32 %v8251_v52, %v8235_v32 }
0x123c   : > { %v8373_v9 = vpop.f32.mrb[60].mxu0  ;;  %v8444_v42 = vpop.f32.mrb[84].mxu1 }
0x123d   : > { %13245 = vtanh.f32 %v8252_v51  ;;  %v8448_v18 = vadd.f32 %v8373_v9, %v563_v14  ;;  %v8375_v55 = vpop.f32.mrb[61].mxu0  ;;  %v9866_v12 = vpop.f32.mrb[85].mxu1  ;;  %v8462_v4 = vadd.f32 %v21142_v62, %v8444_v42 }
0x123e   : > { %v8455_v40 = vadd.f32 %v8375_v55, %v565_v36 }
0x123f   : > { %v8970_v45 = vmul.f32 -1.442695, %v8448_v18 }
0x1240   : > { %v8971_v35 = vmul.f32 -1.442695, %v8455_v40 }
0x1241   : > { %13247 = vpow2.f32 %v8970_v45 }
0x1242   : > { %13249 = vpow2.f32 %v8971_v35 }
0x1247   : > { %v13246_v59 = vpop.eup %13245 }
0x1248   : > { %v8255_v53 = vmul.f32 %v13246_v59, %v8254_v49 }
0x124a   : > { %v8257_v10 = vadd.f32 %v8256_v63, %v8255_v53 }
0x124b   : > { %v13248_v30 = vpop.eup %13247 }
0x124c   : > { %v8452_v31 = vadd.f32 1.0, %v13248_v30  ;;  %8258 = vst [vmem:[%s13480_s24 + $0x70] sm:$0xff] %v8257_v10  ;;  %8662 = vmatprep.mubr.f32.mxu1 %v8257_v10  ;;  %8733 = vmatprep.mubr.f32.mxu0 %v8257_v10  ;;  %v13250_v48 = vpop.eup %13249 }
0x124d   : > { %v8459_v8 = vadd.f32 1.0, %v13250_v48 }
0x124e   : > { %13251 = vrcp.f32 %v8452_v31 }
0x124f   : > { %13253 = vrcp.f32 %v8459_v8 }
0x1258   : > { %v13252_v25 = vpop.eup %13251 }
0x1259   : > { %v8463_v3 = vmul.f32 %v13252_v25, %v8462_v4  ;;  %v13254_v5 = vpop.eup %13253 }
0x125a   : > { %v8466_v29 = vsub.f32 1.0, %v13254_v5  ;;  %v8468_v43 = vmul.f32 %v13254_v5, %v21159_v23 }
0x125b   : > { %v8464_v16 = vadd.f32 %v8463_v3, %v22429_v50 }
0x125d   : > { %13255 = vtanh.f32 %v8464_v16 }
0x1267   : > { %v13256_v57 = vpop.eup %13255 }
0x1268   : > { %v8467_v41 = vmul.f32 %v13256_v57, %v8466_v29 }
0x126a   : > { %v8469_v20 = vadd.f32 %v8468_v43, %v8467_v41 }
0x126c   : > { %8663 = vmatmul.mubr.f32.vlgmr.msra.gmra.mrb[86].mxu1 %v8469_v20  ;;  %8760 = vst [vmem:[#allocation2] sm:$0xff] %v8469_v20  ;;  %8734 = vmatmul.mubr.f32.vlgmr.msra.gmra.mrb[62].mxu0 %v8469_v20  ;;  %8766 = vst [vmem:[#allocation5] sm:$0xff] (!%p8974_p12), %v8469_v20 }
0x133f   : > { %v8664_v19 = vpop.f32.mrb[86].mxu1  ;;  %v8735_v61 = vpop.f32.mrb[62].mxu0 }
0x1340   : > { %v8665_v62 = vadd.f32 %v8664_v19, %v22424_v28  ;;  %v8666_v37 = vpop.f32.mrb[87].mxu1  ;;  %v8737_v38 = vpop.f32.mrb[63].mxu0  ;;  %v8736_v60 = vadd.f32 %v8735_v61, %v14680_v54 }
0x1341   : > { %v8667_v22 = vadd.f32 %v8666_v37, %v14671_v24  ;;  %v8738_v0 = vadd.f32 %v8737_v38, %v22425_v11 }
0x1342   : > { %v8972_v1 = vmul.f32 -1.442695, %v8665_v62 }
0x1343   : > { %v8973_v17 = vmul.f32 -1.442695, %v8667_v22 }
0x1344   : > { %13257 = vpow2.f32 %v8972_v1 }
0x1345   : > { %13259 = vpow2.f32 %v8973_v17 }
0x134e   : > { %v13258_v34 = vpop.eup %13257 }
0x134f   : > { %v8743_v33 = vadd.f32 1.0, %v13258_v34  ;;  %v13260_v23 = vpop.eup %13259 }
0x1350   : > { %v8749_v56 = vadd.f32 1.0, %v13260_v23 }
0x1351   : > { %13261 = vrcp.f32 %v8743_v33 }
0x1352   : > { %13263 = vrcp.f32 %v8749_v56 }
0x135b   : > { %v13262_v58 = vpop.eup %13261 }
0x135c   : > { %v8752_v28 = vmul.f32 %v13262_v58, %v8738_v0  ;;  %v13264_v39 = vpop.eup %13263 }
0x135d   : > { %v8755_v24 = vsub.f32 1.0, %v13264_v39  ;;  %v8757_v47 = vmul.f32 %v13264_v39, %v8257_v10 }
0x135e   : > { %v8753_v7 = vadd.f32 %v8752_v28, %v8736_v60 }
0x1360   : > { %13265 = vtanh.f32 %v8753_v7 }
0x1369   : > { %8765 = sbr.rel (%p8974_p12) target bundleno = 4977 (0x1371), region = 56 }
0x136a   : > { %v13266_v44 = vpop.eup %13265 }
0x136b   : > { %v8756_v21 = vmul.f32 %v13266_v44, %v8755_v24 }
0x136d   : > { %v8758_v2 = vadd.f32 %v8757_v47, %v8756_v21 }
0x136f   : > { %8759 = vst [vmem:[%s13480_s24 + $0x78] sm:$0xff] %v8758_v2  ;;  %8761 = vst [vmem:[#allocation2 + $0x8] sm:$0xff] %v8758_v2 }
0x1370   : > { %8768 = vst [vmem:[#allocation5 + $0x8] sm:$0xff] %v8758_v2 }
0x1371 PF: > { %s8982_s10 = sshll.u32 %s13442_s9, 11  ;;  %s8783_s17 = sshll.u32 %s13480_s24, 4  ;;  %s21331_s17 = int_to_ptr.vmem [resolvable:$true] %s8783_s17 }
0x1372   : > { %s21328_s18 = scalar_lea.hbm %s21405_s7, %s8982_s10  ;;  %s22430_s19 = sand.u32 1, %s13358_s28  }
0x1373   : > { %s21335_s23 = scalar_lea.sflag [#allocation4], %s22430_s19  ;;  %s13274_s20 = scalar_lea.vmem %s21331_s17, 2048 }
0x1374   : > { %p13275_p13 = scmp.ne.s32.totalorder %s21331_s17, %s13274_s20  ;;  %s13372_s21 = smov [#allocation3]  }
0x1375   : > { %s13278_s22 = sshll.u32 %s13372_s21, 4  ;;  %s13279_s22 = int_to_ptr.vmem [resolvable:$false] %s13278_s22 }
0x1376   : > { %p13276_p0 = pnand %p13275_p13, %p13461_p5  ;;  %s13280_s25 = scalar_lea.vmem %s13279_s22, 4096 }
0x1377   : > { %p13281_p3 = scmp.lt.s32.totalorder %s21331_s17, %s13279_s22  ;;  %p13282_p4 = scmp.lt.s32.totalorder %s13280_s25, %s13274_s20 }
0x1378   : > { %p13277_p1 = pneg %p13276_p0 }
0x1379   : > { %p13283_p7 = por %p13282_p4, %p13281_p3 }
0x137b   : > { %p13284_p8 = pnand %p13283_p7, %p13277_p1 }
0x137d   : > { %13287 = shalt.err (!%p13284_p8)
}
0x137e   : > { %s13288_s24 = scalar_lea.hbm %s21328_s18, 2048  ;;  %s13292_s12 = scalar_lea.hbm %s21405_s7, 4096 }
0x137f   : > { %p13289_p9 = scmp.ne.s32.totalorder %s21328_s18, %s13288_s24  ;;  %p13293_p12 = scmp.lt.u32.totalorder %s21328_s18, %s21405_s7 }
0x1380   : > { %p13294_p13 = scmp.lt.u32.totalorder %s13292_s12, %s13288_s24  ;;  %p13296_p1 = scmp.lt.u32.totalorder %s13288_s24, %s21328_s18 }
0x1381   : > { %p13290_p10 = pnand %p13289_p9, %p13461_p5 }
0x1382   : > { %p13295_p0 = por %p13294_p13, %p13293_p12 }
0x1383   : > { %p13291_p11 = pneg %p13290_p10 }
0x1384   : > { %p13297_p3 = por %p13296_p1, %p13295_p0 }
0x1386   : > { %p13298_p4 = pnand %p13297_p3, %p13291_p11 }
0x1388   : > { %13301 = shalt.err (!%p13298_p4)
}
0x1389   : > { %s13373_s20 = smov 128   ;;  %s13374_s21 = smov 8  }
0x138a   : > { %12895 = dma.vmem_to_hbm [thread:$0]  (%p13461_p5), %s21331_s17, 2048, %s21328_s18, %s21335_s23, %s13373_s20, %s13373_s20, %s13374_s21  }
0x138b   : > { %s13375_s22 = smov [#allocation5]  }
0x138c   : > { %s8796_s25 = sshll.u32 %s13375_s22, 4  ;;  %s8797_s25 = int_to_ptr.vmem [resolvable:$true] %s8796_s25 }
0x138d   : > { %s13302_s26 = scalar_lea.vmem %s8797_s25, 256  ;;  %p13309_p10 = scmp.lt.s32.totalorder %s8797_s25, %s8797_s25 }
0x138e   : > { %p13303_p7 = scmp.ne.s32.totalorder %s8797_s25, %s13302_s26  ;;  %p13310_p11 = scmp.lt.s32.totalorder %s13302_s26, %s13302_s26 }
0x1390   : > { %p13304_p8 = pnand %p13303_p7, %p193_p2  ;;  %p13311_p12 = por %p13310_p11, %p13309_p10 }
0x1392   : > { %p13305_p9 = pneg %p13304_p8 }
0x1394   : > { %p13312_p13 = pnand %p13311_p12, %p13305_p9 }
0x1396   : > { %13315 = shalt.err (!%p13312_p13)
}
0x1397   : > { %s13316_s12 = scalar_lea.hbm %s21406_s8, 256 }
0x1398   : > { %p13317_p5 = scmp.ne.s32.totalorder %s21406_s8, %s13316_s12  ;;  %p13322_p3 = scmp.lt.u32.totalorder %s13316_s12, %s21406_s8 }
0x139a   : > { %p13318_p0 = pnand %p13317_p5, %p193_p2 }
0x139c   : > { %p13319_p1 = pneg %p13318_p0 }
0x139e   : > { %p13324_p4 = pnand %p13322_p3, %p13319_p1 }
0x13a0   : > { %13327 = shalt.err (!%p13324_p4)
}
0x13a1   : > { %12897 = dma.vmem_to_hbm [thread:$0]  (%p193_p2), %s8797_s25, 256, %s21406_s8, [#allocation6], %s13373_s20, %s13373_s20, %s13374_s21  }
0x13a2   : > { %13345 = dma.done.wait (%p193_p2), [#allocation6], 256  }
0x13a3   : > { %13347 = vsyncadd (%p193_p2), [#allocation6], 4294967040 }
0x13a4 PF: > { %p12907_p7 = scmp.ge.s32.totalorder %s13366_s30, 2  ;;  %s8815_s22 = sand.u32 1, %s13354_s27  }
0x13a5   : > { %s8816_s26 = scalar_lea.sflag [#allocation4], %s8815_s22 }
0x13a6   : > { %p12902_p8 = pnand %p12907_p7, %p13465_p6 }
0x13a8   : > { %13349 = dma.done.wait (!%p12902_p8), %s8816_s26, 2048  }
0x13a9   : > { %13351 = vsyncadd (!%p12902_p8), %s8816_s26, 4294965248  ;;  %p20_p9 = scmp.ge.s32.totalorder %s13446_s11, 4   ;;  %s22431_s27 = smov %s13358_s28 }
0x13aa   : > { %s22432_s28 = smov %s13362_s29  ;;  %s22433_s29 = smov %s13457_s14 }
0x13ab   : > { %s22434_s30 = smov %s13446_s11  ;;  %22 = sbr.rel (!%p20_p9) target bundleno = 4 (0x4), region = 101 }
0x13b2   :  { %8821 = vsyncpa [#allocation4], 1 }
0x13b3   :  { %8823 = vsyncpa [#allocation4 + $0x1], 1 }
0x13b4   :  { %8824 = vsyncpa [#allocation6], 1 }

</bundles_post_ra>
